<compile_context>
chip_gen: v7x
topology: tpu7x:2x2x1
jax: 0.10.0
libtpu: 0.0.40
codegen_flags: <defaults>
</compile_context>

<pallas_src>
import numpy as np
import jax
import jax.numpy as jnp
from jax.experimental import pallas as pl
from jax.experimental.pallas import tpu as pltpu


# ----------------------------------------------------------------------------
# Fused kernel: conv1+pool -> conv2+pool -> flatten -> fc1+relu -> fc2
# Row convention for every intermediate: row = spatial_index * TB + sample.
# ----------------------------------------------------------------------------
def _backbone_kernel(xe_ref, xo_ref, w1_ref, b1_ref, w2_ref, b2_ref,
                     fc1w_ref, fc1b_ref, fc2w_ref, fc2b_ref, out_ref):
    f32, bf16 = jnp.float32, jnp.bfloat16
    TB = xe_ref.shape[1]

    def dotf(a, b):
        return jnp.dot(a, b, preferred_element_type=f32)

    # even / odd input image rows, rows ordered (row_index, sample)
    xe = xe_ref[...].reshape(14 * TB, 28).astype(bf16)   # row j*TB+t = x[t, 2j,   :]
    xo = xo_ref[...].reshape(14 * TB, 28).astype(bf16)   # row j*TB+t = x[t, 2j+1, :]

    # ---- conv1 (1->20, 5x5, valid): even and odd output rows via 2x5 accumulated
    #      Toeplitz matmuls (K=28, N=480, lanes = w*20+c).  All slices contiguous
    #      and TB-aligned.
    y1e = (dotf(xe[0 * TB:12 * TB], w1_ref[0]) +
           dotf(xo[0 * TB:12 * TB], w1_ref[1]) +
           dotf(xe[1 * TB:13 * TB], w1_ref[2]) +
           dotf(xo[1 * TB:13 * TB], w1_ref[3]) +
           dotf(xe[2 * TB:14 * TB], w1_ref[4]))          # (12*TB, 480) rows h = 2m
    y1o = (dotf(xo[0 * TB:12 * TB], w1_ref[0]) +
           dotf(xe[1 * TB:13 * TB], w1_ref[1]) +
           dotf(xo[1 * TB:13 * TB], w1_ref[2]) +
           dotf(xe[2 * TB:14 * TB], w1_ref[3]) +
           dotf(xo[2 * TB:14 * TB], w1_ref[4]))          # (12*TB, 480) rows h = 2m+1

    # ---- pool1: H pairs = elementwise max of the two blocks; W pairs = adjacent
    #      lane-group max (keep all 23 w positions, even-w selection is folded
    #      into zero rows of w2).  Bias + ReLU commute with max.
    hp = jnp.maximum(y1e, y1o)                           # (12*TB, 480)
    hw = jnp.maximum(hp[:, 0:460], hp[:, 20:480])        # (12*TB, 460)
    p1 = jnp.maximum(hw + b1_ref[...], 0.0).astype(bf16)

    # ---- conv2 (20->50, 5x5, valid): 5 accumulated matmuls, K=460, N=400.
    #      Term kh uses pooled rows kh..kh+7  ->  contiguous TB-aligned row slice.
    y2 = dotf(p1[0 * TB:8 * TB], w2_ref[0])
    for kh in range(1, 5):
        y2 = y2 + dotf(p1[kh * TB:(kh + 8) * TB], w2_ref[kh])   # (8*TB, 400) rows (h2, t)

    # ---- pool2-W (keep all 7 w2 positions; even-w2 selection folded into fc1w),
    #      conv2 bias + ReLU.
    zw = jnp.maximum(y2[:, 0:350], y2[:, 50:400])        # (8*TB, 350)
    z = jnp.maximum(zw + b2_ref[...], 0.0).astype(bf16)

    # ---- pool2-H + flatten + fc1 (800->500): 4 accumulated block matmuls.
    #      Block b = max of the two contiguous row blocks h2 = 2b, 2b+1.
    acc = None
    for b in range(4):
        zb = jnp.maximum(z[(2 * b) * TB:(2 * b + 1) * TB],
                         z[(2 * b + 1) * TB:(2 * b + 2) * TB])   # (TB, 350)
        part = dotf(zb, fc1w_ref[b])
        acc = part if acc is None else acc + part
    h = jnp.maximum(acc + fc1b_ref[...], 0.0).astype(bf16)       # (TB, 500)

    # ---- fc2 (500->50), zero-padded to 128 output lanes (lane-dense store)
    out = dotf(h, fc2w_ref[...]) + fc2b_ref[...]
    out_ref[...] = out.astype(out_ref.dtype)


# ----------------------------------------------------------------------------
# Wrapper
# ----------------------------------------------------------------------------
def backbone_forward(x_nchw, kp, *, tile=128):
    N = x_nchw.shape[0]
    assert x_nchw.shape[1:] == (1, 28, 28), "backbone expects (N,1,28,28) input"
    x = x_nchw.reshape(N, 28, 28).astype(jnp.float32)

    # batch tile: 128 fills the MXU M dim; any N works via zero padding
    TB = tile if N >= tile else max(8, -(-N // 8) * 8)
    n_pad = -(-N // TB) * TB
    if n_pad != N:
        x = jnp.concatenate([x, jnp.zeros((n_pad - N, 28, 28), x.dtype)], axis=0)

    # Parity-split of the image rows + (row, sample) ordering, done once by XLA.
    xe = jnp.transpose(x[:, 0::2, :], (1, 0, 2))   # (14, n_pad, 28)
    xo = jnp.transpose(x[:, 1::2, :], (1, 0, 2))   # (14, n_pad, 28)

    full2 = lambda i: (0, 0)
    full3 = lambda i: (0, 0, 0)

    out = pl.pallas_call(
        _backbone_kernel,
        out_shape=jax.ShapeDtypeStruct((n_pad, 128), jnp.float32),
        grid=(n_pad // TB,),
        in_specs=[
            pl.BlockSpec((14, TB, 28), lambda i: (0, i, 0)),   # even input rows
            pl.BlockSpec((14, TB, 28), lambda i: (0, i, 0)),   # odd input rows
            pl.BlockSpec((5, 28, 480), full3),                 # conv1 Toeplitz (per kh), bf16
            pl.BlockSpec((1, 460), full2),                     # conv1 bias per (w,c) lane
            pl.BlockSpec((5, 460, 400), full3),                # conv2 Toeplitz (per kh), bf16
            pl.BlockSpec((1, 350), full2),                     # conv2 bias per (w2,co) lane
            pl.BlockSpec((4, 350, 500), full3),                # fc1 blocks (per h2p), bf16
            pl.BlockSpec((1, 500), full2),                     # fc1 bias
            pl.BlockSpec((500, 128), full2),                   # fc2 weight (padded), bf16
            pl.BlockSpec((1, 128), full2),                     # fc2 bias (padded)
        ],
        out_specs=pl.BlockSpec((TB, 128), lambda i: (i, 0)),
        compiler_params=pltpu.CompilerParams(
            dimension_semantics=("parallel",),
            vmem_limit_bytes=48 * 1024 * 1024,
        ),
    )(xe, xo, kp["w1"], kp["b1"], kp["w2"], kp["b2"],
      kp["fc1w"], kp["fc1b"], kp["fc2w"], kp["fc2b"])

    return out[:N, :50]


# ----------------------------------------------------------------------------
# Parameters (PyTorch-like init) and one-time kernel-ready prep
# ----------------------------------------------------------------------------
def init_params(key):
    ks = jax.random.split(key, 8)

    def u(k, shape, fan_in):
        bound = 1.0 / np.sqrt(fan_in)
        return jax.random.uniform(k, shape, jnp.float32, -bound, bound)

    return {
        "conv1_w": u(ks[0], (20, 1, 5, 5), 1 * 5 * 5),    # (Cout,Cin,KH,KW)
        "conv1_b": u(ks[1], (20,), 1 * 5 * 5),
        "conv2_w": u(ks[2], (50, 20, 5, 5), 20 * 5 * 5),
        "conv2_b": u(ks[3], (50,), 20 * 5 * 5),
        "fc1_w":   u(ks[4], (500, 800), 800),             # (out,in)
        "fc1_b":   u(ks[5], (500,), 800),
        "fc2_w":   u(ks[6], (50, 500), 500),
        "fc2_b":   u(ks[7], (50,), 500),
    }


def prepare_kernel_params(params):
    c1w = np.asarray(params["conv1_w"], np.float32)
    c1b = np.asarray(params["conv1_b"], np.float32)
    c2w = np.asarray(params["conv2_w"], np.float32)
    c2b = np.asarray(params["conv2_b"], np.float32)
    f1w = np.asarray(params["fc1_w"], np.float32)
    f1b = np.asarray(params["fc1_b"], np.float32)
    f2w = np.asarray(params["fc2_w"], np.float32)
    f2b = np.asarray(params["fc2_b"], np.float32)

    # conv1: per-kh Toeplitz over W. rows = w' (0..27), cols = (w, c) = w*20+c
    W1 = np.zeros((5, 28, 24, 20), np.float32)
    for kh in range(5):
        for kw in range(5):
            for w in range(24):
                W1[kh, w + kw, w, :] = c1w[:, 0, kh, kw]
    w1 = W1.reshape(5, 28, 480)

    # conv1 bias per pool1 lane (w_pair 0..22, c)
    b1 = np.tile(c1b, 23)[None, :]                       # (1, 460)

    # conv2: per-kh weight over the 460-lane pool1 layout; only even w lanes
    # (= pooled positions w2+kw) carry weight, odd lanes get zero rows.
    W2 = np.zeros((5, 23, 20, 8, 50), np.float32)
    for kh in range(5):
        for kw in range(5):
            for w2 in range(8):
                W2[kh, 2 * (w2 + kw), :, w2, :] = c2w[:, :, kh, kw].T   # (ci, co)
    w2 = W2.reshape(5, 460, 400)

    # conv2 bias per pool2 lane (w2_pair 0..6, co)
    b2 = np.tile(c2b, 7)[None, :]                        # (1, 350)

    # fc1: one 350x500 block per pooled h2 row (b = h2p).  Only even w2 lanes are
    # non-zero; PyTorch's NCHW flatten order (co*16 + h2p*4 + w2p) is absorbed.
    F1 = np.zeros((4, 7, 50, 500), np.float32)
    for b in range(4):
        for w2p in range(4):
            cols = np.arange(50) * 16 + b * 4 + w2p
            F1[b, 2 * w2p] = f1w[:, cols].T              # (50, 500)
    fc1w = F1.reshape(4, 350, 500)

    # fc2: transpose and zero-pad to 128 output lanes (lane-dense store)
    fc2w = np.zeros((500, 128), np.float32)
    fc2w[:, :50] = f2w.T
    fc2b = np.zeros((1, 128), np.float32)
    fc2b[0, :50] = f2b

    return {
        "w1":   jnp.asarray(w1, jnp.bfloat16),
        "b1":   jnp.asarray(b1, jnp.float32),
        "w2":   jnp.asarray(w2, jnp.bfloat16),
        "b2":   jnp.asarray(b2, jnp.float32),
        "fc1w": jnp.asarray(fc1w, jnp.bfloat16),
        "fc1b": jnp.asarray(f1b[None, :], jnp.float32),
        "fc2w": jnp.asarray(fc2w, jnp.bfloat16),
        "fc2b": jnp.asarray(fc2b, jnp.float32),
    }


# ----------------------------------------------------------------------------
# Pure-JAX reference (f32) for a sanity check
# ----------------------------------------------------------------------------
def reference_forward(x_nchw, params):
    x = jnp.transpose(x_nchw, (0, 2, 3, 1)).astype(jnp.float32)       # NHWC
    w1 = jnp.transpose(params["conv1_w"], (2, 3, 1, 0))
    y = jax.lax.conv_general_dilated(x, w1, (1, 1), "VALID",
                                     dimension_numbers=("NHWC", "HWIO", "NHWC"))
    y = jax.nn.relu(y + params["conv1_b"])
    y = jax.lax.reduce_window(y, -jnp.inf, jax.lax.max, (1, 2, 2, 1), (1, 2, 2, 1), "VALID")
    w2 = jnp.transpose(params["conv2_w"], (2, 3, 1, 0))
    y = jax.lax.conv_general_dilated(y, w2, (1, 1), "VALID",
                                     dimension_numbers=("NHWC", "HWIO", "NHWC"))
    y = jax.nn.relu(y + params["conv2_b"])
    y = jax.lax.reduce_window(y, -jnp.inf, jax.lax.max, (1, 2, 2, 1), (1, 2, 2, 1), "VALID")
    y = jnp.transpose(y, (0, 3, 1, 2)).reshape(x.shape[0], 800)       # PyTorch NCHW flatten
    h = jax.nn.relu(y @ params["fc1_w"].T + params["fc1_b"])
    return h @ params["fc2_w"].T + params["fc2_b"]


if __name__ == "__main__":
    key = jax.random.PRNGKey(0)
    k_params, k_x = jax.random.split(key)
    params = init_params(k_params)
    kparams = prepare_kernel_params(params)

    # 28x28 single-channel input is required by the module (4*4*50 flatten).
    x = jax.random.normal(k_x, (2, 1, 28, 28), dtype=jnp.float32)     # NCHW like PyTorch

    fwd = jax.jit(lambda xx: backbone_forward(xx, kparams))
    out = fwd(x)
    out = jax.block_until_ready(out)
    assert out.shape == (2, 50) and out.dtype == jnp.float32

    # Numerical sanity check vs. f32 reference (bf16 matmul inputs -> small drift).
    ref = reference_forward(x, params)
    err = float(jnp.max(jnp.abs(out - ref)))
    assert err < 5e-2, f"kernel deviates from reference: max abs err {err}"

    print("KERNEL_OK")
</pallas_src>

<mosaic_0001>
module attributes {stable_mosaic.version = 11 : i64} {
  func.func @_backbone_kernel(%arg0: i32, %arg1: memref<14x8x28xf32, #tpu.memory_space<vmem>>, %arg2: memref<14x8x28xf32, #tpu.memory_space<vmem>>, %arg3: memref<5x28x480xbf16, #tpu.memory_space<vmem>>, %arg4: memref<1x460xf32, #tpu.memory_space<vmem>>, %arg5: memref<5x460x400xbf16, #tpu.memory_space<vmem>>, %arg6: memref<1x350xf32, #tpu.memory_space<vmem>>, %arg7: memref<4x350x500xbf16, #tpu.memory_space<vmem>>, %arg8: memref<1x500xf32, #tpu.memory_space<vmem>>, %arg9: memref<500x128xbf16, #tpu.memory_space<vmem>>, %arg10: memref<1x128xf32, #tpu.memory_space<vmem>>, %arg11: memref<8x128xf32, #tpu.memory_space<vmem>>) attributes {dimension_semantics = [#tpu.dimension_semantics<parallel>], iteration_bounds = array<i64: 1>, scalar_prefetch = 0 : i64, scratch_operands = 0 : i64, tpu.core_type = #tpu.core_type<tc>, window_params = [{transform_indices = @transform_0, window_bounds = array<i64: 14, 8, 28>}, {transform_indices = @transform_1, window_bounds = array<i64: 14, 8, 28>}, {pipeline_mode = #tpu.pipeline_mode<synchronous>, transform_indices = @transform_2, window_bounds = array<i64: 5, 28, 480>}, {pipeline_mode = #tpu.pipeline_mode<synchronous>, transform_indices = @transform_3, window_bounds = array<i64: 1, 460>}, {pipeline_mode = #tpu.pipeline_mode<synchronous>, transform_indices = @transform_4, window_bounds = array<i64: 5, 460, 400>}, {pipeline_mode = #tpu.pipeline_mode<synchronous>, transform_indices = @transform_5, window_bounds = array<i64: 1, 350>}, {pipeline_mode = #tpu.pipeline_mode<synchronous>, transform_indices = @transform_6, window_bounds = array<i64: 4, 350, 500>}, {pipeline_mode = #tpu.pipeline_mode<synchronous>, transform_indices = @transform_7, window_bounds = array<i64: 1, 500>}, {pipeline_mode = #tpu.pipeline_mode<synchronous>, transform_indices = @transform_8, window_bounds = array<i64: 500, 128>}, {pipeline_mode = #tpu.pipeline_mode<synchronous>, transform_indices = @transform_9, window_bounds = array<i64: 1, 128>}, {transform_indices = @transform_10, window_bounds = array<i64: 8, 128>}]} {
    %c0 = arith.constant 0 : index
    %c0_0 = arith.constant 0 : index
    %c0_1 = arith.constant 0 : index
    %0 = vector.load %arg1[%c0, %c0_0, %c0_1] : memref<14x8x28xf32, #tpu.memory_space<vmem>>, vector<14x8x28xf32>
    %1 = vector.shape_cast %0 : vector<14x8x28xf32> to vector<112x28xf32>
    %2 = arith.truncf %1 : vector<112x28xf32> to vector<112x28xbf16>
    %c0_2 = arith.constant 0 : index
    %c0_3 = arith.constant 0 : index
    %c0_4 = arith.constant 0 : index
    %3 = vector.load %arg2[%c0_2, %c0_3, %c0_4] : memref<14x8x28xf32, #tpu.memory_space<vmem>>, vector<14x8x28xf32>
    %4 = vector.shape_cast %3 : vector<14x8x28xf32> to vector<112x28xf32>
    %5 = arith.truncf %4 : vector<112x28xf32> to vector<112x28xbf16>
    %6 = vector.extract_strided_slice %2 {offsets = [0, 0], sizes = [96, 28], strides = [1, 1]} : vector<112x28xbf16> to vector<96x28xbf16>
    %c0_5 = arith.constant 0 : index
    %c0_6 = arith.constant 0 : index
    %c0_7 = arith.constant 0 : index
    %7 = vector.load %arg3[%c0_5, %c0_6, %c0_7] : memref<5x28x480xbf16, #tpu.memory_space<vmem>>, vector<1x28x480xbf16>
    %8 = vector.shape_cast %7 : vector<1x28x480xbf16> to vector<28x480xbf16>
    %cst = arith.constant dense<0.000000e+00> : vector<96x480xf32>
    %9 = tpu.matmul %6, %8, %cst {dimension_numbers = #tpu.dot_dimension_numbers<[1], [0], [0], [1], [0, 0, 1, 1], [], []>} : vector<96x28xbf16>, vector<28x480xbf16>, vector<96x480xf32> -> vector<96x480xf32>
    %10 = vector.extract_strided_slice %5 {offsets = [0, 0], sizes = [96, 28], strides = [1, 1]} : vector<112x28xbf16> to vector<96x28xbf16>
    %c1 = arith.constant 1 : index
    %c0_8 = arith.constant 0 : index
    %c0_9 = arith.constant 0 : index
    %11 = vector.load %arg3[%c1, %c0_8, %c0_9] : memref<5x28x480xbf16, #tpu.memory_space<vmem>>, vector<1x28x480xbf16>
    %12 = vector.shape_cast %11 : vector<1x28x480xbf16> to vector<28x480xbf16>
    %cst_10 = arith.constant dense<0.000000e+00> : vector<96x480xf32>
    %13 = tpu.matmul %10, %12, %cst_10 {dimension_numbers = #tpu.dot_dimension_numbers<[1], [0], [0], [1], [0, 0, 1, 1], [], []>} : vector<96x28xbf16>, vector<28x480xbf16>, vector<96x480xf32> -> vector<96x480xf32>
    %14 = arith.addf %9, %13 : vector<96x480xf32>
    %15 = vector.extract_strided_slice %2 {offsets = [8, 0], sizes = [96, 28], strides = [1, 1]} : vector<112x28xbf16> to vector<96x28xbf16>
    %c2 = arith.constant 2 : index
    %c0_11 = arith.constant 0 : index
    %c0_12 = arith.constant 0 : index
    %16 = vector.load %arg3[%c2, %c0_11, %c0_12] : memref<5x28x480xbf16, #tpu.memory_space<vmem>>, vector<1x28x480xbf16>
    %17 = vector.shape_cast %16 : vector<1x28x480xbf16> to vector<28x480xbf16>
    %cst_13 = arith.constant dense<0.000000e+00> : vector<96x480xf32>
    %18 = tpu.matmul %15, %17, %cst_13 {dimension_numbers = #tpu.dot_dimension_numbers<[1], [0], [0], [1], [0, 0, 1, 1], [], []>} : vector<96x28xbf16>, vector<28x480xbf16>, vector<96x480xf32> -> vector<96x480xf32>
    %19 = arith.addf %14, %18 : vector<96x480xf32>
    %20 = vector.extract_strided_slice %5 {offsets = [8, 0], sizes = [96, 28], strides = [1, 1]} : vector<112x28xbf16> to vector<96x28xbf16>
    %c3 = arith.constant 3 : index
    %c0_14 = arith.constant 0 : index
    %c0_15 = arith.constant 0 : index
    %21 = vector.load %arg3[%c3, %c0_14, %c0_15] : memref<5x28x480xbf16, #tpu.memory_space<vmem>>, vector<1x28x480xbf16>
    %22 = vector.shape_cast %21 : vector<1x28x480xbf16> to vector<28x480xbf16>
    %cst_16 = arith.constant dense<0.000000e+00> : vector<96x480xf32>
    %23 = tpu.matmul %20, %22, %cst_16 {dimension_numbers = #tpu.dot_dimension_numbers<[1], [0], [0], [1], [0, 0, 1, 1], [], []>} : vector<96x28xbf16>, vector<28x480xbf16>, vector<96x480xf32> -> vector<96x480xf32>
    %24 = arith.addf %19, %23 : vector<96x480xf32>
    %25 = vector.extract_strided_slice %2 {offsets = [16, 0], sizes = [96, 28], strides = [1, 1]} : vector<112x28xbf16> to vector<96x28xbf16>
    %c4 = arith.constant 4 : index
    %c0_17 = arith.constant 0 : index
    %c0_18 = arith.constant 0 : index
    %26 = vector.load %arg3[%c4, %c0_17, %c0_18] : memref<5x28x480xbf16, #tpu.memory_space<vmem>>, vector<1x28x480xbf16>
    %27 = vector.shape_cast %26 : vector<1x28x480xbf16> to vector<28x480xbf16>
    %cst_19 = arith.constant dense<0.000000e+00> : vector<96x480xf32>
    %28 = tpu.matmul %25, %27, %cst_19 {dimension_numbers = #tpu.dot_dimension_numbers<[1], [0], [0], [1], [0, 0, 1, 1], [], []>} : vector<96x28xbf16>, vector<28x480xbf16>, vector<96x480xf32> -> vector<96x480xf32>
    %29 = arith.addf %24, %28 : vector<96x480xf32>
    %30 = vector.extract_strided_slice %5 {offsets = [0, 0], sizes = [96, 28], strides = [1, 1]} : vector<112x28xbf16> to vector<96x28xbf16>
    %c0_20 = arith.constant 0 : index
    %c0_21 = arith.constant 0 : index
    %c0_22 = arith.constant 0 : index
    %31 = vector.load %arg3[%c0_20, %c0_21, %c0_22] : memref<5x28x480xbf16, #tpu.memory_space<vmem>>, vector<1x28x480xbf16>
    %32 = vector.shape_cast %31 : vector<1x28x480xbf16> to vector<28x480xbf16>
    %cst_23 = arith.constant dense<0.000000e+00> : vector<96x480xf32>
    %33 = tpu.matmul %30, %32, %cst_23 {dimension_numbers = #tpu.dot_dimension_numbers<[1], [0], [0], [1], [0, 0, 1, 1], [], []>} : vector<96x28xbf16>, vector<28x480xbf16>, vector<96x480xf32> -> vector<96x480xf32>
    %34 = vector.extract_strided_slice %2 {offsets = [8, 0], sizes = [96, 28], strides = [1, 1]} : vector<112x28xbf16> to vector<96x28xbf16>
    %c1_24 = arith.constant 1 : index
    %c0_25 = arith.constant 0 : index
    %c0_26 = arith.constant 0 : index
    %35 = vector.load %arg3[%c1_24, %c0_25, %c0_26] : memref<5x28x480xbf16, #tpu.memory_space<vmem>>, vector<1x28x480xbf16>
    %36 = vector.shape_cast %35 : vector<1x28x480xbf16> to vector<28x480xbf16>
    %cst_27 = arith.constant dense<0.000000e+00> : vector<96x480xf32>
    %37 = tpu.matmul %34, %36, %cst_27 {dimension_numbers = #tpu.dot_dimension_numbers<[1], [0], [0], [1], [0, 0, 1, 1], [], []>} : vector<96x28xbf16>, vector<28x480xbf16>, vector<96x480xf32> -> vector<96x480xf32>
    %38 = arith.addf %33, %37 : vector<96x480xf32>
    %39 = vector.extract_strided_slice %5 {offsets = [8, 0], sizes = [96, 28], strides = [1, 1]} : vector<112x28xbf16> to vector<96x28xbf16>
    %c2_28 = arith.constant 2 : index
    %c0_29 = arith.constant 0 : index
    %c0_30 = arith.constant 0 : index
    %40 = vector.load %arg3[%c2_28, %c0_29, %c0_30] : memref<5x28x480xbf16, #tpu.memory_space<vmem>>, vector<1x28x480xbf16>
    %41 = vector.shape_cast %40 : vector<1x28x480xbf16> to vector<28x480xbf16>
    %cst_31 = arith.constant dense<0.000000e+00> : vector<96x480xf32>
    %42 = tpu.matmul %39, %41, %cst_31 {dimension_numbers = #tpu.dot_dimension_numbers<[1], [0], [0], [1], [0, 0, 1, 1], [], []>} : vector<96x28xbf16>, vector<28x480xbf16>, vector<96x480xf32> -> vector<96x480xf32>
    %43 = arith.addf %38, %42 : vector<96x480xf32>
    %44 = vector.extract_strided_slice %2 {offsets = [16, 0], sizes = [96, 28], strides = [1, 1]} : vector<112x28xbf16> to vector<96x28xbf16>
    %c3_32 = arith.constant 3 : index
    %c0_33 = arith.constant 0 : index
    %c0_34 = arith.constant 0 : index
    %45 = vector.load %arg3[%c3_32, %c0_33, %c0_34] : memref<5x28x480xbf16, #tpu.memory_space<vmem>>, vector<1x28x480xbf16>
    %46 = vector.shape_cast %45 : vector<1x28x480xbf16> to vector<28x480xbf16>
    %cst_35 = arith.constant dense<0.000000e+00> : vector<96x480xf32>
    %47 = tpu.matmul %44, %46, %cst_35 {dimension_numbers = #tpu.dot_dimension_numbers<[1], [0], [0], [1], [0, 0, 1, 1], [], []>} : vector<96x28xbf16>, vector<28x480xbf16>, vector<96x480xf32> -> vector<96x480xf32>
    %48 = arith.addf %43, %47 : vector<96x480xf32>
    %49 = vector.extract_strided_slice %5 {offsets = [16, 0], sizes = [96, 28], strides = [1, 1]} : vector<112x28xbf16> to vector<96x28xbf16>
    %c4_36 = arith.constant 4 : index
    %c0_37 = arith.constant 0 : index
    %c0_38 = arith.constant 0 : index
    %50 = vector.load %arg3[%c4_36, %c0_37, %c0_38] : memref<5x28x480xbf16, #tpu.memory_space<vmem>>, vector<1x28x480xbf16>
    %51 = vector.shape_cast %50 : vector<1x28x480xbf16> to vector<28x480xbf16>
    %cst_39 = arith.constant dense<0.000000e+00> : vector<96x480xf32>
    %52 = tpu.matmul %49, %51, %cst_39 {dimension_numbers = #tpu.dot_dimension_numbers<[1], [0], [0], [1], [0, 0, 1, 1], [], []>} : vector<96x28xbf16>, vector<28x480xbf16>, vector<96x480xf32> -> vector<96x480xf32>
    %53 = arith.addf %48, %52 : vector<96x480xf32>
    %54 = arith.maximumf %29, %53 : vector<96x480xf32>
    %55 = vector.extract_strided_slice %54 {offsets = [0, 0], sizes = [96, 460], strides = [1, 1]} : vector<96x480xf32> to vector<96x460xf32>
    %56 = vector.extract_strided_slice %54 {offsets = [0, 20], sizes = [96, 460], strides = [1, 1]} : vector<96x480xf32> to vector<96x460xf32>
    %57 = arith.maximumf %55, %56 : vector<96x460xf32>
    %c0_40 = arith.constant 0 : index
    %c0_41 = arith.constant 0 : index
    %58 = vector.load %arg4[%c0_40, %c0_41] : memref<1x460xf32, #tpu.memory_space<vmem>>, vector<1x460xf32>
    %59 = vector.broadcast %58 : vector<1x460xf32> to vector<96x460xf32>
    %60 = arith.addf %57, %59 : vector<96x460xf32>
    %cst_42 = arith.constant 0.000000e+00 : f32
    %61 = vector.broadcast %cst_42 : f32 to vector<96x460xf32>
    %62 = arith.maximumf %60, %61 : vector<96x460xf32>
    %63 = arith.truncf %62 : vector<96x460xf32> to vector<96x460xbf16>
    %64 = vector.extract_strided_slice %63 {offsets = [0, 0], sizes = [64, 460], strides = [1, 1]} : vector<96x460xbf16> to vector<64x460xbf16>
    %c0_43 = arith.constant 0 : index
    %c0_44 = arith.constant 0 : index
    %c0_45 = arith.constant 0 : index
    %65 = vector.load %arg5[%c0_43, %c0_44, %c0_45] : memref<5x460x400xbf16, #tpu.memory_space<vmem>>, vector<1x460x400xbf16>
    %66 = vector.shape_cast %65 : vector<1x460x400xbf16> to vector<460x400xbf16>
    %cst_46 = arith.constant dense<0.000000e+00> : vector<64x400xf32>
    %67 = tpu.matmul %64, %66, %cst_46 {dimension_numbers = #tpu.dot_dimension_numbers<[1], [0], [0], [1], [0, 0, 1, 1], [], []>} : vector<64x460xbf16>, vector<460x400xbf16>, vector<64x400xf32> -> vector<64x400xf32>
    %68 = vector.extract_strided_slice %63 {offsets = [8, 0], sizes = [64, 460], strides = [1, 1]} : vector<96x460xbf16> to vector<64x460xbf16>
    %c1_47 = arith.constant 1 : index
    %c0_48 = arith.constant 0 : index
    %c0_49 = arith.constant 0 : index
    %69 = vector.load %arg5[%c1_47, %c0_48, %c0_49] : memref<5x460x400xbf16, #tpu.memory_space<vmem>>, vector<1x460x400xbf16>
    %70 = vector.shape_cast %69 : vector<1x460x400xbf16> to vector<460x400xbf16>
    %cst_50 = arith.constant dense<0.000000e+00> : vector<64x400xf32>
    %71 = tpu.matmul %68, %70, %cst_50 {dimension_numbers = #tpu.dot_dimension_numbers<[1], [0], [0], [1], [0, 0, 1, 1], [], []>} : vector<64x460xbf16>, vector<460x400xbf16>, vector<64x400xf32> -> vector<64x400xf32>
    %72 = arith.addf %67, %71 : vector<64x400xf32>
    %73 = vector.extract_strided_slice %63 {offsets = [16, 0], sizes = [64, 460], strides = [1, 1]} : vector<96x460xbf16> to vector<64x460xbf16>
    %c2_51 = arith.constant 2 : index
    %c0_52 = arith.constant 0 : index
    %c0_53 = arith.constant 0 : index
    %74 = vector.load %arg5[%c2_51, %c0_52, %c0_53] : memref<5x460x400xbf16, #tpu.memory_space<vmem>>, vector<1x460x400xbf16>
    %75 = vector.shape_cast %74 : vector<1x460x400xbf16> to vector<460x400xbf16>
    %cst_54 = arith.constant dense<0.000000e+00> : vector<64x400xf32>
    %76 = tpu.matmul %73, %75, %cst_54 {dimension_numbers = #tpu.dot_dimension_numbers<[1], [0], [0], [1], [0, 0, 1, 1], [], []>} : vector<64x460xbf16>, vector<460x400xbf16>, vector<64x400xf32> -> vector<64x400xf32>
    %77 = arith.addf %72, %76 : vector<64x400xf32>
    %78 = vector.extract_strided_slice %63 {offsets = [24, 0], sizes = [64, 460], strides = [1, 1]} : vector<96x460xbf16> to vector<64x460xbf16>
    %c3_55 = arith.constant 3 : index
    %c0_56 = arith.constant 0 : index
    %c0_57 = arith.constant 0 : index
    %79 = vector.load %arg5[%c3_55, %c0_56, %c0_57] : memref<5x460x400xbf16, #tpu.memory_space<vmem>>, vector<1x460x400xbf16>
    %80 = vector.shape_cast %79 : vector<1x460x400xbf16> to vector<460x400xbf16>
    %cst_58 = arith.constant dense<0.000000e+00> : vector<64x400xf32>
    %81 = tpu.matmul %78, %80, %cst_58 {dimension_numbers = #tpu.dot_dimension_numbers<[1], [0], [0], [1], [0, 0, 1, 1], [], []>} : vector<64x460xbf16>, vector<460x400xbf16>, vector<64x400xf32> -> vector<64x400xf32>
    %82 = arith.addf %77, %81 : vector<64x400xf32>
    %83 = vector.extract_strided_slice %63 {offsets = [32, 0], sizes = [64, 460], strides = [1, 1]} : vector<96x460xbf16> to vector<64x460xbf16>
    %c4_59 = arith.constant 4 : index
    %c0_60 = arith.constant 0 : index
    %c0_61 = arith.constant 0 : index
    %84 = vector.load %arg5[%c4_59, %c0_60, %c0_61] : memref<5x460x400xbf16, #tpu.memory_space<vmem>>, vector<1x460x400xbf16>
    %85 = vector.shape_cast %84 : vector<1x460x400xbf16> to vector<460x400xbf16>
    %cst_62 = arith.constant dense<0.000000e+00> : vector<64x400xf32>
    %86 = tpu.matmul %83, %85, %cst_62 {dimension_numbers = #tpu.dot_dimension_numbers<[1], [0], [0], [1], [0, 0, 1, 1], [], []>} : vector<64x460xbf16>, vector<460x400xbf16>, vector<64x400xf32> -> vector<64x400xf32>
    %87 = arith.addf %82, %86 : vector<64x400xf32>
    %88 = vector.extract_strided_slice %87 {offsets = [0, 0], sizes = [64, 350], strides = [1, 1]} : vector<64x400xf32> to vector<64x350xf32>
    %89 = vector.extract_strided_slice %87 {offsets = [0, 50], sizes = [64, 350], strides = [1, 1]} : vector<64x400xf32> to vector<64x350xf32>
    %90 = arith.maximumf %88, %89 : vector<64x350xf32>
    %c0_63 = arith.constant 0 : index
    %c0_64 = arith.constant 0 : index
    %91 = vector.load %arg6[%c0_63, %c0_64] : memref<1x350xf32, #tpu.memory_space<vmem>>, vector<1x350xf32>
    %92 = vector.broadcast %91 : vector<1x350xf32> to vector<64x350xf32>
    %93 = arith.addf %90, %92 : vector<64x350xf32>
    %cst_65 = arith.constant 0.000000e+00 : f32
    %94 = vector.broadcast %cst_65 : f32 to vector<64x350xf32>
    %95 = arith.maximumf %93, %94 : vector<64x350xf32>
    %96 = arith.truncf %95 : vector<64x350xf32> to vector<64x350xbf16>
    %97 = vector.extract_strided_slice %96 {offsets = [0, 0], sizes = [8, 350], strides = [1, 1]} : vector<64x350xbf16> to vector<8x350xbf16>
    %98 = vector.extract_strided_slice %96 {offsets = [8, 0], sizes = [8, 350], strides = [1, 1]} : vector<64x350xbf16> to vector<8x350xbf16>
    %99 = arith.maximumf %97, %98 : vector<8x350xbf16>
    %c0_66 = arith.constant 0 : index
    %c0_67 = arith.constant 0 : index
    %c0_68 = arith.constant 0 : index
    %100 = vector.load %arg7[%c0_66, %c0_67, %c0_68] : memref<4x350x500xbf16, #tpu.memory_space<vmem>>, vector<1x350x500xbf16>
    %101 = vector.shape_cast %100 : vector<1x350x500xbf16> to vector<350x500xbf16>
    %cst_69 = arith.constant dense<0.000000e+00> : vector<8x500xf32>
    %102 = tpu.matmul %99, %101, %cst_69 {dimension_numbers = #tpu.dot_dimension_numbers<[1], [0], [0], [1], [0, 0, 1, 1], [], []>} : vector<8x350xbf16>, vector<350x500xbf16>, vector<8x500xf32> -> vector<8x500xf32>
    %103 = vector.extract_strided_slice %96 {offsets = [16, 0], sizes = [8, 350], strides = [1, 1]} : vector<64x350xbf16> to vector<8x350xbf16>
    %104 = vector.extract_strided_slice %96 {offsets = [24, 0], sizes = [8, 350], strides = [1, 1]} : vector<64x350xbf16> to vector<8x350xbf16>
    %105 = arith.maximumf %103, %104 : vector<8x350xbf16>
    %c1_70 = arith.constant 1 : index
    %c0_71 = arith.constant 0 : index
    %c0_72 = arith.constant 0 : index
    %106 = vector.load %arg7[%c1_70, %c0_71, %c0_72] : memref<4x350x500xbf16, #tpu.memory_space<vmem>>, vector<1x350x500xbf16>
    %107 = vector.shape_cast %106 : vector<1x350x500xbf16> to vector<350x500xbf16>
    %cst_73 = arith.constant dense<0.000000e+00> : vector<8x500xf32>
    %108 = tpu.matmul %105, %107, %cst_73 {dimension_numbers = #tpu.dot_dimension_numbers<[1], [0], [0], [1], [0, 0, 1, 1], [], []>} : vector<8x350xbf16>, vector<350x500xbf16>, vector<8x500xf32> -> vector<8x500xf32>
    %109 = arith.addf %102, %108 : vector<8x500xf32>
    %110 = vector.extract_strided_slice %96 {offsets = [32, 0], sizes = [8, 350], strides = [1, 1]} : vector<64x350xbf16> to vector<8x350xbf16>
    %111 = vector.extract_strided_slice %96 {offsets = [40, 0], sizes = [8, 350], strides = [1, 1]} : vector<64x350xbf16> to vector<8x350xbf16>
    %112 = arith.maximumf %110, %111 : vector<8x350xbf16>
    %c2_74 = arith.constant 2 : index
    %c0_75 = arith.constant 0 : index
    %c0_76 = arith.constant 0 : index
    %113 = vector.load %arg7[%c2_74, %c0_75, %c0_76] : memref<4x350x500xbf16, #tpu.memory_space<vmem>>, vector<1x350x500xbf16>
    %114 = vector.shape_cast %113 : vector<1x350x500xbf16> to vector<350x500xbf16>
    %cst_77 = arith.constant dense<0.000000e+00> : vector<8x500xf32>
    %115 = tpu.matmul %112, %114, %cst_77 {dimension_numbers = #tpu.dot_dimension_numbers<[1], [0], [0], [1], [0, 0, 1, 1], [], []>} : vector<8x350xbf16>, vector<350x500xbf16>, vector<8x500xf32> -> vector<8x500xf32>
    %116 = arith.addf %109, %115 : vector<8x500xf32>
    %117 = vector.extract_strided_slice %96 {offsets = [48, 0], sizes = [8, 350], strides = [1, 1]} : vector<64x350xbf16> to vector<8x350xbf16>
    %118 = vector.extract_strided_slice %96 {offsets = [56, 0], sizes = [8, 350], strides = [1, 1]} : vector<64x350xbf16> to vector<8x350xbf16>
    %119 = arith.maximumf %117, %118 : vector<8x350xbf16>
    %c3_78 = arith.constant 3 : index
    %c0_79 = arith.constant 0 : index
    %c0_80 = arith.constant 0 : index
    %120 = vector.load %arg7[%c3_78, %c0_79, %c0_80] : memref<4x350x500xbf16, #tpu.memory_space<vmem>>, vector<1x350x500xbf16>
    %121 = vector.shape_cast %120 : vector<1x350x500xbf16> to vector<350x500xbf16>
    %cst_81 = arith.constant dense<0.000000e+00> : vector<8x500xf32>
    %122 = tpu.matmul %119, %121, %cst_81 {dimension_numbers = #tpu.dot_dimension_numbers<[1], [0], [0], [1], [0, 0, 1, 1], [], []>} : vector<8x350xbf16>, vector<350x500xbf16>, vector<8x500xf32> -> vector<8x500xf32>
    %123 = arith.addf %116, %122 : vector<8x500xf32>
    %c0_82 = arith.constant 0 : index
    %c0_83 = arith.constant 0 : index
    %124 = vector.load %arg8[%c0_82, %c0_83] : memref<1x500xf32, #tpu.memory_space<vmem>>, vector<1x500xf32>
    %125 = vector.broadcast %124 : vector<1x500xf32> to vector<8x500xf32>
    %126 = arith.addf %123, %125 : vector<8x500xf32>
    %cst_84 = arith.constant 0.000000e+00 : f32
    %127 = vector.broadcast %cst_84 : f32 to vector<8x500xf32>
    %128 = arith.maximumf %126, %127 : vector<8x500xf32>
    %129 = arith.truncf %128 : vector<8x500xf32> to vector<8x500xbf16>
    %c0_85 = arith.constant 0 : index
    %c0_86 = arith.constant 0 : index
    %130 = vector.load %arg9[%c0_85, %c0_86] : memref<500x128xbf16, #tpu.memory_space<vmem>>, vector<500x128xbf16>
    %cst_87 = arith.constant dense<0.000000e+00> : vector<8x128xf32>
    %131 = tpu.matmul %129, %130, %cst_87 {dimension_numbers = #tpu.dot_dimension_numbers<[1], [0], [0], [1], [0, 0, 1, 1], [], []>} : vector<8x500xbf16>, vector<500x128xbf16>, vector<8x128xf32> -> vector<8x128xf32>
    %c0_88 = arith.constant 0 : index
    %c0_89 = arith.constant 0 : index
    %132 = vector.load %arg10[%c0_88, %c0_89] : memref<1x128xf32, #tpu.memory_space<vmem>>, vector<1x128xf32>
    %133 = vector.broadcast %132 : vector<1x128xf32> to vector<8x128xf32>
    %134 = arith.addf %131, %133 : vector<8x128xf32>
    %c0_90 = arith.constant 0 : index
    %c0_91 = arith.constant 0 : index
    %135 = vector.load %arg11[%c0_90, %c0_91] : memref<8x128xf32, #tpu.memory_space<vmem>>, vector<8x128xf32>
    tpu.vector_store %arg11[%c0_90, %c0_91], %134 {strides = array<i32>} : memref<8x128xf32, #tpu.memory_space<vmem>>, vector<8x128xf32>,
    return
  }
  func.func @transform_0(%arg0: i32) -> (i32, i32, i32) {
    %c0_i32 = arith.constant 0 : i32
    %c0_i32_0 = arith.constant 0 : i32
    %c0_i32_1 = arith.constant 0 : i32
    return %c0_i32, %arg0, %c0_i32_0 : i32, i32, i32
  }
  func.func @transform_1(%arg0: i32) -> (i32, i32, i32) {
    %c0_i32 = arith.constant 0 : i32
    %c0_i32_0 = arith.constant 0 : i32
    %c0_i32_1 = arith.constant 0 : i32
    return %c0_i32, %arg0, %c0_i32_0 : i32, i32, i32
  }
  func.func @transform_2(%arg0: i32) -> (i32, i32, i32) {
    %c0_i32 = arith.constant 0 : i32
    %c0_i32_0 = arith.constant 0 : i32
    %c0_i32_1 = arith.constant 0 : i32
    %c0_i32_2 = arith.constant 0 : i32
    return %c0_i32, %c0_i32_0, %c0_i32_1 : i32, i32, i32
  }
  func.func @transform_3(%arg0: i32) -> (i32, i32) {
    %c0_i32 = arith.constant 0 : i32
    %c0_i32_0 = arith.constant 0 : i32
    %c0_i32_1 = arith.constant 0 : i32
    return %c0_i32, %c0_i32_0 : i32, i32
  }
  func.func @transform_4(%arg0: i32) -> (i32, i32, i32) {
    %c0_i32 = arith.constant 0 : i32
    %c0_i32_0 = arith.constant 0 : i32
    %c0_i32_1 = arith.constant 0 : i32
    %c0_i32_2 = arith.constant 0 : i32
    return %c0_i32, %c0_i32_0, %c0_i32_1 : i32, i32, i32
  }
  func.func @transform_5(%arg0: i32) -> (i32, i32) {
    %c0_i32 = arith.constant 0 : i32
    %c0_i32_0 = arith.constant 0 : i32
    %c0_i32_1 = arith.constant 0 : i32
    return %c0_i32, %c0_i32_0 : i32, i32
  }
  func.func @transform_6(%arg0: i32) -> (i32, i32, i32) {
    %c0_i32 = arith.constant 0 : i32
    %c0_i32_0 = arith.constant 0 : i32
    %c0_i32_1 = arith.constant 0 : i32
    %c0_i32_2 = arith.constant 0 : i32
    return %c0_i32, %c0_i32_0, %c0_i32_1 : i32, i32, i32
  }
  func.func @transform_7(%arg0: i32) -> (i32, i32) {
    %c0_i32 = arith.constant 0 : i32
    %c0_i32_0 = arith.constant 0 : i32
    %c0_i32_1 = arith.constant 0 : i32
    return %c0_i32, %c0_i32_0 : i32, i32
  }
  func.func @transform_8(%arg0: i32) -> (i32, i32) {
    %c0_i32 = arith.constant 0 : i32
    %c0_i32_0 = arith.constant 0 : i32
    %c0_i32_1 = arith.constant 0 : i32
    return %c0_i32, %c0_i32_0 : i32, i32
  }
  func.func @transform_9(%arg0: i32) -> (i32, i32) {
    %c0_i32 = arith.constant 0 : i32
    %c0_i32_0 = arith.constant 0 : i32
    %c0_i32_1 = arith.constant 0 : i32
    return %c0_i32, %c0_i32_0 : i32, i32
  }
  func.func @transform_10(%arg0: i32) -> (i32, i32) {
    %c0_i32 = arith.constant 0 : i32
    %c0_i32_0 = arith.constant 0 : i32
    return %arg0, %c0_i32 : i32, i32
  }
}

</mosaic_0001>

<bundles_post_ra>
// kernel: _lambda_.1
= control target key start
LH: loop header
LB: loop body
LE: loop exit
PB: predicated region body
PF: predicated region fallthrough
CT: control target
= control target key end

     0   :  { %15 = vsyncpa [#allocation3], 0  ;;  %s17609_s0 = inlined_call_operand.vmem [shape: f32[14,8,28], index: 0, kind: input, shape index: {}]   ;;  %s17610_s1 = inlined_call_operand.vmem [shape: f32[14,8,28], index: 1, kind: input, shape index: {}]   ;;  %s17611_s2 = inlined_call_operand.hbm [shape: bf16[5,28,480], index: 2, kind: input, shape index: {}]   ;;  %s17612_s3 = inlined_call_operand.hbm [shape: f32[1,460], index: 3, kind: input, shape index: {}]   ;;  %s17613_s4 = inlined_call_operand.hbm [shape: bf16[5,460,400], index: 4, kind: input, shape index: {}]   ;;  %s17614_s5 = inlined_call_operand.hbm [shape: f32[1,350], index: 5, kind: input, shape index: {}]   ;;  %s17615_s6 = inlined_call_operand.hbm [shape: bf16[4,350,500], index: 6, kind: input, shape index: {}]   ;;  %s17616_s7 = inlined_call_operand.hbm [shape: f32[1,500], index: 7, kind: input, shape index: {}]   ;;  %s17617_s8 = inlined_call_operand.hbm [shape: bf16[500,128], index: 8, kind: input, shape index: {}]   ;;  %s17618_s9 = inlined_call_operand.hbm [shape: f32[1,128], index: 9, kind: input, shape index: {}]   ;;  %s17619_s10 = inlined_call_operand.vmem [shape: f32[8,128], index: 10, kind: output, shape index: {}]  }
   0x1   :  { %16 = vsyncpa [#allocation5], 0 }
   0x2   :  { %17 = vsyncpa [#allocation8], 0 }
   0x3   :  { %18 = vsyncpa [#allocation11], 0 }
   0x4   :  { %19 = vsyncpa [#allocation14], 0  ;;  %s15556_s13 = smov [#allocation4]   ;;  %s15557_s15 = smov [#allocation7]  }
   0x5   :  { %s42_s14 = sshll.u32 %s15556_s13, 4  ;;  %s64_s16 = sshll.u32 %s15557_s15, 4  ;;  %s43_s14 = int_to_ptr.vmem [resolvable:$true] %s42_s14  ;;  %s65_s16 = int_to_ptr.vmem [resolvable:$true] %s64_s16 }
   0x6   :  { %s15370_s19 = scalar_lea.hbm %s17612_s3, 64 }
   0x7   :  { %p15371_p0 = scmp.ne.s32.totalorder %s17612_s3, %s15370_s19  ;;  %p15374_p1 = scmp.lt.u32.totalorder %s15370_s19, %s17612_s3 }
   0x9   :  { %p15376_p2 = pnand %p15374_p1, %p15371_p0 }
   0xb   :  { %15379 = shalt.err (!%p15376_p2)
}
   0xc   :  { %s15380_s24 = scalar_lea.vmem %s43_s14, 64  ;;  %p15385_p4 = scmp.lt.s32.totalorder %s43_s14, %s43_s14 }
   0xd   :  { %p15381_p3 = scmp.ne.s32.totalorder %s43_s14, %s15380_s24  ;;  %p15386_p5 = scmp.lt.s32.totalorder %s15380_s24, %s15380_s24 }
   0xf   :  { %p15387_p6 = por %p15386_p5, %p15385_p4 }
  0x11   :  { %p15388_p7 = pnand %p15387_p6, %p15381_p3 }
  0x13   :  { %15391 = shalt.err (!%p15388_p7)
}
  0x14   :  { %45 = dma.hbm_to_vmem [thread:$0]  %s17612_s3, 64, %s43_s14, [#allocation5]  }
  0x15   :  { %s15392_s29 = scalar_lea.hbm %s17614_s5, 48 }
  0x16   :  { %p15393_p8 = scmp.ne.s32.totalorder %s17614_s5, %s15392_s29  ;;  %p15396_p9 = scmp.lt.u32.totalorder %s15392_s29, %s17614_s5 }
  0x18   :  { %p15398_p10 = pnand %p15396_p9, %p15393_p8 }
  0x1a   :  { %15401 = shalt.err (!%p15398_p10)
}
  0x1b   :  { %s15402_s15 = scalar_lea.vmem %s65_s16, 48  ;;  %s15406_s17 = scalar_lea.vmem %s65_s16, 64 }
  0x1c   :  { %p15403_p11 = scmp.ne.s32.totalorder %s65_s16, %s15402_s15  ;;  %p15407_p12 = scmp.lt.s32.totalorder %s65_s16, %s65_s16 }
  0x1d   :  { %p15408_p13 = scmp.lt.s32.totalorder %s15406_s17, %s15402_s15 }
  0x1f   :  { %p15409_p0 = por %p15408_p13, %p15407_p12 }
  0x21   :  { %p15410_p1 = pnand %p15409_p0, %p15403_p11 }
  0x23   :  { %15413 = shalt.err (!%p15410_p1)
}
  0x24   :  { %67 = dma.hbm_to_vmem [thread:$0]  %s17614_s5, 48, %s65_s16, [#allocation8]  }
  0x25   :  { %s15558_s18 = smov [#allocation10]   ;;  %s15559_s20 = smov [#allocation2]  }
  0x26   :  { %s86_s19 = sshll.u32 %s15558_s18, 4  ;;  %s29_s21 = sshll.u32 %s15559_s20, 4  ;;  %s87_s19 = int_to_ptr.vmem [resolvable:$true] %s86_s19  ;;  %s15650_s21 = int_to_ptr.vmem [resolvable:$true] %s29_s21 }
  0x27   :  { %s15414_s24 = scalar_lea.hbm %s17616_s7, 64 }
  0x28   :  { %p15415_p2 = scmp.ne.s32.totalorder %s17616_s7, %s15414_s24  ;;  %p15418_p3 = scmp.lt.u32.totalorder %s15414_s24, %s17616_s7 }
  0x2a   :  { %p15420_p4 = pnand %p15418_p3, %p15415_p2 }
  0x2c   :  { %15423 = shalt.err (!%p15420_p4)
}
  0x2d   :  { %s15424_s5 = scalar_lea.vmem %s87_s19, 64  ;;  %p15429_p6 = scmp.lt.s32.totalorder %s87_s19, %s87_s19 }
  0x2e   :  { %p15425_p5 = scmp.ne.s32.totalorder %s87_s19, %s15424_s5  ;;  %p15430_p7 = scmp.lt.s32.totalorder %s15424_s5, %s15424_s5 }
  0x30   :  { %p15431_p8 = por %p15430_p7, %p15429_p6 }
  0x32   :  { %p15432_p9 = pnand %p15431_p8, %p15425_p5 }
  0x34   :  { %15435 = shalt.err (!%p15432_p9)
}
  0x35   :  { %89 = dma.hbm_to_vmem [thread:$0]  %s17616_s7, 64, %s87_s19, [#allocation11]  }
  0x36   :  { %s15436_s12 = scalar_lea.hbm %s17611_s2, 5120 }
  0x37   :  { %p15437_p10 = scmp.ne.s32.totalorder %s17611_s2, %s15436_s12  ;;  %p15440_p11 = scmp.lt.u32.totalorder %s15436_s12, %s17611_s2 }
  0x39   :  { %p15442_p12 = pnand %p15440_p11, %p15437_p10 }
  0x3b   :  { %15445 = shalt.err (!%p15442_p12)
}
  0x3c   :  { %s15446_s14 = scalar_lea.vmem %s15650_s21, 5120  ;;  %p15451_p0 = scmp.lt.s32.totalorder %s15650_s21, %s15650_s21 }
  0x3d   :  { %p15447_p13 = scmp.ne.s32.totalorder %s15650_s21, %s15446_s14  ;;  %p15452_p1 = scmp.lt.s32.totalorder %s15446_s14, %s15446_s14 }
  0x3f   :  { %p15453_p2 = por %p15452_p1, %p15451_p0 }
  0x41   :  { %p15454_p3 = pnand %p15453_p2, %p15447_p13 }
  0x43   :  { %15457 = shalt.err (!%p15454_p3)
}
  0x44   :  { %s15560_s7 = smov 256   ;;  %s15561_s18 = smov 16  }
  0x45   :  { %35 = dma.hbm_to_vmem [thread:$0]  %s17611_s2, 5120, %s15650_s21, [#allocation3], %s15560_s7, %s15560_s7, %s15561_s18  }
  0x46   :  { %s15562_s22 = smov [#allocation6]   ;;  %s15563_s24 = smov [#allocation9]  }
  0x47   :  { %s51_s23 = sshll.u32 %s15562_s22, 4  ;;  %s73_s25 = sshll.u32 %s15563_s24, 4  ;;  %s52_s23 = int_to_ptr.vmem [resolvable:$true] %s51_s23  ;;  %s15684_s25 = int_to_ptr.vmem [resolvable:$true] %s73_s25 }
  0x48   :  { %s15458_s28 = scalar_lea.hbm %s17613_s4, 74240 }
  0x49   :  { %p15459_p4 = scmp.ne.s32.totalorder %s17613_s4, %s15458_s28  ;;  %p15462_p5 = scmp.lt.u32.totalorder %s15458_s28, %s17613_s4 }
  0x4b   :  { %p15464_p6 = pnand %p15462_p5, %p15459_p4 }
  0x4d   :  { %15467 = shalt.err (!%p15464_p6)
}
  0x4e   :  { %s15468_s2 = scalar_lea.vmem %s52_s23, 74240  ;;  %p15473_p8 = scmp.lt.s32.totalorder %s52_s23, %s52_s23 }
  0x4f   :  { %p15469_p7 = scmp.ne.s32.totalorder %s52_s23, %s15468_s2  ;;  %p15474_p9 = scmp.lt.s32.totalorder %s15468_s2, %s15468_s2 }
  0x51   :  { %p15475_p10 = por %p15474_p9, %p15473_p8 }
  0x53   :  { %p15476_p11 = pnand %p15475_p10, %p15469_p7 }
  0x55   :  { %15479 = shalt.err (!%p15476_p11)
}
  0x56   :  { %57 = dma.hbm_to_vmem [thread:$0]  %s17613_s4, 74240, %s52_s23, [#allocation5], %s15560_s7, %s15560_s7, %s15561_s18  }
  0x57   :  { %s15480_s15 = scalar_lea.hbm %s17615_s6, 45056 }
  0x58   :  { %p15481_p12 = scmp.ne.s32.totalorder %s17615_s6, %s15480_s15  ;;  %p15484_p13 = scmp.lt.u32.totalorder %s15480_s15, %s17615_s6 }
  0x5a   :  { %p15486_p0 = pnand %p15484_p13, %p15481_p12 }
  0x5c   :  { %15489 = shalt.err (!%p15486_p0)
}
  0x5d   :  { %s15490_s20 = scalar_lea.vmem %s15684_s25, 45056  ;;  %p15495_p2 = scmp.lt.s32.totalorder %s15684_s25, %s15684_s25 }
  0x5e   :  { %p15491_p1 = scmp.ne.s32.totalorder %s15684_s25, %s15490_s20  ;;  %p15496_p3 = scmp.lt.s32.totalorder %s15490_s20, %s15490_s20 }
  0x60   :  { %p15497_p4 = por %p15496_p3, %p15495_p2 }
  0x62   :  { %p15498_p5 = pnand %p15497_p4, %p15491_p1 }
  0x64   :  { %15501 = shalt.err (!%p15498_p5)
}
  0x65   :  { %79 = dma.hbm_to_vmem [thread:$0]  %s17615_s6, 45056, %s15684_s25, [#allocation8], %s15560_s7, %s15560_s7, %s15561_s18  }
  0x66   :  { %s15564_s23 = smov [#allocation12]   ;;  %s15502_s28 = scalar_lea.hbm %s17617_s8, 4032 }
  0x67   :  { %s95_s24 = sshll.u32 %s15564_s23, 4  ;;  %p15503_p6 = scmp.ne.s32.totalorder %s17617_s8, %s15502_s28  ;;  %s96_s24 = int_to_ptr.vmem [resolvable:$true] %s95_s24 }
  0x68   :  { %p15506_p7 = scmp.lt.u32.totalorder %s15502_s28, %s17617_s8 }
  0x6a   :  { %p15508_p8 = pnand %p15506_p7, %p15503_p6 }
  0x6c   :  { %15511 = shalt.err (!%p15508_p8)
}
  0x6d   :  { %s15512_s2 = scalar_lea.vmem %s96_s24, 4032  ;;  %p15517_p10 = scmp.lt.s32.totalorder %s96_s24, %s96_s24 }
  0x6e   :  { %p15513_p9 = scmp.ne.s32.totalorder %s96_s24, %s15512_s2  ;;  %p15518_p11 = scmp.lt.s32.totalorder %s15512_s2, %s15512_s2 }
  0x70   :  { %p15519_p12 = por %p15518_p11, %p15517_p10 }
  0x72   :  { %p15520_p13 = pnand %p15519_p12, %p15513_p9 }
  0x74   :  { %15523 = shalt.err (!%p15520_p13)
}
  0x75   :  { %s15565_s6 = smov 64   ;;  %s15566_s7 = smov 4  }
  0x76   :  { %101 = dma.hbm_to_vmem [thread:$0]  %s17617_s8, 4032, %s96_s24, [#allocation11], %s15565_s6, %s15565_s6, %s15566_s7  }
  0x77   :  { %s15567_s21 = smov [#allocation13]   ;;  %s15524_s15 = scalar_lea.hbm %s17618_s9, 16 }
  0x78   :  { %s108_s11 = sshll.u32 %s15567_s21, 4  ;;  %p15525_p0 = scmp.ne.s32.totalorder %s17618_s9, %s15524_s15  ;;  %s109_s11 = int_to_ptr.vmem [resolvable:$true] %s108_s11 }
  0x79   :  { %p15528_p1 = scmp.lt.u32.totalorder %s15524_s15, %s17618_s9 }
  0x7b   :  { %p15530_p2 = pnand %p15528_p1, %p15525_p0 }
  0x7d   :  { %15533 = shalt.err (!%p15530_p2)
}
  0x7e   :  { %s15534_s20 = scalar_lea.vmem %s109_s11, 16  ;;  %s15538_s8 = scalar_lea.vmem %s109_s11, 32 }
  0x7f   :  { %p15535_p3 = scmp.ne.s32.totalorder %s109_s11, %s15534_s20  ;;  %p15539_p4 = scmp.lt.s32.totalorder %s109_s11, %s109_s11 }
  0x80   :  { %p15540_p5 = scmp.lt.s32.totalorder %s15538_s8, %s15534_s20 }
  0x82   :  { %p15541_p6 = por %p15540_p5, %p15539_p4 }
  0x84   :  { %p15542_p7 = pnand %p15541_p6, %p15535_p3 }
  0x86   :  { %15545 = shalt.err (!%p15542_p7)
}
  0x87   :  { %111 = dma.hbm_to_vmem [thread:$0]  %s17618_s9, 16, %s109_s11, [#allocation14]  }
  0x88   :  { %15546 = dma.done.wait [#allocation3], 5120  }
  0x89   :  { %15547 = vsyncadd [#allocation3], 4294962176 }
  0x8a   :  { %15548 = dma.done.wait [#allocation5], 74304  }
  0x8b   :  { %15549 = vsyncadd [#allocation5], 4294892992 }
  0x8c   :  { %15550 = dma.done.wait [#allocation8], 45104  }
  0x8d   :  { %15551 = vsyncadd [#allocation8], 4294922192 }
  0x8e   :  { %15552 = dma.done.wait [#allocation11], 4096  }
  0x8f   :  { %15553 = vsyncadd [#allocation11], 4294963200 }
  0x90   :  { %15554 = dma.done.wait [#allocation14], 16  }
  0x91   :  { %15555 = vsyncadd [#allocation14], 4294967280  ;;  %v17620_v0 = vmov 0   ;;  %v13850_v1 = vld [vmem:[#allocation2 + $0x44] ss:$16 sps:$4 sm:$0xff]   ;;  %vm251_vm0 = vcmask 1045504  }
  0x92   :  { %296 = vmatprep.mubr.bf16.mxu0 %v17620_v0  ;;  %389 = vmatprep.mubr.bf16.mxu1 %v17620_v0  ;;  %v13852_v2 = vld [vmem:[#allocation2 + $0x4c] ss:$16 sps:$4 sm:$0xff]   ;;  %v13854_v3 = vld [vmem:[#allocation2 + $0x40] ss:$16 sps:$4 sm:$0xff]   ;;  %v13855_v4 = vld [vmem:[#allocation2 + $0x48] ss:$16 sps:$4 sm:$0xff]  }
  0x93   :  { %264 = vmatprep.subr.bf16.mxu0 %v13850_v1  ;;  %357 = vmatprep.subr.bf16.mxu1 %v13852_v2  ;;  %v13856_v5 = vld [vmem:[#allocation2 + $0x64] ss:$16 sps:$4 sm:$0x3f]   ;;  %v13858_v6 = vld [vmem:[#allocation2 + $0x6c] ss:$16 sps:$4 sm:$0x3f]  }
  0x94   :  { %265 = vmatpush1.bf16.msra.mxu0 %v13854_v3  ;;  %358 = vmatpush1.bf16.msra.mxu1 %v13855_v4  ;;  %v158_v7 = vld [vmem:[%s17610_s1] sm:$0xff]  ;;  %v13861_v9 = vld [vmem:[#allocation2 + $0x68] ss:$16 sps:$4 sm:$0x3f]   ;;  %v13864_v14 = vld [vmem:[#allocation2 + $0xc] ss:$16 sps:$4 sm:$0xff]  }
  0x95   :  { %11914 = vmatprep.subr.msk.bf16.mxu0 %vm251_vm0, %v13856_v5  ;;  %v13860_v8 = vld [vmem:[#allocation2 + $0x60] ss:$16 sps:$4 sm:$0x3f]   ;;  %11921 = vmatprep.subr.msk.bf16.mxu1 %vm251_vm0, %v13858_v6  ;;  %v159_v10 = vld [vmem:[%s17610_s1 + $0x8] sm:$0xff]  ;;  %v15759_v12 = vsel %vm251_vm0, %v13861_v9, 0  ;;  %vm232_vm1 = vcmask 228352  }
  0x96   :  { %v15756_v11 = vsel %vm251_vm0, %v13860_v8, 0  ;;  %v15761_v13 = vpack.c.bf16 %v159_v10, %v158_v7  ;;  %v13862_v15 = vld [vmem:[#allocation2 + $0x8] ss:$16 sps:$4 sm:$0xff]   ;;  %v13865_v16 = vld [vmem:[#allocation2] ss:$16 sps:$4 sm:$0xff]   ;;  %vm718_vm2 = vcmask 1043456  }
  0x97   :  { %v13867_v17 = vld [vmem:[#allocation2 + $0x4] ss:$16 sps:$4 sm:$0xff]   ;;  %v161_v19 = vld [vmem:[%s17610_s1 + $0x18] sm:$0xff]  ;;  %v13873_v24 = vld [vmem:[#allocation2 + $0x20] ss:$16 sps:$4 sm:$0x3f]  }
  0x98   :  { %267 = vmatpush1.bf16.msra.mxu0 %v15756_v11  ;;  %360 = vmatpush1.bf16.msra.mxu1 %v15759_v12  ;;  %v160_v18 = vld [vmem:[%s17610_s1 + $0x10] sm:$0xff]  ;;  %v13868_v20 = vld [vmem:[#allocation2 + $0x2c] ss:$16 sps:$4 sm:$0x3f]   ;;  %v15786_v26 = vsel %vm251_vm0, %v13873_v24, 0  ;;  %v162_v29 = vld [vmem:[%s17610_s1 + $0x20] sm:$0xff] }
  0x99   :  { %609 = vmatprep.subr.bf16.mxu1 %v13864_v14  ;;  %516 = vmatprep.subr.bf16.mxu0 %v13867_v17  ;;  %v13870_v21 = vld [vmem:[#allocation2 + $0x28] ss:$16 sps:$4 sm:$0x3f]   ;;  %v13871_v22 = vld [vmem:[#allocation2 + $0x24] ss:$16 sps:$4 sm:$0x3f]   ;;  %v15781_v25 = vpack.c.bf16 %v161_v19, %v160_v18 }
  0x9a   :  { %v15779_v23 = vsel %vm251_vm0, %v13870_v21, 0  ;;  %v13876_v27 = vld [vmem:[#allocation2 + $0x8c] ss:$16 sps:$4 sm:$0xff]   ;;  %v13879_v28 = vld [vmem:[#allocation2 + $0x84] ss:$16 sps:$4 sm:$0xff]   ;;  %vm2924_vm3 = vcmask 883712  }
  0x9b   :  { %11915 = vmatmul.mubr.msk.bf16.vlgmr.msra.gmra.mrb[0].mxu0 %vm232_vm1, %v15761_v13  ;;  %11922 = vmatmul.mubr.msk.bf16.vlgmr.msra.gmra.mrb[0].mxu1 %vm232_vm1, %v15761_v13  ;;  %v163_v30 = vld [vmem:[%s17610_s1 + $0x28] sm:$0xff]  ;;  %v164_v32 = vld [vmem:[%s17610_s1 + $0x30] sm:$0xff]  ;;  %v165_v33 = vld [vmem:[%s17610_s1 + $0x38] sm:$0xff]  ;;  %vm4076_vm4 = vcmask 621568   ;;  %vm9283_vm5 = vcmask 1046528   ;;  %s15570_s22 = smov 78  }
  0x9c   :  { %610 = vmatpush1.bf16.msra.mxu1 %v13862_v15  ;;  %517 = vmatpush1.bf16.msra.mxu0 %v13865_v16  ;;  %v15801_v31 = vpack.c.bf16 %v163_v30, %v162_v29  ;;  %v15815_v34 = vpack.c.bf16 %v165_v33, %v164_v32  ;;  %v166_v35 = vld [vmem:[%s17610_s1 + $0x40] sm:$0xff]  ;;  %v167_v36 = vld [vmem:[%s17610_s1 + $0x48] sm:$0xff]  ;;  %v168_v38 = vld [vmem:[%s17610_s1 + $0x50] sm:$0xff]  ;;  %vm8492_vm6 = vcmask 637952   ;;  %vm9279_vm7 = vcmask 769024  }
  0x9d   :  { %306 = vmatprep.mubr.bf16.mxu0 %v17620_v0  ;;  %399 = vmatprep.mubr.bf16.mxu1 %v17620_v0  ;;  %v15829_v37 = vpack.c.bf16 %v167_v36, %v166_v35  ;;  %v169_v39 = vld [vmem:[%s17610_s1 + $0x58] sm:$0xff]  ;;  %v137_v41 = vld [vmem:[%s17609_s0] sm:$0xff]  ;;  %v138_v42 = vld [vmem:[%s17609_s0 + $0x8] sm:$0xff]  ;;  %vm11812_vm8 = vcmask 1041408   ;;  %vm11808_vm9 = vcmask 949248  }
  0x9e   :  { %11943 = vmatprep.subr.msk.bf16.mxu1 %vm251_vm0, %v13868_v20  ;;  %11936 = vmatprep.subr.msk.bf16.mxu0 %vm251_vm0, %v13871_v22  ;;  %v15843_v40 = vpack.c.bf16 %v169_v39, %v168_v38  ;;  %v13874_v43 = vld [vmem:[#allocation2 + $0x88] ss:$16 sps:$4 sm:$0xff]   ;;  %v13877_v44 = vld [vmem:[#allocation2 + $0x80] ss:$16 sps:$4 sm:$0xff]   ;;  %v15857_v45 = vpack.c.bf16 %v138_v42, %v137_v41  ;;  %v13888_v52 = vld [vmem:[#allocation2 + $0xcc] ss:$16 sps:$4 sm:$0xff]  }
  0x9f   :  { %v13882_v46 = vld [vmem:[#allocation2 + $0xa8] ss:$16 sps:$4 sm:$0x3f]   ;;  %v13885_v47 = vld [vmem:[#allocation2 + $0xa0] ss:$16 sps:$4 sm:$0x3f]  }
  0xa0   :  { %612 = vmatpush1.bf16.msra.mxu1 %v15779_v23  ;;  %519 = vmatpush1.bf16.msra.mxu0 %v15786_v26  ;;  %v13880_v48 = vld [vmem:[#allocation2 + $0xac] ss:$16 sps:$4 sm:$0x3f]   ;;  %v13883_v49 = vld [vmem:[#allocation2 + $0xa4] ss:$16 sps:$4 sm:$0x3f]  }
  0xa1   :  { %891 = vmatprep.subr.bf16.mxu1 %v13876_v27  ;;  %798 = vmatprep.subr.bf16.mxu0 %v13879_v28  ;;  %v139_v50 = vld [vmem:[%s17609_s0 + $0x10] sm:$0xff]  ;;  %v140_v51 = vld [vmem:[%s17609_s0 + $0x18] sm:$0xff]  ;;  %v15872_v54 = vsel %vm251_vm0, %v13882_v46, 0  ;;  %v15875_v55 = vsel %vm251_vm0, %v13885_v47, 0  ;;  %v141_v57 = vld [vmem:[%s17609_s0 + $0x20] sm:$0xff]  ;;  %v719_v6 = vrot.slane %v15857_v45, 4 }
  0xa2   :  { %v13891_v53 = vld [vmem:[#allocation2 + $0xc4] ss:$16 sps:$4 sm:$0xff]   ;;  %v15879_v56 = vpack.c.bf16 %v140_v51, %v139_v50  ;;  %v142_v58 = vld [vmem:[%s17609_s0 + $0x28] sm:$0xff]  ;;  %v144_v61 = vld [vmem:[%s17609_s0 + $0x38] sm:$0xff]  ;;  %v1048_v42 = vrot.slane %v15761_v13, 4  ;;  %v1051_v51 = vrot.slane %v15801_v31, 4 }
  0xa3   :  { %11916 = vmatmul.mubr.msk.bf16.gmra.mrb[4].mxu0 %vm232_vm1, %v15781_v25  ;;  %11923 = vmatmul.mubr.msk.bf16.gmra.mrb[4].mxu1 %vm232_vm1, %v15781_v25  ;;  %v15895_v59 = vpack.c.bf16 %v142_v58, %v141_v57  ;;  %v143_v60 = vld [vmem:[%s17609_s0 + $0x30] sm:$0xff]  ;;  %v145_v63 = vld [vmem:[%s17609_s0 + $0x40] sm:$0xff]  ;;  %v146_v1 = vld [vmem:[%s17609_s0 + $0x48] sm:$0xff] }
  0xa4   :  { %316 = vmatprep.mubr.bf16.mxu0 %v17620_v0  ;;  %409 = vmatprep.mubr.bf16.mxu1 %v17620_v0  ;;  %v15909_v62 = vpack.c.bf16 %v144_v61, %v143_v60  ;;  %v15923_v2 = vpack.c.bf16 %v146_v1, %v145_v63  ;;  %v147_v3 = vld [vmem:[%s17609_s0 + $0x50] sm:$0xff]  ;;  %v148_v4 = vld [vmem:[%s17609_s0 + $0x58] sm:$0xff]  ;;  %v720_v7 = vrot.slane %v15879_v56, 4  ;;  %v149_v32 = vld [vmem:[%s17609_s0 + $0x60] sm:$0xff]  ;;  %v1053_v61 = vrot.slane %v15815_v34, 4 }
  0xa5   :  { %v15937_v5 = vpack.c.bf16 %v148_v4, %v147_v3  ;;  %v13886_v8 = vld [vmem:[#allocation2 + $0xc8] ss:$16 sps:$4 sm:$0xff]   ;;  %v13889_v9 = vld [vmem:[#allocation2 + $0xc0] ss:$16 sps:$4 sm:$0xff]   ;;  %v13900_v18 = vld [vmem:[#allocation2 + $0x10c] ss:$16 sps:$4 sm:$0xff]  }
  0xa6   :  { %v13894_v10 = vld [vmem:[#allocation2 + $0xe8] ss:$16 sps:$4 sm:$0x3f]   ;;  %v13897_v14 = vld [vmem:[#allocation2 + $0xe0] ss:$16 sps:$4 sm:$0x3f]   ;;  %v15948_v15 = vsel %vm718_vm2, %v719_v6, %v720_v7  ;;  %v16057_v63 = vsel %vm718_vm2, %v1051_v51, %v1053_v61 }
  0xa7   :  { %v13892_v16 = vld [vmem:[#allocation2 + $0xec] ss:$16 sps:$4 sm:$0x3f]   ;;  %v13895_v17 = vld [vmem:[#allocation2 + $0xe4] ss:$16 sps:$4 sm:$0x3f]  }
  0xa8   :  { %v13903_v19 = vld [vmem:[#allocation2 + $0x104] ss:$16 sps:$4 sm:$0xff]   ;;  %v722_v20 = vrot.slane %v15895_v59, 4  ;;  %v15958_v21 = vsel %vm251_vm0, %v13894_v10, 0  ;;  %v15961_v22 = vsel %vm251_vm0, %v13897_v14, 0  ;;  %v724_v27 = vrot.slane %v15909_v62, 4 }
  0xa9   :  { %v726_v29 = vrot.slane %v15923_v2, 4  ;;  %v150_v33 = vld [vmem:[%s17609_s0 + $0x68] sm:$0xff]  ;;  %v728_v35 = vrot.slane %v15937_v5, 4  ;;  %v13909_v47 = vld [vmem:[#allocation2 + $0x120] ss:$16 sps:$4 sm:$0x3f]  }
  0xaa   :  { %v15966_v24 = vsel %vm718_vm2, %v720_v7, %v722_v20  ;;  %v15978_v28 = vsel %vm718_vm2, %v722_v20, %v724_v27  ;;  %v16006_v38 = vpack.c.bf16 %v150_v33, %v149_v32  ;;  %v13906_v46 = vld [vmem:[#allocation2 + $0x128] ss:$16 sps:$4 sm:$0x3f]   ;;  %v13907_v50 = vld [vmem:[#allocation2 + $0x124] ss:$16 sps:$4 sm:$0x3f]  }
  0xab   :  { %11917 = vmatmul.mubr.msk.bf16.gmra.mrb[8].mxu0 %vm232_vm1, %v15801_v31  ;;  %11924 = vmatmul.mubr.msk.bf16.gmra.mrb[8].mxu1 %vm232_vm1, %v15801_v31  ;;  %v15988_v30 = vsel %vm718_vm2, %v724_v27, %v726_v29  ;;  %v16004_v36 = vsel %vm718_vm2, %v726_v29, %v728_v35  ;;  %v15340_v58 = vld [vmem:[#allocation2 + $0x4c] ss:$16 sps:$4 sm:$0xff]   ;;  %v15341_v60 = vld [vmem:[#allocation2 + $0x44] ss:$16 sps:$4 sm:$0xff]   ;;  %v1055_v1 = vrot.slane %v15829_v37, 4  ;;  %v1057_v7 = vrot.slane %v15843_v40, 4 }
  0xac   :  { %326 = vmatprep.mubr.bf16.mxu0 %v17620_v0  ;;  %419 = vmatprep.mubr.bf16.mxu1 %v17620_v0  ;;  %v730_v39 = vrot.slane %v16006_v38, 4  ;;  %v170_v4 = vld [vmem:[%s17610_s1 + $0x60] sm:$0xff]  ;;  %v171_v6 = vld [vmem:[%s17610_s1 + $0x68] sm:$0xff]  ;;  %s15569_s1 = smov 108  }
  0xad   :  { %v16067_v3 = vsel %vm718_vm2, %v1053_v61, %v1055_v1  ;;  %v15346_v20 = vld [vmem:[#allocation2 + $0xc] ss:$16 sps:$4 sm:$0xff]   ;;  %v15347_v27 = vld [vmem:[#allocation2 + $0x4] ss:$16 sps:$4 sm:$0xff]  }
  0xae   :  { %v16016_v41 = vsel %vm718_vm2, %v728_v35, %v730_v39  ;;  %v15350_v29 = vld [vmem:[#allocation2 + $0x2c] ss:$16 sps:$4 sm:$0x3f]   ;;  %v15351_v32 = vld [vmem:[#allocation2 + $0x24] ss:$16 sps:$4 sm:$0x3f]  }
  0xaf   :  { %v15352_v33 = vld [vmem:[#allocation2 + $0x8c] ss:$16 sps:$4 sm:$0xff]  }
  0xb0   :  { %v15362_v35 = vld [vmem:[#allocation2 + $0xec] ss:$16 sps:$4 sm:$0x3f]  }
  0xb1   :  { %v15364_v39 = vld [vmem:[#allocation2 + $0x10c] ss:$16 sps:$4 sm:$0xff]  }
  0xb3   :  { %11918 = vmatmul.mubr.msk.bf16.gmra.mrb[12].mxu0 %vm232_vm1, %v15815_v34  ;;  %11925 = vmatmul.mubr.msk.bf16.gmra.mrb[12].mxu1 %vm232_vm1, %v15815_v34 }
  0xb4   :  { %336 = vmatprep.mubr.bf16.mxu0 %v17620_v0  ;;  %429 = vmatprep.mubr.bf16.mxu1 %v17620_v0 }
  0xbb   :  { %11919 = vmatmul.mubr.msk.bf16.gmra.mrb[16].mxu0 %vm232_vm1, %v15829_v37  ;;  %11926 = vmatmul.mubr.msk.bf16.gmra.mrb[16].mxu1 %vm232_vm1, %v15829_v37 }
  0xbc   :  { %346 = vmatprep.mubr.bf16.mxu0 %v17620_v0  ;;  %439 = vmatprep.mubr.bf16.mxu1 %v17620_v0 }
  0xc3   :  { %11920 = vmatmul.mubr.msk.bf16.gmra.mrb[20].mxu0 %vm232_vm1, %v15843_v40  ;;  %11927 = vmatmul.mubr.msk.bf16.gmra.mrb[20].mxu1 %vm232_vm1, %v15843_v40 }
  0xc4   :  { %548 = vmatprep.mubr.bf16.mxu0 %v17620_v0  ;;  %641 = vmatprep.mubr.bf16.mxu1 %v17620_v0 }
  0xcb   :  { %11937 = vmatmul.mubr.msk.bf16.vlgmr.msra.gmra.mrb[0].mxu0 %vm232_vm1, %v15857_v45  ;;  %11944 = vmatmul.mubr.msk.bf16.vlgmr.msra.gmra.mrb[0].mxu1 %vm232_vm1, %v15857_v45  ;;  %v13901_v45 = vld [vmem:[#allocation2 + $0x100] ss:$16 sps:$4 sm:$0xff]  }
  0xcc   :  { %892 = vmatpush1.bf16.msra.mxu1 %v13874_v43  ;;  %799 = vmatpush1.bf16.msra.mxu0 %v13877_v44  ;;  %v1049_v43 = vrot.slane %v15781_v25, 4  ;;  %v13898_v44 = vld [vmem:[#allocation2 + $0x108] ss:$16 sps:$4 sm:$0xff]  }
  0xcd   :  { %558 = vmatprep.mubr.bf16.mxu0 %v17620_v0  ;;  %651 = vmatprep.mubr.bf16.mxu1 %v17620_v0 }
  0xce   :  { %11965 = vmatprep.subr.msk.bf16.mxu1 %vm251_vm0, %v13880_v48  ;;  %11958 = vmatprep.subr.msk.bf16.mxu0 %vm251_vm0, %v13883_v49  ;;  %v16027_v48 = vsel %vm718_vm2, %v1048_v42, %v1049_v43  ;;  %v13904_v49 = vld [vmem:[#allocation2 + $0x12c] ss:$16 sps:$4 sm:$0x3f]   ;;  %v16045_v57 = vsel %vm718_vm2, %v1049_v43, %v1051_v51  ;;  %v15369_v43 = vld [vmem:[#allocation2 + $0x124] ss:$16 sps:$4 sm:$0x3f]  }
  0xcf   :  { %v15368_v42 = vld [vmem:[#allocation2 + $0x12c] ss:$16 sps:$4 sm:$0x3f]  }
  0xd0   :  { %894 = vmatpush1.bf16.msra.mxu1 %v15872_v54  ;;  %801 = vmatpush1.bf16.msra.mxu0 %v15875_v55 }
  0xd1   :  { %1220 = vmatprep.subr.bf16.mxu1 %v13888_v52  ;;  %1127 = vmatprep.subr.bf16.mxu0 %v13891_v53  ;;  %v16037_v52 = vsel %vm251_vm0, %v13906_v46, 0  ;;  %v16040_v53 = vsel %vm251_vm0, %v13909_v47, 0 }
  0xd3   :  { %11938 = vmatmul.mubr.msk.bf16.gmra.mrb[4].mxu0 %vm232_vm1, %v15879_v56  ;;  %11945 = vmatmul.mubr.msk.bf16.gmra.mrb[4].mxu1 %vm232_vm1, %v15879_v56 }
  0xd4   :  { %568 = vmatprep.mubr.bf16.mxu0 %v17620_v0  ;;  %661 = vmatprep.mubr.bf16.mxu1 %v17620_v0 }
  0xdb   :  { %11939 = vmatmul.mubr.msk.bf16.gmra.mrb[8].mxu0 %vm232_vm1, %v15895_v59  ;;  %11946 = vmatmul.mubr.msk.bf16.gmra.mrb[8].mxu1 %vm232_vm1, %v15895_v59 }
  0xdc   :  { %578 = vmatprep.mubr.bf16.mxu0 %v17620_v0  ;;  %671 = vmatprep.mubr.bf16.mxu1 %v17620_v0 }
  0xe3   :  { %11940 = vmatmul.mubr.msk.bf16.gmra.mrb[12].mxu0 %vm232_vm1, %v15909_v62  ;;  %11947 = vmatmul.mubr.msk.bf16.gmra.mrb[12].mxu1 %vm232_vm1, %v15909_v62 }
  0xe4   :  { %588 = vmatprep.mubr.bf16.mxu0 %v17620_v0  ;;  %681 = vmatprep.mubr.bf16.mxu1 %v17620_v0 }
  0xeb   :  { %11941 = vmatmul.mubr.msk.bf16.gmra.mrb[16].mxu0 %vm232_vm1, %v15923_v2  ;;  %11948 = vmatmul.mubr.msk.bf16.gmra.mrb[16].mxu1 %vm232_vm1, %v15923_v2 }
  0xec   :  { %598 = vmatprep.mubr.bf16.mxu0 %v17620_v0  ;;  %691 = vmatprep.mubr.bf16.mxu1 %v17620_v0 }
  0xf3   :  { %11942 = vmatmul.mubr.msk.bf16.gmra.mrb[20].mxu0 %vm232_vm1, %v15937_v5  ;;  %11949 = vmatmul.mubr.msk.bf16.gmra.mrb[20].mxu1 %vm232_vm1, %v15937_v5 }
  0xf4   :  { %830 = vmatprep.mubr.bf16.mxu0 %v17620_v0  ;;  %923 = vmatprep.mubr.bf16.mxu1 %v17620_v0 }
  0xfb   :  { %11959 = vmatmul.mubr.msk.bf16.vlgmr.msra.gmra.mrb[0].mxu0 %vm232_vm1, %v15948_v15  ;;  %11966 = vmatmul.mubr.msk.bf16.vlgmr.msra.gmra.mrb[0].mxu1 %vm232_vm1, %v15948_v15 }
  0xfc   :  { %1221 = vmatpush1.bf16.msra.mxu1 %v13886_v8  ;;  %1128 = vmatpush1.bf16.msra.mxu0 %v13889_v9  ;;  %v16083_v8 = vsel %vm718_vm2, %v1055_v1, %v1057_v7  ;;  %v16085_v9 = vpack.c.bf16 %v171_v6, %v170_v4 }
  0xfd   :  { %840 = vmatprep.mubr.bf16.mxu0 %v17620_v0  ;;  %933 = vmatprep.mubr.bf16.mxu1 %v17620_v0 }
  0xfe   :  { %11987 = vmatprep.subr.msk.bf16.mxu1 %vm251_vm0, %v13892_v16  ;;  %11980 = vmatprep.subr.msk.bf16.mxu0 %vm251_vm0, %v13895_v17  ;;  %v1059_v10 = vrot.slane %v16085_v9, 4  ;;  %v15342_v16 = vld [vmem:[#allocation2 + $0x48] ss:$16 sps:$4 sm:$0xff]   ;;  %v15343_v17 = vld [vmem:[#allocation2 + $0x40] ss:$16 sps:$4 sm:$0xff]  }
 0x100   :  { %1223 = vmatpush1.bf16.msra.mxu1 %v15958_v21  ;;  %1130 = vmatpush1.bf16.msra.mxu0 %v15961_v22  ;;  %v16095_v14 = vsel %vm718_vm2, %v1057_v7, %v1059_v10 }
 0x101   :  { %1514 = vmatprep.subr.bf16.mxu1 %v13900_v18  ;;  %1421 = vmatprep.subr.bf16.mxu0 %v13903_v19  ;;  %v15344_v18 = vld [vmem:[#allocation2 + $0x6c] ss:$16 sps:$4 sm:$0x3f]   ;;  %v15345_v19 = vld [vmem:[#allocation2 + $0x64] ss:$16 sps:$4 sm:$0x3f]  }
 0x103   :  { %11960 = vmatmul.mubr.msk.bf16.gmra.mrb[4].mxu0 %vm232_vm1, %v15966_v24  ;;  %11967 = vmatmul.mubr.msk.bf16.gmra.mrb[4].mxu1 %vm232_vm1, %v15966_v24 }
 0x104   :  { %850 = vmatprep.mubr.bf16.mxu0 %v17620_v0  ;;  %943 = vmatprep.mubr.bf16.mxu1 %v17620_v0 }
 0x10b   :  { %11961 = vmatmul.mubr.msk.bf16.gmra.mrb[8].mxu0 %vm232_vm1, %v15978_v28  ;;  %11968 = vmatmul.mubr.msk.bf16.gmra.mrb[8].mxu1 %vm232_vm1, %v15978_v28 }
 0x10c   :  { %860 = vmatprep.mubr.bf16.mxu0 %v17620_v0  ;;  %953 = vmatprep.mubr.bf16.mxu1 %v17620_v0 }
 0x113   :  { %11962 = vmatmul.mubr.msk.bf16.gmra.mrb[12].mxu0 %vm232_vm1, %v15988_v30  ;;  %11969 = vmatmul.mubr.msk.bf16.gmra.mrb[12].mxu1 %vm232_vm1, %v15988_v30 }
 0x114   :  { %870 = vmatprep.mubr.bf16.mxu0 %v17620_v0  ;;  %963 = vmatprep.mubr.bf16.mxu1 %v17620_v0 }
 0x11b   :  { %11963 = vmatmul.mubr.msk.bf16.gmra.mrb[16].mxu0 %vm232_vm1, %v16004_v36  ;;  %11970 = vmatmul.mubr.msk.bf16.gmra.mrb[16].mxu1 %vm232_vm1, %v16004_v36 }
 0x11c   :  { %880 = vmatprep.mubr.bf16.mxu0 %v17620_v0  ;;  %973 = vmatprep.mubr.bf16.mxu1 %v17620_v0 }
 0x123   :  { %11964 = vmatmul.mubr.msk.bf16.gmra.mrb[20].mxu0 %vm232_vm1, %v16016_v41  ;;  %11971 = vmatmul.mubr.msk.bf16.gmra.mrb[20].mxu1 %vm232_vm1, %v16016_v41 }
 0x124   :  { %1159 = vmatprep.mubr.bf16.mxu0 %v17620_v0  ;;  %1252 = vmatprep.mubr.bf16.mxu1 %v17620_v0 }
 0x12b   :  { %11981 = vmatmul.mubr.msk.bf16.vlgmr.msra.gmra.mrb[0].mxu0 %vm232_vm1, %v16027_v48  ;;  %11988 = vmatmul.mubr.msk.bf16.vlgmr.msra.gmra.mrb[0].mxu1 %vm232_vm1, %v16027_v48 }
 0x12c   :  { %1515 = vmatpush1.bf16.msra.mxu1 %v13898_v44  ;;  %1422 = vmatpush1.bf16.msra.mxu0 %v13901_v45 }
 0x12d   :  { %1169 = vmatprep.mubr.bf16.mxu0 %v17620_v0  ;;  %1262 = vmatprep.mubr.bf16.mxu1 %v17620_v0 }
 0x12e   :  { %12009 = vmatprep.subr.msk.bf16.mxu1 %vm251_vm0, %v13904_v49  ;;  %12002 = vmatprep.subr.msk.bf16.mxu0 %vm251_vm0, %v13907_v50 }
 0x130   :  { %1517 = vmatpush1.bf16.msra.mxu1 %v16037_v52  ;;  %1424 = vmatpush1.bf16.msra.mxu0 %v16040_v53 }
 0x131   :  { %1748 = vmatprep.subr.bf16.mxu1 %v15340_v58  ;;  %1655 = vmatprep.subr.bf16.mxu0 %v15341_v60 }
 0x133   :  { %11982 = vmatmul.mubr.msk.bf16.gmra.mrb[4].mxu0 %vm232_vm1, %v16045_v57  ;;  %11989 = vmatmul.mubr.msk.bf16.gmra.mrb[4].mxu1 %vm232_vm1, %v16045_v57 }
 0x134   :  { %1179 = vmatprep.mubr.bf16.mxu0 %v17620_v0  ;;  %1272 = vmatprep.mubr.bf16.mxu1 %v17620_v0 }
 0x13b   :  { %11983 = vmatmul.mubr.msk.bf16.gmra.mrb[8].mxu0 %vm232_vm1, %v16057_v63  ;;  %11990 = vmatmul.mubr.msk.bf16.gmra.mrb[8].mxu1 %vm232_vm1, %v16057_v63 }
 0x13c   :  { %1189 = vmatprep.mubr.bf16.mxu0 %v17620_v0  ;;  %1282 = vmatprep.mubr.bf16.mxu1 %v17620_v0 }
 0x143   :  { %11984 = vmatmul.mubr.msk.bf16.gmra.mrb[12].mxu0 %vm232_vm1, %v16067_v3  ;;  %11991 = vmatmul.mubr.msk.bf16.gmra.mrb[12].mxu1 %vm232_vm1, %v16067_v3 }
 0x144   :  { %1199 = vmatprep.mubr.bf16.mxu0 %v17620_v0  ;;  %1292 = vmatprep.mubr.bf16.mxu1 %v17620_v0 }
 0x14b   :  { %11985 = vmatmul.mubr.msk.bf16.gmra.mrb[16].mxu0 %vm232_vm1, %v16083_v8  ;;  %11992 = vmatmul.mubr.msk.bf16.gmra.mrb[16].mxu1 %vm232_vm1, %v16083_v8 }
 0x14c   :  { %1209 = vmatprep.mubr.bf16.mxu0 %v17620_v0  ;;  %1302 = vmatprep.mubr.bf16.mxu1 %v17620_v0 }
 0x153   :  { %11986 = vmatmul.mubr.msk.bf16.gmra.mrb[20].mxu0 %vm232_vm1, %v16095_v14  ;;  %11993 = vmatmul.mubr.msk.bf16.gmra.mrb[20].mxu1 %vm232_vm1, %v16095_v14 }
 0x154   :  { %1453 = vmatprep.mubr.bf16.mxu0 %v17620_v0  ;;  %1546 = vmatprep.mubr.bf16.mxu1 %v17620_v0 }
 0x15b   :  { %12003 = vmatmul.mubr.msk.bf16.vlgmr.msra.gmra.mrb[0].mxu0 %vm232_vm1, %v15879_v56  ;;  %12010 = vmatmul.mubr.msk.bf16.vlgmr.msra.gmra.mrb[0].mxu1 %vm232_vm1, %v15879_v56 }
 0x15c   :  { %1749 = vmatpush1.bf16.msra.mxu1 %v15342_v16  ;;  %1656 = vmatpush1.bf16.msra.mxu0 %v15343_v17 }
 0x15d   :  { %1463 = vmatprep.mubr.bf16.mxu0 %v17620_v0  ;;  %1556 = vmatprep.mubr.bf16.mxu1 %v17620_v0 }
 0x15e   :  { %12023 = vmatprep.subr.msk.bf16.mxu1 %vm251_vm0, %v15344_v18  ;;  %12016 = vmatprep.subr.msk.bf16.mxu0 %vm251_vm0, %v15345_v19 }
 0x160   :  { %1751 = vmatpush1.bf16.msra.mxu1 %v15759_v12  ;;  %1658 = vmatpush1.bf16.msra.mxu0 %v15756_v11  ;;  %v15348_v11 = vld [vmem:[#allocation2 + $0x8] ss:$16 sps:$4 sm:$0xff]   ;;  %v15349_v12 = vld [vmem:[#allocation2] ss:$16 sps:$4 sm:$0xff]  }
 0x161   :  { %1934 = vmatprep.subr.bf16.mxu1 %v15346_v20  ;;  %1841 = vmatprep.subr.bf16.mxu0 %v15347_v27 }
 0x163   :  { %12004 = vmatmul.mubr.msk.bf16.gmra.mrb[4].mxu0 %vm232_vm1, %v15895_v59  ;;  %12011 = vmatmul.mubr.msk.bf16.gmra.mrb[4].mxu1 %vm232_vm1, %v15895_v59 }
 0x164   :  { %1473 = vmatprep.mubr.bf16.mxu0 %v17620_v0  ;;  %1566 = vmatprep.mubr.bf16.mxu1 %v17620_v0 }
 0x16b   :  { %12005 = vmatmul.mubr.msk.bf16.gmra.mrb[8].mxu0 %vm232_vm1, %v15909_v62  ;;  %12012 = vmatmul.mubr.msk.bf16.gmra.mrb[8].mxu1 %vm232_vm1, %v15909_v62 }
 0x16c   :  { %1483 = vmatprep.mubr.bf16.mxu0 %v17620_v0  ;;  %1576 = vmatprep.mubr.bf16.mxu1 %v17620_v0 }
 0x173   :  { %12006 = vmatmul.mubr.msk.bf16.gmra.mrb[12].mxu0 %vm232_vm1, %v15923_v2  ;;  %12013 = vmatmul.mubr.msk.bf16.gmra.mrb[12].mxu1 %vm232_vm1, %v15923_v2 }
 0x174   :  { %1493 = vmatprep.mubr.bf16.mxu0 %v17620_v0  ;;  %1586 = vmatprep.mubr.bf16.mxu1 %v17620_v0 }
 0x17b   :  { %12007 = vmatmul.mubr.msk.bf16.gmra.mrb[16].mxu0 %vm232_vm1, %v15937_v5  ;;  %12014 = vmatmul.mubr.msk.bf16.gmra.mrb[16].mxu1 %vm232_vm1, %v15937_v5 }
 0x17c   :  { %1503 = vmatprep.mubr.bf16.mxu0 %v17620_v0  ;;  %1596 = vmatprep.mubr.bf16.mxu1 %v17620_v0 }
 0x183   :  { %12008 = vmatmul.mubr.msk.bf16.gmra.mrb[20].mxu0 %vm232_vm1, %v16006_v38  ;;  %12015 = vmatmul.mubr.msk.bf16.gmra.mrb[20].mxu1 %vm232_vm1, %v16006_v38 }
 0x184   :  { %1687 = vmatprep.mubr.bf16.mxu0 %v17620_v0  ;;  %1780 = vmatprep.mubr.bf16.mxu1 %v17620_v0 }
 0x18b   :  { %12017 = vmatmul.mubr.msk.bf16.vlgmr.msra.gmra.mrb[24].mxu0 %vm232_vm1, %v15948_v15  ;;  %12024 = vmatmul.mubr.msk.bf16.vlgmr.msra.gmra.mrb[24].mxu1 %vm232_vm1, %v15948_v15  ;;  %v15353_v15 = vld [vmem:[#allocation2 + $0x84] ss:$16 sps:$4 sm:$0xff]  }
 0x18c   :  { %1935 = vmatpush1.bf16.msra.mxu1 %v15348_v11  ;;  %1842 = vmatpush1.bf16.msra.mxu0 %v15349_v12 }
 0x18d   :  { %1697 = vmatprep.mubr.bf16.mxu0 %v17620_v0  ;;  %1790 = vmatprep.mubr.bf16.mxu1 %v17620_v0 }
 0x18e   :  { %12037 = vmatprep.subr.msk.bf16.mxu1 %vm251_vm0, %v15350_v29  ;;  %12030 = vmatprep.subr.msk.bf16.mxu0 %vm251_vm0, %v15351_v32 }
 0x190   :  { %1937 = vmatpush1.bf16.msra.mxu1 %v15779_v23  ;;  %1844 = vmatpush1.bf16.msra.mxu0 %v15786_v26  ;;  %v15354_v23 = vld [vmem:[#allocation2 + $0x88] ss:$16 sps:$4 sm:$0xff]   ;;  %v15355_v26 = vld [vmem:[#allocation2 + $0x80] ss:$16 sps:$4 sm:$0xff]  }
 0x191   :  { %2120 = vmatprep.subr.bf16.mxu1 %v15352_v33  ;;  %2027 = vmatprep.subr.bf16.mxu0 %v15353_v15 }
 0x193   :  { %12018 = vmatmul.mubr.msk.bf16.gmra.mrb[28].mxu0 %vm232_vm1, %v15966_v24  ;;  %12025 = vmatmul.mubr.msk.bf16.gmra.mrb[28].mxu1 %vm232_vm1, %v15966_v24  ;;  %v15356_v24 = vld [vmem:[#allocation2 + $0xac] ss:$16 sps:$4 sm:$0x3f]  }
 0x194   :  { %1707 = vmatprep.mubr.bf16.mxu0 %v17620_v0  ;;  %1800 = vmatprep.mubr.bf16.mxu1 %v17620_v0 }
 0x19b   :  { %12019 = vmatmul.mubr.msk.bf16.gmra.mrb[32].mxu0 %vm232_vm1, %v15978_v28  ;;  %12026 = vmatmul.mubr.msk.bf16.gmra.mrb[32].mxu1 %vm232_vm1, %v15978_v28  ;;  %v15357_v28 = vld [vmem:[#allocation2 + $0xa4] ss:$16 sps:$4 sm:$0x3f]  }
 0x19c   :  { %1717 = vmatprep.mubr.bf16.mxu0 %v17620_v0  ;;  %1810 = vmatprep.mubr.bf16.mxu1 %v17620_v0 }
 0x1a3   :  { %12020 = vmatmul.mubr.msk.bf16.gmra.mrb[36].mxu0 %vm232_vm1, %v15988_v30  ;;  %12027 = vmatmul.mubr.msk.bf16.gmra.mrb[36].mxu1 %vm232_vm1, %v15988_v30  ;;  %v15358_v30 = vld [vmem:[#allocation2 + $0xcc] ss:$16 sps:$4 sm:$0xff]  }
 0x1a4   :  { %1727 = vmatprep.mubr.bf16.mxu0 %v17620_v0  ;;  %1820 = vmatprep.mubr.bf16.mxu1 %v17620_v0 }
 0x1ab   :  { %12021 = vmatmul.mubr.msk.bf16.gmra.mrb[40].mxu0 %vm232_vm1, %v16004_v36  ;;  %12028 = vmatmul.mubr.msk.bf16.gmra.mrb[40].mxu1 %vm232_vm1, %v16004_v36  ;;  %v15363_v36 = vld [vmem:[#allocation2 + $0xe4] ss:$16 sps:$4 sm:$0x3f]  }
 0x1ac   :  { %1737 = vmatprep.mubr.bf16.mxu0 %v17620_v0  ;;  %1830 = vmatprep.mubr.bf16.mxu1 %v17620_v0 }
 0x1b3   :  { %12022 = vmatmul.mubr.msk.bf16.gmra.mrb[44].mxu0 %vm232_vm1, %v16016_v41  ;;  %12029 = vmatmul.mubr.msk.bf16.gmra.mrb[44].mxu1 %vm232_vm1, %v16016_v41  ;;  %v15365_v41 = vld [vmem:[#allocation2 + $0x104] ss:$16 sps:$4 sm:$0xff]  }
 0x1b4   :  { %1873 = vmatprep.mubr.bf16.mxu0 %v17620_v0  ;;  %1966 = vmatprep.mubr.bf16.mxu1 %v17620_v0 }
 0x1bb   :  { %12031 = vmatmul.mubr.msk.bf16.vlgmr.msra.gmra.mrb[24].mxu0 %vm232_vm1, %v15761_v13  ;;  %12038 = vmatmul.mubr.msk.bf16.vlgmr.msra.gmra.mrb[24].mxu1 %vm232_vm1, %v15761_v13  ;;  %v15359_v13 = vld [vmem:[#allocation2 + $0xc4] ss:$16 sps:$4 sm:$0xff]  }
 0x1bc   :  { %2121 = vmatpush1.bf16.msra.mxu1 %v15354_v23  ;;  %2028 = vmatpush1.bf16.msra.mxu0 %v15355_v26 }
 0x1bd   :  { %1883 = vmatprep.mubr.bf16.mxu0 %v17620_v0  ;;  %1976 = vmatprep.mubr.bf16.mxu1 %v17620_v0 }
 0x1be   :  { %12051 = vmatprep.subr.msk.bf16.mxu1 %vm251_vm0, %v15356_v24  ;;  %12044 = vmatprep.subr.msk.bf16.mxu0 %vm251_vm0, %v15357_v28 }
 0x1c0   :  { %2123 = vmatpush1.bf16.msra.mxu1 %v15872_v54  ;;  %2030 = vmatpush1.bf16.msra.mxu0 %v15875_v55  ;;  %v15360_v54 = vld [vmem:[#allocation2 + $0xc8] ss:$16 sps:$4 sm:$0xff]   ;;  %v15361_v55 = vld [vmem:[#allocation2 + $0xc0] ss:$16 sps:$4 sm:$0xff]  }
 0x1c1   :  { %2354 = vmatprep.subr.bf16.mxu1 %v15358_v30  ;;  %2261 = vmatprep.subr.bf16.mxu0 %v15359_v13 }
 0x1c3   :  { %12032 = vmatmul.mubr.msk.bf16.gmra.mrb[28].mxu0 %vm232_vm1, %v15781_v25  ;;  %12039 = vmatmul.mubr.msk.bf16.gmra.mrb[28].mxu1 %vm232_vm1, %v15781_v25 }
 0x1c4   :  { %1893 = vmatprep.mubr.bf16.mxu0 %v17620_v0  ;;  %1986 = vmatprep.mubr.bf16.mxu1 %v17620_v0 }
 0x1cb   :  { %12033 = vmatmul.mubr.msk.bf16.gmra.mrb[32].mxu0 %vm232_vm1, %v15801_v31  ;;  %12040 = vmatmul.mubr.msk.bf16.gmra.mrb[32].mxu1 %vm232_vm1, %v15801_v31 }
 0x1cc   :  { %1903 = vmatprep.mubr.bf16.mxu0 %v17620_v0  ;;  %1996 = vmatprep.mubr.bf16.mxu1 %v17620_v0 }
 0x1d3   :  { %12034 = vmatmul.mubr.msk.bf16.gmra.mrb[36].mxu0 %vm232_vm1, %v15815_v34  ;;  %12041 = vmatmul.mubr.msk.bf16.gmra.mrb[36].mxu1 %vm232_vm1, %v15815_v34 }
 0x1d4   :  { %1913 = vmatprep.mubr.bf16.mxu0 %v17620_v0  ;;  %2006 = vmatprep.mubr.bf16.mxu1 %v17620_v0 }
 0x1db   :  { %12035 = vmatmul.mubr.msk.bf16.gmra.mrb[40].mxu0 %vm232_vm1, %v15829_v37  ;;  %12042 = vmatmul.mubr.msk.bf16.gmra.mrb[40].mxu1 %vm232_vm1, %v15829_v37 }
 0x1dc   :  { %1923 = vmatprep.mubr.bf16.mxu0 %v17620_v0  ;;  %2016 = vmatprep.mubr.bf16.mxu1 %v17620_v0 }
 0x1e3   :  { %12036 = vmatmul.mubr.msk.bf16.gmra.mrb[44].mxu0 %vm232_vm1, %v15843_v40  ;;  %12043 = vmatmul.mubr.msk.bf16.gmra.mrb[44].mxu1 %vm232_vm1, %v15843_v40 }
 0x1e4   :  { %2059 = vmatprep.mubr.bf16.mxu0 %v17620_v0  ;;  %2152 = vmatprep.mubr.bf16.mxu1 %v17620_v0 }
 0x1eb   :  { %12045 = vmatmul.mubr.msk.bf16.vlgmr.msra.gmra.mrb[24].mxu0 %vm232_vm1, %v16027_v48  ;;  %12052 = vmatmul.mubr.msk.bf16.vlgmr.msra.gmra.mrb[24].mxu1 %vm232_vm1, %v16027_v48 }
 0x1ec   :  { %2355 = vmatpush1.bf16.msra.mxu1 %v15360_v54  ;;  %2262 = vmatpush1.bf16.msra.mxu0 %v15361_v55  ;;  %v13915_v54 = vld [vmem:[#allocation6 + $0x3ac] ss:$16 sps:$4 sm:$0xff]   ;;  %v13916_v55 = vld [vmem:[#allocation6 + $0x3c0] ss:$16 sps:$4 sm:$0xff]  }
 0x1ed   :  { %2069 = vmatprep.mubr.bf16.mxu0 %v17620_v0  ;;  %2162 = vmatprep.mubr.bf16.mxu1 %v17620_v0 }
 0x1ee   :  { %12065 = vmatprep.subr.msk.bf16.mxu1 %vm251_vm0, %v15362_v35  ;;  %12058 = vmatprep.subr.msk.bf16.mxu0 %vm251_vm0, %v15363_v36  ;;  %v13919_v35 = vld [vmem:[#allocation6 + $0x3c8] ss:$16 sps:$4 sm:$0xff]   ;;  %v13921_v36 = vld [vmem:[#allocation6 + $0x3cc] ss:$16 sps:$4 sm:$0xff]  }
 0x1f0   :  { %2357 = vmatpush1.bf16.msra.mxu1 %v15958_v21  ;;  %2264 = vmatpush1.bf16.msra.mxu0 %v15961_v22  ;;  %v15366_v21 = vld [vmem:[#allocation2 + $0x108] ss:$16 sps:$4 sm:$0xff]   ;;  %v15367_v22 = vld [vmem:[#allocation2 + $0x100] ss:$16 sps:$4 sm:$0xff]  }
 0x1f1   :  { %2591 = vmatprep.subr.bf16.mxu1 %v15364_v39  ;;  %2498 = vmatprep.subr.bf16.mxu0 %v15365_v41  ;;  %v13922_v39 = vld [vmem:[#allocation6 + $0x3e0] ss:$16 sps:$4 sm:$0xff]   ;;  %v13924_v41 = vld [vmem:[#allocation6 + $0x3e4] ss:$16 sps:$4 sm:$0xff]  }
 0x1f3   :  { %12046 = vmatmul.mubr.msk.bf16.gmra.mrb[28].mxu0 %vm232_vm1, %v16045_v57  ;;  %12053 = vmatmul.mubr.msk.bf16.gmra.mrb[28].mxu1 %vm232_vm1, %v16045_v57 }
 0x1f4   :  { %2079 = vmatprep.mubr.bf16.mxu0 %v17620_v0  ;;  %2172 = vmatprep.mubr.bf16.mxu1 %v17620_v0 }
 0x1fb   :  { %12047 = vmatmul.mubr.msk.bf16.gmra.mrb[32].mxu0 %vm232_vm1, %v16057_v63  ;;  %12054 = vmatmul.mubr.msk.bf16.gmra.mrb[32].mxu1 %vm232_vm1, %v16057_v63 }
 0x1fc   :  { %2089 = vmatprep.mubr.bf16.mxu0 %v17620_v0  ;;  %2182 = vmatprep.mubr.bf16.mxu1 %v17620_v0 }
 0x203   :  { %12048 = vmatmul.mubr.msk.bf16.gmra.mrb[36].mxu0 %vm232_vm1, %v16067_v3  ;;  %12055 = vmatmul.mubr.msk.bf16.gmra.mrb[36].mxu1 %vm232_vm1, %v16067_v3 }
 0x204   :  { %2099 = vmatprep.mubr.bf16.mxu0 %v17620_v0  ;;  %2192 = vmatprep.mubr.bf16.mxu1 %v17620_v0 }
 0x20b   :  { %12049 = vmatmul.mubr.msk.bf16.gmra.mrb[40].mxu0 %vm232_vm1, %v16083_v8  ;;  %12056 = vmatmul.mubr.msk.bf16.gmra.mrb[40].mxu1 %vm232_vm1, %v16083_v8 }
 0x20c   :  { %2109 = vmatprep.mubr.bf16.mxu0 %v17620_v0  ;;  %2202 = vmatprep.mubr.bf16.mxu1 %v17620_v0 }
 0x213   :  { %12050 = vmatmul.mubr.msk.bf16.gmra.mrb[44].mxu0 %vm232_vm1, %v16095_v14  ;;  %12057 = vmatmul.mubr.msk.bf16.gmra.mrb[44].mxu1 %vm232_vm1, %v16095_v14 }
 0x214   :  { %2293 = vmatprep.mubr.bf16.mxu0 %v17620_v0  ;;  %2386 = vmatprep.mubr.bf16.mxu1 %v17620_v0 }
 0x21b   :  { %12059 = vmatmul.mubr.msk.bf16.vlgmr.msra.gmra.mrb[24].mxu0 %vm232_vm1, %v15879_v56  ;;  %12066 = vmatmul.mubr.msk.bf16.vlgmr.msra.gmra.mrb[24].mxu1 %vm232_vm1, %v15879_v56 }
 0x21c   :  { %2592 = vmatpush1.bf16.msra.mxu1 %v15366_v21  ;;  %2499 = vmatpush1.bf16.msra.mxu0 %v15367_v22  ;;  %v13925_v21 = vld [vmem:[#allocation6 + $0x3e8] ss:$16 sps:$4 sm:$0xff]   ;;  %v13928_v22 = vld [vmem:[#allocation6 + $0x400] ss:$16 sps:$4 sm:$0xff]  }
 0x21d   :  { %2303 = vmatprep.mubr.bf16.mxu0 %v17620_v0  ;;  %2396 = vmatprep.mubr.bf16.mxu1 %v17620_v0 }
 0x21e   :  { %12079 = vmatprep.subr.msk.bf16.mxu1 %vm251_vm0, %v15368_v42  ;;  %12072 = vmatprep.subr.msk.bf16.mxu0 %vm251_vm0, %v15369_v43  ;;  %v13930_v42 = vld [vmem:[#allocation6 + $0x404] ss:$16 sps:$4 sm:$0xff]   ;;  %v13931_v43 = vld [vmem:[#allocation6 + $0x408] ss:$16 sps:$4 sm:$0xff]  }
 0x220   :  { %2594 = vmatpush1.bf16.msra.mxu1 %v16037_v52  ;;  %2501 = vmatpush1.bf16.msra.mxu0 %v16040_v53 }
 0x221   :  { %4247 = vmatprep.subr.bf16.mxu1 %v13915_v54  ;;  %v13934_v54 = vld [vmem:[#allocation6 + $0x420] ss:$16 sps:$4 sm:$0xff]  }
 0x223   :  { %12060 = vmatmul.mubr.msk.bf16.gmra.mrb[28].mxu0 %vm232_vm1, %v15895_v59  ;;  %12067 = vmatmul.mubr.msk.bf16.gmra.mrb[28].mxu1 %vm232_vm1, %v15895_v59 }
 0x224   :  { %2313 = vmatprep.mubr.bf16.mxu0 %v17620_v0  ;;  %2406 = vmatprep.mubr.bf16.mxu1 %v17620_v0 }
 0x22b   :  { %12061 = vmatmul.mubr.msk.bf16.gmra.mrb[32].mxu0 %vm232_vm1, %v15909_v62  ;;  %12068 = vmatmul.mubr.msk.bf16.gmra.mrb[32].mxu1 %vm232_vm1, %v15909_v62 }
 0x22c   :  { %2323 = vmatprep.mubr.bf16.mxu0 %v17620_v0  ;;  %2416 = vmatprep.mubr.bf16.mxu1 %v17620_v0 }
 0x22e   :  { %v16285_v56 = vpop.f32.mrb[0].mxu0  ;;  %v16287_v44 = vpop.f32.mrb[0].mxu1 }
 0x22f   :  { %v16289_v45 = vpop.f32.mrb[1].mxu0  ;;  %v16291_v59 = vpop.f32.mrb[1].mxu1 }
 0x230   :  { %v16293_v46 = vpop.f32.mrb[2].mxu0  ;;  %v16295_v47 = vpop.f32.mrb[2].mxu1 }
 0x231   :  { %v16297_v48 = vpop.f32.mrb[3].mxu0  ;;  %v16299_v49 = vpop.f32.mrb[3].mxu1 }
 0x233   :  { %12062 = vmatmul.mubr.msk.bf16.gmra.mrb[36].mxu0 %vm232_vm1, %v15923_v2  ;;  %12069 = vmatmul.mubr.msk.bf16.gmra.mrb[36].mxu1 %vm232_vm1, %v15923_v2 }
 0x234   :  { %2333 = vmatprep.mubr.bf16.mxu0 %v17620_v0  ;;  %2426 = vmatprep.mubr.bf16.mxu1 %v17620_v0 }
 0x236   :  { %v16307_v62 = vpop.f32.mrb[4].mxu0  ;;  %v16309_v50 = vpop.f32.mrb[4].mxu1 }
 0x237   :  { %v16311_v51 = vpop.f32.mrb[5].mxu0  ;;  %v16313_v52 = vpop.f32.mrb[5].mxu1 }
 0x238   :  { %v16315_v53 = vpop.f32.mrb[6].mxu0  ;;  %v16317_v57 = vpop.f32.mrb[6].mxu1 }
 0x239   :  { %v16319_v58 = vpop.f32.mrb[7].mxu0  ;;  %v16321_v60 = vpop.f32.mrb[7].mxu1 }
 0x23b   :  { %12063 = vmatmul.mubr.msk.bf16.gmra.mrb[40].mxu0 %vm232_vm1, %v15937_v5  ;;  %12070 = vmatmul.mubr.msk.bf16.gmra.mrb[40].mxu1 %vm232_vm1, %v15937_v5 }
 0x23c   :  { %2343 = vmatprep.mubr.bf16.mxu0 %v17620_v0  ;;  %2436 = vmatprep.mubr.bf16.mxu1 %v17620_v0 }
 0x23e   :  { %v16329_v2 = vpop.f32.mrb[8].mxu0  ;;  %v16331_v61 = vpop.f32.mrb[8].mxu1 }
 0x23f   :  { %v16333_v63 = vpop.f32.mrb[9].mxu0  ;;  %v16335_v1 = vpop.f32.mrb[9].mxu1 }
 0x240   :  { %v16337_v3 = vpop.f32.mrb[10].mxu0  ;;  %v16339_v4 = vpop.f32.mrb[10].mxu1 }
 0x241   :  { %v16341_v6 = vpop.f32.mrb[11].mxu0  ;;  %v16343_v7 = vpop.f32.mrb[11].mxu1 }
 0x243   :  { %12064 = vmatmul.mubr.msk.bf16.gmra.mrb[44].mxu0 %vm232_vm1, %v16006_v38  ;;  %12071 = vmatmul.mubr.msk.bf16.gmra.mrb[44].mxu1 %vm232_vm1, %v16006_v38 }
 0x244   :  { %2530 = vmatprep.mubr.bf16.mxu0 %v17620_v0  ;;  %2623 = vmatprep.mubr.bf16.mxu1 %v17620_v0 }
 0x246   :  { %v16351_v5 = vpop.f32.mrb[12].mxu0  ;;  %v16353_v8 = vpop.f32.mrb[12].mxu1 }
 0x247   :  { %v16355_v10 = vpop.f32.mrb[13].mxu0  ;;  %v16357_v14 = vpop.f32.mrb[13].mxu1 }
 0x248   :  { %v16359_v16 = vpop.f32.mrb[14].mxu0  ;;  %v16361_v17 = vpop.f32.mrb[14].mxu1 }
 0x249   :  { %v16363_v18 = vpop.f32.mrb[15].mxu0  ;;  %v16365_v19 = vpop.f32.mrb[15].mxu1 }
 0x24b   :  { %12073 = vmatmul.mubr.msk.bf16.vlgmr.msra.gmra.mrb[24].mxu0 %vm232_vm1, %v15781_v25  ;;  %12080 = vmatmul.mubr.msk.bf16.vlgmr.msra.gmra.mrb[24].mxu1 %vm232_vm1, %v15781_v25 }
 0x24c   :  { %2540 = vmatprep.mubr.bf16.mxu0 %v17620_v0  ;;  %2633 = vmatprep.mubr.bf16.mxu1 %v17620_v0 }
 0x24e   :  { %v16373_v38 = vpop.f32.mrb[16].mxu0  ;;  %v16375_v20 = vpop.f32.mrb[16].mxu1 }
 0x24f   :  { %v16377_v27 = vpop.f32.mrb[17].mxu0  ;;  %v16379_v11 = vpop.f32.mrb[17].mxu1 }
 0x250   :  { %v16381_v12 = vpop.f32.mrb[18].mxu0  ;;  %v16383_v29 = vpop.f32.mrb[18].mxu1 }
 0x251   :  { %v16385_v32 = vpop.f32.mrb[19].mxu0  ;;  %v16387_v33 = vpop.f32.mrb[19].mxu1 }
 0x253   :  { %12074 = vmatmul.mubr.msk.bf16.gmra.mrb[28].mxu0 %vm232_vm1, %v15801_v31  ;;  %12081 = vmatmul.mubr.msk.bf16.gmra.mrb[28].mxu1 %vm232_vm1, %v15801_v31  ;;  %v13910_v31 = vld [vmem:[#allocation6 + $0x3a0] ss:$16 sps:$4 sm:$0xff]  }
 0x254   :  { %2550 = vmatprep.mubr.bf16.mxu0 %v17620_v0  ;;  %2643 = vmatprep.mubr.bf16.mxu1 %v17620_v0 }
 0x256   :  { %v16395_v25 = vpop.f32.mrb[20].mxu0  ;;  %v16397_v15 = vpop.f32.mrb[20].mxu1 }
 0x257   :  { %v16399_v23 = vpop.f32.mrb[21].mxu0  ;;  %v16401_v26 = vpop.f32.mrb[21].mxu1 }
 0x258   :  { %v16403_v24 = vpop.f32.mrb[22].mxu0  ;;  %v16405_v28 = vpop.f32.mrb[22].mxu1 }
 0x259   :  { %v16407_v30 = vpop.f32.mrb[23].mxu0  ;;  %v16409_v13 = vpop.f32.mrb[23].mxu1 }
 0x25b   :  { %12075 = vmatmul.mubr.msk.bf16.gmra.mrb[32].mxu0 %vm232_vm1, %v15815_v34  ;;  %12082 = vmatmul.mubr.msk.bf16.gmra.mrb[32].mxu1 %vm232_vm1, %v15815_v34  ;;  %v13912_v34 = vld [vmem:[#allocation6 + $0x3a4] ss:$16 sps:$4 sm:$0xff]  }
 0x25c   :  { %2560 = vmatprep.mubr.bf16.mxu0 %v17620_v0  ;;  %2653 = vmatprep.mubr.bf16.mxu1 %v17620_v0 }
 0x25d   :  { %4101 = vmatprep.subr.bf16.mxu0 %v13912_v34  ;;  %v13936_v34 = vld [vmem:[#allocation6 + $0x424] ss:$16 sps:$4 sm:$0xff]  }
 0x25e   :  { %4102 = vmatpush1.bf16.msra.mxu0 %v13910_v31  ;;  %v13933_v31 = vld [vmem:[#allocation6 + $0x40c] ss:$16 sps:$4 sm:$0xff]  }
 0x263   :  { %12076 = vmatmul.mubr.msk.bf16.gmra.mrb[36].mxu0 %vm232_vm1, %v15829_v37  ;;  %12083 = vmatmul.mubr.msk.bf16.gmra.mrb[36].mxu1 %vm232_vm1, %v15829_v37  ;;  %v13913_v37 = vld [vmem:[#allocation6 + $0x3a8] ss:$16 sps:$4 sm:$0xff]  }
 0x264   :  { %2570 = vmatprep.mubr.bf16.mxu0 %v17620_v0  ;;  %2663 = vmatprep.mubr.bf16.mxu1 %v17620_v0 }
 0x265   :  { %4248 = vmatpush1.bf16.msra.mxu1 %v13913_v37  ;;  %v13939_v37 = vld [vmem:[#allocation6 + $0x42c] ss:$16 sps:$4 sm:$0xff]  }
 0x266   :  { %4249 = vmatprep.subr.bf16.mxu1 %v13921_v36  ;;  %v13940_v36 = vld [vmem:[#allocation6 + $0x440] ss:$16 sps:$4 sm:$0xff]  }
 0x269   :  { %4250 = vmatpush1.bf16.msra.mxu1 %v13919_v35  ;;  %v13945_v35 = vld [vmem:[#allocation6 + $0x44c] ss:$16 sps:$4 sm:$0xff]  }
 0x26b   :  { %12077 = vmatmul.mubr.msk.bf16.gmra.mrb[40].mxu0 %vm232_vm1, %v15843_v40  ;;  %12084 = vmatmul.mubr.msk.bf16.gmra.mrb[40].mxu1 %vm232_vm1, %v15843_v40  ;;  %v13918_v40 = vld [vmem:[#allocation6 + $0x3c4] ss:$16 sps:$4 sm:$0xff]  }
 0x26c   :  { %2580 = vmatprep.mubr.bf16.mxu0 %v17620_v0  ;;  %2673 = vmatprep.mubr.bf16.mxu1 %v17620_v0 }
 0x26d   :  { %4103 = vmatprep.subr.bf16.mxu0 %v13918_v40  ;;  %v13942_v40 = vld [vmem:[#allocation6 + $0x444] ss:$16 sps:$4 sm:$0xff]  }
 0x26e   :  { %4104 = vmatpush1.bf16.msra.mxu0 %v13916_v55  ;;  %v13937_v55 = vld [vmem:[#allocation6 + $0x428] ss:$16 sps:$4 sm:$0xff]  }
 0x26f   :  { %4105 = vmatprep.subr.bf16.mxu0 %v13924_v41  ;;  %v13948_v41 = vld [vmem:[#allocation6 + $0x464] ss:$16 sps:$4 sm:$0xff]  }
 0x272   :  { %4106 = vmatpush1.bf16.msra.mxu0 %v13922_v39  ;;  %v13943_v39 = vld [vmem:[#allocation6 + $0x448] ss:$16 sps:$4 sm:$0xff]  }
 0x273   :  { %12078 = vmatmul.mubr.msk.bf16.gmra.mrb[44].mxu0 %vm232_vm1, %v16085_v9  ;;  %12085 = vmatmul.mubr.msk.bf16.gmra.mrb[44].mxu1 %vm232_vm1, %v16085_v9  ;;  %v13927_v9 = vld [vmem:[#allocation6 + $0x3ec] ss:$16 sps:$4 sm:$0xff]  }
 0x274   :  { %4251 = vmatprep.subr.bf16.mxu1 %v13927_v9  ;;  %4107 = vmatprep.subr.bf16.mxu0 %v13930_v42  ;;  %v13946_v9 = vld [vmem:[#allocation6 + $0x460] ss:$16 sps:$4 sm:$0xff]   ;;  %v13954_v42 = vld [vmem:[#allocation6 + $0x484] ss:$16 sps:$4 sm:$0xff]  }
 0x275   :  { %4252 = vmatpush1.bf16.msra.mxu1 %v13925_v21  ;;  %v13951_v21 = vld [vmem:[#allocation6 + $0x46c] ss:$16 sps:$4 sm:$0xff]  }
 0x276   :  { %4253 = vmatprep.subr.bf16.mxu1 %v13933_v31  ;;  %4108 = vmatpush1.bf16.msra.mxu0 %v13928_v22  ;;  %v13949_v22 = vld [vmem:[#allocation6 + $0x468] ss:$16 sps:$4 sm:$0xff]   ;;  %v13952_v31 = vld [vmem:[#allocation6 + $0x480] ss:$16 sps:$4 sm:$0xff]  }
 0x277   :  { %4109 = vmatprep.subr.bf16.mxu0 %v13936_v34  ;;  %v13955_v34 = vld [vmem:[#allocation6 + $0x488] ss:$16 sps:$4 sm:$0xff]  }
 0x279   :  { %4254 = vmatpush1.bf16.msra.mxu1 %v13931_v43  ;;  %v13957_v43 = vld [vmem:[#allocation6 + $0x48c] ss:$16 sps:$4 sm:$0xff]  }
 0x27a   :  { %4255 = vmatprep.subr.bf16.mxu1 %v13939_v37  ;;  %4110 = vmatpush1.bf16.msra.mxu0 %v13934_v54  ;;  %v13958_v37 = vld [vmem:[#allocation6 + $0x4a8] ss:$16 sps:$4 sm:$0xff]   ;;  %v13960_v54 = vld [vmem:[#allocation6 + $0x4ac] ss:$16 sps:$4 sm:$0xff]  }
 0x27b   :  { %4111 = vmatprep.subr.bf16.mxu0 %v13942_v40  ;;  %v13961_v40 = vld [vmem:[#allocation6 + $0x4a0] ss:$16 sps:$4 sm:$0xff]  }
 0x27d   :  { %4256 = vmatpush1.bf16.msra.mxu1 %v13937_v55  ;;  %v13963_v55 = vld [vmem:[#allocation6 + $0x4a4] ss:$16 sps:$4 sm:$0xff]  }
 0x27e   :  { %4257 = vmatprep.subr.bf16.mxu1 %v13945_v35  ;;  %4112 = vmatpush1.bf16.msra.mxu0 %v13940_v36  ;;  %v13964_v35 = vld [vmem:[#allocation6 + $0x4c0] ss:$16 sps:$4 sm:$0xff]   ;;  %v13966_v36 = vld [vmem:[#allocation6 + $0x4c4] ss:$16 sps:$4 sm:$0xff]  }
 0x27f   :  { %4113 = vmatprep.subr.bf16.mxu0 %v13948_v41  ;;  %v13969_v41 = vld [vmem:[#allocation6 + $0x4cc] ss:$16 sps:$4 sm:$0xff]  }
 0x281   :  { %4258 = vmatpush1.bf16.msra.mxu1 %v13943_v39  ;;  %v13967_v39 = vld [vmem:[#allocation6 + $0x4c8] ss:$16 sps:$4 sm:$0xff]  }
 0x282   :  { %4259 = vmatprep.subr.bf16.mxu1 %v13951_v21  ;;  %4114 = vmatpush1.bf16.msra.mxu0 %v13946_v9  ;;  %v13972_v21 = vld [vmem:[#allocation6 + $0x4e4] ss:$16 sps:$4 sm:$0xff]   ;;  %v13975_v9 = vld [vmem:[#allocation6 + $0x4ec] ss:$16 sps:$4 sm:$0xff]  }
 0x283   :  { %4115 = vmatprep.subr.bf16.mxu0 %v13954_v42  ;;  %v13973_v42 = vld [vmem:[#allocation6 + $0x4e8] ss:$16 sps:$4 sm:$0xff]  }
 0x285   :  { %4260 = vmatpush1.bf16.msra.mxu1 %v13949_v22  ;;  %v13970_v22 = vld [vmem:[#allocation6 + $0x4e0] ss:$16 sps:$4 sm:$0xff]  }
 0x286   :  { %4261 = vmatprep.subr.bf16.mxu1 %v13957_v43  ;;  %4116 = vmatpush1.bf16.msra.mxu0 %v13952_v31 }
 0x287   :  { %4117 = vmatprep.subr.bf16.mxu0 %v13963_v55 }
 0x289   :  { %4262 = vmatpush1.bf16.msra.mxu1 %v13955_v34 }
 0x28a   :  { %4263 = vmatprep.subr.bf16.mxu1 %v13960_v54  ;;  %4118 = vmatpush1.bf16.msra.mxu0 %v13961_v40  ;;  %v13978_v40 = vld [vmem:[#allocation6 + $0x504] ss:$16 sps:$4 sm:$0xff]  }
 0x28b   :  { %4119 = vmatprep.subr.bf16.mxu0 %v13966_v36 }
 0x28d   :  { %4264 = vmatpush1.bf16.msra.mxu1 %v13958_v37 }
 0x28e   :  { %4265 = vmatprep.subr.bf16.mxu1 %v13969_v41  ;;  %4120 = vmatpush1.bf16.msra.mxu0 %v13964_v35  ;;  %v13981_v35 = vld [vmem:[#allocation6 + $0x50c] ss:$16 sps:$4 sm:$0xff]  }
 0x28f   :  { %4121 = vmatprep.subr.bf16.mxu0 %v13972_v21 }
 0x291   :  { %4266 = vmatpush1.bf16.msra.mxu1 %v13967_v39 }
 0x292   :  { %4267 = vmatprep.subr.bf16.mxu1 %v13975_v9  ;;  %4122 = vmatpush1.bf16.msra.mxu0 %v13970_v22  ;;  %v13976_v9 = vld [vmem:[#allocation6 + $0x500] ss:$16 sps:$4 sm:$0xff]   ;;  %v13979_v22 = vld [vmem:[#allocation6 + $0x508] ss:$16 sps:$4 sm:$0xff]  }
 0x293   :  { %4123 = vmatprep.subr.bf16.mxu0 %v13978_v40 }
 0x295   :  { %4268 = vmatpush1.bf16.msra.mxu1 %v13973_v42 }
 0x296   :  { %4269 = vmatprep.subr.bf16.mxu1 %v13981_v35  ;;  %4124 = vmatpush1.bf16.msra.mxu0 %v13976_v9  ;;  %v13993_v9 = vld [vmem:[#allocation6 + $0x54c] ss:$16 sps:$4 sm:$0xff]  }
 0x299   :  { %4270 = vmatpush1.bf16.msra.mxu1 %v13979_v22 }
 0x31e   :  { %v2532_v43 = vpop.f32.mrb[24].mxu0  ;;  %v2625_v31 = vpop.f32.mrb[24].mxu1 }
 0x31f   :  { %v16434_v34 = vmax.f32 %v16285_v56, %v2532_v43  ;;  %v16437_v37 = vmax.f32 %v16287_v44, %v2625_v31  ;;  %v2534_v54 = vpop.f32.mrb[25].mxu0  ;;  %v2627_v55 = vpop.f32.mrb[25].mxu1  ;;  %v13982_v31 = vld [vmem:[#allocation6 + $0x520] ss:$16 sps:$4 sm:$0xff]  }
 0x320   :  { %v16440_v36 = vmax.f32 %v16289_v45, %v2534_v54  ;;  %v16443_v39 = vmax.f32 %v16291_v59, %v2627_v55  ;;  %v2536_v41 = vpop.f32.mrb[26].mxu0  ;;  %v2629_v21 = vpop.f32.mrb[26].mxu1  ;;  %v13985_v54 = vld [vmem:[#allocation6 + $0x528] ss:$16 sps:$4 sm:$0xff]  }
 0x321   :  { %v16446_v56 = vmax.f32 %v16293_v46, %v2536_v41  ;;  %v16449_v44 = vmax.f32 %v16295_v47, %v2629_v21  ;;  %2832 = vrot.lane.b32.xlu0 %v16437_v37, %s15569_s1  ;;  %v2538_v42 = vpop.f32.mrb[27].mxu0  ;;  %v2631_v45 = vpop.f32.mrb[27].mxu1  ;;  %v13984_v46 = vld [vmem:[#allocation6 + $0x524] ss:$16 sps:$4 sm:$0xff]   ;;  %v13987_v47 = vld [vmem:[#allocation6 + $0x52c] ss:$16 sps:$4 sm:$0xff]  }
 0x322   :  { %v16454_v59 = vmax.f32 %v16297_v48, %v2538_v42  ;;  %v16457_v43 = vmax.f32 %v16299_v49, %v2631_v45  ;;  %4125 = vmatprep.subr.bf16.mxu0 %v13984_v46  ;;  %4271 = vmatprep.subr.bf16.mxu1 %v13987_v47  ;;  %v13990_v21 = vld [vmem:[#allocation6 + $0x544] ss:$16 sps:$4 sm:$0xff]   ;;  %v13988_v46 = vld [vmem:[#allocation6 + $0x540] ss:$16 sps:$4 sm:$0xff]   ;;  %v13991_v47 = vld [vmem:[#allocation6 + $0x548] ss:$16 sps:$4 sm:$0xff]  }
 0x323   :  { %2840 = vrot.lane.b32.xlu1 %v16449_v44, %s15569_s1  ;;  %4126 = vmatpush1.bf16.msra.mxu0 %v13982_v31 }
 0x324   :  { %4272 = vmatpush1.bf16.msra.mxu1 %v13985_v54  ;;  %4127 = vmatprep.subr.bf16.mxu0 %v13990_v21 }
 0x325   :  { %2828 = vrot.lane.b32.xlu0 %v16434_v34, %s15569_s1  ;;  %4273 = vmatprep.subr.bf16.mxu1 %v13993_v9 }
 0x326   :  { %v2542_v55 = vpop.f32.mrb[28].mxu0  ;;  %v2635_v48 = vpop.f32.mrb[28].mxu1 }
 0x327   :  { %v16464_v49 = vmax.f32 %v16307_v62, %v2542_v55  ;;  %v16467_v40 = vmax.f32 %v16309_v50, %v2635_v48  ;;  %v2637_v35 = vpop.f32.mrb[29].mxu1  ;;  %2836 = vrot.lane.b32.xlu1 %v16446_v56, %s15569_s1  ;;  %v2544_v41 = vpop.f32.mrb[29].mxu0  ;;  %4128 = vmatpush1.bf16.msra.mxu0 %v13988_v46  ;;  %v13994_v48 = vld [vmem:[#allocation6 + $0x560] ss:$16 sps:$4 sm:$0xff]   ;;  %v14005_v46 = vld [vmem:[#allocation6 + $0x58c] ss:$16 sps:$4 sm:$0xff]  }
 0x328   :  { %v16472_v22 = vmax.f32 %v16313_v52, %v2637_v35  ;;  %v16475_v42 = vmax.f32 %v16311_v51, %v2544_v41  ;;  %v2546_v45 = vpop.f32.mrb[30].mxu0  ;;  %v2639_v62 = vpop.f32.mrb[30].mxu1  ;;  %4274 = vmatpush1.bf16.msra.mxu1 %v13991_v47  ;;  %v13997_v35 = vld [vmem:[#allocation6 + $0x568] ss:$16 sps:$4 sm:$0xff]  }
 0x329   :  { %v16478_v50 = vmax.f32 %v16315_v53, %v2546_v45  ;;  %v16481_v31 = vmax.f32 %v16317_v57, %v2639_v62  ;;  %v2641_v55 = vpop.f32.mrb[31].mxu1  ;;  %2830 = vrot.lane.b32.xlu0 %v16440_v36, %s15569_s1  ;;  %v2548_v54 = vpop.f32.mrb[31].mxu0  ;;  %v13996_v53 = vld [vmem:[#allocation6 + $0x564] ss:$16 sps:$4 sm:$0xff]   ;;  %v13999_v57 = vld [vmem:[#allocation6 + $0x56c] ss:$16 sps:$4 sm:$0xff]  }
 0x32a   :  { %v16486_v52 = vmax.f32 %v16321_v60, %v2641_v55  ;;  %v16489_v51 = vmax.f32 %v16319_v58, %v2548_v54  ;;  %4129 = vmatprep.subr.bf16.mxu0 %v13996_v53  ;;  %4275 = vmatprep.subr.bf16.mxu1 %v13999_v57  ;;  %v14002_v62 = vld [vmem:[#allocation6 + $0x584] ss:$16 sps:$4 sm:$0xff]   ;;  %v14000_v53 = vld [vmem:[#allocation6 + $0x580] ss:$16 sps:$4 sm:$0xff]   ;;  %v14003_v57 = vld [vmem:[#allocation6 + $0x588] ss:$16 sps:$4 sm:$0xff]  }
 0x32b   :  { %2838 = vrot.lane.b32.xlu1 %v16454_v59, %s15569_s1  ;;  %4130 = vmatpush1.bf16.msra.mxu0 %v13994_v48 }
 0x32c   :  { %4276 = vmatpush1.bf16.msra.mxu1 %v13997_v35  ;;  %4131 = vmatprep.subr.bf16.mxu0 %v14002_v62 }
 0x32d   :  { %2846 = vrot.lane.b32.xlu0 %v16475_v42, %s15569_s1  ;;  %4277 = vmatprep.subr.bf16.mxu1 %v14005_v46 }
 0x32e   :  { %v2552_v41 = vpop.f32.mrb[32].mxu0  ;;  %v2645_v60 = vpop.f32.mrb[32].mxu1 }
 0x32f   :  { %v16496_v58 = vmax.f32 %v16329_v2, %v2552_v41  ;;  %v16499_v21 = vmax.f32 %v16331_v61, %v2645_v60  ;;  %v2647_v9 = vpop.f32.mrb[33].mxu1  ;;  %2848 = vrot.lane.b32.xlu1 %v16467_v40, %s15569_s1  ;;  %v2554_v45 = vpop.f32.mrb[33].mxu0  ;;  %4132 = vmatpush1.bf16.msra.mxu0 %v14000_v53 }
 0x330   :  { %v16504_v47 = vmax.f32 %v16335_v1, %v2647_v9  ;;  %v16507_v55 = vmax.f32 %v16333_v63, %v2554_v45  ;;  %v2556_v54 = vpop.f32.mrb[34].mxu0  ;;  %v2649_v2 = vpop.f32.mrb[34].mxu1  ;;  %4278 = vmatpush1.bf16.msra.mxu1 %v14003_v57 }
 0x331   :  { %v16510_v61 = vmax.f32 %v16337_v3, %v2556_v54  ;;  %v16513_v48 = vmax.f32 %v16339_v4, %v2649_v2  ;;  %v2651_v41 = vpop.f32.mrb[35].mxu1  ;;  %2854 = vrot.lane.b32.xlu0 %v16489_v51, %s15569_s1  ;;  %v2558_v35 = vpop.f32.mrb[35].mxu0  ;;  %v14008_v3 = vld [vmem:[#allocation6 + $0x5a4] ss:$16 sps:$4 sm:$0xff]   ;;  %v14011_v4 = vld [vmem:[#allocation6 + $0x5ac] ss:$16 sps:$4 sm:$0xff]  }
 0x332   :  { %v16518_v1 = vmax.f32 %v16343_v7, %v2651_v41  ;;  %v16521_v63 = vmax.f32 %v16341_v6, %v2558_v35  ;;  %4174 = vmatprep.subr.bf16.mxu0 %v14008_v3  ;;  %4320 = vmatprep.subr.bf16.mxu1 %v14011_v4 }
 0x333   :  { %2856 = vrot.lane.b32.xlu1 %v16481_v31, %s15569_s1 }
 0x335   :  { %2844 = vrot.lane.b32.xlu0 %v16464_v49, %s15569_s1 }
 0x336   :  { %v2562_v60 = vpop.f32.mrb[36].mxu0  ;;  %v2655_v9 = vpop.f32.mrb[36].mxu1 }
 0x337   :  { %v16528_v7 = vmax.f32 %v16351_v5, %v2562_v60  ;;  %v16531_v6 = vmax.f32 %v16353_v8, %v2655_v9  ;;  %v2657_v45 = vpop.f32.mrb[37].mxu1  ;;  %2852 = vrot.lane.b32.xlu1 %v16478_v50, %s15569_s1  ;;  %v2564_v62 = vpop.f32.mrb[37].mxu0 }
 0x338   :  { %v16536_v46 = vmax.f32 %v16357_v14, %v2657_v45  ;;  %v16539_v54 = vmax.f32 %v16355_v10, %v2564_v62  ;;  %v2566_v2 = vpop.f32.mrb[38].mxu0  ;;  %v2659_v53 = vpop.f32.mrb[38].mxu1 }
 0x339   :  { %v16542_v57 = vmax.f32 %v16359_v16, %v2566_v2  ;;  %v16545_v5 = vmax.f32 %v16361_v17, %v2659_v53  ;;  %v2661_v8 = vpop.f32.mrb[39].mxu1  ;;  %2860 = vrot.lane.b32.xlu0 %v16496_v58, %s15569_s1  ;;  %v2568_v41 = vpop.f32.mrb[39].mxu0 }
 0x33a   :  { %v16550_v35 = vmax.f32 %v16365_v19, %v2661_v8  ;;  %v16553_v14 = vmax.f32 %v16363_v18, %v2568_v41 }
 0x33b   :  { %2864 = vrot.lane.b32.xlu1 %v16499_v21, %s15569_s1 }
 0x33d   :  { %2862 = vrot.lane.b32.xlu0 %v16507_v55, %s15569_s1 }
 0x33e   :  { %v2572_v10 = vpop.f32.mrb[40].mxu0  ;;  %v2665_v16 = vpop.f32.mrb[40].mxu1 }
 0x33f   :  { %v16560_v17 = vmax.f32 %v16373_v38, %v2572_v10  ;;  %v16563_v3 = vmax.f32 %v16375_v20, %v2665_v16  ;;  %v2667_v4 = vpop.f32.mrb[41].mxu1  ;;  %2872 = vrot.lane.b32.xlu1 %v16513_v48, %s15569_s1  ;;  %v2574_v18 = vpop.f32.mrb[41].mxu0 }
 0x340   :  { %v16568_v19 = vmax.f32 %v16379_v11, %v2667_v4  ;;  %v16571_v60 = vmax.f32 %v16377_v27, %v2574_v18  ;;  %v2576_v9 = vpop.f32.mrb[42].mxu0  ;;  %v2669_v45 = vpop.f32.mrb[42].mxu1 }
 0x341   :  { %17646 = vst [vmem:[#allocation20_spill] sm:$0xff] %v16563_v3  ;;  %v16574_v62 = vmax.f32 %v16381_v12, %v2576_v9  ;;  %v16577_v38 = vmax.f32 %v16383_v29, %v2669_v45  ;;  %v2671_v20 = vpop.f32.mrb[43].mxu1  ;;  %2870 = vrot.lane.b32.xlu0 %v16521_v63, %s15569_s1  ;;  %v2578_v2 = vpop.f32.mrb[43].mxu0 }
 0x342   :  { %v16582_v53 = vmax.f32 %v16387_v33, %v2671_v20  ;;  %v16585_v11 = vmax.f32 %v16385_v32, %v2578_v2 }
 0x343   :  { %2868 = vrot.lane.b32.xlu1 %v16510_v61, %s15569_s1 }
 0x345   :  { %2876 = vrot.lane.b32.xlu0 %v16528_v7, %s15569_s1 }
 0x346   :  { %v2582_v27 = vpop.f32.mrb[44].mxu0  ;;  %v2675_v12 = vpop.f32.mrb[44].mxu1 }
 0x347   :  { %v16592_v29 = vmax.f32 %v16395_v25, %v2582_v27  ;;  %v16595_v8 = vmax.f32 %v16397_v15, %v2675_v12  ;;  %v2677_v41 = vpop.f32.mrb[45].mxu1  ;;  %2880 = vrot.lane.b32.xlu1 %v16531_v6, %s15569_s1  ;;  %v2584_v32 = vpop.f32.mrb[45].mxu0  ;;  %v16682_v12 = vld [vmem:[#allocation4] sm:$0xf] }
 0x348   :  { %v16600_v33 = vmax.f32 %v16401_v26, %v2677_v41  ;;  %v16603_v10 = vmax.f32 %v16399_v23, %v2584_v32  ;;  %v2586_v16 = vpop.f32.mrb[46].mxu0  ;;  %v2679_v4 = vpop.f32.mrb[46].mxu1 }
 0x349   :  { %17647 = vst [vmem:[#allocation21_spill] sm:$0xff] %v16592_v29  ;;  %17648 = vst [vmem:[#allocation22_spill] sm:$0xff] %v16595_v8  ;;  %v16606_v18 = vmax.f32 %v16403_v24, %v2586_v16  ;;  %v16609_v25 = vmax.f32 %v16405_v28, %v2679_v4  ;;  %v2681_v15 = vpop.f32.mrb[47].mxu1  ;;  %2878 = vrot.lane.b32.xlu0 %v16539_v54, %s15569_s1  ;;  %v2588_v9 = vpop.f32.mrb[47].mxu0  ;;  %v3059_v24 = vlaneseq }
 0x34a   :  { %17649 = vst [vmem:[#allocation23_spill] sm:$0xff] %v16600_v33  ;;  %17650 = vst [vmem:[#allocation24_spill] sm:$0xff] %v16603_v10  ;;  %v16614_v45 = vmax.f32 %v16409_v13, %v2681_v15  ;;  %v16617_v26 = vmax.f32 %v16407_v30, %v2588_v9 }
 0x34b   :  { %17651 = vst [vmem:[#allocation25_spill] sm:$0xff] %v16606_v18  ;;  %17652 = vst [vmem:[#allocation26_spill] sm:$0xff] %v16609_v25  ;;  %2888 = vrot.lane.b32.xlu1 %v16545_v5, %s15569_s1  ;;  %v16677_v13 = vshrl.u32 %v3059_v24, 7 }
 0x34c   :  { %17653 = vst [vmem:[#allocation27_spill] sm:$0xff] %v16614_v45  ;;  %17654 = vst [vmem:[#allocation28_spill] sm:$0xff] %v16617_v26 }
 0x34d   :  { %2886 = vrot.lane.b32.xlu0 %v16553_v14, %s15569_s1  ;;  %v16680_v27 = vsub.s32 1, %v16677_v13  ;;  %v16691_v24 = vsub.s32 0, %v16677_v13 }
 0x34f   :  { %2884 = vrot.lane.b32.xlu1 %v16542_v57, %s15569_s1  ;;  %17655 = vst [vmem:[#allocation29_spill] sm:$0xff] %v16680_v27  ;;  %17656 = vst [vmem:[#allocation30_spill] sm:$0xff] %v16691_v24  ;;  %v16695_v0 = vrot.slane %v16682_v12, %v16680_v27  ;;  %v16708_v27 = vrot.slane %v16682_v12, %v16691_v24 }
 0x351   :  { %2894 = vrot.lane.b32.xlu0 %v16571_v60, %s15569_s1 }
 0x353   :  { %2896 = vrot.lane.b32.xlu1 %v16563_v3, %s15569_s1 }
 0x355   :  { %2902 = vrot.lane.b32.xlu0 %v16585_v11, %s15569_s1 }
 0x357   :  { %2904 = vrot.lane.b32.xlu1 %v16577_v38, %s15569_s1 }
 0x359   :  { %2892 = vrot.lane.b32.xlu0 %v16560_v17, %s15569_s1 }
 0x35b   :  { %2900 = vrot.lane.b32.xlu1 %v16574_v62, %s15569_s1 }
 0x35d   :  { %2834 = vrot.lane.b32.xlu0 %v16443_v39, %s15569_s1 }
 0x35f   :  { %2842 = vrot.lane.b32.xlu1 %v16457_v43, %s15569_s1 }
 0x361   :  { %2850 = vrot.lane.b32.xlu0 %v16472_v22, %s15569_s1 }
 0x363   :  { %2858 = vrot.lane.b32.xlu1 %v16486_v52, %s15569_s1 }
 0x365   :  { %2866 = vrot.lane.b32.xlu0 %v16504_v47, %s15569_s1 }
 0x367   :  { %2874 = vrot.lane.b32.xlu1 %v16518_v1, %s15569_s1 }
 0x369   :  { %2882 = vrot.lane.b32.xlu0 %v16536_v46, %s15569_s1 }
 0x36b   :  { %2890 = vrot.lane.b32.xlu1 %v16550_v35, %s15569_s1 }
 0x36d   :  { %2898 = vrot.lane.b32.xlu0 %v16568_v19, %s15569_s1 }
 0x36f   :  { %2906 = vrot.lane.b32.xlu1 %v16582_v53, %s15569_s1 }
 0x371   :  { %2910 = vrot.lane.b32.xlu0 %v16603_v10, %s15569_s1 }
 0x373   :  { %2912 = vrot.lane.b32.xlu1 %v16595_v8, %s15569_s1 }
 0x375   :  { %2918 = vrot.lane.b32.xlu0 %v16617_v26, %s15569_s1 }
 0x377   :  { %2920 = vrot.lane.b32.xlu1 %v16609_v25, %s15569_s1 }
 0x379   :  { %2908 = vrot.lane.b32.xlu0 %v16592_v29, %s15569_s1 }
 0x37b   :  { %2916 = vrot.lane.b32.xlu1 %v16606_v18, %s15569_s1 }
 0x37d   :  { %2914 = vrot.lane.b32.xlu0 %v16600_v33, %s15569_s1 }
 0x37f   :  { %2922 = vrot.lane.b32.xlu1 %v16614_v45, %s15569_s1 }
 0x393   :  { %v16673_v23 = vpop.permute.xlu0 %2832 }
 0x395   :  { %v16675_v28 = vpop.permute.xlu1 %2840 }
 0x397   :  { %v2829_v30 = vpop.permute.xlu0 %2828 }
 0x399   :  { %v2837_v20 = vpop.permute.xlu1 %2836 }
 0x39b   :  { %v2831_v2 = vpop.permute.xlu0 %2830 }
 0x39c   :  { %v2926_v41 = vsel %vm2924_vm3, %v2831_v2, %v16673_v23  ;;  %v2925_v45 = vsel %vm2924_vm3, %v2829_v30, %v2831_v2 }
 0x39d   :  { %v2839_v32 = vpop.permute.xlu1 %2838  ;;  %v3010_v33 = vmax.f32 %v16440_v36, %v2926_v41  ;;  %v3009_v36 = vmax.f32 %v16434_v34, %v2925_v45 }
 0x39e   :  { %v2929_v16 = vsel %vm2924_vm3, %v2839_v32, %v16675_v28  ;;  %v2928_v4 = vsel %vm2924_vm3, %v2837_v20, %v2839_v32 }
 0x39f   :  { %v3014_v15 = vmax.f32 %v16454_v59, %v2929_v16  ;;  %v2847_v9 = vpop.permute.xlu0 %2846  ;;  %v3013_v18 = vmax.f32 %v16446_v56, %v2928_v4  ;;  %v3080_v30 = vadd.f32 %v16695_v0, %v3010_v33  ;;  %v3079_v24 = vadd.f32 %v16708_v27, %v3009_v36 }
 0x3a1   :  { %v16699_v29 = vpop.permute.xlu1 %2848  ;;  %v3084_v20 = vadd.f32 %v16695_v0, %v3014_v15  ;;  %v3083_v56 = vadd.f32 %v16708_v27, %v3013_v18  ;;  %v3128_v10 = vmax.f32 %v3080_v30, 0.0  ;;  %v3127_v30 = vmax.f32 %v3079_v24, 0.0 }
 0x3a2   :  { %v2932_v59 = vsel %vm2924_vm3, %v2847_v9, %v16699_v29 }
 0x3a3   :  { %v3018_v32 = vmax.f32 %v16475_v42, %v2932_v59  ;;  %v2855_v16 = vpop.permute.xlu0 %2854  ;;  %v3132_v41 = vmax.f32 %v3084_v20, 0.0  ;;  %v3131_v18 = vmax.f32 %v3083_v56, 0.0 }
 0x3a5   :  { %v16712_v2 = vpop.permute.xlu1 %2856  ;;  %v3088_v15 = vadd.f32 %v16695_v0, %v3018_v32  ;;  %v16723_v20 = vpack.c.bf16 %v3132_v41, %v3128_v10 }
 0x3a6   :  { %v2935_v4 = vsel %vm2924_vm3, %v2855_v16, %v16712_v2 }
 0x3a7   :  { %v3022_v42 = vmax.f32 %v16489_v51, %v2935_v4  ;;  %v2845_v59 = vpop.permute.xlu0 %2844  ;;  %v3136_v8 = vmax.f32 %v3088_v15, 0.0 }
 0x3a8   :  { %v2931_v34 = vsel %vm2924_vm3, %v2845_v59, %v2847_v9 }
 0x3a9   :  { %v3092_v33 = vadd.f32 %v16695_v0, %v3022_v42  ;;  %v3017_v45 = vmax.f32 %v16464_v49, %v2931_v34  ;;  %v2853_v26 = vpop.permute.xlu1 %2852  ;;  %v16733_v49 = vpack.c.bf16 %v3131_v18, %v3127_v30  ;;  %v14009_v18 = vld [vmem:[#allocation6 + $0x5a8] ss:$16 sps:$4 sm:$0xff]  }
 0x3aa   :  { %v2934_v25 = vsel %vm2924_vm3, %v2853_v26, %v2855_v16  ;;  %v3455_v26 = vrot.slane %v16723_v20, 4 }
 0x3ab   :  { %v3140_v32 = vmax.f32 %v3092_v33, 0.0  ;;  %v3087_v51 = vadd.f32 %v16708_v27, %v3017_v45  ;;  %v3021_v4 = vmax.f32 %v16478_v50, %v2934_v25  ;;  %v2861_v36 = vpop.permute.xlu0 %2860  ;;  %v14006_v45 = vld [vmem:[#allocation6 + $0x5a0] ss:$16 sps:$4 sm:$0xff]  }
 0x3ad   :  { %v16728_v3 = vpack.c.bf16 %v3140_v32, %v3136_v8  ;;  %v3091_v9 = vadd.f32 %v16708_v27, %v3021_v4  ;;  %v16731_v42 = vpop.permute.xlu1 %2864  ;;  %v3135_v10 = vmax.f32 %v3087_v51, 0.0  ;;  %v3452_v32 = vrot.slane %v16733_v49, 4  ;;  %v14014_v4 = vld [vmem:[#allocation6 + $0x5c4] ss:$16 sps:$4 sm:$0xff]  }
 0x3af   :  { %v3139_v56 = vmax.f32 %v3091_v9, 0.0  ;;  %v2863_v41 = vpop.permute.xlu0 %2862  ;;  %v3456_v16 = vrot.slane %v16728_v3, 4 }
 0x3b0   :  { %v2937_v15 = vsel %vm2924_vm3, %v2861_v36, %v2863_v41  ;;  %v2938_v50 = vsel %vm2924_vm3, %v2863_v41, %v16731_v42  ;;  %v14017_v36 = vld [vmem:[#allocation6 + $0x5cc] ss:$16 sps:$4 sm:$0xff]  }
 0x3b1   :  { %v16740_v8 = vpack.c.bf16 %v3139_v56, %v3135_v10  ;;  %v3026_v25 = vmax.f32 %v16507_v55, %v2938_v50  ;;  %v16743_v24 = vpop.permute.xlu1 %2872  ;;  %v3457_v59 = vsel %vm718_vm2, %v3455_v26, %v3456_v16  ;;  %v3025_v34 = vmax.f32 %v16496_v58, %v2937_v15 }
 0x3b2   :  { %4133 = vmatprep.mubr.bf16.mxu0 %v3457_v59  ;;  %4279 = vmatprep.mubr.bf16.mxu1 %v3457_v59  ;;  %v14020_v59 = vld [vmem:[#allocation6 + $0x5e4] ss:$16 sps:$4 sm:$0xff]  }
 0x3b3   :  { %v2871_v33 = vpop.permute.xlu0 %2870  ;;  %v17635_v51 = vrot.slane %v16740_v8, 4  ;;  %v3096_v30 = vadd.f32 %v16695_v0, %v3026_v25  ;;  %v3095_v41 = vadd.f32 %v16708_v27, %v3025_v34  ;;  %v14012_v25 = vld [vmem:[#allocation6 + $0x5c0] ss:$16 sps:$4 sm:$0xff]  }
 0x3b4   :  { %v2941_v55 = vsel %vm2924_vm3, %v2871_v33, %v16743_v24 }
 0x3b5   :  { %v3030_v9 = vmax.f32 %v16521_v63, %v2941_v55  ;;  %v2869_v10 = vpop.permute.xlu1 %2868  ;;  %v3454_v58 = vsel %vm718_vm2, %v3452_v32, %v17635_v51  ;;  %v14015_v63 = vld [vmem:[#allocation6 + $0x5c8] ss:$16 sps:$4 sm:$0xff]   ;;  %v14023_v55 = vld [vmem:[#allocation6 + $0x5ec] ss:$16 sps:$4 sm:$0xff]   ;;  %v3144_v32 = vmax.f32 %v3096_v30, 0.0  ;;  %v3143_v34 = vmax.f32 %v3095_v41, 0.0 }
 0x3b6   :  { %v2940_v56 = vsel %vm2924_vm3, %v2869_v10, %v2871_v33  ;;  %4134 = vmatmul.mubr.bf16.vlgmr.msra.gmra.mrb[48].mxu0 %v3454_v58  ;;  %4280 = vmatmul.mubr.bf16.vlgmr.msra.gmra.mrb[48].mxu1 %v3454_v58 }
 0x3b7   :  { %v3100_v26 = vadd.f32 %v16695_v0, %v3030_v9  ;;  %v3029_v15 = vmax.f32 %v16510_v61, %v2940_v56  ;;  %4175 = vmatpush1.bf16.msra.mxu0 %v14006_v45  ;;  %4321 = vmatpush1.bf16.msra.mxu1 %v14009_v18  ;;  %v2877_v50 = vpop.permute.xlu0 %2876  ;;  %v14018_v45 = vld [vmem:[#allocation6 + $0x5e0] ss:$16 sps:$4 sm:$0xff]   ;;  %v14021_v18 = vld [vmem:[#allocation6 + $0x5e8] ss:$16 sps:$4 sm:$0xff]  }
 0x3b8   :  { %4176 = vmatprep.subr.bf16.mxu0 %v14014_v4  ;;  %4322 = vmatprep.subr.bf16.mxu1 %v14017_v36 }
 0x3b9   :  { %v3148_v51 = vmax.f32 %v3100_v26, 0.0  ;;  %v3099_v33 = vadd.f32 %v16708_v27, %v3029_v15  ;;  %v16763_v10 = vpop.permute.xlu1 %2880  ;;  %v14026_v26 = vld [vmem:[#allocation6 + $0x604] ss:$16 sps:$4 sm:$0xff]   ;;  %v14029_v15 = vld [vmem:[#allocation6 + $0x60c] ss:$16 sps:$4 sm:$0xff]  }
 0x3bb   :  { %v16765_v58 = vpack.c.bf16 %v3148_v51, %v3144_v32  ;;  %v3147_v9 = vmax.f32 %v3099_v33, 0.0  ;;  %4177 = vmatpush1.bf16.msra.mxu0 %v14012_v25  ;;  %4323 = vmatpush1.bf16.msra.mxu1 %v14015_v63  ;;  %v2879_v61 = vpop.permute.xlu0 %2878  ;;  %v14035_v33 = vld [vmem:[#allocation6 + $0x62c] ss:$16 sps:$4 sm:$0xff]  }
 0x3bc   :  { %v2943_v4 = vsel %vm2924_vm3, %v2877_v50, %v2879_v61  ;;  %v2944_v36 = vsel %vm2924_vm3, %v2879_v61, %v16763_v10  ;;  %4178 = vmatprep.subr.bf16.mxu0 %v14020_v59  ;;  %4324 = vmatprep.subr.bf16.mxu1 %v14023_v55  ;;  %v14024_v59 = vld [vmem:[#allocation6 + $0x600] ss:$16 sps:$4 sm:$0xff]   ;;  %v17657_v61 = vrot.slane %v16740_v8, 4 }
 0x3bd   :  { %v16770_v30 = vpack.c.bf16 %v3147_v9, %v3143_v34  ;;  %v3034_v56 = vmax.f32 %v16539_v54, %v2944_v36  ;;  %v16773_v41 = vpop.permute.xlu1 %2888  ;;  %v17637_v51 = vrot.slane %v16765_v58, 4  ;;  %v3033_v25 = vmax.f32 %v16528_v7, %v2943_v4  ;;  %v14027_v54 = vld [vmem:[#allocation6 + $0x608] ss:$16 sps:$4 sm:$0xff]   ;;  %v14032_v7 = vld [vmem:[#allocation6 + $0x624] ss:$16 sps:$4 sm:$0xff]  }
 0x3bf   :  { %4179 = vmatpush1.bf16.msra.mxu0 %v14018_v45  ;;  %4325 = vmatpush1.bf16.msra.mxu1 %v14021_v18  ;;  %v2887_v50 = vpop.permute.xlu0 %2886  ;;  %v16782_v63 = vsel %vm718_vm2, %v3456_v16, %v17637_v51  ;;  %v17636_v55 = vrot.slane %v16770_v30, 4  ;;  %v3104_v34 = vadd.f32 %v16695_v0, %v3034_v56  ;;  %v3103_v4 = vadd.f32 %v16708_v27, %v3033_v25 }
 0x3c0   :  { %v2947_v32 = vsel %vm2924_vm3, %v2887_v50, %v16773_v41  ;;  %4143 = vmatprep.mubr.bf16.mxu0 %v16782_v63  ;;  %4289 = vmatprep.mubr.bf16.mxu1 %v16782_v63 }
 0x3c1   :  { %v3038_v9 = vmax.f32 %v16553_v14, %v2947_v32  ;;  %4180 = vmatprep.subr.bf16.mxu0 %v14026_v26  ;;  %4326 = vmatprep.subr.bf16.mxu1 %v14029_v15  ;;  %v2885_v16 = vpop.permute.xlu1 %2884  ;;  %v16796_v45 = vsel %vm718_vm2, %v17657_v61, %v17636_v55  ;;  %v14030_v26 = vld [vmem:[#allocation6 + $0x620] ss:$16 sps:$4 sm:$0xff]   ;;  %v14033_v15 = vld [vmem:[#allocation6 + $0x628] ss:$16 sps:$4 sm:$0xff]   ;;  %v14038_v32 = vld [vmem:[#allocation6 + $0x644] ss:$16 sps:$4 sm:$0xff]  }
 0x3c2   :  { %17658 = vst [vmem:[#allocation31_spill] sm:$0xff] %v16796_v45  ;;  %v2946_v18 = vsel %vm2924_vm3, %v2885_v16, %v2887_v50  ;;  %4144 = vmatmul.mubr.bf16.gmra.mrb[52].mxu0 %v16796_v45  ;;  %4290 = vmatmul.mubr.bf16.gmra.mrb[52].mxu1 %v16796_v45  ;;  %v14041_v61 = vld [vmem:[#allocation6 + $0x64c] ss:$16 sps:$4 sm:$0xff]   ;;  %v3152_v50 = vmax.f32 %v3104_v34, 0.0  ;;  %v14044_v45 = vld [vmem:[#allocation6 + $0x664] ss:$16 sps:$4 sm:$0xff]  }
 0x3c3   :  { %v3108_v14 = vadd.f32 %v16695_v0, %v3038_v9  ;;  %v3037_v36 = vmax.f32 %v16542_v57, %v2946_v18  ;;  %4181 = vmatpush1.bf16.msra.mxu0 %v14024_v59  ;;  %4327 = vmatpush1.bf16.msra.mxu1 %v14027_v54  ;;  %v2895_v56 = vpop.permute.xlu0 %2894  ;;  %v3151_v9 = vmax.f32 %v3103_v4, 0.0  ;;  %v14039_v18 = vld [vmem:[#allocation6 + $0x648] ss:$16 sps:$4 sm:$0xff]   ;;  %v14047_v4 = vld [vmem:[#allocation6 + $0x66c] ss:$16 sps:$4 sm:$0xff]  }
 0x3c4   :  { %4182 = vmatprep.subr.bf16.mxu0 %v14032_v7  ;;  %4328 = vmatprep.subr.bf16.mxu1 %v14035_v33  ;;  %v14036_v33 = vld [vmem:[#allocation6 + $0x640] ss:$16 sps:$4 sm:$0xff]  }
 0x3c5   :  { %v3156_v16 = vmax.f32 %v3108_v14, 0.0  ;;  %v3107_v55 = vadd.f32 %v16708_v27, %v3037_v36  ;;  %v16805_v51 = vpop.permute.xlu1 %2896 }
 0x3c6   :  { %v2950_v25 = vsel %vm2924_vm3, %v2895_v56, %v16805_v51 }
 0x3c7   :  { %v16809_v57 = vpack.c.bf16 %v3156_v16, %v3152_v50  ;;  %v3155_v59 = vmax.f32 %v3107_v55, 0.0  ;;  %v3042_v54 = vmax.f32 %v16571_v60, %v2950_v25  ;;  %4183 = vmatpush1.bf16.msra.mxu0 %v14030_v26  ;;  %4329 = vmatpush1.bf16.msra.mxu1 %v14033_v15  ;;  %v2903_v7 = vpop.permute.xlu0 %2902  ;;  %v16820_v60 = vsub.s32 2, %v16677_v13  ;;  %v14042_v16 = vld [vmem:[#allocation6 + $0x660] ss:$16 sps:$4 sm:$0xff]   ;;  %v14045_v25 = vld [vmem:[#allocation6 + $0x668] ss:$16 sps:$4 sm:$0xff]  }
 0x3c8   :  { %4184 = vmatprep.subr.bf16.mxu0 %v14038_v32  ;;  %4330 = vmatprep.subr.bf16.mxu1 %v14041_v61  ;;  %v17660_v61 = vrot.slane %v16765_v58, 4 }
 0x3c9   :  { %v16812_v34 = vpack.c.bf16 %v3155_v59, %v3151_v9  ;;  %v16814_v14 = vpop.permute.xlu1 %2904  ;;  %v17640_v36 = vrot.slane %v16809_v57, 4  ;;  %17659 = vst [vmem:[#allocation32_spill] sm:$0xff] %v16820_v60  ;;  %v3112_v26 = vadd.f32 %v16695_v0, %v3042_v54  ;;  %v14053_v54 = vld [vmem:[#allocation6 + $0x68c] ss:$16 sps:$4 sm:$0xff]  }
 0x3ca   :  { %v2953_v55 = vsel %vm2924_vm3, %v2903_v7, %v16814_v14 }
 0x3cb   :  { %v3046_v15 = vmax.f32 %v16585_v11, %v2953_v55  ;;  %4185 = vmatpush1.bf16.msra.mxu0 %v14036_v33  ;;  %4331 = vmatpush1.bf16.msra.mxu1 %v14039_v18  ;;  %v2893_v32 = vpop.permute.xlu0 %2892  ;;  %v16829_v50 = vsel %vm718_vm2, %v17660_v61, %v17640_v36  ;;  %v17641_v9 = vrot.slane %v16812_v34, 4  ;;  %v14050_v11 = vld [vmem:[#allocation6 + $0x684] ss:$16 sps:$4 sm:$0xff]   ;;  %v17661_v61 = vrot.slane %v16770_v30, 4 }
 0x3cc   :  { %v2949_v59 = vsel %vm2924_vm3, %v2893_v32, %v2895_v56  ;;  %4153 = vmatprep.mubr.bf16.mxu0 %v16829_v50  ;;  %4299 = vmatprep.mubr.bf16.mxu1 %v16829_v50  ;;  %v3160_v32 = vmax.f32 %v3112_v26, 0.0  ;;  %v14056_v26 = vld [vmem:[#allocation6 + $0x6a4] ss:$16 sps:$4 sm:$0xff]  }
 0x3cd   :  { %v3116_v33 = vadd.f32 %v16695_v0, %v3046_v15  ;;  %v3041_v18 = vmax.f32 %v16560_v17, %v2949_v59  ;;  %4186 = vmatprep.subr.bf16.mxu0 %v14044_v45  ;;  %4332 = vmatprep.subr.bf16.mxu1 %v14047_v4  ;;  %v2901_v55 = vpop.permute.xlu1 %2900  ;;  %v16842_v36 = vsel %vm718_vm2, %v17661_v61, %v17641_v9  ;;  %v14048_v59 = vld [vmem:[#allocation6 + $0x680] ss:$16 sps:$4 sm:$0xff]   ;;  %v14051_v61 = vld [vmem:[#allocation6 + $0x688] ss:$16 sps:$4 sm:$0xff]  }
 0x3ce   :  { %17662 = vst [vmem:[#allocation33_spill] sm:$0xff] %v16842_v36  ;;  %v2952_v56 = vsel %vm2924_vm3, %v2901_v55, %v2903_v7  ;;  %4154 = vmatmul.mubr.bf16.gmra.mrb[56].mxu0 %v16842_v36  ;;  %4300 = vmatmul.mubr.bf16.gmra.mrb[56].mxu1 %v16842_v36  ;;  %v16850_v45 = vrot.slane %v16682_v12, %v16820_v60 }
 0x3cf   :  { %v3164_v15 = vmax.f32 %v3116_v33, 0.0  ;;  %v3045_v17 = vmax.f32 %v16574_v62, %v2952_v56  ;;  %4187 = vmatpush1.bf16.msra.mxu0 %v14042_v16  ;;  %4333 = vmatpush1.bf16.msra.mxu1 %v14045_v25  ;;  %v2835_v4 = vpop.permute.xlu0 %2834  ;;  %v3111_v9 = vadd.f32 %v16708_v27, %v3041_v18  ;;  %v14059_v33 = vld [vmem:[#allocation6 + $0x6ac] ss:$16 sps:$4 sm:$0xff]  }
 0x3d0   :  { %v2927_v7 = vsel %vm2924_vm3, %v16673_v23, %v2835_v4  ;;  %4188 = vmatprep.subr.bf16.mxu0 %v14050_v11  ;;  %4334 = vmatprep.subr.bf16.mxu1 %v14053_v54  ;;  %v14054_v54 = vld [vmem:[#allocation6 + $0x6a0] ss:$16 sps:$4 sm:$0xff]  }
 0x3d1   :  { %v16855_v55 = vpack.c.bf16 %v3164_v15, %v3160_v32  ;;  %v3115_v62 = vadd.f32 %v16708_v27, %v3045_v17  ;;  %v3011_v25 = vmax.f32 %v16437_v37, %v2927_v7  ;;  %v2843_v56 = vpop.permute.xlu1 %2842  ;;  %v14057_v32 = vld [vmem:[#allocation6 + $0x6a8] ss:$16 sps:$4 sm:$0xff]   ;;  %v3159_v17 = vmax.f32 %v3111_v9, 0.0 }
 0x3d2   :  { %v2930_v60 = vsel %vm2924_vm3, %v16675_v28, %v2843_v56  ;;  %v3016_v16 = vmax.f32 %v16457_v43, %v2843_v56  ;;  %v17663_v37 = vsub.s32 3, %v16677_v13  ;;  %v3012_v7 = vmax.f32 %v16443_v39, %v2835_v4 }
 0x3d3   :  { %v3163_v18 = vmax.f32 %v3115_v62, 0.0  ;;  %v3081_v36 = vadd.f32 %v16850_v45, %v3011_v25  ;;  %v3015_v23 = vmax.f32 %v16449_v44, %v2930_v60  ;;  %4189 = vmatpush1.bf16.msra.mxu0 %v14048_v59  ;;  %4335 = vmatpush1.bf16.msra.mxu1 %v14051_v61  ;;  %v2851_v11 = vpop.permute.xlu0 %2850  ;;  %v3482_v15 = vrot.slane %v16855_v55, 4  ;;  %v14062_v61 = vld [vmem:[#allocation6 + $0x6c4] ss:$16 sps:$4 sm:$0xff]   ;;  %v14065_v62 = vld [vmem:[#allocation6 + $0x6cc] ss:$16 sps:$4 sm:$0xff]  }
 0x3d4   :  { %4190 = vmatprep.subr.bf16.mxu0 %v14056_v26  ;;  %4336 = vmatprep.subr.bf16.mxu1 %v14059_v33  ;;  %v16869_v28 = vrot.slane %v16682_v12, %v17663_v37  ;;  %v2933_v60 = vsel %vm2924_vm3, %v16699_v29, %v2851_v11  ;;  %v3020_v43 = vmax.f32 %v16472_v22, %v2851_v11  ;;  %v17664_v29 = vrot.slane %v16809_v57, 4  ;;  %v14060_v22 = vld [vmem:[#allocation6 + $0x6c0] ss:$16 sps:$4 sm:$0xff]  }
 0x3d5   :  { %v3085_v44 = vadd.f32 %v16850_v45, %v3015_v23  ;;  %v2859_v59 = vpop.permute.xlu1 %2858  ;;  %v16875_v9 = vpack.c.bf16 %v3163_v18, %v3159_v17  ;;  %v3129_v33 = vmax.f32 %v3081_v36, 0.0  ;;  %v14063_v18 = vld [vmem:[#allocation6 + $0x6c8] ss:$16 sps:$4 sm:$0xff]   ;;  %v3019_v23 = vmax.f32 %v16467_v40, %v2933_v60  ;;  %v14066_v60 = vld [vmem:[#allocation6 + $0x6e0] ss:$16 sps:$4 sm:$0xff]  }
 0x3d6   :  { %v2936_v26 = vsel %vm2924_vm3, %v16712_v2, %v2859_v59  ;;  %v3024_v12 = vmax.f32 %v16486_v52, %v2859_v59  ;;  %v16887_v4 = vsel %vm718_vm2, %v17664_v29, %v3482_v15  ;;  %v3086_v2 = vadd.f32 %v16869_v28, %v3016_v16  ;;  %v14077_v29 = vld [vmem:[#allocation6 + $0x70c] ss:$16 sps:$4 sm:$0xff]  }
 0x3d7   :  { %v3133_v25 = vmax.f32 %v3085_v44, 0.0  ;;  %v3023_v39 = vmax.f32 %v16481_v31, %v2936_v26  ;;  %4191 = vmatpush1.bf16.msra.mxu0 %v14054_v54  ;;  %4337 = vmatpush1.bf16.msra.mxu1 %v14057_v32  ;;  %v2867_v56 = vpop.permute.xlu0 %2866  ;;  %v14068_v31 = vld [vmem:[#allocation6 + $0x6e4] ss:$16 sps:$4 sm:$0xff]   ;;  %v14071_v54 = vld [vmem:[#allocation6 + $0x6ec] ss:$16 sps:$4 sm:$0xff]   ;;  %v3082_v32 = vadd.f32 %v16869_v28, %v3012_v7  ;;  %v3090_v17 = vadd.f32 %v16869_v28, %v3020_v43 }
 0x3d8   :  { %v3094_v52 = vadd.f32 %v16869_v28, %v3024_v12  ;;  %4163 = vmatprep.mubr.bf16.mxu0 %v16887_v4  ;;  %4309 = vmatprep.mubr.bf16.mxu1 %v16887_v4  ;;  %v3028_v16 = vmax.f32 %v16504_v47, %v2867_v56  ;;  %v3480_v26 = vrot.slane %v16875_v9, 4  ;;  %v14074_v47 = vld [vmem:[#allocation6 + $0x704] ss:$16 sps:$4 sm:$0xff]   ;;  %v2939_v12 = vsel %vm2924_vm3, %v16731_v42, %v2867_v56  ;;  %v14072_v42 = vld [vmem:[#allocation6 + $0x700] ss:$16 sps:$4 sm:$0xff]  }
 0x3d9   :  { %v16893_v36 = vpack.c.bf16 %v3133_v25, %v3129_v33  ;;  %4192 = vmatprep.subr.bf16.mxu0 %v14062_v61  ;;  %4338 = vmatprep.subr.bf16.mxu1 %v14065_v62  ;;  %v2875_v11 = vpop.permute.xlu1 %2874  ;;  %v3093_v44 = vadd.f32 %v16850_v45, %v3023_v39  ;;  %v14069_v61 = vld [vmem:[#allocation6 + $0x6e8] ss:$16 sps:$4 sm:$0xff]   ;;  %v3134_v62 = vmax.f32 %v3086_v2, 0.0  ;;  %v17665_v33 = vrot.slane %v16812_v34, 4 }
 0x3da   :  { %v3032_v37 = vmax.f32 %v16518_v1, %v2875_v11  ;;  %v2942_v59 = vsel %vm2924_vm3, %v16743_v24, %v2875_v11  ;;  %v3142_v7 = vmax.f32 %v3094_v52, 0.0  ;;  %v3089_v1 = vadd.f32 %v16850_v45, %v3019_v23  ;;  %v14075_v56 = vld [vmem:[#allocation6 + $0x708] ss:$16 sps:$4 sm:$0xff]  }
 0x3db   :  { %4193 = vmatpush1.bf16.msra.mxu0 %v14060_v22  ;;  %4339 = vmatpush1.bf16.msra.mxu1 %v14063_v18  ;;  %v2883_v40 = vpop.permute.xlu0 %2882  ;;  %v3098_v24 = vadd.f32 %v16869_v28, %v3028_v16  ;;  %v16914_v25 = vsel %vm718_vm2, %v17665_v33, %v3480_v26  ;;  %v3130_v22 = vmax.f32 %v3082_v32, 0.0  ;;  %v3138_v18 = vmax.f32 %v3090_v17, 0.0  ;;  %v14080_v17 = vld [vmem:[#allocation6 + $0x72c] ss:$16 sps:$4 sm:$0x3f]  }
 0x3dc   :  { %v3102_v43 = vadd.f32 %v16869_v28, %v3032_v37  ;;  %4194 = vmatprep.subr.bf16.mxu0 %v14068_v31  ;;  %4340 = vmatprep.subr.bf16.mxu1 %v14071_v54  ;;  %v3031_v2 = vmax.f32 %v16513_v48, %v2942_v59  ;;  %v3141_v52 = vmax.f32 %v3093_v44, 0.0  ;;  %v14078_v54 = vld [vmem:[#allocation6 + $0x724] ss:$16 sps:$4 sm:$0x3f]   ;;  %v3027_v48 = vmax.f32 %v16499_v21, %v2939_v12 }
 0x3dd   :  { %v2891_v39 = vpop.permute.xlu1 %2890  ;;  %4164 = vmatmul.mubr.bf16.gmra.mrb[60].mxu0 %v16914_v25  ;;  %4310 = vmatmul.mubr.bf16.gmra.mrb[60].mxu1 %v16914_v25  ;;  %v16922_v16 = vpack.c.bf16 %v3134_v62, %v3130_v22  ;;  %v16924_v32 = vpack.c.bf16 %v3142_v7, %v3138_v18  ;;  %v14082_v37 = vld [vmem:[#allocation6 + $0x720] ss:$16 sps:$4 sm:$0x3f]   ;;  %v3137_v59 = vmax.f32 %v3089_v1, 0.0  ;;  %v3146_v33 = vmax.f32 %v3098_v24, 0.0 }
 0x3de   :  { %v3150_v31 = vmax.f32 %v3102_v43, 0.0  ;;  %v3040_v23 = vmax.f32 %v16550_v35, %v2891_v39  ;;  %v3036_v44 = vmax.f32 %v16536_v46, %v2883_v40  ;;  %v2948_v62 = vsel %vm2924_vm3, %v16773_v41, %v2891_v39 }
 0x3df   :  { %4195 = vmatpush1.bf16.msra.mxu0 %v14066_v60  ;;  %4341 = vmatpush1.bf16.msra.mxu1 %v14069_v61  ;;  %v16920_v11 = vpop.permute.xlu0 %2898  ;;  %v14083_v60 = vld [vmem:[#allocation6 + $0x728] ss:$16 sps:$4 sm:$0x3f]   ;;  %v3101_v61 = vadd.f32 %v16850_v45, %v3031_v2  ;;  %v16931_v43 = vpack.c.bf16 %v3141_v52, %v3137_v59  ;;  %v3097_v46 = vadd.f32 %v16850_v45, %v3027_v48  ;;  %v3461_v12 = vrot.slane %v16922_v16, 4  ;;  %v14086_v2 = vld [vmem:[#allocation6 + $0x4] ss:$16 sps:$4 sm:$0xff]  }
 0x3e0   :  { %4196 = vmatprep.subr.bf16.mxu0 %v14074_v47  ;;  %4342 = vmatprep.subr.bf16.mxu1 %v14077_v29  ;;  %v16933_v7 = vpack.c.bf16 %v3150_v31, %v3146_v33  ;;  %v3110_v21 = vadd.f32 %v16869_v28, %v3040_v23  ;;  %v2945_v1 = vsel %vm2924_vm3, %v16763_v10, %v2883_v40  ;;  %v3462_v41 = vrot.slane %v16924_v32, 4  ;;  %v14089_v10 = vld [vmem:[#allocation6 + $0xc] ss:$16 sps:$4 sm:$0xff]   ;;  %v14084_v59 = vld [vmem:[#allocation6] ss:$16 sps:$4 sm:$0xff]  }
 0x3e1   :  { %v2907_v35 = vpop.permute.xlu1 %2906  ;;  %v3106_v24 = vadd.f32 %v16869_v28, %v3036_v44  ;;  %v3039_v39 = vmax.f32 %v16545_v5, %v2948_v62  ;;  %v4090_v22 = vsel %vm251_vm0, %v14082_v37, 0  ;;  %v4096_v18 = vsel %vm251_vm0, %v14083_v60, 0  ;;  %v14087_v33 = vld [vmem:[#allocation6 + $0x8] ss:$16 sps:$4 sm:$0xff]  }
 0x3e2   :  { %v3149_v40 = vmax.f32 %v3101_v61, 0.0  ;;  %v3035_v52 = vmax.f32 %v16531_v6, %v2945_v1  ;;  %v3158_v31 = vmax.f32 %v3110_v21, 0.0  ;;  %v3459_v23 = vrot.slane %v16931_v43, 4  ;;  %v14092_v21 = vld [vmem:[#allocation6 + $0x24] ss:$16 sps:$4 sm:$0xff]  }
 0x3e3   :  { %4197 = vmatpush1.bf16.msra.mxu0 %v14072_v42  ;;  %4343 = vmatpush1.bf16.msra.mxu1 %v14075_v56  ;;  %v16936_v47 = vpop.permute.xlu0 %2910  ;;  %v3048_v42 = vmax.f32 %v16582_v53, %v2907_v35  ;;  %v3463_v56 = vsel %vm718_vm2, %v3461_v12, %v3462_v41  ;;  %v3145_v48 = vmax.f32 %v3097_v46, 0.0  ;;  %v3458_v53 = vrot.slane %v16893_v36, 4  ;;  %v14095_v46 = vld [vmem:[#allocation6 + $0x2c] ss:$16 sps:$4 sm:$0xff]  }
 0x3e4   :  { %12202 = vmatprep.subr.msk.bf16.mxu0 %vm251_vm0, %v14078_v54  ;;  %12207 = vmatprep.subr.msk.bf16.mxu1 %vm251_vm0, %v14080_v17  ;;  %v3470_v54 = vrot.slane %v16933_v7, 4  ;;  %v3044_v17 = vmax.f32 %v16568_v19, %v16920_v11  ;;  %v3154_v6 = vmax.f32 %v3106_v24, 0.0  ;;  %v3109_v37 = vadd.f32 %v16850_v45, %v3039_v39 }
 0x3e5   :  { %v16947_v29 = vpop.permute.xlu1 %2912  ;;  %12203 = vmatprep.mubr.msk.bf16.mxu0 %vm4076_vm4, %v3463_v56  ;;  %12208 = vmatprep.mubr.msk.bf16.mxu1 %vm4076_vm4, %v3463_v56  ;;  %v16966_v60 = vpack.c.bf16 %v3149_v40, %v3145_v48  ;;  %v2954_v61 = vsel %vm2924_vm3, %v16814_v14, %v2907_v35  ;;  %v3118_v19 = vadd.f32 %v16869_v28, %v3048_v42  ;;  %v14098_v56 = vld [vmem:[#allocation6 + $0x44] ss:$16 sps:$4 sm:$0xff]  }
 0x3e6   :  { %v3460_v62 = vsel %vm718_vm2, %v3458_v53, %v3459_v23  ;;  %v3105_v1 = vadd.f32 %v16850_v45, %v3035_v52  ;;  %v16973_v12 = vpack.c.bf16 %v3158_v31, %v3154_v6  ;;  %v16978_v24 = vsel %vm718_vm2, %v3462_v41, %v3470_v54  ;;  %v14090_v41 = vld [vmem:[#allocation6 + $0x20] ss:$16 sps:$4 sm:$0xff]   ;;  %v14101_v52 = vld [vmem:[#allocation6 + $0x4c] ss:$16 sps:$4 sm:$0xff]  }
 0x3e7   :  { %v16956_v5 = vpop.permute.xlu0 %2918  ;;  %4199 = vmatpush1.bf16.msra.mxu0 %v4090_v22  ;;  %4345 = vmatpush1.bf16.msra.mxu1 %v4096_v18  ;;  %v3114_v14 = vadd.f32 %v16869_v28, %v3044_v17  ;;  %v3157_v35 = vmax.f32 %v3109_v37, 0.0  ;;  %v2951_v22 = vsel %vm2924_vm3, %v16805_v51, %v16920_v11  ;;  %v3047_v18 = vmax.f32 %v16577_v38, %v2954_v61  ;;  %v17666_v11 = vld [vmem:[#allocation20_spill] sm:$0xff]  ;;  %v14096_v61 = vld [vmem:[#allocation6 + $0x40] ss:$16 sps:$4 sm:$0xff]  }
 0x3e8   :  { %4993 = vmatprep.subr.bf16.mxu0 %v14086_v2  ;;  %5139 = vmatprep.subr.bf16.mxu1 %v14089_v10  ;;  %v14093_v2 = vld [vmem:[#allocation6 + $0x28] ss:$16 sps:$4 sm:$0xff]   ;;  %v3166_v40 = vmax.f32 %v3118_v19, 0.0  ;;  %v3468_v42 = vrot.slane %v16966_v60, 4  ;;  %v3153_v31 = vmax.f32 %v3105_v1, 0.0  ;;  %v3478_v51 = vrot.slane %v16973_v12, 4 }
 0x3e9   :  { %v16964_v44 = vpop.permute.xlu1 %2920  ;;  %v3043_v38 = vmax.f32 %v17666_v11, %v2951_v22  ;;  %v3162_v17 = vmax.f32 %v3114_v14, 0.0  ;;  %v3117_v37 = vadd.f32 %v16850_v45, %v3047_v18  ;;  %v14099_v19 = vld [vmem:[#allocation6 + $0x48] ss:$16 sps:$4 sm:$0xff]   ;;  %v14104_v14 = vld [vmem:[#allocation6 + $0x64] ss:$16 sps:$4 sm:$0xff]  }
 0x3ea   :  { %4207 = vmatmul.mubr.bf16.vlgmr.msra.gmra.mrb[48].mxu0 %v3460_v62  ;;  %4353 = vmatmul.mubr.bf16.vlgmr.msra.gmra.mrb[48].mxu1 %v3460_v62  ;;  %v17001_v6 = vpack.c.bf16 %v3157_v35, %v3153_v31  ;;  %v14107_v35 = vld [vmem:[#allocation6 + $0x6c] ss:$16 sps:$4 sm:$0xff]   ;;  %v14110_v11 = vld [vmem:[#allocation6 + $0x84] ss:$16 sps:$4 sm:$0xff]  }
 0x3eb   :  { %v16980_v39 = vpop.permute.xlu0 %2908  ;;  %12204 = vmatprep.mubr.msk.bf16.mxu0 %vm4076_vm4, %v16978_v24  ;;  %12209 = vmatprep.mubr.msk.bf16.mxu1 %vm4076_vm4, %v16978_v24  ;;  %v17668_v18 = vld [vmem:[#allocation26_spill] sm:$0xff]  ;;  %v3165_v31 = vmax.f32 %v3117_v37, 0.0 }
 0x3ec   :  { %4994 = vmatpush1.bf16.msra.mxu0 %v14084_v59  ;;  %5140 = vmatpush1.bf16.msra.mxu1 %v14087_v33  ;;  %v17667_v59 = vld [vmem:[#allocation22_spill] sm:$0xff] }
 0x3ed   :  { %v16991_v10 = vpop.permute.xlu1 %2916  ;;  %4995 = vmatprep.subr.bf16.mxu0 %v14092_v21  ;;  %5141 = vmatprep.subr.bf16.mxu1 %v14095_v46  ;;  %v17007_v21 = vpack.c.bf16 %v3166_v40, %v3162_v17  ;;  %v17010_v46 = vsel %vm718_vm2, %v3459_v23, %v3468_v42  ;;  %v17022_v23 = vsel %vm718_vm2, %v3470_v54, %v3478_v51  ;;  %v3476_v54 = vrot.slane %v17001_v6, 4  ;;  %v14113_v17 = vld [vmem:[#allocation6 + $0x8c] ss:$16 sps:$4 sm:$0xff]  }
 0x3ef   :  { %v16994_v48 = vpop.permute.xlu0 %2914  ;;  %v17037_v37 = vsel %vm718_vm2, %v3468_v42, %v3476_v54  ;;  %v14114_v42 = vld [vmem:[#allocation6 + $0xa0] ss:$16 sps:$4 sm:$0xff]  }
 0x3f0   :  { %v2957_v53 = vsel %vm2924_vm3, %v16947_v29, %v16994_v48  ;;  %4996 = vmatpush1.bf16.msra.mxu0 %v14090_v41  ;;  %5142 = vmatpush1.bf16.msra.mxu1 %v14093_v2  ;;  %v3113_v2 = vadd.f32 %v16850_v45, %v3043_v38 }
 0x3f1   :  { %v3051_v33 = vmax.f32 %v17667_v59, %v2957_v53  ;;  %v17005_v62 = vpop.permute.xlu1 %2922  ;;  %4997 = vmatprep.subr.bf16.mxu0 %v14098_v56  ;;  %5143 = vmatprep.subr.bf16.mxu1 %v14101_v52  ;;  %v14102_v56 = vld [vmem:[#allocation6 + $0x60] ss:$16 sps:$4 sm:$0xff]   ;;  %v14105_v52 = vld [vmem:[#allocation6 + $0x68] ss:$16 sps:$4 sm:$0xff]   ;;  %v3486_v59 = vrot.slane %v17007_v21, 4 }
 0x3f2   :  { %v2960_v1 = vsel %vm2924_vm3, %v16964_v44, %v17005_v62  ;;  %4217 = vmatmul.mubr.bf16.gmra.mrb[52].mxu0 %v17010_v46  ;;  %4363 = vmatmul.mubr.bf16.gmra.mrb[52].mxu1 %v17010_v46 }
 0x3f3   :  { %v3121_v22 = vadd.f32 %v16850_v45, %v3051_v33  ;;  %v3055_v41 = vmax.f32 %v17668_v18, %v2960_v1  ;;  %12205 = vmatprep.mubr.msk.bf16.mxu0 %vm4076_vm4, %v17022_v23  ;;  %12210 = vmatprep.mubr.msk.bf16.mxu1 %vm4076_vm4, %v17022_v23  ;;  %v3161_v33 = vmax.f32 %v3113_v2, 0.0  ;;  %v14117_v18 = vld [vmem:[#allocation6 + $0xa8] ss:$16 sps:$4 sm:$0xff]   ;;  %v14122_v2 = vld [vmem:[#allocation6 + $0xc4] ss:$16 sps:$4 sm:$0xff]  }
 0x3f4   :  { %4998 = vmatpush1.bf16.msra.mxu0 %v14096_v61  ;;  %5144 = vmatpush1.bf16.msra.mxu1 %v14099_v19  ;;  %v14111_v61 = vld [vmem:[#allocation6 + $0x88] ss:$16 sps:$4 sm:$0xff]  }
 0x3f5   :  { %v3125_v40 = vadd.f32 %v16850_v45, %v3055_v41  ;;  %4999 = vmatprep.subr.bf16.mxu0 %v14104_v14  ;;  %5145 = vmatprep.subr.bf16.mxu1 %v14107_v35  ;;  %v3169_v38 = vmax.f32 %v3121_v22, 0.0  ;;  %v14108_v45 = vld [vmem:[#allocation6 + $0x80] ss:$16 sps:$4 sm:$0xff]   ;;  %v17034_v19 = vpack.c.bf16 %v3165_v31, %v3161_v33  ;;  %v14116_v14 = vld [vmem:[#allocation6 + $0xa4] ss:$16 sps:$4 sm:$0xff]   ;;  %v17044_v22 = vsel %vm718_vm2, %v3478_v51, %v3486_v59 }
 0x3f6   :  { %v14119_v35 = vld [vmem:[#allocation6 + $0xac] ss:$16 sps:$4 sm:$0xff]   ;;  %v14120_v51 = vld [vmem:[#allocation6 + $0xc0] ss:$16 sps:$4 sm:$0xff]   ;;  %v14128_v31 = vld [vmem:[#allocation6 + $0xe4] ss:$16 sps:$4 sm:$0xff]  }
 0x3f7   :  { %v3173_v53 = vmax.f32 %v3125_v40, 0.0  ;;  %v3484_v41 = vrot.slane %v17034_v19, 4  ;;  %v14125_v40 = vld [vmem:[#allocation6 + $0xcc] ss:$16 sps:$4 sm:$0xff]   ;;  %v14132_v33 = vld [vmem:[#allocation6 + $0x100] ss:$16 sps:$4 sm:$0xff]  }
 0x3f8   :  { %5000 = vmatpush1.bf16.msra.mxu0 %v14102_v56  ;;  %5146 = vmatpush1.bf16.msra.mxu1 %v14105_v52  ;;  %v14123_v56 = vld [vmem:[#allocation6 + $0xc8] ss:$16 sps:$4 sm:$0xff]  }
 0x3f9   :  { %v17032_v1 = vpack.c.bf16 %v3173_v53, %v3169_v38  ;;  %5001 = vmatprep.subr.bf16.mxu0 %v14110_v11  ;;  %5147 = vmatprep.subr.bf16.mxu1 %v14113_v17  ;;  %v17054_v52 = vsel %vm718_vm2, %v3476_v54, %v3484_v41  ;;  %v14131_v11 = vld [vmem:[#allocation6 + $0xec] ss:$16 sps:$4 sm:$0xff]   ;;  %v14126_v17 = vld [vmem:[#allocation6 + $0xe0] ss:$16 sps:$4 sm:$0xff]   ;;  %v14129_v38 = vld [vmem:[#allocation6 + $0xe8] ss:$16 sps:$4 sm:$0xff]  }
 0x3fa   :  { %4227 = vmatmul.mubr.bf16.gmra.mrb[56].mxu0 %v17037_v37  ;;  %4373 = vmatmul.mubr.bf16.gmra.mrb[56].mxu1 %v17037_v37  ;;  %v14134_v54 = vld [vmem:[#allocation6 + $0x104] ss:$16 sps:$4 sm:$0xff]   ;;  %v14137_v53 = vld [vmem:[#allocation6 + $0x10c] ss:$16 sps:$4 sm:$0xff]  }
 0x3fb   :  { %12206 = vmatprep.mubr.msk.bf16.mxu0 %vm4076_vm4, %v17044_v22  ;;  %12211 = vmatprep.mubr.msk.bf16.mxu1 %vm4076_vm4, %v17044_v22 }
 0x3fc   :  { %5002 = vmatpush1.bf16.msra.mxu0 %v14108_v45  ;;  %5148 = vmatpush1.bf16.msra.mxu1 %v14111_v61  ;;  %v14135_v45 = vld [vmem:[#allocation6 + $0x108] ss:$16 sps:$4 sm:$0xff]   ;;  %v14140_v61 = vld [vmem:[#allocation6 + $0x124] ss:$16 sps:$4 sm:$0xff]  }
 0x3fd   :  { %5003 = vmatprep.subr.bf16.mxu0 %v14116_v14  ;;  %5149 = vmatprep.subr.bf16.mxu1 %v14119_v35  ;;  %v14143_v14 = vld [vmem:[#allocation6 + $0x12c] ss:$16 sps:$4 sm:$0xff]   ;;  %v14138_v35 = vld [vmem:[#allocation6 + $0x120] ss:$16 sps:$4 sm:$0xff]  }
 0x400   :  { %5004 = vmatpush1.bf16.msra.mxu0 %v14114_v42  ;;  %5150 = vmatpush1.bf16.msra.mxu1 %v14117_v18  ;;  %v14146_v42 = vld [vmem:[#allocation6 + $0x144] ss:$16 sps:$4 sm:$0xff]   ;;  %v14149_v18 = vld [vmem:[#allocation6 + $0x14c] ss:$16 sps:$4 sm:$0xff]  }
 0x401   :  { %5005 = vmatprep.subr.bf16.mxu0 %v14122_v2  ;;  %5151 = vmatprep.subr.bf16.mxu1 %v14125_v40  ;;  %v14144_v2 = vld [vmem:[#allocation6 + $0x140] ss:$16 sps:$4 sm:$0xff]   ;;  %v14147_v40 = vld [vmem:[#allocation6 + $0x148] ss:$16 sps:$4 sm:$0xff]  }
 0x402   :  { %4237 = vmatmul.mubr.bf16.gmra.mrb[60].mxu0 %v17054_v52  ;;  %4383 = vmatmul.mubr.bf16.gmra.mrb[60].mxu1 %v17054_v52 }
 0x403   :  { %5025 = vmatprep.mubr.bf16.mxu0 %v16723_v20  ;;  %5171 = vmatprep.mubr.bf16.mxu1 %v16723_v20  ;;  %v14141_v20 = vld [vmem:[#allocation6 + $0x128] ss:$16 sps:$4 sm:$0xff]  }
 0x404   :  { %5006 = vmatpush1.bf16.msra.mxu0 %v14120_v51  ;;  %5152 = vmatpush1.bf16.msra.mxu1 %v14123_v56  ;;  %v14152_v51 = vld [vmem:[#allocation6 + $0x164] ss:$16 sps:$4 sm:$0xff]   ;;  %v14155_v56 = vld [vmem:[#allocation6 + $0x16c] ss:$16 sps:$4 sm:$0xff]  }
 0x405   :  { %5007 = vmatprep.subr.bf16.mxu0 %v14128_v31  ;;  %5153 = vmatprep.subr.bf16.mxu1 %v14131_v11  ;;  %v14150_v31 = vld [vmem:[#allocation6 + $0x160] ss:$16 sps:$4 sm:$0xff]   ;;  %v14153_v11 = vld [vmem:[#allocation6 + $0x168] ss:$16 sps:$4 sm:$0xff]  }
 0x408   :  { %5008 = vmatpush1.bf16.msra.mxu0 %v14126_v17  ;;  %5154 = vmatpush1.bf16.msra.mxu1 %v14129_v38  ;;  %v14158_v17 = vld [vmem:[#allocation6 + $0x184] ss:$16 sps:$4 sm:$0xff]   ;;  %v14161_v38 = vld [vmem:[#allocation6 + $0x18c] ss:$16 sps:$4 sm:$0xff]  }
 0x409   :  { %5009 = vmatprep.subr.bf16.mxu0 %v14134_v54  ;;  %5155 = vmatprep.subr.bf16.mxu1 %v14137_v53  ;;  %v14156_v54 = vld [vmem:[#allocation6 + $0x180] ss:$16 sps:$4 sm:$0xff]   ;;  %v14159_v53 = vld [vmem:[#allocation6 + $0x188] ss:$16 sps:$4 sm:$0xff]  }
 0x40c   :  { %5010 = vmatpush1.bf16.msra.mxu0 %v14132_v33  ;;  %5156 = vmatpush1.bf16.msra.mxu1 %v14135_v45  ;;  %v14164_v33 = vld [vmem:[#allocation6 + $0x1a4] ss:$16 sps:$4 sm:$0xff]   ;;  %v14167_v45 = vld [vmem:[#allocation6 + $0x1ac] ss:$16 sps:$4 sm:$0xff]  }
 0x40d   :  { %5011 = vmatprep.subr.bf16.mxu0 %v14140_v61  ;;  %5157 = vmatprep.subr.bf16.mxu1 %v14143_v14  ;;  %v14162_v61 = vld [vmem:[#allocation6 + $0x1a0] ss:$16 sps:$4 sm:$0xff]   ;;  %v14165_v14 = vld [vmem:[#allocation6 + $0x1a8] ss:$16 sps:$4 sm:$0xff]  }
 0x410   :  { %5012 = vmatpush1.bf16.msra.mxu0 %v14138_v35  ;;  %5158 = vmatpush1.bf16.msra.mxu1 %v14141_v20  ;;  %v14170_v35 = vld [vmem:[#allocation6 + $0x1c4] ss:$16 sps:$4 sm:$0xff]   ;;  %v14173_v20 = vld [vmem:[#allocation6 + $0x1cc] ss:$16 sps:$4 sm:$0xff]  }
 0x411   :  { %5013 = vmatprep.subr.bf16.mxu0 %v14146_v42  ;;  %5159 = vmatprep.subr.bf16.mxu1 %v14149_v18  ;;  %v14168_v42 = vld [vmem:[#allocation6 + $0x1c0] ss:$16 sps:$4 sm:$0xff]   ;;  %v14171_v18 = vld [vmem:[#allocation6 + $0x1c8] ss:$16 sps:$4 sm:$0xff]  }
 0x414   :  { %5014 = vmatpush1.bf16.msra.mxu0 %v14144_v2  ;;  %5160 = vmatpush1.bf16.msra.mxu1 %v14147_v40  ;;  %v14176_v2 = vld [vmem:[#allocation6 + $0x1e4] ss:$16 sps:$4 sm:$0xff]   ;;  %v14179_v40 = vld [vmem:[#allocation6 + $0x1ec] ss:$16 sps:$4 sm:$0xff]  }
 0x415   :  { %5015 = vmatprep.subr.bf16.mxu0 %v14152_v51  ;;  %5161 = vmatprep.subr.bf16.mxu1 %v14155_v56  ;;  %v14174_v51 = vld [vmem:[#allocation6 + $0x1e0] ss:$16 sps:$4 sm:$0xff]   ;;  %v14177_v56 = vld [vmem:[#allocation6 + $0x1e8] ss:$16 sps:$4 sm:$0xff]  }
 0x418   :  { %5016 = vmatpush1.bf16.msra.mxu0 %v14150_v31  ;;  %5162 = vmatpush1.bf16.msra.mxu1 %v14153_v11  ;;  %v14182_v31 = vld [vmem:[#allocation6 + $0x204] ss:$16 sps:$4 sm:$0xff]   ;;  %v14185_v11 = vld [vmem:[#allocation6 + $0x20c] ss:$16 sps:$4 sm:$0xff]  }
 0x419   :  { %5017 = vmatprep.subr.bf16.mxu0 %v14158_v17  ;;  %5163 = vmatprep.subr.bf16.mxu1 %v14161_v38  ;;  %v14180_v17 = vld [vmem:[#allocation6 + $0x200] ss:$16 sps:$4 sm:$0xff]   ;;  %v14183_v38 = vld [vmem:[#allocation6 + $0x208] ss:$16 sps:$4 sm:$0xff]  }
 0x41c   :  { %5018 = vmatpush1.bf16.msra.mxu0 %v14156_v54  ;;  %5164 = vmatpush1.bf16.msra.mxu1 %v14159_v53  ;;  %v14188_v54 = vld [vmem:[#allocation6 + $0x224] ss:$16 sps:$4 sm:$0xff]   ;;  %v14191_v53 = vld [vmem:[#allocation6 + $0x22c] ss:$16 sps:$4 sm:$0xff]  }
 0x41d   :  { %5019 = vmatprep.subr.bf16.mxu0 %v14164_v33  ;;  %5165 = vmatprep.subr.bf16.mxu1 %v14167_v45  ;;  %v14186_v33 = vld [vmem:[#allocation6 + $0x220] ss:$16 sps:$4 sm:$0xff]   ;;  %v14189_v45 = vld [vmem:[#allocation6 + $0x228] ss:$16 sps:$4 sm:$0xff]  }
 0x420   :  { %5020 = vmatpush1.bf16.msra.mxu0 %v14162_v61  ;;  %5166 = vmatpush1.bf16.msra.mxu1 %v14165_v14  ;;  %v14194_v61 = vld [vmem:[#allocation6 + $0x244] ss:$16 sps:$4 sm:$0xff]   ;;  %v14197_v14 = vld [vmem:[#allocation6 + $0x24c] ss:$16 sps:$4 sm:$0xff]  }
 0x421   :  { %5021 = vmatprep.subr.bf16.mxu0 %v14170_v35  ;;  %5167 = vmatprep.subr.bf16.mxu1 %v14173_v20  ;;  %v14192_v35 = vld [vmem:[#allocation6 + $0x240] ss:$16 sps:$4 sm:$0xff]   ;;  %v14195_v20 = vld [vmem:[#allocation6 + $0x248] ss:$16 sps:$4 sm:$0xff]  }
 0x424   :  { %5022 = vmatpush1.bf16.msra.mxu0 %v14168_v42  ;;  %5168 = vmatpush1.bf16.msra.mxu1 %v14171_v18  ;;  %v14200_v42 = vld [vmem:[#allocation6 + $0x264] ss:$16 sps:$4 sm:$0xff]   ;;  %v14198_v18 = vld [vmem:[#allocation6 + $0x260] ss:$16 sps:$4 sm:$0xff]  }
 0x425   :  { %5023 = vmatprep.subr.bf16.mxu0 %v14176_v2  ;;  %5169 = vmatprep.subr.bf16.mxu1 %v14179_v40  ;;  %v14201_v2 = vld [vmem:[#allocation6 + $0x268] ss:$16 sps:$4 sm:$0xff]   ;;  %v14206_v40 = vld [vmem:[#allocation6 + $0x284] ss:$16 sps:$4 sm:$0xff]  }
 0x428   :  { %5024 = vmatpush1.bf16.msra.mxu0 %v14174_v51  ;;  %5170 = vmatpush1.bf16.msra.mxu1 %v14177_v56  ;;  %v14209_v51 = vld [vmem:[#allocation6 + $0x28c] ss:$16 sps:$4 sm:$0xff]   ;;  %v14204_v56 = vld [vmem:[#allocation6 + $0x280] ss:$16 sps:$4 sm:$0xff]  }
 0x429   :  { %5066 = vmatprep.subr.bf16.mxu0 %v14182_v31  ;;  %5212 = vmatprep.subr.bf16.mxu1 %v14185_v11  ;;  %v14207_v31 = vld [vmem:[#allocation6 + $0x288] ss:$16 sps:$4 sm:$0xff]   ;;  %v14212_v11 = vld [vmem:[#allocation6 + $0x2a4] ss:$16 sps:$4 sm:$0xff]  }
 0x42b   :  { %5026 = vmatmul.mubr.bf16.vlgmr.msra.gmra.mrb[48].mxu0 %v16733_v49  ;;  %5172 = vmatmul.mubr.bf16.vlgmr.msra.gmra.mrb[48].mxu1 %v16733_v49  ;;  %v14203_v49 = vld [vmem:[#allocation6 + $0x26c] ss:$16 sps:$4 sm:$0xff]  }
 0x42c   :  { %5035 = vmatprep.mubr.bf16.mxu0 %v16728_v3  ;;  %5067 = vmatpush1.bf16.msra.mxu0 %v14180_v17  ;;  %v14215_v17 = vld [vmem:[#allocation6 + $0x2ac] ss:$16 sps:$4 sm:$0xff]  }
 0x42d   :  { %5181 = vmatprep.mubr.bf16.mxu1 %v16728_v3  ;;  %5213 = vmatpush1.bf16.msra.mxu1 %v14183_v38  ;;  %v14210_v38 = vld [vmem:[#allocation6 + $0x2a0] ss:$16 sps:$4 sm:$0xff]  }
 0x42e   :  { %5068 = vmatprep.subr.bf16.mxu0 %v14188_v54  ;;  %5214 = vmatprep.subr.bf16.mxu1 %v14191_v53  ;;  %v14213_v54 = vld [vmem:[#allocation6 + $0x2a8] ss:$16 sps:$4 sm:$0xff]   ;;  %v14218_v53 = vld [vmem:[#allocation6 + $0x2c4] ss:$16 sps:$4 sm:$0xff]  }
 0x430   :  { %5069 = vmatpush1.bf16.msra.mxu0 %v14186_v33  ;;  %v14221_v33 = vld [vmem:[#allocation6 + $0x2cc] ss:$16 sps:$4 sm:$0xff]  }
 0x431   :  { %5215 = vmatpush1.bf16.msra.mxu1 %v14189_v45  ;;  %5070 = vmatprep.subr.bf16.mxu0 %v14194_v61  ;;  %v14216_v45 = vld [vmem:[#allocation6 + $0x2c0] ss:$16 sps:$4 sm:$0xff]   ;;  %v14219_v61 = vld [vmem:[#allocation6 + $0x2c8] ss:$16 sps:$4 sm:$0xff]  }
 0x432   :  { %5216 = vmatprep.subr.bf16.mxu1 %v14197_v14  ;;  %v14224_v14 = vld [vmem:[#allocation6 + $0x2e4] ss:$16 sps:$4 sm:$0xff]  }
 0x433   :  { %5036 = vmatmul.mubr.bf16.gmra.mrb[52].mxu0 %v16740_v8  ;;  %5182 = vmatmul.mubr.bf16.gmra.mrb[52].mxu1 %v16740_v8 }
 0x434   :  { %5045 = vmatprep.mubr.bf16.mxu0 %v16765_v58  ;;  %5071 = vmatpush1.bf16.msra.mxu0 %v14192_v35  ;;  %v14227_v35 = vld [vmem:[#allocation6 + $0x2ec] ss:$16 sps:$4 sm:$0xff]  }
 0x435   :  { %5191 = vmatprep.mubr.bf16.mxu1 %v16765_v58  ;;  %5217 = vmatpush1.bf16.msra.mxu1 %v14195_v20  ;;  %v14222_v20 = vld [vmem:[#allocation6 + $0x2e0] ss:$16 sps:$4 sm:$0xff]  }
 0x436   :  { %5072 = vmatprep.subr.bf16.mxu0 %v14200_v42  ;;  %5218 = vmatprep.subr.bf16.mxu1 %v14203_v49  ;;  %v14225_v42 = vld [vmem:[#allocation6 + $0x2e8] ss:$16 sps:$4 sm:$0xff]   ;;  %v14230_v49 = vld [vmem:[#allocation6 + $0x304] ss:$16 sps:$4 sm:$0xff]  }
 0x438   :  { %5073 = vmatpush1.bf16.msra.mxu0 %v14198_v18  ;;  %v14233_v18 = vld [vmem:[#allocation6 + $0x30c] ss:$16 sps:$4 sm:$0xff]  }
 0x439   :  { %5219 = vmatpush1.bf16.msra.mxu1 %v14201_v2  ;;  %5074 = vmatprep.subr.bf16.mxu0 %v14206_v40  ;;  %v14228_v2 = vld [vmem:[#allocation6 + $0x300] ss:$16 sps:$4 sm:$0xff]   ;;  %v14231_v40 = vld [vmem:[#allocation6 + $0x308] ss:$16 sps:$4 sm:$0xff]  }
 0x43a   :  { %5220 = vmatprep.subr.bf16.mxu1 %v14209_v51  ;;  %v14236_v51 = vld [vmem:[#allocation6 + $0x324] ss:$16 sps:$4 sm:$0xff]  }
 0x43b   :  { %5046 = vmatmul.mubr.bf16.gmra.mrb[56].mxu0 %v16770_v30  ;;  %5192 = vmatmul.mubr.bf16.gmra.mrb[56].mxu1 %v16770_v30 }
 0x43c   :  { %5055 = vmatprep.mubr.bf16.mxu0 %v16809_v57  ;;  %5075 = vmatpush1.bf16.msra.mxu0 %v14204_v56  ;;  %v14239_v56 = vld [vmem:[#allocation6 + $0x32c] ss:$16 sps:$4 sm:$0xff]  }
 0x43d   :  { %5201 = vmatprep.mubr.bf16.mxu1 %v16809_v57  ;;  %5221 = vmatpush1.bf16.msra.mxu1 %v14207_v31  ;;  %v14234_v31 = vld [vmem:[#allocation6 + $0x320] ss:$16 sps:$4 sm:$0xff]  }
 0x43e   :  { %5076 = vmatprep.subr.bf16.mxu0 %v14212_v11  ;;  %5222 = vmatprep.subr.bf16.mxu1 %v14215_v17  ;;  %v14237_v11 = vld [vmem:[#allocation6 + $0x328] ss:$16 sps:$4 sm:$0xff]   ;;  %v14242_v17 = vld [vmem:[#allocation6 + $0x344] ss:$16 sps:$4 sm:$0xff]  }
 0x440   :  { %5077 = vmatpush1.bf16.msra.mxu0 %v14210_v38  ;;  %v14240_v38 = vld [vmem:[#allocation6 + $0x340] ss:$16 sps:$4 sm:$0xff]  }
 0x441   :  { %5223 = vmatpush1.bf16.msra.mxu1 %v14213_v54  ;;  %5078 = vmatprep.subr.bf16.mxu0 %v14218_v53  ;;  %v14243_v54 = vld [vmem:[#allocation6 + $0x348] ss:$16 sps:$4 sm:$0xff]   ;;  %v14248_v53 = vld [vmem:[#allocation6 + $0x364] ss:$16 sps:$4 sm:$0xff]  }
 0x442   :  { %5224 = vmatprep.subr.bf16.mxu1 %v14221_v33  ;;  %v14251_v33 = vld [vmem:[#allocation6 + $0x36c] ss:$16 sps:$4 sm:$0xff]  }
 0x443   :  { %5056 = vmatmul.mubr.bf16.gmra.mrb[60].mxu0 %v16812_v34  ;;  %5202 = vmatmul.mubr.bf16.gmra.mrb[60].mxu1 %v16812_v34 }
 0x444   :  { %5079 = vmatpush1.bf16.msra.mxu0 %v14216_v45  ;;  %12329 = vmatprep.mubr.msk.bf16.mxu0 %vm4076_vm4, %v16922_v16  ;;  %v14246_v45 = vld [vmem:[#allocation6 + $0x360] ss:$16 sps:$4 sm:$0xff]  }
 0x445   :  { %5225 = vmatpush1.bf16.msra.mxu1 %v14219_v61  ;;  %12334 = vmatprep.mubr.msk.bf16.mxu1 %vm4076_vm4, %v16922_v16  ;;  %v14245_v16 = vld [vmem:[#allocation6 + $0x34c] ss:$16 sps:$4 sm:$0xff]   ;;  %v14249_v61 = vld [vmem:[#allocation6 + $0x368] ss:$16 sps:$4 sm:$0xff]  }
 0x446   :  { %5080 = vmatprep.subr.bf16.mxu0 %v14224_v14  ;;  %5226 = vmatprep.subr.bf16.mxu1 %v14227_v35  ;;  %v14252_v14 = vld [vmem:[#allocation6 + $0x384] ss:$16 sps:$4 sm:$0x3f]   ;;  %v14256_v35 = vld [vmem:[#allocation6 + $0x380] ss:$16 sps:$4 sm:$0x3f]  }
 0x448   :  { %5081 = vmatpush1.bf16.msra.mxu0 %v14222_v20  ;;  %v14254_v20 = vld [vmem:[#allocation6 + $0x38c] ss:$16 sps:$4 sm:$0x3f]  }
 0x449   :  { %5227 = vmatpush1.bf16.msra.mxu1 %v14225_v42  ;;  %5082 = vmatprep.subr.bf16.mxu0 %v14230_v49  ;;  %v14257_v42 = vld [vmem:[#allocation6 + $0x388] ss:$16 sps:$4 sm:$0x3f]   ;;  %v4982_v49 = vsel %vm251_vm0, %v14256_v35, 0  ;;  %v14284_v35 = vld [vmem:[#allocation6 + $0x7c4] ss:$16 sps:$4 sm:$0xff]  }
 0x44a   :  { %5228 = vmatprep.subr.bf16.mxu1 %v14233_v18  ;;  %v14260_v18 = vld [vmem:[#allocation6 + $0x744] ss:$16 sps:$4 sm:$0xff]  }
 0x44c   :  { %5083 = vmatpush1.bf16.msra.mxu0 %v14228_v2  ;;  %v4988_v2 = vsel %vm251_vm0, %v14257_v42, 0  ;;  %v14282_v42 = vld [vmem:[#allocation6 + $0x7c0] ss:$16 sps:$4 sm:$0xff]  }
 0x44d   :  { %5229 = vmatpush1.bf16.msra.mxu1 %v14231_v40  ;;  %5084 = vmatprep.subr.bf16.mxu0 %v14236_v51  ;;  %v14263_v40 = vld [vmem:[#allocation6 + $0x74c] ss:$16 sps:$4 sm:$0xff]   ;;  %v14258_v51 = vld [vmem:[#allocation6 + $0x740] ss:$16 sps:$4 sm:$0xff]  }
 0x44e   :  { %5230 = vmatprep.subr.bf16.mxu1 %v14239_v56  ;;  %v14261_v56 = vld [vmem:[#allocation6 + $0x748] ss:$16 sps:$4 sm:$0xff]  }
 0x450   :  { %5085 = vmatpush1.bf16.msra.mxu0 %v14234_v31  ;;  %v14266_v31 = vld [vmem:[#allocation6 + $0x764] ss:$16 sps:$4 sm:$0xff]  }
 0x451   :  { %5231 = vmatpush1.bf16.msra.mxu1 %v14237_v11  ;;  %5086 = vmatprep.subr.bf16.mxu0 %v14242_v17  ;;  %v14269_v11 = vld [vmem:[#allocation6 + $0x76c] ss:$16 sps:$4 sm:$0xff]   ;;  %v14264_v17 = vld [vmem:[#allocation6 + $0x760] ss:$16 sps:$4 sm:$0xff]  }
 0x452   :  { %5232 = vmatprep.subr.bf16.mxu1 %v14245_v16  ;;  %v14267_v16 = vld [vmem:[#allocation6 + $0x768] ss:$16 sps:$4 sm:$0xff]  }
 0x454   :  { %5087 = vmatpush1.bf16.msra.mxu0 %v14240_v38  ;;  %v14272_v38 = vld [vmem:[#allocation6 + $0x784] ss:$16 sps:$4 sm:$0xff]  }
 0x455   :  { %5233 = vmatpush1.bf16.msra.mxu1 %v14243_v54  ;;  %5088 = vmatprep.subr.bf16.mxu0 %v14248_v53  ;;  %v14275_v54 = vld [vmem:[#allocation6 + $0x78c] ss:$16 sps:$4 sm:$0xff]   ;;  %v14270_v53 = vld [vmem:[#allocation6 + $0x780] ss:$16 sps:$4 sm:$0xff]  }
 0x456   :  { %5234 = vmatprep.subr.bf16.mxu1 %v14251_v33  ;;  %v14273_v33 = vld [vmem:[#allocation6 + $0x788] ss:$16 sps:$4 sm:$0xff]  }
 0x458   :  { %5089 = vmatpush1.bf16.msra.mxu0 %v14246_v45  ;;  %v14281_v45 = vld [vmem:[#allocation6 + $0x7ac] ss:$16 sps:$4 sm:$0xff]  }
 0x459   :  { %5235 = vmatpush1.bf16.msra.mxu1 %v14249_v61  ;;  %12328 = vmatprep.subr.msk.bf16.mxu0 %vm251_vm0, %v14252_v14  ;;  %v14276_v61 = vld [vmem:[#allocation6 + $0x7a0] ss:$16 sps:$4 sm:$0xff]   ;;  %v14279_v14 = vld [vmem:[#allocation6 + $0x7a8] ss:$16 sps:$4 sm:$0xff]  }
 0x45a   :  { %12333 = vmatprep.subr.msk.bf16.mxu1 %vm251_vm0, %v14254_v20  ;;  %v14287_v20 = vld [vmem:[#allocation6 + $0x7cc] ss:$16 sps:$4 sm:$0xff]  }
 0x45c   :  { %5091 = vmatpush1.bf16.msra.mxu0 %v4982_v49  ;;  %v14285_v49 = vld [vmem:[#allocation6 + $0x7c8] ss:$16 sps:$4 sm:$0xff]  }
 0x45d   :  { %5237 = vmatpush1.bf16.msra.mxu1 %v4988_v2  ;;  %5993 = vmatprep.subr.bf16.mxu0 %v14260_v18  ;;  %v14290_v18 = vld [vmem:[#allocation6 + $0x7e4] ss:$16 sps:$4 sm:$0xff]   ;;  %v14293_v2 = vld [vmem:[#allocation6 + $0x7ec] ss:$16 sps:$4 sm:$0xff]  }
 0x45e   :  { %6139 = vmatprep.subr.bf16.mxu1 %v14263_v40  ;;  %v14288_v40 = vld [vmem:[#allocation6 + $0x7e0] ss:$16 sps:$4 sm:$0xff]  }
 0x45f   :  { %5099 = vmatmul.mubr.bf16.vlgmr.msra.gmra.mrb[48].mxu0 %v16893_v36 }
 0x460   :  { %5245 = vmatmul.mubr.bf16.vlgmr.msra.gmra.mrb[48].mxu1 %v16893_v36  ;;  %12330 = vmatprep.mubr.msk.bf16.mxu0 %vm4076_vm4, %v16924_v32  ;;  %v14278_v36 = vld [vmem:[#allocation6 + $0x7a4] ss:$16 sps:$4 sm:$0xff]  }
 0x461   :  { %12335 = vmatprep.mubr.msk.bf16.mxu1 %vm4076_vm4, %v16924_v32  ;;  %5994 = vmatpush1.bf16.msra.mxu0 %v14258_v51  ;;  %v14291_v51 = vld [vmem:[#allocation6 + $0x7e8] ss:$16 sps:$4 sm:$0xff]  }
 0x462   :  { %6140 = vmatpush1.bf16.msra.mxu1 %v14261_v56  ;;  %5995 = vmatprep.subr.bf16.mxu0 %v14266_v31  ;;  %v14296_v56 = vld [vmem:[#allocation6 + $0x804] ss:$16 sps:$4 sm:$0xff]   ;;  %v14299_v31 = vld [vmem:[#allocation6 + $0x80c] ss:$16 sps:$4 sm:$0xff]  }
 0x463   :  { %6141 = vmatprep.subr.bf16.mxu1 %v14269_v11  ;;  %v14294_v11 = vld [vmem:[#allocation6 + $0x800] ss:$16 sps:$4 sm:$0xff]  }
 0x465   :  { %5996 = vmatpush1.bf16.msra.mxu0 %v14264_v17  ;;  %v14297_v17 = vld [vmem:[#allocation6 + $0x808] ss:$16 sps:$4 sm:$0xff]  }
 0x466   :  { %6142 = vmatpush1.bf16.msra.mxu1 %v14267_v16  ;;  %5997 = vmatprep.subr.bf16.mxu0 %v14272_v38  ;;  %v14302_v16 = vld [vmem:[#allocation6 + $0x824] ss:$16 sps:$4 sm:$0xff]   ;;  %v14305_v38 = vld [vmem:[#allocation6 + $0x82c] ss:$16 sps:$4 sm:$0xff]  }
 0x467   :  { %5109 = vmatmul.mubr.bf16.gmra.mrb[52].mxu0 %v16931_v43  ;;  %6143 = vmatprep.subr.bf16.mxu1 %v14275_v54  ;;  %v14300_v54 = vld [vmem:[#allocation6 + $0x820] ss:$16 sps:$4 sm:$0xff]  }
 0x468   :  { %5255 = vmatmul.mubr.bf16.gmra.mrb[52].mxu1 %v16931_v43  ;;  %12331 = vmatprep.mubr.msk.bf16.mxu0 %vm4076_vm4, %v16933_v7 }
 0x469   :  { %12336 = vmatprep.mubr.msk.bf16.mxu1 %vm4076_vm4, %v16933_v7  ;;  %5998 = vmatpush1.bf16.msra.mxu0 %v14270_v53  ;;  %v14303_v53 = vld [vmem:[#allocation6 + $0x828] ss:$16 sps:$4 sm:$0xff]  }
 0x46a   :  { %6144 = vmatpush1.bf16.msra.mxu1 %v14273_v33  ;;  %5999 = vmatprep.subr.bf16.mxu0 %v14278_v36  ;;  %v14308_v33 = vld [vmem:[#allocation6 + $0x844] ss:$16 sps:$4 sm:$0xff]   ;;  %v14311_v36 = vld [vmem:[#allocation6 + $0x84c] ss:$16 sps:$4 sm:$0xff]  }
 0x46b   :  { %6145 = vmatprep.subr.bf16.mxu1 %v14281_v45  ;;  %v14306_v45 = vld [vmem:[#allocation6 + $0x840] ss:$16 sps:$4 sm:$0xff]  }
 0x46d   :  { %6000 = vmatpush1.bf16.msra.mxu0 %v14276_v61  ;;  %v14309_v61 = vld [vmem:[#allocation6 + $0x848] ss:$16 sps:$4 sm:$0xff]  }
 0x46e   :  { %6146 = vmatpush1.bf16.msra.mxu1 %v14279_v14  ;;  %6001 = vmatprep.subr.bf16.mxu0 %v14284_v35  ;;  %v14314_v14 = vld [vmem:[#allocation6 + $0x864] ss:$16 sps:$4 sm:$0xff]   ;;  %v14317_v35 = vld [vmem:[#allocation6 + $0x86c] ss:$16 sps:$4 sm:$0xff]  }
 0x46f   :  { %5119 = vmatmul.mubr.bf16.gmra.mrb[56].mxu0 %v16966_v60  ;;  %6147 = vmatprep.subr.bf16.mxu1 %v14287_v20  ;;  %v14312_v20 = vld [vmem:[#allocation6 + $0x860] ss:$16 sps:$4 sm:$0xff]  }
 0x470   :  { %5265 = vmatmul.mubr.bf16.gmra.mrb[56].mxu1 %v16966_v60  ;;  %12332 = vmatprep.mubr.msk.bf16.mxu0 %vm4076_vm4, %v16973_v12 }
 0x471   :  { %12337 = vmatprep.mubr.msk.bf16.mxu1 %vm4076_vm4, %v16973_v12  ;;  %6002 = vmatpush1.bf16.msra.mxu0 %v14282_v42  ;;  %v14320_v42 = vld [vmem:[#allocation6 + $0x884] ss:$16 sps:$4 sm:$0xff]  }
 0x472   :  { %6148 = vmatpush1.bf16.msra.mxu1 %v14285_v49  ;;  %6003 = vmatprep.subr.bf16.mxu0 %v14290_v18  ;;  %v14323_v49 = vld [vmem:[#allocation6 + $0x88c] ss:$16 sps:$4 sm:$0xff]   ;;  %v14318_v18 = vld [vmem:[#allocation6 + $0x880] ss:$16 sps:$4 sm:$0xff]  }
 0x473   :  { %6149 = vmatprep.subr.bf16.mxu1 %v14293_v2  ;;  %v14321_v2 = vld [vmem:[#allocation6 + $0x888] ss:$16 sps:$4 sm:$0xff]  }
 0x475   :  { %6004 = vmatpush1.bf16.msra.mxu0 %v14288_v40  ;;  %v14326_v40 = vld [vmem:[#allocation6 + $0x8a4] ss:$16 sps:$4 sm:$0xff]  }
 0x476   :  { %6150 = vmatpush1.bf16.msra.mxu1 %v14291_v51  ;;  %6005 = vmatprep.subr.bf16.mxu0 %v14296_v56  ;;  %v14329_v51 = vld [vmem:[#allocation6 + $0x8ac] ss:$16 sps:$4 sm:$0xff]   ;;  %v14324_v56 = vld [vmem:[#allocation6 + $0x8a0] ss:$16 sps:$4 sm:$0xff]  }
 0x477   :  { %5129 = vmatmul.mubr.bf16.gmra.mrb[60].mxu0 %v17001_v6  ;;  %6151 = vmatprep.subr.bf16.mxu1 %v14299_v31  ;;  %v14327_v31 = vld [vmem:[#allocation6 + $0x8a8] ss:$16 sps:$4 sm:$0xff]  }
 0x478   :  { %5275 = vmatmul.mubr.bf16.gmra.mrb[60].mxu1 %v17001_v6  ;;  %6025 = vmatprep.mubr.bf16.mxu0 %v16728_v3 }
 0x479   :  { %6006 = vmatpush1.bf16.msra.mxu0 %v14294_v11  ;;  %6171 = vmatprep.mubr.bf16.mxu1 %v16728_v3  ;;  %v14315_v3 = vld [vmem:[#allocation6 + $0x868] ss:$16 sps:$4 sm:$0xff]   ;;  %v14332_v11 = vld [vmem:[#allocation6 + $0x8c4] ss:$16 sps:$4 sm:$0xff]  }
 0x47a   :  { %6152 = vmatpush1.bf16.msra.mxu1 %v14297_v17  ;;  %6007 = vmatprep.subr.bf16.mxu0 %v14302_v16  ;;  %v14335_v17 = vld [vmem:[#allocation6 + $0x8cc] ss:$16 sps:$4 sm:$0xff]   ;;  %v14330_v16 = vld [vmem:[#allocation6 + $0x8c0] ss:$16 sps:$4 sm:$0xff]  }
 0x47b   :  { %6153 = vmatprep.subr.bf16.mxu1 %v14305_v38  ;;  %v14333_v38 = vld [vmem:[#allocation6 + $0x8c8] ss:$16 sps:$4 sm:$0xff]  }
 0x47d   :  { %6008 = vmatpush1.bf16.msra.mxu0 %v14300_v54  ;;  %v14338_v54 = vld [vmem:[#allocation6 + $0x8e4] ss:$16 sps:$4 sm:$0xff]  }
 0x47e   :  { %6154 = vmatpush1.bf16.msra.mxu1 %v14303_v53  ;;  %6009 = vmatprep.subr.bf16.mxu0 %v14308_v33  ;;  %v14341_v53 = vld [vmem:[#allocation6 + $0x8ec] ss:$16 sps:$4 sm:$0xff]   ;;  %v14336_v33 = vld [vmem:[#allocation6 + $0x8e0] ss:$16 sps:$4 sm:$0xff]  }
 0x47f   :  { %6155 = vmatprep.subr.bf16.mxu1 %v14311_v36  ;;  %v14339_v36 = vld [vmem:[#allocation6 + $0x8e8] ss:$16 sps:$4 sm:$0xff]  }
 0x481   :  { %6010 = vmatpush1.bf16.msra.mxu0 %v14306_v45  ;;  %v14344_v45 = vld [vmem:[#allocation6 + $0x904] ss:$16 sps:$4 sm:$0xff]  }
 0x482   :  { %6156 = vmatpush1.bf16.msra.mxu1 %v14309_v61  ;;  %6011 = vmatprep.subr.bf16.mxu0 %v14314_v14  ;;  %v14347_v61 = vld [vmem:[#allocation6 + $0x90c] ss:$16 sps:$4 sm:$0xff]   ;;  %v14342_v14 = vld [vmem:[#allocation6 + $0x900] ss:$16 sps:$4 sm:$0xff]  }
 0x483   :  { %6157 = vmatprep.subr.bf16.mxu1 %v14317_v35  ;;  %v14345_v35 = vld [vmem:[#allocation6 + $0x908] ss:$16 sps:$4 sm:$0xff]  }
 0x485   :  { %6012 = vmatpush1.bf16.msra.mxu0 %v14312_v20  ;;  %v14350_v20 = vld [vmem:[#allocation6 + $0x924] ss:$16 sps:$4 sm:$0xff]  }
 0x486   :  { %6158 = vmatpush1.bf16.msra.mxu1 %v14315_v3  ;;  %6013 = vmatprep.subr.bf16.mxu0 %v14320_v42  ;;  %v14353_v3 = vld [vmem:[#allocation6 + $0x92c] ss:$16 sps:$4 sm:$0xff]   ;;  %v14348_v42 = vld [vmem:[#allocation6 + $0x920] ss:$16 sps:$4 sm:$0xff]  }
 0x487   :  { %6159 = vmatprep.subr.bf16.mxu1 %v14323_v49  ;;  %v14351_v49 = vld [vmem:[#allocation6 + $0x928] ss:$16 sps:$4 sm:$0xff]  }
 0x489   :  { %6014 = vmatpush1.bf16.msra.mxu0 %v14318_v18  ;;  %v14356_v18 = vld [vmem:[#allocation6 + $0x944] ss:$16 sps:$4 sm:$0xff]  }
 0x48a   :  { %6160 = vmatpush1.bf16.msra.mxu1 %v14321_v2  ;;  %6015 = vmatprep.subr.bf16.mxu0 %v14326_v40  ;;  %v14359_v2 = vld [vmem:[#allocation6 + $0x94c] ss:$16 sps:$4 sm:$0xff]   ;;  %v14354_v40 = vld [vmem:[#allocation6 + $0x940] ss:$16 sps:$4 sm:$0xff]  }
 0x48b   :  { %6161 = vmatprep.subr.bf16.mxu1 %v14329_v51  ;;  %v14357_v51 = vld [vmem:[#allocation6 + $0x948] ss:$16 sps:$4 sm:$0xff]  }
 0x48d   :  { %6016 = vmatpush1.bf16.msra.mxu0 %v14324_v56  ;;  %v14362_v56 = vld [vmem:[#allocation6 + $0x964] ss:$16 sps:$4 sm:$0xff]  }
 0x48e   :  { %6162 = vmatpush1.bf16.msra.mxu1 %v14327_v31  ;;  %6017 = vmatprep.subr.bf16.mxu0 %v14332_v11  ;;  %v14365_v31 = vld [vmem:[#allocation6 + $0x96c] ss:$16 sps:$4 sm:$0xff]   ;;  %v14360_v11 = vld [vmem:[#allocation6 + $0x960] ss:$16 sps:$4 sm:$0xff]  }
 0x48f   :  { %6163 = vmatprep.subr.bf16.mxu1 %v14335_v17  ;;  %v14363_v17 = vld [vmem:[#allocation6 + $0x968] ss:$16 sps:$4 sm:$0xff]  }
 0x491   :  { %6018 = vmatpush1.bf16.msra.mxu0 %v14330_v16  ;;  %v14368_v16 = vld [vmem:[#allocation6 + $0x984] ss:$16 sps:$4 sm:$0xff]  }
 0x492   :  { %6164 = vmatpush1.bf16.msra.mxu1 %v14333_v38  ;;  %6019 = vmatprep.subr.bf16.mxu0 %v14338_v54  ;;  %v14371_v38 = vld [vmem:[#allocation6 + $0x98c] ss:$16 sps:$4 sm:$0xff]   ;;  %v14366_v54 = vld [vmem:[#allocation6 + $0x980] ss:$16 sps:$4 sm:$0xff]  }
 0x493   :  { %6165 = vmatprep.subr.bf16.mxu1 %v14341_v53  ;;  %v14369_v53 = vld [vmem:[#allocation6 + $0x988] ss:$16 sps:$4 sm:$0xff]  }
 0x495   :  { %6020 = vmatpush1.bf16.msra.mxu0 %v14336_v33  ;;  %v14374_v33 = vld [vmem:[#allocation6 + $0x9a4] ss:$16 sps:$4 sm:$0xff]  }
 0x496   :  { %6166 = vmatpush1.bf16.msra.mxu1 %v14339_v36  ;;  %6021 = vmatprep.subr.bf16.mxu0 %v14344_v45  ;;  %v14372_v36 = vld [vmem:[#allocation6 + $0x9a0] ss:$16 sps:$4 sm:$0xff]   ;;  %v14375_v45 = vld [vmem:[#allocation6 + $0x9a8] ss:$16 sps:$4 sm:$0xff]  }
 0x497   :  { %6167 = vmatprep.subr.bf16.mxu1 %v14347_v61  ;;  %v14380_v61 = vld [vmem:[#allocation6 + $0x9c4] ss:$16 sps:$4 sm:$0xff]  }
 0x499   :  { %6022 = vmatpush1.bf16.msra.mxu0 %v14342_v14  ;;  %v14383_v14 = vld [vmem:[#allocation6 + $0x9cc] ss:$16 sps:$4 sm:$0xff]  }
 0x49a   :  { %6168 = vmatpush1.bf16.msra.mxu1 %v14345_v35  ;;  %6023 = vmatprep.subr.bf16.mxu0 %v14350_v20  ;;  %v14378_v35 = vld [vmem:[#allocation6 + $0x9c0] ss:$16 sps:$4 sm:$0xff]   ;;  %v14381_v20 = vld [vmem:[#allocation6 + $0x9c8] ss:$16 sps:$4 sm:$0xff]  }
 0x49b   :  { %6169 = vmatprep.subr.bf16.mxu1 %v14353_v3  ;;  %v14386_v3 = vld [vmem:[#allocation6 + $0x9e4] ss:$16 sps:$4 sm:$0xff]  }
 0x49d   :  { %6024 = vmatpush1.bf16.msra.mxu0 %v14348_v42  ;;  %v14389_v42 = vld [vmem:[#allocation6 + $0x9ec] ss:$16 sps:$4 sm:$0xff]  }
 0x49e   :  { %6170 = vmatpush1.bf16.msra.mxu1 %v14351_v49  ;;  %6066 = vmatprep.subr.bf16.mxu0 %v14356_v18  ;;  %v14384_v49 = vld [vmem:[#allocation6 + $0x9e0] ss:$16 sps:$4 sm:$0xff]   ;;  %v14387_v18 = vld [vmem:[#allocation6 + $0x9e8] ss:$16 sps:$4 sm:$0xff]  }
 0x49f   :  { %6212 = vmatprep.subr.bf16.mxu1 %v14359_v2  ;;  %v14392_v2 = vld [vmem:[#allocation6 + $0xa04] ss:$16 sps:$4 sm:$0xff]  }
 0x4a0   :  { %6026 = vmatmul.mubr.bf16.vlgmr.msra.gmra.mrb[48].mxu0 %v16740_v8 }
 0x4a1   :  { %6172 = vmatmul.mubr.bf16.vlgmr.msra.gmra.mrb[48].mxu1 %v16740_v8  ;;  %6035 = vmatprep.mubr.bf16.mxu0 %v16765_v58  ;;  %v14377_v8 = vld [vmem:[#allocation6 + $0x9ac] ss:$16 sps:$4 sm:$0xff]  }
 0x4a2   :  { %6067 = vmatpush1.bf16.msra.mxu0 %v14354_v40  ;;  %6181 = vmatprep.mubr.bf16.mxu1 %v16765_v58  ;;  %v14395_v40 = vld [vmem:[#allocation6 + $0xa0c] ss:$16 sps:$4 sm:$0xff]  }
 0x4a3   :  { %6213 = vmatpush1.bf16.msra.mxu1 %v14357_v51  ;;  %6068 = vmatprep.subr.bf16.mxu0 %v14362_v56  ;;  %v14390_v51 = vld [vmem:[#allocation6 + $0xa00] ss:$16 sps:$4 sm:$0xff]   ;;  %v14393_v56 = vld [vmem:[#allocation6 + $0xa08] ss:$16 sps:$4 sm:$0xff]  }
 0x4a4   :  { %6214 = vmatprep.subr.bf16.mxu1 %v14365_v31  ;;  %v14398_v31 = vld [vmem:[#allocation6 + $0xa24] ss:$16 sps:$4 sm:$0xff]  }
 0x4a6   :  { %6069 = vmatpush1.bf16.msra.mxu0 %v14360_v11  ;;  %v14401_v11 = vld [vmem:[#allocation6 + $0xa2c] ss:$16 sps:$4 sm:$0xff]  }
 0x4a7   :  { %6215 = vmatpush1.bf16.msra.mxu1 %v14363_v17  ;;  %6070 = vmatprep.subr.bf16.mxu0 %v14368_v16  ;;  %v14396_v17 = vld [vmem:[#allocation6 + $0xa20] ss:$16 sps:$4 sm:$0xff]   ;;  %v14399_v16 = vld [vmem:[#allocation6 + $0xa28] ss:$16 sps:$4 sm:$0xff]  }
 0x4a8   :  { %6036 = vmatmul.mubr.bf16.gmra.mrb[52].mxu0 %v16770_v30  ;;  %6216 = vmatprep.subr.bf16.mxu1 %v14371_v38  ;;  %v14404_v38 = vld [vmem:[#allocation6 + $0xa44] ss:$16 sps:$4 sm:$0xff]  }
 0x4a9   :  { %6182 = vmatmul.mubr.bf16.gmra.mrb[52].mxu1 %v16770_v30  ;;  %6045 = vmatprep.mubr.bf16.mxu0 %v16809_v57 }
 0x4aa   :  { %6071 = vmatpush1.bf16.msra.mxu0 %v14366_v54  ;;  %6191 = vmatprep.mubr.bf16.mxu1 %v16809_v57  ;;  %v14407_v54 = vld [vmem:[#allocation6 + $0xa4c] ss:$16 sps:$4 sm:$0xff]  }
 0x4ab   :  { %6217 = vmatpush1.bf16.msra.mxu1 %v14369_v53  ;;  %6072 = vmatprep.subr.bf16.mxu0 %v14374_v33  ;;  %v14402_v53 = vld [vmem:[#allocation6 + $0xa40] ss:$16 sps:$4 sm:$0xff]   ;;  %v14405_v33 = vld [vmem:[#allocation6 + $0xa48] ss:$16 sps:$4 sm:$0xff]  }
 0x4ac   :  { %6218 = vmatprep.subr.bf16.mxu1 %v14377_v8  ;;  %v14410_v8 = vld [vmem:[#allocation6 + $0xa64] ss:$16 sps:$4 sm:$0xff]  }
 0x4ae   :  { %6073 = vmatpush1.bf16.msra.mxu0 %v14372_v36  ;;  %v14413_v36 = vld [vmem:[#allocation6 + $0xa6c] ss:$16 sps:$4 sm:$0xff]  }
 0x4af   :  { %6219 = vmatpush1.bf16.msra.mxu1 %v14375_v45  ;;  %6074 = vmatprep.subr.bf16.mxu0 %v14380_v61  ;;  %v14408_v45 = vld [vmem:[#allocation6 + $0xa60] ss:$16 sps:$4 sm:$0xff]   ;;  %v14416_v61 = vld [vmem:[#allocation6 + $0xa84] ss:$16 sps:$4 sm:$0xff]  }
 0x4b0   :  { %6046 = vmatmul.mubr.bf16.gmra.mrb[56].mxu0 %v16812_v34  ;;  %6220 = vmatprep.subr.bf16.mxu1 %v14383_v14  ;;  %v14419_v14 = vld [vmem:[#allocation6 + $0xa8c] ss:$16 sps:$4 sm:$0xff]  }
 0x4b1   :  { %6192 = vmatmul.mubr.bf16.gmra.mrb[56].mxu1 %v16812_v34  ;;  %6055 = vmatprep.mubr.bf16.mxu0 %v16855_v55 }
 0x4b2   :  { %6075 = vmatpush1.bf16.msra.mxu0 %v14378_v35  ;;  %6201 = vmatprep.mubr.bf16.mxu1 %v16855_v55  ;;  %v14414_v35 = vld [vmem:[#allocation6 + $0xa80] ss:$16 sps:$4 sm:$0xff]  }
 0x4b3   :  { %6221 = vmatpush1.bf16.msra.mxu1 %v14381_v20  ;;  %6076 = vmatprep.subr.bf16.mxu0 %v14386_v3  ;;  %v14417_v20 = vld [vmem:[#allocation6 + $0xa88] ss:$16 sps:$4 sm:$0xff]   ;;  %v14422_v3 = vld [vmem:[#allocation6 + $0xaa4] ss:$16 sps:$4 sm:$0xff]  }
 0x4b4   :  { %6222 = vmatprep.subr.bf16.mxu1 %v14389_v42  ;;  %v14425_v42 = vld [vmem:[#allocation6 + $0xaac] ss:$16 sps:$4 sm:$0xff]  }
 0x4b6   :  { %6077 = vmatpush1.bf16.msra.mxu0 %v14384_v49  ;;  %v14420_v49 = vld [vmem:[#allocation6 + $0xaa0] ss:$16 sps:$4 sm:$0xff]  }
 0x4b7   :  { %6223 = vmatpush1.bf16.msra.mxu1 %v14387_v18  ;;  %6078 = vmatprep.subr.bf16.mxu0 %v14392_v2  ;;  %v14423_v18 = vld [vmem:[#allocation6 + $0xaa8] ss:$16 sps:$4 sm:$0xff]   ;;  %v14426_v2 = vld [vmem:[#allocation6 + $0xac4] ss:$16 sps:$4 sm:$0x3f]  }
 0x4b8   :  { %6056 = vmatmul.mubr.bf16.gmra.mrb[60].mxu0 %v16875_v9  ;;  %6224 = vmatprep.subr.bf16.mxu1 %v14395_v40  ;;  %v14430_v40 = vld [vmem:[#allocation6 + $0xac0] ss:$16 sps:$4 sm:$0x3f]  }
 0x4b9   :  { %6202 = vmatmul.mubr.bf16.gmra.mrb[60].mxu1 %v16875_v9  ;;  %12455 = vmatprep.mubr.msk.bf16.mxu0 %vm4076_vm4, %v16924_v32 }
 0x4ba   :  { %6079 = vmatpush1.bf16.msra.mxu0 %v14390_v51  ;;  %12460 = vmatprep.mubr.msk.bf16.mxu1 %vm4076_vm4, %v16924_v32  ;;  %v14411_v32 = vld [vmem:[#allocation6 + $0xa68] ss:$16 sps:$4 sm:$0xff]   ;;  %v14428_v51 = vld [vmem:[#allocation6 + $0xacc] ss:$16 sps:$4 sm:$0x3f]  }
 0x4bb   :  { %6225 = vmatpush1.bf16.msra.mxu1 %v14393_v56  ;;  %6080 = vmatprep.subr.bf16.mxu0 %v14398_v31  ;;  %v14431_v56 = vld [vmem:[#allocation6 + $0xac8] ss:$16 sps:$4 sm:$0x3f]   ;;  %v5982_v31 = vsel %vm251_vm0, %v14430_v40, 0  ;;  %v14464_v40 = vld [vmem:[#allocation6 + $0xb84] ss:$16 sps:$4 sm:$0xff]  }
 0x4bc   :  { %6226 = vmatprep.subr.bf16.mxu1 %v14401_v11  ;;  %v14434_v11 = vld [vmem:[#allocation6 + $0xae4] ss:$16 sps:$4 sm:$0xff]  }
 0x4be   :  { %6081 = vmatpush1.bf16.msra.mxu0 %v14396_v17  ;;  %v5988_v17 = vsel %vm251_vm0, %v14431_v56, 0  ;;  %v14462_v56 = vld [vmem:[#allocation6 + $0xb80] ss:$16 sps:$4 sm:$0xff]  }
 0x4bf   :  { %6227 = vmatpush1.bf16.msra.mxu1 %v14399_v16  ;;  %6082 = vmatprep.subr.bf16.mxu0 %v14404_v38  ;;  %v14437_v16 = vld [vmem:[#allocation6 + $0xaec] ss:$16 sps:$4 sm:$0xff]   ;;  %v14432_v38 = vld [vmem:[#allocation6 + $0xae0] ss:$16 sps:$4 sm:$0xff]  }
 0x4c0   :  { %6228 = vmatprep.subr.bf16.mxu1 %v14407_v54  ;;  %v14435_v54 = vld [vmem:[#allocation6 + $0xae8] ss:$16 sps:$4 sm:$0xff]  }
 0x4c2   :  { %6083 = vmatpush1.bf16.msra.mxu0 %v14402_v53  ;;  %v14440_v53 = vld [vmem:[#allocation6 + $0xb04] ss:$16 sps:$4 sm:$0xff]  }
 0x4c3   :  { %6229 = vmatpush1.bf16.msra.mxu1 %v14405_v33  ;;  %6084 = vmatprep.subr.bf16.mxu0 %v14410_v8  ;;  %v14443_v33 = vld [vmem:[#allocation6 + $0xb0c] ss:$16 sps:$4 sm:$0xff]   ;;  %v14438_v8 = vld [vmem:[#allocation6 + $0xb00] ss:$16 sps:$4 sm:$0xff]  }
 0x4c4   :  { %6230 = vmatprep.subr.bf16.mxu1 %v14413_v36  ;;  %v14441_v36 = vld [vmem:[#allocation6 + $0xb08] ss:$16 sps:$4 sm:$0xff]  }
 0x4c6   :  { %6085 = vmatpush1.bf16.msra.mxu0 %v14408_v45  ;;  %v14446_v45 = vld [vmem:[#allocation6 + $0xb24] ss:$16 sps:$4 sm:$0xff]  }
 0x4c7   :  { %6231 = vmatpush1.bf16.msra.mxu1 %v14411_v32  ;;  %6086 = vmatprep.subr.bf16.mxu0 %v14416_v61  ;;  %v14449_v32 = vld [vmem:[#allocation6 + $0xb2c] ss:$16 sps:$4 sm:$0xff]   ;;  %v14444_v61 = vld [vmem:[#allocation6 + $0xb20] ss:$16 sps:$4 sm:$0xff]  }
 0x4c8   :  { %6232 = vmatprep.subr.bf16.mxu1 %v14419_v14  ;;  %v14447_v14 = vld [vmem:[#allocation6 + $0xb28] ss:$16 sps:$4 sm:$0xff]  }
 0x4ca   :  { %6087 = vmatpush1.bf16.msra.mxu0 %v14414_v35  ;;  %v14455_v35 = vld [vmem:[#allocation6 + $0xb4c] ss:$16 sps:$4 sm:$0xff]  }
 0x4cb   :  { %6233 = vmatpush1.bf16.msra.mxu1 %v14417_v20  ;;  %6088 = vmatprep.subr.bf16.mxu0 %v14422_v3  ;;  %v14450_v20 = vld [vmem:[#allocation6 + $0xb40] ss:$16 sps:$4 sm:$0xff]   ;;  %v14453_v3 = vld [vmem:[#allocation6 + $0xb48] ss:$16 sps:$4 sm:$0xff]  }
 0x4cc   :  { %6234 = vmatprep.subr.bf16.mxu1 %v14425_v42  ;;  %v14458_v42 = vld [vmem:[#allocation6 + $0xb64] ss:$16 sps:$4 sm:$0xff]  }
 0x4ce   :  { %6089 = vmatpush1.bf16.msra.mxu0 %v14420_v49  ;;  %v14461_v49 = vld [vmem:[#allocation6 + $0xb6c] ss:$16 sps:$4 sm:$0xff]  }
 0x4cf   :  { %6235 = vmatpush1.bf16.msra.mxu1 %v14423_v18  ;;  %12454 = vmatprep.subr.msk.bf16.mxu0 %vm251_vm0, %v14426_v2  ;;  %v14456_v18 = vld [vmem:[#allocation6 + $0xb60] ss:$16 sps:$4 sm:$0xff]   ;;  %v14459_v2 = vld [vmem:[#allocation6 + $0xb68] ss:$16 sps:$4 sm:$0xff]  }
 0x4d0   :  { %12459 = vmatprep.subr.msk.bf16.mxu1 %vm251_vm0, %v14428_v51  ;;  %v14467_v51 = vld [vmem:[#allocation6 + $0xb8c] ss:$16 sps:$4 sm:$0xff]  }
 0x4d2   :  { %6091 = vmatpush1.bf16.msra.mxu0 %v5982_v31  ;;  %v14465_v31 = vld [vmem:[#allocation6 + $0xb88] ss:$16 sps:$4 sm:$0xff]  }
 0x4d3   :  { %6237 = vmatpush1.bf16.msra.mxu1 %v5988_v17  ;;  %7040 = vmatprep.subr.bf16.mxu0 %v14434_v11  ;;  %v14470_v11 = vld [vmem:[#allocation6 + $0xba4] ss:$16 sps:$4 sm:$0xff]   ;;  %v14473_v17 = vld [vmem:[#allocation6 + $0xbac] ss:$16 sps:$4 sm:$0xff]  }
 0x4d4   :  { %7186 = vmatprep.subr.bf16.mxu1 %v14437_v16  ;;  %v14468_v16 = vld [vmem:[#allocation6 + $0xba0] ss:$16 sps:$4 sm:$0xff]  }
 0x4d5   :  { %6099 = vmatmul.mubr.bf16.vlgmr.msra.gmra.mrb[48].mxu0 %v16931_v43 }
 0x4d6   :  { %6245 = vmatmul.mubr.bf16.vlgmr.msra.gmra.mrb[48].mxu1 %v16931_v43  ;;  %12456 = vmatprep.mubr.msk.bf16.mxu0 %vm4076_vm4, %v16933_v7  ;;  %v14452_v43 = vld [vmem:[#allocation6 + $0xb44] ss:$16 sps:$4 sm:$0xff]  }
 0x4d7   :  { %12461 = vmatprep.mubr.msk.bf16.mxu1 %vm4076_vm4, %v16933_v7  ;;  %7041 = vmatpush1.bf16.msra.mxu0 %v14432_v38  ;;  %v14471_v38 = vld [vmem:[#allocation6 + $0xba8] ss:$16 sps:$4 sm:$0xff]  }
 0x4d8   :  { %7187 = vmatpush1.bf16.msra.mxu1 %v14435_v54  ;;  %7042 = vmatprep.subr.bf16.mxu0 %v14440_v53  ;;  %v14476_v54 = vld [vmem:[#allocation6 + $0xbc4] ss:$16 sps:$4 sm:$0xff]   ;;  %v14479_v53 = vld [vmem:[#allocation6 + $0xbcc] ss:$16 sps:$4 sm:$0xff]  }
 0x4d9   :  { %7188 = vmatprep.subr.bf16.mxu1 %v14443_v33  ;;  %v14474_v33 = vld [vmem:[#allocation6 + $0xbc0] ss:$16 sps:$4 sm:$0xff]  }
 0x4db   :  { %7043 = vmatpush1.bf16.msra.mxu0 %v14438_v8  ;;  %v14477_v8 = vld [vmem:[#allocation6 + $0xbc8] ss:$16 sps:$4 sm:$0xff]  }
 0x4dc   :  { %7189 = vmatpush1.bf16.msra.mxu1 %v14441_v36  ;;  %7044 = vmatprep.subr.bf16.mxu0 %v14446_v45  ;;  %v14482_v36 = vld [vmem:[#allocation6 + $0xbe4] ss:$16 sps:$4 sm:$0xff]   ;;  %v14485_v45 = vld [vmem:[#allocation6 + $0xbec] ss:$16 sps:$4 sm:$0xff]  }
 0x4dd   :  { %6109 = vmatmul.mubr.bf16.gmra.mrb[52].mxu0 %v16966_v60  ;;  %7190 = vmatprep.subr.bf16.mxu1 %v14449_v32  ;;  %v14480_v32 = vld [vmem:[#allocation6 + $0xbe0] ss:$16 sps:$4 sm:$0xff]  }
 0x4de   :  { %6255 = vmatmul.mubr.bf16.gmra.mrb[52].mxu1 %v16966_v60  ;;  %12457 = vmatprep.mubr.msk.bf16.mxu0 %vm4076_vm4, %v16973_v12 }
 0x4df   :  { %12462 = vmatprep.mubr.msk.bf16.mxu1 %vm4076_vm4, %v16973_v12  ;;  %7045 = vmatpush1.bf16.msra.mxu0 %v14444_v61  ;;  %v14483_v61 = vld [vmem:[#allocation6 + $0xbe8] ss:$16 sps:$4 sm:$0xff]  }
 0x4e0   :  { %7191 = vmatpush1.bf16.msra.mxu1 %v14447_v14  ;;  %7046 = vmatprep.subr.bf16.mxu0 %v14452_v43  ;;  %v14488_v14 = vld [vmem:[#allocation6 + $0xc04] ss:$16 sps:$4 sm:$0xff]   ;;  %v14491_v43 = vld [vmem:[#allocation6 + $0xc0c] ss:$16 sps:$4 sm:$0xff]  }
 0x4e1   :  { %7192 = vmatprep.subr.bf16.mxu1 %v14455_v35  ;;  %v14486_v35 = vld [vmem:[#allocation6 + $0xc00] ss:$16 sps:$4 sm:$0xff]  }
 0x4e3   :  { %7047 = vmatpush1.bf16.msra.mxu0 %v14450_v20  ;;  %v14494_v20 = vld [vmem:[#allocation6 + $0xc24] ss:$16 sps:$4 sm:$0xff]  }
 0x4e4   :  { %7193 = vmatpush1.bf16.msra.mxu1 %v14453_v3  ;;  %7048 = vmatprep.subr.bf16.mxu0 %v14458_v42  ;;  %v14497_v3 = vld [vmem:[#allocation6 + $0xc2c] ss:$16 sps:$4 sm:$0xff]   ;;  %v14492_v42 = vld [vmem:[#allocation6 + $0xc20] ss:$16 sps:$4 sm:$0xff]  }
 0x4e5   :  { %6119 = vmatmul.mubr.bf16.gmra.mrb[56].mxu0 %v17001_v6  ;;  %7194 = vmatprep.subr.bf16.mxu1 %v14461_v49  ;;  %v14495_v49 = vld [vmem:[#allocation6 + $0xc28] ss:$16 sps:$4 sm:$0xff]  }
 0x4e6   :  { %6265 = vmatmul.mubr.bf16.gmra.mrb[56].mxu1 %v17001_v6  ;;  %12458 = vmatprep.mubr.msk.bf16.mxu0 %vm4076_vm4, %v17007_v21 }
 0x4e7   :  { %12463 = vmatprep.mubr.msk.bf16.mxu1 %vm4076_vm4, %v17007_v21  ;;  %7049 = vmatpush1.bf16.msra.mxu0 %v14456_v18  ;;  %v14500_v18 = vld [vmem:[#allocation6 + $0xc44] ss:$16 sps:$4 sm:$0xff]  }
 0x4e8   :  { %7195 = vmatpush1.bf16.msra.mxu1 %v14459_v2  ;;  %7050 = vmatprep.subr.bf16.mxu0 %v14464_v40  ;;  %v14503_v2 = vld [vmem:[#allocation6 + $0xc4c] ss:$16 sps:$4 sm:$0xff]   ;;  %v14498_v40 = vld [vmem:[#allocation6 + $0xc40] ss:$16 sps:$4 sm:$0xff]  }
 0x4e9   :  { %7196 = vmatprep.subr.bf16.mxu1 %v14467_v51  ;;  %v14501_v51 = vld [vmem:[#allocation6 + $0xc48] ss:$16 sps:$4 sm:$0xff]  }
 0x4eb   :  { %7051 = vmatpush1.bf16.msra.mxu0 %v14462_v56  ;;  %v14506_v56 = vld [vmem:[#allocation6 + $0xc64] ss:$16 sps:$4 sm:$0xff]  }
 0x4ec   :  { %7197 = vmatpush1.bf16.msra.mxu1 %v14465_v31  ;;  %7052 = vmatprep.subr.bf16.mxu0 %v14470_v11  ;;  %v14509_v31 = vld [vmem:[#allocation6 + $0xc6c] ss:$16 sps:$4 sm:$0xff]   ;;  %v14504_v11 = vld [vmem:[#allocation6 + $0xc60] ss:$16 sps:$4 sm:$0xff]  }
 0x4ed   :  { %6129 = vmatmul.mubr.bf16.gmra.mrb[60].mxu0 %v17034_v19  ;;  %7198 = vmatprep.subr.bf16.mxu1 %v14473_v17  ;;  %v14507_v17 = vld [vmem:[#allocation6 + $0xc68] ss:$16 sps:$4 sm:$0xff]  }
 0x4ee   :  { %6275 = vmatmul.mubr.bf16.gmra.mrb[60].mxu1 %v17034_v19  ;;  %7072 = vmatprep.mubr.bf16.mxu0 %v16782_v63 }
 0x4ef   :  { %7053 = vmatpush1.bf16.msra.mxu0 %v14468_v16  ;;  %7218 = vmatprep.mubr.bf16.mxu1 %v16782_v63  ;;  %v14489_v63 = vld [vmem:[#allocation6 + $0xc08] ss:$16 sps:$4 sm:$0xff]   ;;  %v14512_v16 = vld [vmem:[#allocation6 + $0xc84] ss:$16 sps:$4 sm:$0xff]  }
 0x4f0   :  { %7199 = vmatpush1.bf16.msra.mxu1 %v14471_v38  ;;  %7054 = vmatprep.subr.bf16.mxu0 %v14476_v54  ;;  %v14515_v38 = vld [vmem:[#allocation6 + $0xc8c] ss:$16 sps:$4 sm:$0xff]   ;;  %v14510_v54 = vld [vmem:[#allocation6 + $0xc80] ss:$16 sps:$4 sm:$0xff]  }
 0x4f1   :  { %7200 = vmatprep.subr.bf16.mxu1 %v14479_v53  ;;  %v14513_v53 = vld [vmem:[#allocation6 + $0xc88] ss:$16 sps:$4 sm:$0xff]  }
 0x4f3   :  { %7055 = vmatpush1.bf16.msra.mxu0 %v14474_v33  ;;  %v14518_v33 = vld [vmem:[#allocation6 + $0xca4] ss:$16 sps:$4 sm:$0xff]  }
 0x4f4   :  { %7201 = vmatpush1.bf16.msra.mxu1 %v14477_v8  ;;  %7056 = vmatprep.subr.bf16.mxu0 %v14482_v36  ;;  %v14521_v8 = vld [vmem:[#allocation6 + $0xcac] ss:$16 sps:$4 sm:$0xff]   ;;  %v14516_v36 = vld [vmem:[#allocation6 + $0xca0] ss:$16 sps:$4 sm:$0xff]  }
 0x4f5   :  { %7202 = vmatprep.subr.bf16.mxu1 %v14485_v45  ;;  %v14519_v45 = vld [vmem:[#allocation6 + $0xca8] ss:$16 sps:$4 sm:$0xff]  }
 0x4f7   :  { %7057 = vmatpush1.bf16.msra.mxu0 %v14480_v32  ;;  %v14524_v32 = vld [vmem:[#allocation6 + $0xcc4] ss:$16 sps:$4 sm:$0xff]  }
 0x4f8   :  { %7203 = vmatpush1.bf16.msra.mxu1 %v14483_v61  ;;  %7058 = vmatprep.subr.bf16.mxu0 %v14488_v14  ;;  %v14527_v61 = vld [vmem:[#allocation6 + $0xccc] ss:$16 sps:$4 sm:$0xff]   ;;  %v2959_v14 = vsel %vm2924_vm3, %v16956_v5, %v16964_v44  ;;  %v14531_v44 = vld [vmem:[#allocation6 + $0xce8] ss:$16 sps:$4 sm:$0xff]  }
 0x4f9   :  { %7204 = vmatprep.subr.bf16.mxu1 %v14491_v43  ;;  %v14522_v43 = vld [vmem:[#allocation6 + $0xcc0] ss:$16 sps:$4 sm:$0xff]  }
 0x4fb   :  { %7059 = vmatpush1.bf16.msra.mxu0 %v14486_v35  ;;  %v14525_v35 = vld [vmem:[#allocation6 + $0xcc8] ss:$16 sps:$4 sm:$0xff]  }
 0x4fc   :  { %7205 = vmatpush1.bf16.msra.mxu1 %v14489_v63  ;;  %7060 = vmatprep.subr.bf16.mxu0 %v14494_v20  ;;  %v14530_v63 = vld [vmem:[#allocation6 + $0xce4] ss:$16 sps:$4 sm:$0xff]   ;;  %v2956_v20 = vsel %vm2924_vm3, %v16936_v47, %v16947_v29 }
 0x4fd   :  { %7206 = vmatprep.subr.bf16.mxu1 %v14497_v3  ;;  %v14533_v3 = vld [vmem:[#allocation6 + $0xcec] ss:$16 sps:$4 sm:$0xff]  }
 0x4fe   :  { %v17671_v29 = vld [vmem:[#allocation31_spill] sm:$0xff] }
 0x4ff   :  { %7061 = vmatpush1.bf16.msra.mxu0 %v14492_v42  ;;  %v17669_v42 = vld [vmem:[#allocation28_spill] sm:$0xff] }
 0x500   :  { %7207 = vmatpush1.bf16.msra.mxu1 %v14495_v49  ;;  %7062 = vmatprep.subr.bf16.mxu0 %v14500_v18  ;;  %v3054_v49 = vmax.f32 %v17669_v42, %v2959_v14  ;;  %v17670_v18 = vld [vmem:[#allocation24_spill] sm:$0xff]  ;;  %v17674_v14 = vld [vmem:[#allocation33_spill] sm:$0xff] }
 0x501   :  { %7208 = vmatprep.subr.bf16.mxu1 %v14503_v2  ;;  %v3050_v2 = vmax.f32 %v17670_v18, %v2956_v20  ;;  %v14554_v42 = vld [vmem:[#allocation6 + $0xd64] ss:$16 sps:$4 sm:$0xff]  }
 0x503   :  { %7063 = vmatpush1.bf16.msra.mxu0 %v14498_v40  ;;  %v14528_v40 = vld [vmem:[#allocation6 + $0xce0] ss:$16 sps:$4 sm:$0xff]  }
 0x504   :  { %7209 = vmatpush1.bf16.msra.mxu1 %v14501_v51  ;;  %7064 = vmatprep.subr.bf16.mxu0 %v14506_v56  ;;  %v14536_v51 = vld [vmem:[#allocation6 + $0xd04] ss:$16 sps:$4 sm:$0xff]   ;;  %v3124_v56 = vadd.f32 %v16695_v0, %v3054_v49  ;;  %v14557_v49 = vld [vmem:[#allocation6 + $0xd6c] ss:$16 sps:$4 sm:$0xff]  }
 0x505   :  { %7210 = vmatprep.subr.bf16.mxu1 %v14509_v31  ;;  %v2958_v31 = vsel %vm2924_vm3, %v16991_v10, %v16956_v5  ;;  %v14537_v5 = vld [vmem:[#allocation6 + $0xd08] ss:$16 sps:$4 sm:$0xff]   ;;  %v14542_v10 = vld [vmem:[#allocation6 + $0xd24] ss:$16 sps:$4 sm:$0xff]  }
 0x507   :  { %7065 = vmatpush1.bf16.msra.mxu0 %v14504_v11  ;;  %v14539_v11 = vld [vmem:[#allocation6 + $0xd0c] ss:$16 sps:$4 sm:$0xff]  }
 0x508   :  { %7211 = vmatpush1.bf16.msra.mxu1 %v14507_v17  ;;  %7066 = vmatprep.subr.bf16.mxu0 %v14512_v16  ;;  %v3120_v17 = vadd.f32 %v16695_v0, %v3050_v2  ;;  %v2955_v16 = vsel %vm2924_vm3, %v16980_v39, %v16936_v47  ;;  %v14548_v39 = vld [vmem:[#allocation6 + $0xd44] ss:$16 sps:$4 sm:$0xff]  }
 0x509   :  { %7212 = vmatprep.subr.bf16.mxu1 %v14515_v38  ;;  %v14534_v38 = vld [vmem:[#allocation6 + $0xd00] ss:$16 sps:$4 sm:$0xff]  }
 0x50a   :  { %v3168_v0 = vmax.f32 %v3120_v17, 0.0  ;;  %v14566_v17 = vld [vmem:[#allocation6 + $0xda4] ss:$16 sps:$4 sm:$0xff]  }
 0x50b   :  { %7067 = vmatpush1.bf16.msra.mxu0 %v14510_v54  ;;  %v17672_v54 = vld [vmem:[#allocation25_spill] sm:$0xff] }
 0x50c   :  { %7213 = vmatpush1.bf16.msra.mxu1 %v14513_v53  ;;  %7068 = vmatprep.subr.bf16.mxu0 %v14518_v33  ;;  %v3053_v53 = vmax.f32 %v17672_v54, %v2958_v31  ;;  %v3172_v33 = vmax.f32 %v3124_v56, 0.0  ;;  %v14563_v56 = vld [vmem:[#allocation6 + $0xd8c] ss:$16 sps:$4 sm:$0xff]   ;;  %v14558_v31 = vld [vmem:[#allocation6 + $0xd80] ss:$16 sps:$4 sm:$0xff]  }
 0x50d   :  { %7214 = vmatprep.subr.bf16.mxu1 %v14521_v8  ;;  %v14545_v8 = vld [vmem:[#allocation6 + $0xd2c] ss:$16 sps:$4 sm:$0xff]   ;;  %v14572_v54 = vld [vmem:[#allocation6 + $0xdc4] ss:$16 sps:$4 sm:$0xff]  }
 0x50e   :  { %v3123_v47 = vadd.f32 %v16708_v27, %v3053_v53  ;;  %v14575_v53 = vld [vmem:[#allocation6 + $0xdcc] ss:$16 sps:$4 sm:$0xff]  }
 0x50f   :  { %7069 = vmatpush1.bf16.msra.mxu0 %v14516_v36  ;;  %v17673_v36 = vld [vmem:[#allocation21_spill] sm:$0xff] }
 0x510   :  { %7215 = vmatpush1.bf16.msra.mxu1 %v14519_v45  ;;  %7070 = vmatprep.subr.bf16.mxu0 %v14524_v32  ;;  %v3049_v45 = vmax.f32 %v17673_v36, %v2955_v16  ;;  %v14540_v32 = vld [vmem:[#allocation6 + $0xd20] ss:$16 sps:$4 sm:$0xff]   ;;  %v3171_v20 = vmax.f32 %v3123_v47, 0.0  ;;  %v14569_v16 = vld [vmem:[#allocation6 + $0xdac] ss:$16 sps:$4 sm:$0xff]  }
 0x511   :  { %7216 = vmatprep.subr.bf16.mxu1 %v14527_v61  ;;  %v17171_v61 = vpack.c.bf16 %v3172_v33, %v3168_v0  ;;  %v14578_v33 = vld [vmem:[#allocation6 + $0xde4] ss:$16 sps:$4 sm:$0xff]   ;;  %v14579_v36 = vld [vmem:[#allocation6 + $0xde8] ss:$16 sps:$4 sm:$0xff]   ;;  %v14587_v0 = vld [vmem:[#allocation6 + $0xe0c] ss:$16 sps:$4 sm:$0xff]  }
 0x512   :  { %v14590_v47 = vld [vmem:[#allocation6 + $0xe24] ss:$16 sps:$4 sm:$0xff]  }
 0x513   :  { %7071 = vmatpush1.bf16.msra.mxu0 %v14522_v43  ;;  %v14551_v43 = vld [vmem:[#allocation6 + $0xd4c] ss:$16 sps:$4 sm:$0xff]   ;;  %v6440_v18 = vrot.slane %v17171_v61, 4 }
 0x514   :  { %7217 = vmatpush1.bf16.msra.mxu1 %v14525_v35  ;;  %7113 = vmatprep.subr.bf16.mxu0 %v14530_v63  ;;  %v3119_v35 = vadd.f32 %v16708_v27, %v3049_v45  ;;  %v14546_v63 = vld [vmem:[#allocation6 + $0xd40] ss:$16 sps:$4 sm:$0xff]   ;;  %v14584_v45 = vld [vmem:[#allocation6 + $0xe04] ss:$16 sps:$4 sm:$0xff]  }
 0x515   :  { %7259 = vmatprep.subr.bf16.mxu1 %v14533_v3  ;;  %v14549_v3 = vld [vmem:[#allocation6 + $0xd48] ss:$16 sps:$4 sm:$0xff]   ;;  %v14552_v27 = vld [vmem:[#allocation6 + $0xd60] ss:$16 sps:$4 sm:$0xff]  }
 0x516   :  { %7073 = vmatmul.mubr.bf16.vlgmr.msra.gmra.mrb[48].mxu0 %v17671_v29  ;;  %v3167_v2 = vmax.f32 %v3119_v35, 0.0  ;;  %v14599_v35 = vld [vmem:[#allocation6 + $0xe4c] ss:$16 sps:$4 sm:$0xff]  }
 0x517   :  { %7219 = vmatmul.mubr.bf16.vlgmr.msra.gmra.mrb[48].mxu1 %v17671_v29  ;;  %7082 = vmatprep.mubr.bf16.mxu0 %v16829_v50  ;;  %v14561_v29 = vld [vmem:[#allocation6 + $0xd88] ss:$16 sps:$4 sm:$0xff]  }
 0x518   :  { %7114 = vmatpush1.bf16.msra.mxu0 %v14528_v40  ;;  %7228 = vmatprep.mubr.bf16.mxu1 %v16829_v50  ;;  %v14543_v50 = vld [vmem:[#allocation6 + $0xd28] ss:$16 sps:$4 sm:$0xff]   ;;  %v17179_v40 = vpack.c.bf16 %v3171_v20, %v3167_v2 }
 0x519   :  { %7260 = vmatpush1.bf16.msra.mxu1 %v14531_v44  ;;  %7115 = vmatprep.subr.bf16.mxu0 %v14536_v51  ;;  %v14555_v44 = vld [vmem:[#allocation6 + $0xd68] ss:$16 sps:$4 sm:$0xff]   ;;  %v14560_v51 = vld [vmem:[#allocation6 + $0xd84] ss:$16 sps:$4 sm:$0xff]  }
 0x51a   :  { %7261 = vmatprep.subr.bf16.mxu1 %v14539_v11  ;;  %v6438_v11 = vrot.slane %v17179_v40, 4  ;;  %v14597_v20 = vld [vmem:[#allocation6 + $0xe48] ss:$16 sps:$4 sm:$0xff]  }
 0x51c   :  { %7116 = vmatpush1.bf16.msra.mxu0 %v14534_v38  ;;  %v14564_v38 = vld [vmem:[#allocation6 + $0xda0] ss:$16 sps:$4 sm:$0xff]  }
 0x51d   :  { %7262 = vmatpush1.bf16.msra.mxu1 %v14537_v5  ;;  %7117 = vmatprep.subr.bf16.mxu0 %v14542_v10  ;;  %v14570_v5 = vld [vmem:[#allocation6 + $0xdc0] ss:$16 sps:$4 sm:$0xff]   ;;  %v14573_v10 = vld [vmem:[#allocation6 + $0xdc8] ss:$16 sps:$4 sm:$0xff]  }
 0x51e   :  { %7083 = vmatmul.mubr.bf16.gmra.mrb[52].mxu0 %v17674_v14  ;;  %7263 = vmatprep.subr.bf16.mxu1 %v14545_v8  ;;  %v14576_v8 = vld [vmem:[#allocation6 + $0xde0] ss:$16 sps:$4 sm:$0xff]  }
 0x51f   :  { %7229 = vmatmul.mubr.bf16.gmra.mrb[52].mxu1 %v17674_v14  ;;  %7092 = vmatprep.mubr.bf16.mxu0 %v16887_v4  ;;  %v14591_v14 = vld [vmem:[#allocation6 + $0xe28] ss:$16 sps:$4 sm:$0xff]  }
 0x520   :  { %7118 = vmatpush1.bf16.msra.mxu0 %v14540_v32  ;;  %7238 = vmatprep.mubr.bf16.mxu1 %v16887_v4  ;;  %v6441_v4 = vsel %vm718_vm2, %v3482_v15, %v6440_v18  ;;  %v6439_v15 = vsel %vm718_vm2, %v3480_v26, %v6438_v11  ;;  %v14581_v26 = vld [vmem:[#allocation6 + $0xdec] ss:$16 sps:$4 sm:$0xff]   ;;  %v14582_v32 = vld [vmem:[#allocation6 + $0xe00] ss:$16 sps:$4 sm:$0xff]  }
 0x521   :  { %7264 = vmatpush1.bf16.msra.mxu1 %v14543_v50  ;;  %7119 = vmatprep.subr.bf16.mxu0 %v14548_v39  ;;  %v14593_v50 = vld [vmem:[#allocation6 + $0xe2c] ss:$16 sps:$4 sm:$0xff]   ;;  %v14588_v39 = vld [vmem:[#allocation6 + $0xe20] ss:$16 sps:$4 sm:$0xff]  }
 0x522   :  { %7265 = vmatprep.subr.bf16.mxu1 %v14551_v43  ;;  %v14596_v43 = vld [vmem:[#allocation6 + $0xe44] ss:$16 sps:$4 sm:$0xff]   ;;  %v14605_v18 = vld [vmem:[#allocation6 + $0xe68] ss:$16 sps:$4 sm:$0x3f]  }
 0x523   :  { %v14606_v11 = vld [vmem:[#allocation6 + $0xe80] ss:$16 sps:$4 sm:$0xff]  }
 0x524   :  { %7120 = vmatpush1.bf16.msra.mxu0 %v14546_v63  ;;  %v14594_v63 = vld [vmem:[#allocation6 + $0xe40] ss:$16 sps:$4 sm:$0xff]  }
 0x525   :  { %7266 = vmatpush1.bf16.msra.mxu1 %v14549_v3  ;;  %7121 = vmatprep.subr.bf16.mxu0 %v14554_v42  ;;  %v14600_v3 = vld [vmem:[#allocation6 + $0xe64] ss:$16 sps:$4 sm:$0x3f]   ;;  %v14604_v42 = vld [vmem:[#allocation6 + $0xe60] ss:$16 sps:$4 sm:$0x3f]  }
 0x526   :  { %7093 = vmatmul.mubr.bf16.gmra.mrb[56].mxu0 %v16914_v25  ;;  %7267 = vmatprep.subr.bf16.mxu1 %v14557_v49  ;;  %v14602_v49 = vld [vmem:[#allocation6 + $0xe6c] ss:$16 sps:$4 sm:$0x3f]   ;;  %v7029_v2 = vsel %vm251_vm0, %v14604_v42, 0 }
 0x527   :  { %7239 = vmatmul.mubr.bf16.gmra.mrb[56].mxu1 %v16914_v25  ;;  %7102 = vmatprep.mubr.bf16.mxu0 %v6441_v4  ;;  %v14567_v25 = vld [vmem:[#allocation6 + $0xda8] ss:$16 sps:$4 sm:$0xff]   ;;  %v14653_v42 = vld [vmem:[#allocation6 + $0xf6c] ss:$16 sps:$4 sm:$0xff]  }
 0x528   :  { %7122 = vmatpush1.bf16.msra.mxu0 %v14552_v27  ;;  %7248 = vmatprep.mubr.bf16.mxu1 %v6441_v4  ;;  %v14608_v27 = vld [vmem:[#allocation6 + $0xe84] ss:$16 sps:$4 sm:$0xff]  }
 0x529   :  { %7268 = vmatpush1.bf16.msra.mxu1 %v14555_v44  ;;  %7123 = vmatprep.subr.bf16.mxu0 %v14560_v51  ;;  %v7035_v44 = vsel %vm251_vm0, %v14605_v18, 0  ;;  %v14611_v51 = vld [vmem:[#allocation6 + $0xe8c] ss:$16 sps:$4 sm:$0xff]   ;;  %v14651_v18 = vld [vmem:[#allocation6 + $0xf68] ss:$16 sps:$4 sm:$0xff]  }
 0x52a   :  { %7269 = vmatprep.subr.bf16.mxu1 %v14563_v56  ;;  %v17675_v4 = vld [vmem:[#allocation27_spill] sm:$0xff] }
 0x52b   :  { %v3056_v56 = vmax.f32 %v17675_v4, %v17005_v62  ;;  %v14665_v4 = vld [vmem:[#allocation6 + $0xfac] ss:$16 sps:$4 sm:$0xff]  }
 0x52c   :  { %7124 = vmatpush1.bf16.msra.mxu0 %v14558_v31  ;;  %v17676_v31 = vld [vmem:[#allocation23_spill] sm:$0xff] }
 0x52d   :  { %7270 = vmatpush1.bf16.msra.mxu1 %v14561_v29  ;;  %7125 = vmatprep.subr.bf16.mxu0 %v14566_v17  ;;  %v3052_v29 = vmax.f32 %v17676_v31, %v16994_v48  ;;  %v14609_v17 = vld [vmem:[#allocation6 + $0xe88] ss:$16 sps:$4 sm:$0xff]   ;;  %v14612_v48 = vld [vmem:[#allocation6 + $0xea0] ss:$16 sps:$4 sm:$0xff]   ;;  %v14668_v31 = vld [vmem:[#allocation6 + $0xfc4] ss:$16 sps:$4 sm:$0xff]  }
 0x52e   :  { %7103 = vmatmul.mubr.bf16.gmra.mrb[60].mxu0 %v6439_v15  ;;  %7271 = vmatprep.subr.bf16.mxu1 %v14569_v16  ;;  %v14614_v16 = vld [vmem:[#allocation6 + $0xea4] ss:$16 sps:$4 sm:$0xff]  }
 0x52f   :  { %7249 = vmatmul.mubr.bf16.gmra.mrb[60].mxu1 %v6439_v15  ;;  %12581 = vmatprep.mubr.msk.bf16.mxu0 %vm4076_vm4, %v16978_v24  ;;  %v14617_v15 = vld [vmem:[#allocation6 + $0xeac] ss:$16 sps:$4 sm:$0xff]   ;;  %v3122_v62 = vadd.f32 %v16869_v28, %v3052_v29 }
 0x530   :  { %7126 = vmatpush1.bf16.msra.mxu0 %v14564_v38  ;;  %12586 = vmatprep.mubr.msk.bf16.mxu1 %vm4076_vm4, %v16978_v24  ;;  %v14585_v24 = vld [vmem:[#allocation6 + $0xe08] ss:$16 sps:$4 sm:$0xff]   ;;  %v3126_v38 = vadd.f32 %v16869_v28, %v3056_v56  ;;  %v14660_v56 = vld [vmem:[#allocation6 + $0xfa0] ss:$16 sps:$4 sm:$0xff]   ;;  %v14671_v29 = vld [vmem:[#allocation6 + $0xfcc] ss:$16 sps:$4 sm:$0xff]  }
 0x531   :  { %7272 = vmatpush1.bf16.msra.mxu1 %v14567_v25  ;;  %7127 = vmatprep.subr.bf16.mxu0 %v14572_v54  ;;  %v14615_v25 = vld [vmem:[#allocation6 + $0xea8] ss:$16 sps:$4 sm:$0xff]   ;;  %v14620_v54 = vld [vmem:[#allocation6 + $0xec4] ss:$16 sps:$4 sm:$0xff]  }
 0x532   :  { %7273 = vmatprep.subr.bf16.mxu1 %v14575_v53  ;;  %v3174_v53 = vmax.f32 %v3126_v38, 0.0  ;;  %v14677_v38 = vld [vmem:[#allocation6 + $0xfec] ss:$16 sps:$4 sm:$0xff]  }
 0x534   :  { %7128 = vmatpush1.bf16.msra.mxu0 %v14570_v5  ;;  %v14623_v5 = vld [vmem:[#allocation6 + $0xecc] ss:$16 sps:$4 sm:$0xff]  }
 0x535   :  { %7274 = vmatpush1.bf16.msra.mxu1 %v14573_v10  ;;  %7129 = vmatprep.subr.bf16.mxu0 %v14578_v33  ;;  %v3170_v10 = vmax.f32 %v3122_v62, 0.0  ;;  %v14621_v33 = vld [vmem:[#allocation6 + $0xec8] ss:$16 sps:$4 sm:$0xff]  }
 0x536   :  { %7275 = vmatprep.subr.bf16.mxu1 %v14581_v26  ;;  %v14626_v26 = vld [vmem:[#allocation6 + $0xee4] ss:$16 sps:$4 sm:$0xff]   ;;  %v14675_v62 = vld [vmem:[#allocation6 + $0xfe8] ss:$16 sps:$4 sm:$0xff]  }
 0x537   :  { %v17210_v28 = vpack.c.bf16 %v3174_v53, %v3170_v10  ;;  %v14681_v53 = vld [vmem:[#allocation6 + $0x1008] ss:$16 sps:$4 sm:$0xff]   ;;  %v14689_v10 = vld [vmem:[#allocation6 + $0x102c] ss:$16 sps:$4 sm:$0xff]  }
 0x538   :  { %7130 = vmatpush1.bf16.msra.mxu0 %v14576_v8  ;;  %v14624_v8 = vld [vmem:[#allocation6 + $0xee0] ss:$16 sps:$4 sm:$0xff]  }
 0x539   :  { %7276 = vmatpush1.bf16.msra.mxu1 %v14579_v36  ;;  %7131 = vmatprep.subr.bf16.mxu0 %v14584_v45  ;;  %v14627_v36 = vld [vmem:[#allocation6 + $0xee8] ss:$16 sps:$4 sm:$0xff]   ;;  %v14632_v45 = vld [vmem:[#allocation6 + $0xf04] ss:$16 sps:$4 sm:$0xff]  }
 0x53a   :  { %7277 = vmatprep.subr.bf16.mxu1 %v14587_v0  ;;  %v14635_v0 = vld [vmem:[#allocation6 + $0xf0c] ss:$16 sps:$4 sm:$0xff]  }
 0x53c   :  { %7132 = vmatpush1.bf16.msra.mxu0 %v14582_v32  ;;  %v6444_v32 = vrot.slane %v17210_v28, 4 }
 0x53d   :  { %7278 = vmatpush1.bf16.msra.mxu1 %v14585_v24  ;;  %7133 = vmatprep.subr.bf16.mxu0 %v14590_v47  ;;  %v14630_v24 = vld [vmem:[#allocation6 + $0xf00] ss:$16 sps:$4 sm:$0xff]   ;;  %v14638_v47 = vld [vmem:[#allocation6 + $0xf24] ss:$16 sps:$4 sm:$0xff]  }
 0x53e   :  { %7279 = vmatprep.subr.bf16.mxu1 %v14593_v50  ;;  %v14641_v50 = vld [vmem:[#allocation6 + $0xf2c] ss:$16 sps:$4 sm:$0xff]  }
 0x540   :  { %7134 = vmatpush1.bf16.msra.mxu0 %v14588_v39  ;;  %v14636_v39 = vld [vmem:[#allocation6 + $0xf20] ss:$16 sps:$4 sm:$0xff]  }
 0x541   :  { %7280 = vmatpush1.bf16.msra.mxu1 %v14591_v14  ;;  %7135 = vmatprep.subr.bf16.mxu0 %v14596_v43  ;;  %v14639_v14 = vld [vmem:[#allocation6 + $0xf28] ss:$16 sps:$4 sm:$0xff]   ;;  %v6442_v43 = vrot.slane %v17032_v1, 4 }
 0x542   :  { %7281 = vmatprep.subr.bf16.mxu1 %v14599_v35  ;;  %v14644_v35 = vld [vmem:[#allocation6 + $0xf44] ss:$16 sps:$4 sm:$0xff]  }
 0x544   :  { %7136 = vmatpush1.bf16.msra.mxu0 %v14594_v63  ;;  %v14647_v63 = vld [vmem:[#allocation6 + $0xf4c] ss:$16 sps:$4 sm:$0xff]  }
 0x545   :  { %7282 = vmatpush1.bf16.msra.mxu1 %v14597_v20  ;;  %12580 = vmatprep.subr.msk.bf16.mxu0 %vm251_vm0, %v14600_v3  ;;  %v14642_v20 = vld [vmem:[#allocation6 + $0xf40] ss:$16 sps:$4 sm:$0xff]   ;;  %v14650_v3 = vld [vmem:[#allocation6 + $0xf64] ss:$16 sps:$4 sm:$0xff]  }
 0x546   :  { %12585 = vmatprep.subr.msk.bf16.mxu1 %vm251_vm0, %v14602_v49  ;;  %v14648_v49 = vld [vmem:[#allocation6 + $0xf60] ss:$16 sps:$4 sm:$0xff]  }
 0x548   :  { %7138 = vmatpush1.bf16.msra.mxu0 %v7029_v2  ;;  %v14656_v2 = vld [vmem:[#allocation6 + $0xf84] ss:$16 sps:$4 sm:$0xff]  }
 0x549   :  { %7284 = vmatpush1.bf16.msra.mxu1 %v7035_v44  ;;  %8072 = vmatprep.subr.bf16.mxu0 %v14608_v27  ;;  %v14659_v27 = vld [vmem:[#allocation6 + $0xf8c] ss:$16 sps:$4 sm:$0xff]   ;;  %v14657_v44 = vld [vmem:[#allocation6 + $0xf88] ss:$16 sps:$4 sm:$0xff]  }
 0x54a   :  { %8218 = vmatprep.subr.bf16.mxu1 %v14611_v51  ;;  %v14662_v51 = vld [vmem:[#allocation6 + $0xfa4] ss:$16 sps:$4 sm:$0xff]  }
 0x54b   :  { %7146 = vmatmul.mubr.bf16.vlgmr.msra.gmra.mrb[48].mxu0 %v17010_v46 }
 0x54c   :  { %7292 = vmatmul.mubr.bf16.vlgmr.msra.gmra.mrb[48].mxu1 %v17010_v46  ;;  %12582 = vmatprep.mubr.msk.bf16.mxu0 %vm4076_vm4, %v17022_v23  ;;  %v14618_v46 = vld [vmem:[#allocation6 + $0xec0] ss:$16 sps:$4 sm:$0xff]  }
 0x54d   :  { %12587 = vmatprep.mubr.msk.bf16.mxu1 %vm4076_vm4, %v17022_v23  ;;  %8073 = vmatpush1.bf16.msra.mxu0 %v14606_v11  ;;  %v14629_v23 = vld [vmem:[#allocation6 + $0xeec] ss:$16 sps:$4 sm:$0xff]   ;;  %v14666_v11 = vld [vmem:[#allocation6 + $0xfc0] ss:$16 sps:$4 sm:$0xff]  }
 0x54e   :  { %8219 = vmatpush1.bf16.msra.mxu1 %v14609_v17  ;;  %8074 = vmatprep.subr.bf16.mxu0 %v14614_v16  ;;  %v14669_v17 = vld [vmem:[#allocation6 + $0xfc8] ss:$16 sps:$4 sm:$0xff]   ;;  %v14674_v16 = vld [vmem:[#allocation6 + $0xfe4] ss:$16 sps:$4 sm:$0xff]  }
 0x54f   :  { %8220 = vmatprep.subr.bf16.mxu1 %v14617_v15  ;;  %v14672_v15 = vld [vmem:[#allocation6 + $0xfe0] ss:$16 sps:$4 sm:$0xff]  }
 0x551   :  { %8075 = vmatpush1.bf16.msra.mxu0 %v14612_v48  ;;  %v14680_v48 = vld [vmem:[#allocation6 + $0x1004] ss:$16 sps:$4 sm:$0xff]  }
 0x552   :  { %8221 = vmatpush1.bf16.msra.mxu1 %v14615_v25  ;;  %8076 = vmatprep.subr.bf16.mxu0 %v14620_v54  ;;  %v14683_v25 = vld [vmem:[#allocation6 + $0x100c] ss:$16 sps:$4 sm:$0xff]   ;;  %v14678_v54 = vld [vmem:[#allocation6 + $0x1000] ss:$16 sps:$4 sm:$0xff]  }
 0x553   :  { %7156 = vmatmul.mubr.bf16.gmra.mrb[52].mxu0 %v17037_v37  ;;  %8222 = vmatprep.subr.bf16.mxu1 %v14623_v5  ;;  %v14686_v5 = vld [vmem:[#allocation6 + $0x1024] ss:$16 sps:$4 sm:$0xff]  }
 0x554   :  { %7302 = vmatmul.mubr.bf16.gmra.mrb[52].mxu1 %v17037_v37  ;;  %12583 = vmatprep.mubr.msk.bf16.mxu0 %vm4076_vm4, %v17044_v22  ;;  %v14633_v37 = vld [vmem:[#allocation6 + $0xf08] ss:$16 sps:$4 sm:$0xff]  }
 0x555   :  { %12588 = vmatprep.mubr.msk.bf16.mxu1 %vm4076_vm4, %v17044_v22  ;;  %8077 = vmatpush1.bf16.msra.mxu0 %v14618_v46  ;;  %v6445_v22 = vsel %vm718_vm2, %v3486_v59, %v6444_v32  ;;  %v6443_v59 = vsel %vm718_vm2, %v3484_v41, %v6442_v43  ;;  %v14654_v41 = vld [vmem:[#allocation6 + $0xf80] ss:$16 sps:$4 sm:$0xff]  }
 0x556   :  { %8223 = vmatpush1.bf16.msra.mxu1 %v14621_v33  ;;  %8078 = vmatprep.subr.bf16.mxu0 %v14626_v26  ;;  %v14684_v46 = vld [vmem:[#allocation6 + $0x1020] ss:$16 sps:$4 sm:$0xff]   ;;  %v14687_v33 = vld [vmem:[#allocation6 + $0x1028] ss:$16 sps:$4 sm:$0xff]   ;;  %v14692_v26 = vld [vmem:[#allocation6 + $0x1044] ss:$16 sps:$4 sm:$0xff]  }
 0x557   :  { %8224 = vmatprep.subr.bf16.mxu1 %v14629_v23  ;;  %v14695_v23 = vld [vmem:[#allocation6 + $0x104c] ss:$16 sps:$4 sm:$0xff]   ;;  %v14696_v32 = vld [vmem:[#allocation6 + $0x1060] ss:$16 sps:$4 sm:$0xff]  }
 0x558   :  { %v14708_v43 = vld [vmem:[#allocation6 + $0x10a0] ss:$16 sps:$4 sm:$0xff]  }
 0x559   :  { %8079 = vmatpush1.bf16.msra.mxu0 %v14624_v8  ;;  %v14690_v8 = vld [vmem:[#allocation6 + $0x1040] ss:$16 sps:$4 sm:$0xff]  }
 0x55a   :  { %8225 = vmatpush1.bf16.msra.mxu1 %v14627_v36  ;;  %8080 = vmatprep.subr.bf16.mxu0 %v14632_v45  ;;  %v14693_v36 = vld [vmem:[#allocation6 + $0x1048] ss:$16 sps:$4 sm:$0xff]   ;;  %v14698_v45 = vld [vmem:[#allocation6 + $0x1064] ss:$16 sps:$4 sm:$0xff]  }
 0x55b   :  { %7166 = vmatmul.mubr.bf16.gmra.mrb[56].mxu0 %v17054_v52  ;;  %8226 = vmatprep.subr.bf16.mxu1 %v14635_v0  ;;  %v14701_v0 = vld [vmem:[#allocation6 + $0x106c] ss:$16 sps:$4 sm:$0xff]  }
 0x55c   :  { %7312 = vmatmul.mubr.bf16.gmra.mrb[56].mxu1 %v17054_v52  ;;  %12584 = vmatprep.mubr.msk.bf16.mxu0 %vm4076_vm4, %v6445_v22  ;;  %v14645_v52 = vld [vmem:[#allocation6 + $0xf48] ss:$16 sps:$4 sm:$0xff]  }
 0x55d   :  { %12589 = vmatprep.mubr.msk.bf16.mxu1 %vm4076_vm4, %v6445_v22  ;;  %8081 = vmatpush1.bf16.msra.mxu0 %v14630_v24  ;;  %v14699_v24 = vld [vmem:[#allocation6 + $0x1068] ss:$16 sps:$4 sm:$0xff]   ;;  %v14702_v22 = vld [vmem:[#allocation6 + $0x1080] ss:$16 sps:$4 sm:$0xff]  }
 0x55e   :  { %8227 = vmatpush1.bf16.msra.mxu1 %v14633_v37  ;;  %8082 = vmatprep.subr.bf16.mxu0 %v14638_v47  ;;  %v14704_v37 = vld [vmem:[#allocation6 + $0x1084] ss:$16 sps:$4 sm:$0xff]   ;;  %v14707_v47 = vld [vmem:[#allocation6 + $0x108c] ss:$16 sps:$4 sm:$0xff]  }
 0x55f   :  { %8228 = vmatprep.subr.bf16.mxu1 %v14641_v50  ;;  %v14705_v50 = vld [vmem:[#allocation6 + $0x1088] ss:$16 sps:$4 sm:$0xff]  }
 0x561   :  { %8083 = vmatpush1.bf16.msra.mxu0 %v14636_v39  ;;  %v14710_v39 = vld [vmem:[#allocation6 + $0x10a4] ss:$16 sps:$4 sm:$0xff]  }
 0x562   :  { %8229 = vmatpush1.bf16.msra.mxu1 %v14639_v14  ;;  %8084 = vmatprep.subr.bf16.mxu0 %v14644_v35  ;;  %v14713_v14 = vld [vmem:[#allocation6 + $0x10ac] ss:$16 sps:$4 sm:$0xff]   ;;  %v14711_v35 = vld [vmem:[#allocation6 + $0x10a8] ss:$16 sps:$4 sm:$0xff]  }
 0x563   :  { %7176 = vmatmul.mubr.bf16.gmra.mrb[60].mxu0 %v6443_v59  ;;  %8230 = vmatprep.subr.bf16.mxu1 %v14647_v63  ;;  %v14716_v63 = vld [vmem:[#allocation6 + $0x10c4] ss:$16 sps:$4 sm:$0xff]  }
 0x564   :  { %7322 = vmatmul.mubr.bf16.gmra.mrb[60].mxu1 %v6443_v59  ;;  %8104 = vmatprep.mubr.bf16.mxu0 %v16765_v58  ;;  %v14714_v59 = vld [vmem:[#allocation6 + $0x10c0] ss:$16 sps:$4 sm:$0xff]  }
 0x565   :  { %8085 = vmatpush1.bf16.msra.mxu0 %v14642_v20  ;;  %8250 = vmatprep.mubr.bf16.mxu1 %v16765_v58  ;;  %v14663_v58 = vld [vmem:[#allocation6 + $0xfa8] ss:$16 sps:$4 sm:$0xff]   ;;  %v14719_v20 = vld [vmem:[#allocation6 + $0x10cc] ss:$16 sps:$4 sm:$0xff]  }
 0x566   :  { %8231 = vmatpush1.bf16.msra.mxu1 %v14645_v52  ;;  %8086 = vmatprep.subr.bf16.mxu0 %v14650_v3  ;;  %v14717_v52 = vld [vmem:[#allocation6 + $0x10c8] ss:$16 sps:$4 sm:$0xff]   ;;  %v14722_v3 = vld [vmem:[#allocation6 + $0x10e4] ss:$16 sps:$4 sm:$0xff]  }
 0x567   :  { %8232 = vmatprep.subr.bf16.mxu1 %v14653_v42  ;;  %v14723_v42 = vld [vmem:[#allocation6 + $0x10e8] ss:$16 sps:$4 sm:$0xff]  }
 0x569   :  { %8087 = vmatpush1.bf16.msra.mxu0 %v14648_v49  ;;  %v14728_v49 = vld [vmem:[#allocation6 + $0x1104] ss:$16 sps:$4 sm:$0xff]  }
 0x56a   :  { %8233 = vmatpush1.bf16.msra.mxu1 %v14651_v18  ;;  %8088 = vmatprep.subr.bf16.mxu0 %v14656_v2  ;;  %v14731_v18 = vld [vmem:[#allocation6 + $0x110c] ss:$16 sps:$4 sm:$0xff]   ;;  %v14726_v2 = vld [vmem:[#allocation6 + $0x1100] ss:$16 sps:$4 sm:$0xff]  }
 0x56b   :  { %8234 = vmatprep.subr.bf16.mxu1 %v14659_v27  ;;  %v14729_v27 = vld [vmem:[#allocation6 + $0x1108] ss:$16 sps:$4 sm:$0xff]  }
 0x56d   :  { %8089 = vmatpush1.bf16.msra.mxu0 %v14654_v41  ;;  %v14734_v41 = vld [vmem:[#allocation6 + $0x1124] ss:$16 sps:$4 sm:$0xff]  }
 0x56e   :  { %8235 = vmatpush1.bf16.msra.mxu1 %v14657_v44  ;;  %8090 = vmatprep.subr.bf16.mxu0 %v14662_v51  ;;  %v14735_v44 = vld [vmem:[#allocation6 + $0x1128] ss:$16 sps:$4 sm:$0xff]   ;;  %v14740_v51 = vld [vmem:[#allocation6 + $0x1144] ss:$16 sps:$4 sm:$0xff]  }
 0x56f   :  { %8236 = vmatprep.subr.bf16.mxu1 %v14665_v4  ;;  %v14743_v4 = vld [vmem:[#allocation6 + $0x114c] ss:$16 sps:$4 sm:$0xff]  }
 0x571   :  { %8091 = vmatpush1.bf16.msra.mxu0 %v14660_v56  ;;  %v14738_v56 = vld [vmem:[#allocation6 + $0x1140] ss:$16 sps:$4 sm:$0xff]  }
 0x572   :  { %8237 = vmatpush1.bf16.msra.mxu1 %v14663_v58  ;;  %8092 = vmatprep.subr.bf16.mxu0 %v14668_v31  ;;  %v14741_v58 = vld [vmem:[#allocation6 + $0x1148] ss:$16 sps:$4 sm:$0xff]   ;;  %v14746_v31 = vld [vmem:[#allocation6 + $0x1164] ss:$16 sps:$4 sm:$0xff]  }
 0x573   :  { %8238 = vmatprep.subr.bf16.mxu1 %v14671_v29  ;;  %v14747_v29 = vld [vmem:[#allocation6 + $0x1168] ss:$16 sps:$4 sm:$0xff]  }
 0x575   :  { %8093 = vmatpush1.bf16.msra.mxu0 %v14666_v11  ;;  %v14752_v11 = vld [vmem:[#allocation6 + $0x1184] ss:$16 sps:$4 sm:$0xff]  }
 0x576   :  { %8239 = vmatpush1.bf16.msra.mxu1 %v14669_v17  ;;  %8094 = vmatprep.subr.bf16.mxu0 %v14674_v16  ;;  %v14755_v17 = vld [vmem:[#allocation6 + $0x118c] ss:$16 sps:$4 sm:$0xff]   ;;  %v14750_v16 = vld [vmem:[#allocation6 + $0x1180] ss:$16 sps:$4 sm:$0xff]  }
 0x577   :  { %8240 = vmatprep.subr.bf16.mxu1 %v14677_v38  ;;  %v14753_v38 = vld [vmem:[#allocation6 + $0x1188] ss:$16 sps:$4 sm:$0xff]  }
 0x579   :  { %8095 = vmatpush1.bf16.msra.mxu0 %v14672_v15  ;;  %v14761_v15 = vld [vmem:[#allocation6 + $0x11ac] ss:$16 sps:$4 sm:$0xff]  }
 0x57a   :  { %8241 = vmatpush1.bf16.msra.mxu1 %v14675_v62  ;;  %8096 = vmatprep.subr.bf16.mxu0 %v14680_v48  ;;  %v14756_v62 = vld [vmem:[#allocation6 + $0x11a0] ss:$16 sps:$4 sm:$0xff]   ;;  %v14764_v48 = vld [vmem:[#allocation6 + $0x11c4] ss:$16 sps:$4 sm:$0xff]  }
 0x57b   :  { %8242 = vmatprep.subr.bf16.mxu1 %v14683_v25  ;;  %v14767_v25 = vld [vmem:[#allocation6 + $0x11cc] ss:$16 sps:$4 sm:$0xff]  }
 0x57d   :  { %8097 = vmatpush1.bf16.msra.mxu0 %v14678_v54  ;;  %v14762_v54 = vld [vmem:[#allocation6 + $0x11c0] ss:$16 sps:$4 sm:$0xff]  }
 0x57e   :  { %8243 = vmatpush1.bf16.msra.mxu1 %v14681_v53  ;;  %8098 = vmatprep.subr.bf16.mxu0 %v14686_v5  ;;  %v14765_v53 = vld [vmem:[#allocation6 + $0x11c8] ss:$16 sps:$4 sm:$0xff]   ;;  %v14770_v5 = vld [vmem:[#allocation6 + $0x11e4] ss:$16 sps:$4 sm:$0xff]  }
 0x57f   :  { %8244 = vmatprep.subr.bf16.mxu1 %v14689_v10  ;;  %v14773_v10 = vld [vmem:[#allocation6 + $0x11ec] ss:$16 sps:$4 sm:$0xff]  }
 0x581   :  { %8099 = vmatpush1.bf16.msra.mxu0 %v14684_v46  ;;  %v14768_v46 = vld [vmem:[#allocation6 + $0x11e0] ss:$16 sps:$4 sm:$0xff]  }
 0x582   :  { %8245 = vmatpush1.bf16.msra.mxu1 %v14687_v33  ;;  %8100 = vmatprep.subr.bf16.mxu0 %v14692_v26  ;;  %v14771_v33 = vld [vmem:[#allocation6 + $0x11e8] ss:$16 sps:$4 sm:$0xff]   ;;  %v14774_v26 = vld [vmem:[#allocation6 + $0x1204] ss:$16 sps:$4 sm:$0x3f]  }
 0x583   :  { %8246 = vmatprep.subr.bf16.mxu1 %v14695_v23  ;;  %v14778_v23 = vld [vmem:[#allocation6 + $0x1200] ss:$16 sps:$4 sm:$0x3f]  }
 0x585   :  { %8101 = vmatpush1.bf16.msra.mxu0 %v14690_v8  ;;  %v14776_v8 = vld [vmem:[#allocation6 + $0x120c] ss:$16 sps:$4 sm:$0x3f]  }
 0x586   :  { %8247 = vmatpush1.bf16.msra.mxu1 %v14693_v36  ;;  %8102 = vmatprep.subr.bf16.mxu0 %v14698_v45  ;;  %v14779_v36 = vld [vmem:[#allocation6 + $0x1208] ss:$16 sps:$4 sm:$0x3f]   ;;  %v8061_v45 = vsel %vm251_vm0, %v14778_v23, 0 }
 0x587   :  { %8248 = vmatprep.subr.bf16.mxu1 %v14701_v0  ;;  %v8067_v0 = vsel %vm251_vm0, %v14779_v36, 0  ;;  %v14842_v23 = vld [vmem:[#allocation9 + $0x484] ss:$16 sps:$4 sm:$0xff]   ;;  %v14840_v36 = vld [vmem:[#allocation9 + $0x480] ss:$16 sps:$4 sm:$0xff]  }
 0x589   :  { %8103 = vmatpush1.bf16.msra.mxu0 %v14696_v32  ;;  %v14785_v32 = vld [vmem:[#allocation9 + $0x2e4] ss:$16 sps:$4 sm:$0xff]  }
 0x58a   :  { %8249 = vmatpush1.bf16.msra.mxu1 %v14699_v24  ;;  %8145 = vmatprep.subr.bf16.mxu0 %v14704_v37  ;;  %v14801_v24 = vld [vmem:[#allocation9 + $0x4c0] ss:$16 sps:$4 sm:$0xff]   ;;  %v14803_v37 = vld [vmem:[#allocation9 + $0x4c4] ss:$16 sps:$4 sm:$0xff]  }
 0x58b   :  { %8291 = vmatprep.subr.bf16.mxu1 %v14707_v47  ;;  %v14809_v47 = vld [vmem:[#allocation9 + $0x4e4] ss:$16 sps:$4 sm:$0xff]  }
 0x58c   :  { %8105 = vmatmul.mubr.bf16.vlgmr.msra.gmra.mrb[48].mxu0 %v16770_v30 }
 0x58d   :  { %8251 = vmatmul.mubr.bf16.vlgmr.msra.gmra.mrb[48].mxu1 %v16770_v30  ;;  %8114 = vmatprep.mubr.bf16.mxu0 %v16809_v57  ;;  %v14725_v30 = vld [vmem:[#allocation6 + $0x10ec] ss:$16 sps:$4 sm:$0xff]  }
 0x58e   :  { %8146 = vmatpush1.bf16.msra.mxu0 %v14702_v22  ;;  %8260 = vmatprep.mubr.bf16.mxu1 %v16809_v57  ;;  %v14720_v57 = vld [vmem:[#allocation6 + $0x10e0] ss:$16 sps:$4 sm:$0xff]   ;;  %v14786_v22 = vld [vmem:[#allocation9 + $0x300] ss:$16 sps:$4 sm:$0xff]  }
 0x58f   :  { %8292 = vmatpush1.bf16.msra.mxu1 %v14705_v50  ;;  %8147 = vmatprep.subr.bf16.mxu0 %v14710_v39  ;;  %v14818_v50 = vld [vmem:[#allocation9 + $0x504] ss:$16 sps:$4 sm:$0xff]   ;;  %v14789_v39 = vld [vmem:[#allocation9 + $0x320] ss:$16 sps:$4 sm:$0xff]  }
 0x590   :  { %8293 = vmatprep.subr.bf16.mxu1 %v14713_v14  ;;  %v14794_v14 = vld [vmem:[#allocation9 + $0x344] ss:$16 sps:$4 sm:$0xff]  }
 0x592   :  { %8148 = vmatpush1.bf16.msra.mxu0 %v14708_v43  ;;  %v14816_v43 = vld [vmem:[#allocation9 + $0x500] ss:$16 sps:$4 sm:$0xff]  }
 0x593   :  { %8294 = vmatpush1.bf16.msra.mxu1 %v14711_v35  ;;  %8149 = vmatprep.subr.bf16.mxu0 %v14716_v63  ;;  %v14792_v35 = vld [vmem:[#allocation9 + $0x340] ss:$16 sps:$4 sm:$0xff]   ;;  %v14797_v63 = vld [vmem:[#allocation9 + $0x364] ss:$16 sps:$4 sm:$0xff]  }
 0x594   :  { %8115 = vmatmul.mubr.bf16.gmra.mrb[52].mxu0 %v16812_v34  ;;  %8295 = vmatprep.subr.bf16.mxu1 %v14719_v20  ;;  %v14795_v20 = vld [vmem:[#allocation9 + $0x360] ss:$16 sps:$4 sm:$0xff]  }
 0x595   :  { %8261 = vmatmul.mubr.bf16.gmra.mrb[52].mxu1 %v16812_v34  ;;  %8124 = vmatprep.mubr.bf16.mxu0 %v16855_v55  ;;  %v14737_v34 = vld [vmem:[#allocation6 + $0x112c] ss:$16 sps:$4 sm:$0xff]  }
 0x596   :  { %8150 = vmatpush1.bf16.msra.mxu0 %v14714_v59  ;;  %8270 = vmatprep.mubr.bf16.mxu1 %v16855_v55  ;;  %v14732_v55 = vld [vmem:[#allocation6 + $0x1120] ss:$16 sps:$4 sm:$0xff]   ;;  %v14800_v59 = vld [vmem:[#allocation9 + $0x384] ss:$16 sps:$4 sm:$0xff]  }
 0x597   :  { %8296 = vmatpush1.bf16.msra.mxu1 %v14717_v52  ;;  %8151 = vmatprep.subr.bf16.mxu0 %v14722_v3  ;;  %v14798_v52 = vld [vmem:[#allocation9 + $0x380] ss:$16 sps:$4 sm:$0xff]   ;;  %v14806_v3 = vld [vmem:[#allocation9 + $0x3a4] ss:$16 sps:$4 sm:$0xff]  }
 0x598   :  { %8297 = vmatprep.subr.bf16.mxu1 %v14725_v30  ;;  %v14804_v30 = vld [vmem:[#allocation9 + $0x3a0] ss:$16 sps:$4 sm:$0xff]  }
 0x59a   :  { %8152 = vmatpush1.bf16.msra.mxu0 %v14720_v57  ;;  %v14812_v57 = vld [vmem:[#allocation9 + $0x3c4] ss:$16 sps:$4 sm:$0xff]  }
 0x59b   :  { %8298 = vmatpush1.bf16.msra.mxu1 %v14723_v42  ;;  %8153 = vmatprep.subr.bf16.mxu0 %v14728_v49  ;;  %v14810_v42 = vld [vmem:[#allocation9 + $0x3c0] ss:$16 sps:$4 sm:$0xff]   ;;  %v14815_v49 = vld [vmem:[#allocation9 + $0x3e4] ss:$16 sps:$4 sm:$0xff]  }
 0x59c   :  { %8125 = vmatmul.mubr.bf16.gmra.mrb[56].mxu0 %v16875_v9  ;;  %8299 = vmatprep.subr.bf16.mxu1 %v14731_v18  ;;  %v14813_v18 = vld [vmem:[#allocation9 + $0x3e0] ss:$16 sps:$4 sm:$0xff]  }
 0x59d   :  { %8271 = vmatmul.mubr.bf16.gmra.mrb[56].mxu1 %v16875_v9  ;;  %8134 = vmatprep.mubr.bf16.mxu0 %v17171_v61  ;;  %v14749_v9 = vld [vmem:[#allocation6 + $0x116c] ss:$16 sps:$4 sm:$0xff]  }
 0x59e   :  { %8154 = vmatpush1.bf16.msra.mxu0 %v14726_v2  ;;  %8280 = vmatprep.mubr.bf16.mxu1 %v17171_v61  ;;  %v14744_v61 = vld [vmem:[#allocation6 + $0x1160] ss:$16 sps:$4 sm:$0xff]   ;;  %v14821_v2 = vld [vmem:[#allocation9 + $0x404] ss:$16 sps:$4 sm:$0xff]  }
 0x59f   :  { %8300 = vmatpush1.bf16.msra.mxu1 %v14729_v27  ;;  %8155 = vmatprep.subr.bf16.mxu0 %v14734_v41  ;;  %v14819_v27 = vld [vmem:[#allocation9 + $0x400] ss:$16 sps:$4 sm:$0xff]  }
 0x5a0   :  { %8301 = vmatprep.subr.bf16.mxu1 %v14737_v34  ;;  %v14824_v34 = vld [vmem:[#allocation9 + $0x524] ss:$16 sps:$4 sm:$0xff]  }
 0x5a2   :  { %8156 = vmatpush1.bf16.msra.mxu0 %v14732_v55  ;;  %v14827_v55 = vld [vmem:[#allocation9 + $0x424] ss:$16 sps:$4 sm:$0xff]  }
 0x5a3   :  { %8302 = vmatpush1.bf16.msra.mxu1 %v14735_v44  ;;  %8157 = vmatprep.subr.bf16.mxu0 %v14740_v51 }
 0x5a4   :  { %8135 = vmatmul.mubr.bf16.gmra.mrb[60].mxu0 %v17179_v40  ;;  %8303 = vmatprep.subr.bf16.mxu1 %v14743_v4  ;;  %v14822_v4 = vld [vmem:[#allocation9 + $0x520] ss:$16 sps:$4 sm:$0xff]  }
 0x5a5   :  { %8281 = vmatmul.mubr.bf16.gmra.mrb[60].mxu1 %v17179_v40  ;;  %12707 = vmatprep.mubr.msk.bf16.mxu0 %vm4076_vm4, %v16933_v7  ;;  %v14758_v40 = vld [vmem:[#allocation6 + $0x11a4] ss:$16 sps:$4 sm:$0xff]  }
 0x5a6   :  { %8158 = vmatpush1.bf16.msra.mxu0 %v14738_v56  ;;  %12712 = vmatprep.mubr.msk.bf16.mxu1 %vm4076_vm4, %v16933_v7  ;;  %v14759_v7 = vld [vmem:[#allocation6 + $0x11a8] ss:$16 sps:$4 sm:$0xff]   ;;  %v14825_v56 = vld [vmem:[#allocation9 + $0x420] ss:$16 sps:$4 sm:$0xff]  }
 0x5a7   :  { %8304 = vmatpush1.bf16.msra.mxu1 %v14741_v58  ;;  %8159 = vmatprep.subr.bf16.mxu0 %v14746_v31 }
 0x5a8   :  { %8305 = vmatprep.subr.bf16.mxu1 %v14749_v9 }
 0x5aa   :  { %8160 = vmatpush1.bf16.msra.mxu0 %v14744_v61 }
 0x5ab   :  { %8306 = vmatpush1.bf16.msra.mxu1 %v14747_v29  ;;  %8161 = vmatprep.subr.bf16.mxu0 %v14752_v11  ;;  %v14830_v11 = vld [vmem:[#allocation9 + $0x544] ss:$16 sps:$4 sm:$0xff]  }
 0x5ac   :  { %8307 = vmatprep.subr.bf16.mxu1 %v14755_v17  ;;  %v14833_v17 = vld [vmem:[#allocation9 + $0x444] ss:$16 sps:$4 sm:$0xff]  }
 0x5ae   :  { %8162 = vmatpush1.bf16.msra.mxu0 %v14750_v16  ;;  %v14828_v16 = vld [vmem:[#allocation9 + $0x540] ss:$16 sps:$4 sm:$0xff]  }
 0x5af   :  { %8308 = vmatpush1.bf16.msra.mxu1 %v14753_v38  ;;  %8163 = vmatprep.subr.bf16.mxu0 %v14758_v40  ;;  %v14831_v38 = vld [vmem:[#allocation9 + $0x440] ss:$16 sps:$4 sm:$0xff]  }
 0x5b0   :  { %8309 = vmatprep.subr.bf16.mxu1 %v14761_v15  ;;  %v14836_v15 = vld [vmem:[#allocation9 + $0x464] ss:$16 sps:$4 sm:$0xff]  }
 0x5b2   :  { %8164 = vmatpush1.bf16.msra.mxu0 %v14756_v62  ;;  %v14837_v62 = vld [vmem:[#allocation9 + $0x564] ss:$16 sps:$4 sm:$0x7f]  }
 0x5b3   :  { %8310 = vmatpush1.bf16.msra.mxu1 %v14759_v7  ;;  %8165 = vmatprep.subr.bf16.mxu0 %v14764_v48 }
 0x5b4   :  { %8311 = vmatprep.subr.bf16.mxu1 %v14767_v25  ;;  %v14834_v25 = vld [vmem:[#allocation9 + $0x460] ss:$16 sps:$4 sm:$0xff]  }
 0x5b6   :  { %8166 = vmatpush1.bf16.msra.mxu0 %v14762_v54 }
 0x5b7   :  { %8312 = vmatpush1.bf16.msra.mxu1 %v14765_v53  ;;  %8167 = vmatprep.subr.bf16.mxu0 %v14770_v5  ;;  %v14839_v5 = vld [vmem:[#allocation9 + $0x560] ss:$16 sps:$4 sm:$0x7f]  }
 0x5b8   :  { %8313 = vmatprep.subr.bf16.mxu1 %v14773_v10 }
 0x5ba   :  { %8168 = vmatpush1.bf16.msra.mxu0 %v14768_v46 }
 0x5bb   :  { %8314 = vmatpush1.bf16.msra.mxu1 %v14771_v33  ;;  %12706 = vmatprep.subr.msk.bf16.mxu0 %vm251_vm0, %v14774_v26  ;;  %v9285_v26 = vsel %vm9283_vm5, %v14839_v5, 0 }
 0x5bc   :  { %12711 = vmatprep.subr.msk.bf16.mxu1 %vm251_vm0, %v14776_v8  ;;  %v14845_v8 = vld [vmem:[#allocation9 + $0x2cc] ss:$16 sps:$4 sm:$0xff]  }
 0x5be   :  { %8170 = vmatpush1.bf16.msra.mxu0 %v8061_v45 }
 0x5bf   :  { %8316 = vmatpush1.bf16.msra.mxu1 %v8067_v0 }
 0x5c0   :  { %9337 = vmatprep.subr.bf16.mxu1 %v14803_v37 }
 0x5c1   :  { %8178 = vmatmul.mubr.bf16.vlgmr.msra.gmra.mrb[48].mxu0 %v16966_v60 }
 0x5c2   :  { %8324 = vmatmul.mubr.bf16.vlgmr.msra.gmra.mrb[48].mxu1 %v16966_v60  ;;  %12708 = vmatprep.mubr.msk.bf16.mxu0 %vm4076_vm4, %v16973_v12  ;;  %v17677_v60 = vmov 0  }
 0x5c3   :  { %12713 = vmatprep.mubr.msk.bf16.mxu1 %vm4076_vm4, %v16973_v12  ;;  %v14780_v12 = vld [vmem:[#allocation9 + $0x2c0] ss:$16 sps:$4 sm:$0xff]   ;;  %9338 = vmatpush1.bf16.msra.mxu1 %v14801_v24 }
 0x5c4   :  { %9339 = vmatprep.subr.bf16.mxu1 %v14809_v47 }
 0x5c9   :  { %8188 = vmatmul.mubr.bf16.gmra.mrb[52].mxu0 %v17001_v6 }
 0x5ca   :  { %8334 = vmatmul.mubr.bf16.gmra.mrb[52].mxu1 %v17001_v6  ;;  %12709 = vmatprep.mubr.msk.bf16.mxu0 %vm4076_vm4, %v17007_v21  ;;  %v14782_v6 = vld [vmem:[#allocation9 + $0x2c4] ss:$16 sps:$4 sm:$0xff]  }
 0x5cb   :  { %12714 = vmatprep.mubr.msk.bf16.mxu1 %vm4076_vm4, %v17007_v21  ;;  %9296 = vmatprep.subr.bf16.mxu0 %v14782_v6  ;;  %v14783_v21 = vld [vmem:[#allocation9 + $0x2e0] ss:$16 sps:$4 sm:$0xff]   ;;  %v14848_v6 = vld [vmem:[#allocation9 + $0x4a4] ss:$16 sps:$4 sm:$0xff]  }
 0x5cc   :  { %9297 = vmatpush1.bf16.msra.mxu0 %v14780_v12 }
 0x5cd   :  { %9298 = vmatprep.subr.bf16.mxu0 %v14785_v32 }
 0x5d0   :  { %9299 = vmatpush1.bf16.msra.mxu0 %v14783_v21 }
 0x5d1   :  { %8198 = vmatmul.mubr.bf16.gmra.mrb[56].mxu0 %v17034_v19 }
 0x5d2   :  { %8344 = vmatmul.mubr.bf16.gmra.mrb[56].mxu1 %v17034_v19  ;;  %12710 = vmatprep.mubr.msk.bf16.mxu0 %vm4076_vm4, %v17210_v28  ;;  %v14788_v19 = vld [vmem:[#allocation9 + $0x304] ss:$16 sps:$4 sm:$0xff]  }
 0x5d3   :  { %12715 = vmatprep.mubr.msk.bf16.mxu1 %vm4076_vm4, %v17210_v28  ;;  %9300 = vmatprep.subr.bf16.mxu0 %v14788_v19  ;;  %v14791_v28 = vld [vmem:[#allocation9 + $0x324] ss:$16 sps:$4 sm:$0xff]   ;;  %v14846_v19 = vld [vmem:[#allocation9 + $0x4a0] ss:$16 sps:$4 sm:$0xff]  }
 0x5d4   :  { %9301 = vmatpush1.bf16.msra.mxu0 %v14786_v22  ;;  %v14857_v22 = vld [vmem:[#allocation9 + $0x4cc] ss:$16 sps:$4 sm:$0xff]  }
 0x5d5   :  { %9302 = vmatprep.subr.bf16.mxu0 %v14791_v28 }
 0x5d8   :  { %9303 = vmatpush1.bf16.msra.mxu0 %v14789_v39 }
 0x5d9   :  { %8208 = vmatmul.mubr.bf16.gmra.mrb[60].mxu0 %v17032_v1  ;;  %9304 = vmatprep.subr.bf16.mxu0 %v14794_v14 }
 0x5da   :  { %8354 = vmatmul.mubr.bf16.gmra.mrb[60].mxu1 %v17032_v1  ;;  %v14807_v1 = vld [vmem:[#allocation9 + $0x4e0] ss:$16 sps:$4 sm:$0xff]  }
 0x5db   :  { %9369 = vmatprep.mubr.bf16.mxu1 %v17677_v60  ;;  %9340 = vmatpush1.bf16.msra.mxu1 %v14807_v1 }
 0x5dc   :  { %9341 = vmatprep.subr.bf16.mxu1 %v14818_v50  ;;  %9305 = vmatpush1.bf16.msra.mxu0 %v14792_v35 }
 0x5dd   :  { %9306 = vmatprep.subr.bf16.mxu0 %v14797_v63 }
 0x5df   :  { %9342 = vmatpush1.bf16.msra.mxu1 %v14816_v43 }
 0x5e0   :  { %9307 = vmatpush1.bf16.msra.mxu0 %v14795_v20  ;;  %9343 = vmatprep.subr.bf16.mxu1 %v14824_v34 }
 0x5e1   :  { %9308 = vmatprep.subr.bf16.mxu0 %v14800_v59  ;;  %v8565_v59 = vld [vmem:[#allocation7] sm:$0x7] }
 0x5e3   :  { %9344 = vmatpush1.bf16.msra.mxu1 %v14822_v4 }
 0x5e4   :  { %9309 = vmatpush1.bf16.msra.mxu0 %v14798_v52  ;;  %9345 = vmatprep.subr.bf16.mxu1 %v14830_v11 }
 0x5e5   :  { %9310 = vmatprep.subr.bf16.mxu0 %v14806_v3 }
 0x5e7   :  { %9346 = vmatpush1.bf16.msra.mxu1 %v14828_v16 }
 0x5e8   :  { %9311 = vmatpush1.bf16.msra.mxu0 %v14804_v30  ;;  %12804 = vmatprep.subr.msk.bf16.mxu1 %vm9283_vm5, %v14837_v62  ;;  %v17678_v30 = vld [vmem:[#allocation32_spill] sm:$0xff] }
 0x5e9   :  { %9312 = vmatprep.subr.bf16.mxu0 %v14812_v57  ;;  %v17389_v57 = vrot.slane %v8565_v59, %v17678_v30 }
 0x5eb   :  { %9348 = vmatpush1.bf16.msra.mxu1 %v9285_v26 }
 0x5ec   :  { %9313 = vmatpush1.bf16.msra.mxu0 %v14810_v42  ;;  %9378 = vmatprep.subr.bf16.mxu1 %v14845_v8 }
 0x5ed   :  { %9314 = vmatprep.subr.bf16.mxu0 %v14815_v49 }
 0x5f0   :  { %9315 = vmatpush1.bf16.msra.mxu0 %v14813_v18 }
 0x5f1   :  { %9316 = vmatprep.subr.bf16.mxu0 %v14821_v2 }
 0x5f4   :  { %9317 = vmatpush1.bf16.msra.mxu0 %v14819_v27 }
 0x5f5   :  { %9318 = vmatprep.subr.bf16.mxu0 %v14827_v55  ;;  %v17679_v55 = vld [vmem:[#allocation29_spill] sm:$0xff] }
 0x5f6   :  { %v17396_v4 = vrot.slane %v8565_v59, %v17679_v55 }
 0x5f8   :  { %9319 = vmatpush1.bf16.msra.mxu0 %v14825_v56 }
 0x5f9   :  { %9320 = vmatprep.subr.bf16.mxu0 %v14833_v17 }
 0x5fc   :  { %9321 = vmatpush1.bf16.msra.mxu0 %v14831_v38 }
 0x5fd   :  { %9322 = vmatprep.subr.bf16.mxu0 %v14836_v15 }
 0x600   :  { %9323 = vmatpush1.bf16.msra.mxu0 %v14834_v25  ;;  %v17680_v25 = vld [vmem:[#allocation30_spill] sm:$0xff] }
 0x601   :  { %9324 = vmatprep.subr.bf16.mxu0 %v14842_v23 }
 0x604   :  { %9325 = vmatpush1.bf16.msra.mxu0 %v14840_v36 }
 0x605   :  { %9326 = vmatprep.subr.bf16.mxu0 %v14848_v6 }
 0x608   :  { %9327 = vmatpush1.bf16.msra.mxu0 %v14846_v19 }
 0x609   :  { %9419 = vmatprep.subr.bf16.mxu0 %v14857_v22  ;;  %v14843_v22 = vld [vmem:[#allocation9 + $0x2c8] ss:$16 sps:$4 sm:$0xff]  }
 0x694   :  { %v17275_v41 = vpop.f32.mrb[48].mxu0 }
 0x695   :  { %v17277_v44 = vpop.f32.mrb[48].mxu1  ;;  %v17279_v51 = vpop.f32.mrb[49].mxu0 }
 0x696   :  { %v17281_v58 = vpop.f32.mrb[49].mxu1  ;;  %v17283_v31 = vpop.f32.mrb[50].mxu0 }
 0x697   :  { %v17285_v9 = vpop.f32.mrb[50].mxu1  ;;  %v17287_v61 = vpop.f32.mrb[51].mxu0 }
 0x698   :  { %v17289_v29 = vpop.f32.mrb[51].mxu1 }
 0x69c   :  { %v17291_v40 = vpop.f32.mrb[52].mxu0 }
 0x69d   :  { %v17293_v7 = vpop.f32.mrb[52].mxu1  ;;  %v17295_v48 = vpop.f32.mrb[53].mxu0 }
 0x69e   :  { %8448 = vrot.lane.b32.xlu0 %v17293_v7, %s15570_s22  ;;  %v8337_v54 = vpop.f32.mrb[53].mxu1  ;;  %v17299_v53 = vpop.f32.mrb[54].mxu0 }
 0x69f   :  { %8450 = vrot.lane.b32.xlu1 %v8337_v54, %s15570_s22  ;;  %v17302_v10 = vpop.f32.mrb[54].mxu1  ;;  %v17304_v46 = vpop.f32.mrb[55].mxu0  ;;  %v17405_v54 = vrot.slane %v8565_v59, %v17680_v25  ;;  %v14851_v59 = vld [vmem:[#allocation9 + $0x2ec] ss:$16 sps:$4 sm:$0xff]  }
 0x6a0   :  { %v8341_v33 = vpop.f32.mrb[55].mxu1 }
 0x6a2   :  { %8456 = vrot.lane.b32.xlu0 %v17302_v10, %s15570_s22 }
 0x6a3   :  { %8458 = vrot.lane.b32.xlu1 %v8341_v33, %s15570_s22 }
 0x6a4   :  { %v17311_v45 = vpop.f32.mrb[56].mxu0 }
 0x6a5   :  { %v17313_v0 = vpop.f32.mrb[56].mxu1  ;;  %v17315_v12 = vpop.f32.mrb[57].mxu0 }
 0x6a6   :  { %v8347_v32 = vpop.f32.mrb[57].mxu1  ;;  %8446 = vrot.lane.b32.xlu0 %v17295_v48, %s15570_s22  ;;  %v17319_v21 = vpop.f32.mrb[58].mxu0 }
 0x6a7   :  { %v17321_v24 = vpop.f32.mrb[58].mxu1  ;;  %8454 = vrot.lane.b32.xlu1 %v17304_v46, %s15570_s22  ;;  %v17325_v37 = vpop.f32.mrb[59].mxu0 }
 0x6a8   :  { %v8351_v47 = vpop.f32.mrb[59].mxu1 }
 0x6aa   :  { %8444 = vrot.lane.b32.xlu0 %v17291_v40, %s15570_s22 }
 0x6ab   :  { %8452 = vrot.lane.b32.xlu1 %v17299_v53, %s15570_s22 }
 0x6ac   :  { %v17331_v28 = vpop.f32.mrb[60].mxu0 }
 0x6ad   :  { %v17333_v1 = vpop.f32.mrb[60].mxu1  ;;  %v17335_v50 = vpop.f32.mrb[61].mxu0 }
 0x6ae   :  { %v8357_v39 = vpop.f32.mrb[61].mxu1  ;;  %8432 = vrot.lane.b32.xlu0 %v17277_v44, %s15570_s22  ;;  %v17339_v14 = vpop.f32.mrb[62].mxu0 }
 0x6af   :  { %v17341_v43 = vpop.f32.mrb[62].mxu1  ;;  %8434 = vrot.lane.b32.xlu1 %v17281_v58, %s15570_s22  ;;  %v17345_v35 = vpop.f32.mrb[63].mxu0 }
 0x6b0   :  { %v8361_v63 = vpop.f32.mrb[63].mxu1 }
 0x6b2   :  { %8440 = vrot.lane.b32.xlu0 %v17285_v9, %s15570_s22 }
 0x6b3   :  { %8442 = vrot.lane.b32.xlu1 %v17289_v29, %s15570_s22 }
 0x6b6   :  { %8430 = vrot.lane.b32.xlu0 %v17279_v51, %s15570_s22 }
 0x6b7   :  { %8438 = vrot.lane.b32.xlu1 %v17287_v61, %s15570_s22 }
 0x6ba   :  { %8428 = vrot.lane.b32.xlu0 %v17275_v41, %s15570_s22 }
 0x6bb   :  { %8436 = vrot.lane.b32.xlu1 %v17283_v31, %s15570_s22 }
 0x6be   :  { %8464 = vrot.lane.b32.xlu0 %v17313_v0, %s15570_s22 }
 0x6bf   :  { %8466 = vrot.lane.b32.xlu1 %v8347_v32, %s15570_s22 }
 0x6c2   :  { %8472 = vrot.lane.b32.xlu0 %v17321_v24, %s15570_s22 }
 0x6c3   :  { %8474 = vrot.lane.b32.xlu1 %v8351_v47, %s15570_s22 }
 0x6c6   :  { %8462 = vrot.lane.b32.xlu0 %v17315_v12, %s15570_s22 }
 0x6c7   :  { %8470 = vrot.lane.b32.xlu1 %v17325_v37, %s15570_s22 }
 0x6ca   :  { %8460 = vrot.lane.b32.xlu0 %v17311_v45, %s15570_s22 }
 0x6cb   :  { %8468 = vrot.lane.b32.xlu1 %v17319_v21, %s15570_s22 }
 0x6ce   :  { %8480 = vrot.lane.b32.xlu0 %v17333_v1, %s15570_s22 }
 0x6cf   :  { %8482 = vrot.lane.b32.xlu1 %v8357_v39, %s15570_s22 }
 0x6d2   :  { %8488 = vrot.lane.b32.xlu0 %v17341_v43, %s15570_s22 }
 0x6d3   :  { %8490 = vrot.lane.b32.xlu1 %v8361_v63, %s15570_s22 }
 0x6d6   :  { %8478 = vrot.lane.b32.xlu0 %v17335_v50, %s15570_s22 }
 0x6d7   :  { %8486 = vrot.lane.b32.xlu1 %v17345_v35, %s15570_s22 }
 0x6da   :  { %8476 = vrot.lane.b32.xlu0 %v17331_v28, %s15570_s22 }
 0x6db   :  { %8484 = vrot.lane.b32.xlu1 %v17339_v14, %s15570_s22 }
 0x710   :  { %v8449_v20 = vpop.permute.xlu0 %8448 }
 0x711   :  { %v8451_v52 = vpop.permute.xlu1 %8450 }
 0x712   :  { %v8501_v3 = vsel %vm8492_vm6, %v8449_v20, %v8451_v52 }
 0x713   :  { %v8549_v42 = vmax.f32 %v17293_v7, %v8501_v3 }
 0x714   :  { %v8457_v49 = vpop.permute.xlu0 %8456 }
 0x715   :  { %v8459_v18 = vpop.permute.xlu1 %8458  ;;  %v8590_v27 = vadd.f32 %v17389_v57, %v8549_v42 }
 0x716   :  { %v8504_v2 = vsel %vm8492_vm6, %v8457_v49, %v8459_v18 }
 0x717   :  { %v8552_v34 = vmax.f32 %v17302_v10, %v8504_v2  ;;  %v8614_v38 = vmax.f32 %v8590_v27, 0.0  ;;  %v14849_v2 = vld [vmem:[#allocation9 + $0x2e8] ss:$16 sps:$4 sm:$0xff]  }
 0x718   :  { %v8447_v56 = vpop.permute.xlu0 %8446 }
 0x719   :  { %v8593_v58 = vadd.f32 %v17389_v57, %v8552_v34  ;;  %v8500_v29 = vsel %vm8492_vm6, %v8447_v56, %v8449_v20  ;;  %v8455_v11 = vpop.permute.xlu1 %8454 }
 0x71a   :  { %v8548_v17 = vmax.f32 %v17295_v48, %v8500_v29  ;;  %v8503_v16 = vsel %vm8492_vm6, %v8455_v11, %v8457_v49  ;;  %v14854_v29 = vld [vmem:[#allocation9 + $0x30c] ss:$16 sps:$4 sm:$0xff]  }
 0x71b   :  { %v8617_v15 = vmax.f32 %v8593_v58, 0.0  ;;  %v8551_v62 = vmax.f32 %v17304_v46, %v8503_v16 }
 0x71c   :  { %v8589_v7 = vadd.f32 %v17396_v4, %v8548_v17  ;;  %v8445_v5 = vpop.permute.xlu0 %8444 }
 0x71d   :  { %v8635_v10 = vpack.c.bf16 %v8617_v15, %v8614_v38  ;;  %v8592_v33 = vadd.f32 %v17396_v4, %v8551_v62  ;;  %v8499_v26 = vsel %vm8492_vm6, %v8445_v5, %v8447_v56  ;;  %v8453_v23 = vpop.permute.xlu1 %8452  ;;  %v14852_v38 = vld [vmem:[#allocation9 + $0x308] ss:$16 sps:$4 sm:$0xff]  }
 0x71e   :  { %v8613_v8 = vmax.f32 %v8589_v7, 0.0  ;;  %v8547_v48 = vmax.f32 %v17291_v40, %v8499_v26  ;;  %v8502_v36 = vsel %vm8492_vm6, %v8453_v23, %v8455_v11  ;;  %v14855_v15 = vld [vmem:[#allocation9 + $0x4c8] ss:$16 sps:$4 sm:$0xff]   ;;  %v14863_v26 = vld [vmem:[#allocation9 + $0x4ec] ss:$16 sps:$4 sm:$0xff]  }
 0x71f   :  { %v8747_v6 = vrot.slane %v8635_v10, 4  ;;  %v8616_v32 = vmax.f32 %v8592_v33, 0.0  ;;  %v8550_v46 = vmax.f32 %v17299_v53, %v8502_v36  ;;  %v14860_v33 = vld [vmem:[#allocation9 + $0x32c] ss:$16 sps:$4 sm:$0xff]  }
 0x720   :  { %v8588_v19 = vadd.f32 %v17405_v54, %v8547_v48  ;;  %v8433_v47 = vpop.permute.xlu0 %8432 }
 0x721   :  { %v17413_v39 = vmax.bf16 %v8747_v6, %v8635_v10  ;;  %v8591_v63 = vadd.f32 %v17405_v54, %v8550_v46  ;;  %v8435_v20 = vpop.permute.xlu1 %8434  ;;  %v8634_v52 = vpack.c.bf16 %v8616_v32, %v8613_v8  ;;  %v14858_v46 = vld [vmem:[#allocation9 + $0x328] ss:$16 sps:$4 sm:$0xff]  }
 0x722   :  { %v8612_v3 = vmax.f32 %v8588_v19, 0.0  ;;  %v8495_v40 = vsel %vm8492_vm6, %v8433_v47, %v8435_v20  ;;  %v14861_v19 = vld [vmem:[#allocation9 + $0x4e8] ss:$16 sps:$4 sm:$0xff]   ;;  %v14866_v20 = vld [vmem:[#allocation9 + $0x34c] ss:$16 sps:$4 sm:$0xff]  }
 0x723   :  { %v8615_v42 = vmax.f32 %v8591_v63, 0.0  ;;  %v8543_v49 = vmax.f32 %v17277_v44, %v8495_v40  ;;  %12805 = vmatmul.mubr.msk.bf16.vlgmr.msra.gmra.mrb[64].mxu1 %vm9279_vm7, %v17413_v39  ;;  %v8746_v53 = vrot.slane %v8634_v52, 4 }
 0x724   :  { %9379 = vmatpush1.bf16.msra.mxu1 %v14843_v22  ;;  %v8441_v18 = vpop.permute.xlu0 %8440 }
 0x725   :  { %v8633_v27 = vpack.c.bf16 %v8615_v42, %v8612_v3  ;;  %v8584_v34 = vadd.f32 %v17389_v57, %v8543_v49  ;;  %v8443_v56 = vpop.permute.xlu1 %8442  ;;  %9380 = vmatprep.subr.bf16.mxu1 %v14851_v59  ;;  %v8752_v58 = vmax.bf16 %v8746_v53, %v8634_v52 }
 0x726   :  { %v8498_v11 = vsel %vm8492_vm6, %v8441_v18, %v8443_v56  ;;  %v14875_v56 = vld [vmem:[#allocation9 + $0x52c] ss:$16 sps:$4 sm:$0xff]  }
 0x727   :  { %v8745_v17 = vrot.slane %v8633_v27, 4  ;;  %v8546_v16 = vmax.f32 %v17285_v9, %v8498_v11  ;;  %9328 = vmatprep.mubr.bf16.mxu0 %v8752_v58  ;;  %9410 = vmatprep.mubr.bf16.mxu1 %v8752_v58  ;;  %v8608_v8 = vmax.f32 %v8584_v34, 0.0 }
 0x728   :  { %9381 = vmatpush1.bf16.msra.mxu1 %v14849_v2  ;;  %v8431_v44 = vpop.permute.xlu0 %8430  ;;  %v14867_v2 = vld [vmem:[#allocation9 + $0x508] ss:$16 sps:$4 sm:$0xff]  }
 0x729   :  { %v17423_v62 = vmax.bf16 %v8745_v17, %v8633_v27  ;;  %v8587_v7 = vadd.f32 %v17389_v57, %v8546_v16  ;;  %v8494_v5 = vsel %vm8492_vm6, %v8431_v44, %v8433_v47  ;;  %v8439_v10 = vpop.permute.xlu1 %8438  ;;  %9382 = vmatprep.subr.bf16.mxu1 %v14854_v29 }
 0x72a   :  { %v8542_v23 = vmax.f32 %v17279_v51, %v8494_v5  ;;  %v8497_v9 = vsel %vm8492_vm6, %v8439_v10, %v8441_v18  ;;  %v14864_v18 = vld [vmem:[#allocation9 + $0x348] ss:$16 sps:$4 sm:$0xff]  }
 0x72b   :  { %v8611_v48 = vmax.f32 %v8587_v7, 0.0  ;;  %v8545_v36 = vmax.f32 %v17287_v61, %v8497_v9  ;;  %9329 = vmatmul.mubr.bf16.vlgmr.msra.gmra.mrb[64].mxu0 %v17423_v62  ;;  %v14869_v61 = vld [vmem:[#allocation9 + $0x50c] ss:$16 sps:$4 sm:$0xff]   ;;  %v14876_v9 = vld [vmem:[#allocation9 + $0x388] ss:$16 sps:$4 sm:$0xff]  }
 0x72c   :  { %v8583_v6 = vadd.f32 %v17396_v4, %v8542_v23  ;;  %9383 = vmatpush1.bf16.msra.mxu1 %v14852_v38  ;;  %9420 = vmatpush1.bf16.msra.mxu0 %v14855_v15  ;;  %v8429_v32 = vpop.permute.xlu0 %8428  ;;  %v14873_v38 = vld [vmem:[#allocation9 + $0x528] ss:$16 sps:$4 sm:$0xff]  }
 0x72d   :  { %v17432_v47 = vpack.c.bf16 %v8611_v48, %v8608_v8  ;;  %v8586_v22 = vadd.f32 %v17396_v4, %v8545_v36  ;;  %v8493_v51 = vsel %vm8492_vm6, %v8429_v32, %v8431_v44  ;;  %v8437_v63 = vpop.permute.xlu1 %8436  ;;  %9384 = vmatprep.subr.bf16.mxu1 %v14860_v33  ;;  %9421 = vmatprep.subr.bf16.mxu0 %v14863_v26  ;;  %v14870_v44 = vld [vmem:[#allocation9 + $0x368] ss:$16 sps:$4 sm:$0xff]   ;;  %v14881_v33 = vld [vmem:[#allocation9 + $0x54c] ss:$16 sps:$4 sm:$0xff]  }
 0x72e   :  { %v8607_v59 = vmax.f32 %v8583_v6, 0.0  ;;  %v8541_v52 = vmax.f32 %v17275_v41, %v8493_v51  ;;  %v8496_v3 = vsel %vm8492_vm6, %v8437_v63, %v8439_v10  ;;  %9451 = vmatprep.mubr.bf16.mxu0 %v17677_v60  ;;  %v14872_v41 = vld [vmem:[#allocation9 + $0x36c] ss:$16 sps:$4 sm:$0xff]   ;;  %v14879_v8 = vld [vmem:[#allocation9 + $0x548] ss:$16 sps:$4 sm:$0xff]  }
 0x72f   :  { %v8610_v40 = vmax.f32 %v8586_v22, 0.0  ;;  %v8544_v42 = vmax.f32 %v17283_v31, %v8496_v3  ;;  %v14878_v10 = vld [vmem:[#allocation9 + $0x38c] ss:$16 sps:$4 sm:$0xff]  }
 0x730   :  { %v8582_v49 = vadd.f32 %v17405_v54, %v8541_v52  ;;  %9385 = vmatpush1.bf16.msra.mxu1 %v14858_v46  ;;  %9422 = vmatpush1.bf16.msra.mxu0 %v14861_v19  ;;  %v8465_v53 = vpop.permute.xlu0 %8464  ;;  %v14884_v48 = vld [vmem:[#allocation9 + $0x3ac] ss:$16 sps:$4 sm:$0xff]   ;;  %v14887_v19 = vld [vmem:[#allocation9 + $0x568] ss:$16 sps:$4 sm:$0x7f]  }
 0x731   :  { %v8585_v27 = vadd.f32 %v17405_v54, %v8544_v42  ;;  %v8467_v34 = vpop.permute.xlu1 %8466  ;;  %9386 = vmatprep.subr.bf16.mxu1 %v14866_v20  ;;  %9423 = vmatprep.subr.bf16.mxu0 %v14869_v61  ;;  %v17442_v58 = vpack.c.bf16 %v8610_v40, %v8607_v59  ;;  %v14885_v46 = vld [vmem:[#allocation9 + $0x56c] ss:$16 sps:$4 sm:$0x7f]   ;;  %v14882_v52 = vld [vmem:[#allocation9 + $0x3a8] ss:$16 sps:$4 sm:$0xff]  }
 0x732   :  { %v8606_v29 = vmax.f32 %v8582_v49, 0.0  ;;  %v8507_v11 = vsel %vm8492_vm6, %v8465_v53, %v8467_v34 }
 0x733   :  { %v8609_v31 = vmax.f32 %v8585_v27, 0.0  ;;  %v8555_v17 = vmax.f32 %v17313_v0, %v8507_v11 }
 0x734   :  { %9387 = vmatpush1.bf16.msra.mxu1 %v14864_v18  ;;  %9424 = vmatpush1.bf16.msra.mxu0 %v14867_v2  ;;  %v8473_v16 = vpop.permute.xlu0 %8472 }
 0x735   :  { %v17446_v15 = vpack.c.bf16 %v8609_v31, %v8606_v29  ;;  %v8596_v7 = vadd.f32 %v17389_v57, %v8555_v17  ;;  %v8475_v5 = vpop.permute.xlu1 %8474  ;;  %9388 = vmatprep.subr.bf16.mxu1 %v14872_v41  ;;  %9425 = vmatprep.subr.bf16.mxu0 %v14875_v56  ;;  %v8646_v56 = vrot.slane %v17442_v58, 4  ;;  %v14888_v31 = vld [vmem:[#allocation9 + $0x3c8] ss:$16 sps:$4 sm:$0xff]   ;;  %v14891_v17 = vld [vmem:[#allocation9] ss:$16 sps:$4 sm:$0xff]  }
 0x736   :  { %v8510_v26 = vsel %vm8492_vm6, %v8473_v16, %v8475_v5  ;;  %v14899_v5 = vld [vmem:[#allocation9 + $0x24] ss:$16 sps:$4 sm:$0xff]  }
 0x737   :  { %v8558_v23 = vmax.f32 %v17321_v24, %v8510_v26  ;;  %v8620_v24 = vmax.f32 %v8596_v7, 0.0  ;;  %v17476_v26 = vmax.bf16 %v8646_v56, %v17442_v58 }
 0x738   :  { %9389 = vmatpush1.bf16.msra.mxu1 %v14870_v44  ;;  %9426 = vmatpush1.bf16.msra.mxu0 %v14873_v38  ;;  %v8463_v0 = vpop.permute.xlu0 %8462 }
 0x739   :  { %v8599_v36 = vadd.f32 %v17389_v57, %v8558_v23  ;;  %v8506_v6 = vsel %vm8492_vm6, %v8463_v0, %v8465_v53  ;;  %v8471_v32 = vpop.permute.xlu1 %8470  ;;  %9390 = vmatprep.subr.bf16.mxu1 %v14878_v10  ;;  %9427 = vmatprep.subr.bf16.mxu0 %v14881_v33  ;;  %v14890_v53 = vld [vmem:[#allocation9 + $0x3cc] ss:$16 sps:$4 sm:$0xff]  }
 0x73a   :  { %v8554_v22 = vmax.f32 %v17315_v12, %v8506_v6  ;;  %v8509_v51 = vsel %vm8492_vm6, %v8471_v32, %v8473_v16  ;;  %v9291_v12 = vsel %vm9283_vm5, %v14887_v19, 0  ;;  %v14905_v6 = vld [vmem:[#allocation9 + $0x44] ss:$16 sps:$4 sm:$0xff]   ;;  %v14903_v19 = vld [vmem:[#allocation9 + $0x40] ss:$16 sps:$4 sm:$0xff]  }
 0x73b   :  { %v8623_v63 = vmax.f32 %v8599_v36, 0.0  ;;  %v8557_v20 = vmax.f32 %v17325_v37, %v8509_v51  ;;  %v14893_v37 = vld [vmem:[#allocation9 + $0x4] ss:$16 sps:$4 sm:$0xff]  }
 0x73c   :  { %v8595_v61 = vadd.f32 %v17396_v4, %v8554_v22  ;;  %9391 = vmatpush1.bf16.msra.mxu1 %v14876_v9  ;;  %9428 = vmatpush1.bf16.msra.mxu0 %v14879_v8  ;;  %v8461_v59 = vpop.permute.xlu0 %8460  ;;  %v14897_v9 = vld [vmem:[#allocation9 + $0x20] ss:$16 sps:$4 sm:$0xff]  }
 0x73d   :  { %v17457_v3 = vpack.c.bf16 %v8623_v63, %v8620_v24  ;;  %v8598_v40 = vadd.f32 %v17396_v4, %v8557_v20  ;;  %v8505_v42 = vsel %vm8492_vm6, %v8461_v59, %v8463_v0  ;;  %v8469_v49 = vpop.permute.xlu1 %8468  ;;  %9392 = vmatprep.subr.bf16.mxu1 %v14884_v48  ;;  %12806 = vmatprep.subr.msk.bf16.mxu0 %vm9283_vm5, %v14885_v46  ;;  %v14894_v0 = vld [vmem:[#allocation9 + $0x3e8] ss:$16 sps:$4 sm:$0xff]   ;;  %v14908_v63 = vld [vmem:[#allocation9 + $0x42c] ss:$16 sps:$4 sm:$0xff]   ;;  %v14911_v20 = vld [vmem:[#allocation9 + $0x64] ss:$16 sps:$4 sm:$0xff]  }
 0x73e   :  { %v8619_v18 = vmax.f32 %v8595_v61, 0.0  ;;  %v8553_v2 = vmax.f32 %v17311_v45, %v8505_v42  ;;  %v8508_v27 = vsel %vm8492_vm6, %v8469_v49, %v8471_v32  ;;  %v14896_v45 = vld [vmem:[#allocation9 + $0x3ec] ss:$16 sps:$4 sm:$0xff]   ;;  %v14900_v46 = vld [vmem:[#allocation9 + $0x408] ss:$16 sps:$4 sm:$0xff]  }
 0x73f   :  { %v8622_v34 = vmax.f32 %v8598_v40, 0.0  ;;  %v8556_v41 = vmax.f32 %v17319_v21, %v8508_v27  ;;  %v14906_v49 = vld [vmem:[#allocation9 + $0x428] ss:$16 sps:$4 sm:$0xff]   ;;  %v14917_v27 = vld [vmem:[#allocation9 + $0x84] ss:$16 sps:$4 sm:$0xff]  }
 0x740   :  { %v8594_v29 = vadd.f32 %v17405_v54, %v8553_v2  ;;  %9393 = vmatpush1.bf16.msra.mxu1 %v14882_v52  ;;  %9430 = vmatpush1.bf16.msra.mxu0 %v9291_v12  ;;  %v8481_v11 = vpop.permute.xlu0 %8480  ;;  %v14909_v12 = vld [vmem:[#allocation9 + $0x60] ss:$16 sps:$4 sm:$0xff]   ;;  %v14914_v2 = vld [vmem:[#allocation9 + $0x44c] ss:$16 sps:$4 sm:$0xff]  }
 0x741   :  { %v8597_v16 = vadd.f32 %v17405_v54, %v8556_v41  ;;  %v8483_v44 = vpop.permute.xlu1 %8482  ;;  %9394 = vmatprep.subr.bf16.mxu1 %v14890_v53  ;;  %9911 = vmatprep.subr.bf16.mxu0 %v14893_v37  ;;  %v17469_v38 = vpack.c.bf16 %v8622_v34, %v8619_v18 }
 0x742   :  { %v8618_v7 = vmax.f32 %v8594_v29, 0.0  ;;  %v8513_v21 = vsel %vm8492_vm6, %v8481_v11, %v8483_v44  ;;  %v14923_v44 = vld [vmem:[#allocation9 + $0xa4] ss:$16 sps:$4 sm:$0xff]  }
 0x743   :  { %v8621_v10 = vmax.f32 %v8597_v16, 0.0  ;;  %v8561_v33 = vmax.f32 %v17333_v1, %v8513_v21  ;;  %12807 = vmatmul.mubr.msk.bf16.vlgmr.msra.gmra.mrb[68].mxu0 %vm9279_vm7, %v17413_v39  ;;  %v14902_v1 = vld [vmem:[#allocation9 + $0x40c] ss:$16 sps:$4 sm:$0xff]   ;;  %v14918_v21 = vld [vmem:[#allocation9 + $0x468] ss:$16 sps:$4 sm:$0xff]  }
 0x744   :  { %9395 = vmatpush1.bf16.msra.mxu1 %v14888_v31  ;;  %9912 = vmatpush1.bf16.msra.mxu0 %v14891_v17  ;;  %v8489_v23 = vpop.permute.xlu0 %8488  ;;  %v14915_v31 = vld [vmem:[#allocation9 + $0x80] ss:$16 sps:$4 sm:$0xff]   ;;  %v14920_v16 = vld [vmem:[#allocation9 + $0x46c] ss:$16 sps:$4 sm:$0xff]  }
 0x745   :  { %v17478_v8 = vpack.c.bf16 %v8621_v10, %v8618_v7  ;;  %v8602_v48 = vadd.f32 %v17389_v57, %v8561_v33  ;;  %9943 = vmatprep.mubr.bf16.mxu0 %v17476_v26  ;;  %v8491_v36 = vpop.permute.xlu1 %8490  ;;  %9396 = vmatprep.subr.bf16.mxu1 %v14896_v45  ;;  %v14926_v10 = vld [vmem:[#allocation9 + $0x48c] ss:$16 sps:$4 sm:$0xff]   ;;  %v14929_v33 = vld [vmem:[#allocation9 + $0xc4] ss:$16 sps:$4 sm:$0xff]  }
 0x746   :  { %v8516_v39 = vsel %vm8492_vm6, %v8489_v23, %v8491_v36  ;;  %9913 = vmatprep.subr.bf16.mxu0 %v14899_v5  ;;  %v14933_v36 = vld [vmem:[#allocation9 + $0xe0] ss:$16 sps:$4 sm:$0xff]  }
 0x747   :  { %v8564_v58 = vmax.f32 %v17341_v43, %v8516_v39  ;;  %v8626_v52 = vmax.f32 %v8602_v48, 0.0  ;;  %v14930_v48 = vld [vmem:[#allocation9 + $0x4a8] ss:$16 sps:$4 sm:$0xff]   ;;  %v14936_v39 = vld [vmem:[#allocation9 + $0x100] ss:$16 sps:$4 sm:$0xff]  }
 0x748   :  { %9397 = vmatpush1.bf16.msra.mxu1 %v14894_v0  ;;  %9914 = vmatpush1.bf16.msra.mxu0 %v14897_v9  ;;  %v8479_v32 = vpop.permute.xlu0 %8478  ;;  %v14932_v0 = vld [vmem:[#allocation9 + $0x4ac] ss:$16 sps:$4 sm:$0xff]   ;;  %v14935_v9 = vld [vmem:[#allocation9 + $0xe4] ss:$16 sps:$4 sm:$0xff]  }
 0x749   :  { %v8605_v22 = vadd.f32 %v17389_v57, %v8564_v58  ;;  %v8512_v51 = vsel %vm8492_vm6, %v8479_v32, %v8481_v11  ;;  %v8487_v24 = vpop.permute.xlu1 %8486  ;;  %9398 = vmatprep.subr.bf16.mxu1 %v14902_v1  ;;  %9915 = vmatprep.subr.bf16.mxu0 %v14905_v6  ;;  %v14938_v1 = vld [vmem:[#allocation9 + $0x104] ss:$16 sps:$4 sm:$0xff]   ;;  %v14939_v58 = vld [vmem:[#allocation9 + $0x200] ss:$16 sps:$4 sm:$0xff]  }
 0x74a   :  { %v8560_v61 = vmax.f32 %v17335_v50, %v8512_v51  ;;  %v8515_v59 = vsel %vm8492_vm6, %v8487_v24, %v8489_v23  ;;  %v14927_v23 = vld [vmem:[#allocation9 + $0xc0] ss:$16 sps:$4 sm:$0xff]   ;;  %v14941_v6 = vld [vmem:[#allocation9 + $0x204] ss:$16 sps:$4 sm:$0xff]  }
 0x74b   :  { %v8629_v43 = vmax.f32 %v8605_v22, 0.0  ;;  %v8563_v40 = vmax.f32 %v17345_v35, %v8515_v59  ;;  %v14945_v22 = vld [vmem:[#allocation9 + $0x220] ss:$16 sps:$4 sm:$0xff]   ;;  %v14950_v51 = vld [vmem:[#allocation9 + $0x144] ss:$16 sps:$4 sm:$0xff]  }
 0x74c   :  { %v8601_v42 = vadd.f32 %v17396_v4, %v8560_v61  ;;  %9399 = vmatpush1.bf16.msra.mxu1 %v14900_v46  ;;  %9916 = vmatpush1.bf16.msra.mxu0 %v14903_v19  ;;  %v8477_v57 = vpop.permute.xlu0 %8476  ;;  %v14947_v46 = vld [vmem:[#allocation9 + $0x224] ss:$16 sps:$4 sm:$0xff]   ;;  %v14942_v19 = vld [vmem:[#allocation9 + $0x120] ss:$16 sps:$4 sm:$0xff]  }
 0x74d   :  { %v17490_v53 = vpack.c.bf16 %v8629_v43, %v8626_v52  ;;  %v8604_v37 = vadd.f32 %v17396_v4, %v8563_v40  ;;  %v8511_v18 = vsel %vm8492_vm6, %v8477_v57, %v8479_v32  ;;  %v8485_v50 = vpop.permute.xlu1 %8484  ;;  %9400 = vmatprep.subr.bf16.mxu1 %v14908_v63  ;;  %9917 = vmatprep.subr.bf16.mxu0 %v14911_v20  ;;  %v14912_v4 = vld [vmem:[#allocation9 + $0x448] ss:$16 sps:$4 sm:$0xff]   ;;  %v14944_v32 = vld [vmem:[#allocation9 + $0x124] ss:$16 sps:$4 sm:$0xff]   ;;  %v14948_v63 = vld [vmem:[#allocation9 + $0x140] ss:$16 sps:$4 sm:$0xff]  }
 0x74e   :  { %v8625_v34 = vmax.f32 %v8601_v42, 0.0  ;;  %v8559_v35 = vmax.f32 %v17331_v28, %v8511_v18  ;;  %v8514_v41 = vsel %vm8492_vm6, %v8485_v50, %v8487_v24  ;;  %v14953_v24 = vld [vmem:[#allocation9 + $0x244] ss:$16 sps:$4 sm:$0xff]   ;;  %v14951_v20 = vld [vmem:[#allocation9 + $0x240] ss:$16 sps:$4 sm:$0xff]   ;;  %v8647_v50 = vrot.slane %v17432_v47, 4 }
 0x74f   :  { %v8628_v56 = vmax.f32 %v8604_v37, 0.0  ;;  %v8562_v29 = vmax.f32 %v17339_v14, %v8514_v41  ;;  %v14921_v14 = vld [vmem:[#allocation9 + $0xa0] ss:$16 sps:$4 sm:$0xff]   ;;  %v14956_v61 = vld [vmem:[#allocation9 + $0x164] ss:$16 sps:$4 sm:$0xff]  }
 0x750   :  { %v8600_v11 = vadd.f32 %v17405_v54, %v8559_v35  ;;  %9401 = vmatpush1.bf16.msra.mxu1 %v14906_v49  ;;  %9918 = vmatpush1.bf16.msra.mxu0 %v14909_v12  ;;  %v14959_v59 = vld [vmem:[#allocation9 + $0x264] ss:$16 sps:$4 sm:$0xff]   ;;  %v14957_v52 = vld [vmem:[#allocation9 + $0x260] ss:$16 sps:$4 sm:$0xff]   ;;  %v14975_v41 = vld [vmem:[#allocation9 + $0x8] ss:$16 sps:$4 sm:$0xff]  }
 0x751   :  { %v8603_v17 = vadd.f32 %v17405_v54, %v8562_v29  ;;  %9402 = vmatprep.subr.bf16.mxu1 %v14914_v2  ;;  %9919 = vmatprep.subr.bf16.mxu0 %v14917_v27  ;;  %v17499_v45 = vpack.c.bf16 %v8628_v56, %v8625_v34  ;;  %v14924_v54 = vld [vmem:[#allocation9 + $0x488] ss:$16 sps:$4 sm:$0xff]   ;;  %v14962_v43 = vld [vmem:[#allocation9 + $0x184] ss:$16 sps:$4 sm:$0xff]   ;;  %v14960_v42 = vld [vmem:[#allocation9 + $0x180] ss:$16 sps:$4 sm:$0xff]   ;;  %v17509_v56 = vmax.bf16 %v8647_v50, %v17432_v47 }
 0x752   :  { %v8624_v28 = vmax.f32 %v8600_v11, 0.0  ;;  %v14965_v40 = vld [vmem:[#allocation9 + $0x284] ss:$16 sps:$4 sm:$0xff]   ;;  %v14963_v57 = vld [vmem:[#allocation9 + $0x280] ss:$16 sps:$4 sm:$0xff]  }
 0x753   :  { %v8627_v7 = vmax.f32 %v8603_v17, 0.0  ;;  %v14968_v49 = vld [vmem:[#allocation9 + $0x1a4] ss:$16 sps:$4 sm:$0xff]   ;;  %v14971_v37 = vld [vmem:[#allocation9 + $0x2a0] ss:$16 sps:$4 sm:$0x7f]  }
 0x754   :  { %9403 = vmatpush1.bf16.msra.mxu1 %v14912_v4  ;;  %9920 = vmatpush1.bf16.msra.mxu0 %v14915_v31  ;;  %v14969_v12 = vld [vmem:[#allocation9 + $0x2a4] ss:$16 sps:$4 sm:$0x7f]   ;;  %v14966_v18 = vld [vmem:[#allocation9 + $0x1a0] ss:$16 sps:$4 sm:$0xff]   ;;  %v9900_v2 = vsel %vm9283_vm5, %v14971_v37, 0 }
 0x755   :  { %v17501_v5 = vpack.c.bf16 %v8627_v7, %v8624_v28  ;;  %9404 = vmatprep.subr.bf16.mxu1 %v14920_v16  ;;  %9921 = vmatprep.subr.bf16.mxu0 %v14923_v44  ;;  %v14974_v27 = vld [vmem:[#allocation9 + $0x1c4] ss:$16 sps:$4 sm:$0xff]   ;;  %v14977_v34 = vld [vmem:[#allocation9 + $0xc] ss:$16 sps:$4 sm:$0xff]   ;;  %v14972_v35 = vld [vmem:[#allocation9 + $0x1c0] ss:$16 sps:$4 sm:$0xff]  }
 0x756   :  { %v14980_v29 = vld [vmem:[#allocation9 + $0x1e4] ss:$16 sps:$4 sm:$0xff]   ;;  %v14983_v11 = vld [vmem:[#allocation9 + $0x2c] ss:$16 sps:$4 sm:$0xff]   ;;  %v14978_v4 = vld [vmem:[#allocation9 + $0x1e0] ss:$16 sps:$4 sm:$0xff]  }
 0x757   :  { %v14981_v31 = vld [vmem:[#allocation9 + $0x28] ss:$16 sps:$4 sm:$0xff]   ;;  %v8645_v17 = vrot.slane %v17446_v15, 4  ;;  %v14986_v16 = vld [vmem:[#allocation9 + $0x4c] ss:$16 sps:$4 sm:$0xff]  }
 0x758   :  { %9405 = vmatpush1.bf16.msra.mxu1 %v14918_v21  ;;  %9922 = vmatpush1.bf16.msra.mxu0 %v14921_v14  ;;  %v14989_v44 = vld [vmem:[#allocation9 + $0x20c] ss:$16 sps:$4 sm:$0xff]   ;;  %v14984_v47 = vld [vmem:[#allocation9 + $0x48] ss:$16 sps:$4 sm:$0xff]   ;;  %v15035_v37 = vld [vmem:[#allocation9 + $0x5c0] ss:$16 sps:$4 sm:$0xff]  }
 0x759   :  { %9406 = vmatprep.subr.bf16.mxu1 %v14926_v10  ;;  %9923 = vmatprep.subr.bf16.mxu0 %v14929_v33  ;;  %v14987_v28 = vld [vmem:[#allocation9 + $0x208] ss:$16 sps:$4 sm:$0xff]   ;;  %v17516_v7 = vmax.bf16 %v8645_v17, %v17446_v15  ;;  %v14992_v21 = vld [vmem:[#allocation9 + $0x6c] ss:$16 sps:$4 sm:$0xff]   ;;  %v15043_v50 = vld [vmem:[#allocation9 + $0x5e4] ss:$16 sps:$4 sm:$0xff]  }
 0x75a   :  { %v14995_v14 = vld [vmem:[#allocation9 + $0x22c] ss:$16 sps:$4 sm:$0xff]   ;;  %v14993_v10 = vld [vmem:[#allocation9 + $0x228] ss:$16 sps:$4 sm:$0xff]   ;;  %v15061_v17 = vld [vmem:[#allocation9 + $0x644] ss:$16 sps:$4 sm:$0xff]  }
 0x75b   :  { %v14998_v33 = vld [vmem:[#allocation9 + $0x8c] ss:$16 sps:$4 sm:$0xff]   ;;  %v14996_v15 = vld [vmem:[#allocation9 + $0x88] ss:$16 sps:$4 sm:$0xff]  }
 0x75c   :  { %9407 = vmatpush1.bf16.msra.mxu1 %v14924_v54  ;;  %9924 = vmatpush1.bf16.msra.mxu0 %v14927_v23  ;;  %v15001_v54 = vld [vmem:[#allocation9 + $0x24c] ss:$16 sps:$4 sm:$0xff]   ;;  %v14999_v23 = vld [vmem:[#allocation9 + $0x248] ss:$16 sps:$4 sm:$0xff]  }
 0x75d   :  { %9408 = vmatprep.subr.bf16.mxu1 %v14932_v0  ;;  %9925 = vmatprep.subr.bf16.mxu0 %v14935_v9  ;;  %v15004_v0 = vld [vmem:[#allocation9 + $0xac] ss:$16 sps:$4 sm:$0xff]  }
 0x75e   :  { %v15007_v9 = vld [vmem:[#allocation9 + $0x26c] ss:$16 sps:$4 sm:$0xff]  }
 0x760   :  { %9409 = vmatpush1.bf16.msra.mxu1 %v14930_v48  ;;  %9926 = vmatpush1.bf16.msra.mxu0 %v14933_v36  ;;  %v15002_v48 = vld [vmem:[#allocation9 + $0xa8] ss:$16 sps:$4 sm:$0xff]  }
 0x761   :  { %9927 = vmatprep.subr.bf16.mxu0 %v14938_v1  ;;  %9952 = vmatprep.subr.bf16.mxu1 %v14941_v6  ;;  %v15005_v36 = vld [vmem:[#allocation9 + $0x268] ss:$16 sps:$4 sm:$0xff]   ;;  %v15010_v1 = vld [vmem:[#allocation9 + $0xcc] ss:$16 sps:$4 sm:$0xff]  }
 0x762   :  { %v15013_v6 = vld [vmem:[#allocation9 + $0x28c] ss:$16 sps:$4 sm:$0xff]  }
 0x763   :  { %9411 = vmatmul.mubr.bf16.vlgmr.msra.gmra.mrb[68].mxu1 %v17423_v62  ;;  %v14954_v62 = vld [vmem:[#allocation9 + $0x160] ss:$16 sps:$4 sm:$0xff]  }
 0x764   :  { %9928 = vmatpush1.bf16.msra.mxu0 %v14936_v39  ;;  %9953 = vmatpush1.bf16.msra.mxu1 %v14939_v58  ;;  %v15008_v39 = vld [vmem:[#allocation9 + $0xc8] ss:$16 sps:$4 sm:$0xff]  }
 0x765   :  { %9929 = vmatprep.subr.bf16.mxu0 %v14944_v32  ;;  %9954 = vmatprep.subr.bf16.mxu1 %v14947_v46  ;;  %v15011_v58 = vld [vmem:[#allocation9 + $0x288] ss:$16 sps:$4 sm:$0xff]   ;;  %v15016_v32 = vld [vmem:[#allocation9 + $0xec] ss:$16 sps:$4 sm:$0xff]  }
 0x766   :  { %9984 = vmatprep.mubr.bf16.mxu1 %v17677_v60  ;;  %v15017_v46 = vld [vmem:[#allocation9 + $0x2ac] ss:$16 sps:$4 sm:$0x7f]  }
 0x768   :  { %9930 = vmatpush1.bf16.msra.mxu0 %v14942_v19  ;;  %9955 = vmatpush1.bf16.msra.mxu1 %v14945_v22  ;;  %v15019_v19 = vld [vmem:[#allocation9 + $0x2a8] ss:$16 sps:$4 sm:$0x7f]  }
 0x769   :  { %9931 = vmatprep.subr.bf16.mxu0 %v14950_v51  ;;  %9956 = vmatprep.subr.bf16.mxu1 %v14953_v24  ;;  %v15014_v22 = vld [vmem:[#allocation9 + $0xe8] ss:$16 sps:$4 sm:$0xff]   ;;  %v9906_v51 = vsel %vm9283_vm5, %v15019_v19, 0  ;;  %v15022_v24 = vld [vmem:[#allocation9 + $0x10c] ss:$16 sps:$4 sm:$0xff]  }
 0x76a   :  { %v15097_v19 = vld [vmem:[#allocation9 + $0x804] ss:$16 sps:$4 sm:$0xff]  }
 0x76c   :  { %9932 = vmatpush1.bf16.msra.mxu0 %v14948_v63  ;;  %9957 = vmatpush1.bf16.msra.mxu1 %v14951_v20  ;;  %v15025_v63 = vld [vmem:[#allocation9 + $0x584] ss:$16 sps:$4 sm:$0xff]   ;;  %v10079_v20 = vrot.slane %v17469_v38, 4 }
 0x76d   :  { %9933 = vmatprep.subr.bf16.mxu0 %v14956_v61  ;;  %9958 = vmatprep.subr.bf16.mxu1 %v14959_v59  ;;  %v15020_v61 = vld [vmem:[#allocation9 + $0x108] ss:$16 sps:$4 sm:$0xff]   ;;  %v15023_v59 = vld [vmem:[#allocation9 + $0x580] ss:$16 sps:$4 sm:$0xff]  }
 0x770   :  { %9934 = vmatpush1.bf16.msra.mxu0 %v14954_v62  ;;  %9959 = vmatpush1.bf16.msra.mxu1 %v14957_v52  ;;  %v15028_v62 = vld [vmem:[#allocation9 + $0x12c] ss:$16 sps:$4 sm:$0xff]   ;;  %v15031_v52 = vld [vmem:[#allocation9 + $0x5a4] ss:$16 sps:$4 sm:$0xff]  }
 0x771   :  { %9935 = vmatprep.subr.bf16.mxu0 %v14962_v43  ;;  %9960 = vmatprep.subr.bf16.mxu1 %v14965_v40  ;;  %v17526_v43 = vmax.bf16 %v10079_v20, %v17469_v38  ;;  %v15026_v40 = vld [vmem:[#allocation9 + $0x128] ss:$16 sps:$4 sm:$0xff]   ;;  %v15103_v20 = vld [vmem:[#allocation9 + $0x820] ss:$16 sps:$4 sm:$0x7f]  }
 0x772   :  { %v15038_v38 = vld [vmem:[#allocation9 + $0x168] ss:$16 sps:$4 sm:$0xff]  }
 0x774   :  { %9936 = vmatpush1.bf16.msra.mxu0 %v14960_v42  ;;  %9961 = vmatpush1.bf16.msra.mxu1 %v14963_v57  ;;  %v15029_v42 = vld [vmem:[#allocation9 + $0x5a0] ss:$16 sps:$4 sm:$0xff]   ;;  %v15034_v57 = vld [vmem:[#allocation9 + $0x14c] ss:$16 sps:$4 sm:$0xff]  }
 0x775   :  { %9937 = vmatprep.subr.bf16.mxu0 %v14968_v49  ;;  %12896 = vmatprep.subr.msk.bf16.mxu1 %vm9283_vm5, %v14969_v12  ;;  %v15037_v49 = vld [vmem:[#allocation9 + $0x5c4] ss:$16 sps:$4 sm:$0xff]   ;;  %v15032_v12 = vld [vmem:[#allocation9 + $0x148] ss:$16 sps:$4 sm:$0xff]  }
 0x778   :  { %9938 = vmatpush1.bf16.msra.mxu0 %v14966_v18  ;;  %9963 = vmatpush1.bf16.msra.mxu1 %v9900_v2  ;;  %v15040_v18 = vld [vmem:[#allocation9 + $0x16c] ss:$16 sps:$4 sm:$0xff]   ;;  %v15041_v2 = vld [vmem:[#allocation9 + $0x5e0] ss:$16 sps:$4 sm:$0xff]  }
 0x779   :  { %9939 = vmatprep.subr.bf16.mxu0 %v14974_v27  ;;  %9993 = vmatprep.subr.bf16.mxu1 %v14977_v34  ;;  %v15046_v27 = vld [vmem:[#allocation9 + $0x18c] ss:$16 sps:$4 sm:$0xff]   ;;  %v15049_v34 = vld [vmem:[#allocation9 + $0x604] ss:$16 sps:$4 sm:$0xff]  }
 0x77b   :  { %12897 = vmatmul.mubr.msk.bf16.vlgmr.msra.gmra.mrb[72].mxu1 %vm9279_vm7, %v17509_v56 }
 0x77c   :  { %9940 = vmatpush1.bf16.msra.mxu0 %v14972_v35  ;;  %9994 = vmatpush1.bf16.msra.mxu1 %v14975_v41  ;;  %v15044_v35 = vld [vmem:[#allocation9 + $0x188] ss:$16 sps:$4 sm:$0xff]   ;;  %v15047_v41 = vld [vmem:[#allocation9 + $0x600] ss:$16 sps:$4 sm:$0xff]  }
 0x77d   :  { %10025 = vmatprep.mubr.bf16.mxu1 %v17476_v26  ;;  %9941 = vmatprep.subr.bf16.mxu0 %v14980_v29  ;;  %v14990_v26 = vld [vmem:[#allocation9 + $0x68] ss:$16 sps:$4 sm:$0xff]   ;;  %v15055_v29 = vld [vmem:[#allocation9 + $0x624] ss:$16 sps:$4 sm:$0xff]  }
 0x77e   :  { %9995 = vmatprep.subr.bf16.mxu1 %v14983_v11  ;;  %v15050_v11 = vld [vmem:[#allocation9 + $0x1a8] ss:$16 sps:$4 sm:$0xff]  }
 0x780   :  { %9942 = vmatpush1.bf16.msra.mxu0 %v14978_v4  ;;  %9996 = vmatpush1.bf16.msra.mxu1 %v14981_v31  ;;  %v15053_v4 = vld [vmem:[#allocation9 + $0x620] ss:$16 sps:$4 sm:$0xff]   ;;  %v15058_v31 = vld [vmem:[#allocation9 + $0x1cc] ss:$16 sps:$4 sm:$0xff]  }
 0x781   :  { %9997 = vmatprep.subr.bf16.mxu1 %v14986_v16  ;;  %10034 = vmatprep.subr.bf16.mxu0 %v14989_v44  ;;  %v15056_v16 = vld [vmem:[#allocation9 + $0x1c8] ss:$16 sps:$4 sm:$0xff]   ;;  %v15059_v44 = vld [vmem:[#allocation9 + $0x640] ss:$16 sps:$4 sm:$0xff]  }
 0x783   :  { %9944 = vmatmul.mubr.bf16.vlgmr.msra.gmra.mrb[72].mxu0 %v17516_v7 }
 0x784   :  { %9998 = vmatpush1.bf16.msra.mxu1 %v14984_v47  ;;  %10035 = vmatpush1.bf16.msra.mxu0 %v14987_v28  ;;  %v15064_v47 = vld [vmem:[#allocation9 + $0x1ec] ss:$16 sps:$4 sm:$0xff]   ;;  %v15067_v28 = vld [vmem:[#allocation9 + $0x664] ss:$16 sps:$4 sm:$0xff]  }
 0x785   :  { %9999 = vmatprep.subr.bf16.mxu1 %v14992_v21  ;;  %10036 = vmatprep.subr.bf16.mxu0 %v14995_v14  ;;  %v15062_v21 = vld [vmem:[#allocation9 + $0x1e8] ss:$16 sps:$4 sm:$0xff]   ;;  %v15065_v14 = vld [vmem:[#allocation9 + $0x660] ss:$16 sps:$4 sm:$0xff]  }
 0x786   :  { %10066 = vmatprep.mubr.bf16.mxu0 %v17677_v60 }
 0x788   :  { %10000 = vmatpush1.bf16.msra.mxu1 %v14990_v26  ;;  %10037 = vmatpush1.bf16.msra.mxu0 %v14993_v10  ;;  %v15070_v26 = vld [vmem:[#allocation9 + $0x684] ss:$16 sps:$4 sm:$0xff]  }
 0x789   :  { %10001 = vmatprep.subr.bf16.mxu1 %v14998_v33  ;;  %10038 = vmatprep.subr.bf16.mxu0 %v15001_v54  ;;  %v15073_v10 = vld [vmem:[#allocation9 + $0x784] ss:$16 sps:$4 sm:$0xff]   ;;  %v15068_v33 = vld [vmem:[#allocation9 + $0x680] ss:$16 sps:$4 sm:$0xff]  }
 0x78a   :  { %v15071_v54 = vld [vmem:[#allocation9 + $0x780] ss:$16 sps:$4 sm:$0xff]  }
 0x78c   :  { %10002 = vmatpush1.bf16.msra.mxu1 %v14996_v15  ;;  %10039 = vmatpush1.bf16.msra.mxu0 %v14999_v23  ;;  %v15076_v15 = vld [vmem:[#allocation9 + $0x6a4] ss:$16 sps:$4 sm:$0xff]  }
 0x78d   :  { %10003 = vmatprep.subr.bf16.mxu1 %v15004_v0  ;;  %10040 = vmatprep.subr.bf16.mxu0 %v15007_v9  ;;  %v15079_v23 = vld [vmem:[#allocation9 + $0x7a4] ss:$16 sps:$4 sm:$0xff]   ;;  %v15074_v0 = vld [vmem:[#allocation9 + $0x6a0] ss:$16 sps:$4 sm:$0xff]  }
 0x78e   :  { %v15077_v9 = vld [vmem:[#allocation9 + $0x7a0] ss:$16 sps:$4 sm:$0xff]  }
 0x790   :  { %10004 = vmatpush1.bf16.msra.mxu1 %v15002_v48  ;;  %10041 = vmatpush1.bf16.msra.mxu0 %v15005_v36  ;;  %v15082_v48 = vld [vmem:[#allocation9 + $0x6c4] ss:$16 sps:$4 sm:$0xff]  }
 0x791   :  { %10005 = vmatprep.subr.bf16.mxu1 %v15010_v1  ;;  %10042 = vmatprep.subr.bf16.mxu0 %v15013_v6  ;;  %v15085_v36 = vld [vmem:[#allocation9 + $0x7c4] ss:$16 sps:$4 sm:$0xff]   ;;  %v15080_v1 = vld [vmem:[#allocation9 + $0x6c0] ss:$16 sps:$4 sm:$0xff]  }
 0x792   :  { %v15083_v6 = vld [vmem:[#allocation9 + $0x7c0] ss:$16 sps:$4 sm:$0xff]  }
 0x794   :  { %10006 = vmatpush1.bf16.msra.mxu1 %v15008_v39  ;;  %10043 = vmatpush1.bf16.msra.mxu0 %v15011_v58  ;;  %v15088_v39 = vld [vmem:[#allocation9 + $0x6e4] ss:$16 sps:$4 sm:$0xff]  }
 0x795   :  { %10007 = vmatprep.subr.bf16.mxu1 %v15016_v32  ;;  %12898 = vmatprep.subr.msk.bf16.mxu0 %vm9283_vm5, %v15017_v46  ;;  %v15091_v58 = vld [vmem:[#allocation9 + $0x7e4] ss:$16 sps:$4 sm:$0xff]   ;;  %v15089_v32 = vld [vmem:[#allocation9 + $0x7e0] ss:$16 sps:$4 sm:$0xff]  }
 0x796   :  { %v15094_v46 = vld [vmem:[#allocation9 + $0x704] ss:$16 sps:$4 sm:$0xff]  }
 0x798   :  { %10008 = vmatpush1.bf16.msra.mxu1 %v15014_v22  ;;  %10045 = vmatpush1.bf16.msra.mxu0 %v9906_v51  ;;  %v15092_v22 = vld [vmem:[#allocation9 + $0x700] ss:$16 sps:$4 sm:$0xff]  }
 0x799   :  { %10009 = vmatprep.subr.bf16.mxu1 %v15022_v24  ;;  %10627 = vmatprep.subr.bf16.mxu0 %v15025_v63  ;;  %v15095_v51 = vld [vmem:[#allocation9 + $0x800] ss:$16 sps:$4 sm:$0xff]   ;;  %v15100_v24 = vld [vmem:[#allocation9 + $0x724] ss:$16 sps:$4 sm:$0xff]  }
 0x79a   :  { %v15101_v63 = vld [vmem:[#allocation9 + $0x824] ss:$16 sps:$4 sm:$0x7f]  }
 0x79b   :  { %12899 = vmatmul.mubr.msk.bf16.vlgmr.msra.gmra.mrb[76].mxu0 %vm9279_vm7, %v17509_v56  ;;  %v15052_v56 = vld [vmem:[#allocation9 + $0x1ac] ss:$16 sps:$4 sm:$0xff]  }
 0x79c   :  { %10010 = vmatpush1.bf16.msra.mxu1 %v15020_v61  ;;  %10628 = vmatpush1.bf16.msra.mxu0 %v15023_v59  ;;  %v15098_v61 = vld [vmem:[#allocation9 + $0x720] ss:$16 sps:$4 sm:$0xff]   ;;  %v10080_v59 = vrot.slane %v17457_v3, 4 }
 0x79d   :  { %10659 = vmatprep.mubr.bf16.mxu0 %v17526_v43  ;;  %10011 = vmatprep.subr.bf16.mxu1 %v15028_v62  ;;  %v10616_v62 = vsel %vm9283_vm5, %v15103_v20, 0  ;;  %v15167_v20 = vld [vmem:[#allocation9 + $0x880] ss:$16 sps:$4 sm:$0xff]  }
 0x79e   :  { %10629 = vmatprep.subr.bf16.mxu0 %v15031_v52  ;;  %v15106_v52 = vld [vmem:[#allocation9 + $0x744] ss:$16 sps:$4 sm:$0xff]  }
 0x7a0   :  { %10012 = vmatpush1.bf16.msra.mxu1 %v15026_v40  ;;  %10630 = vmatpush1.bf16.msra.mxu0 %v15029_v42  ;;  %v15109_v40 = vld [vmem:[#allocation9 + $0x58c] ss:$16 sps:$4 sm:$0xff]   ;;  %v15104_v42 = vld [vmem:[#allocation9 + $0x740] ss:$16 sps:$4 sm:$0xff]  }
 0x7a1   :  { %10013 = vmatprep.subr.bf16.mxu1 %v15034_v57  ;;  %10631 = vmatprep.subr.bf16.mxu0 %v15037_v49  ;;  %v15107_v57 = vld [vmem:[#allocation9 + $0x588] ss:$16 sps:$4 sm:$0xff]   ;;  %v17535_v49 = vmax.bf16 %v10080_v59, %v17457_v3  ;;  %v15175_v59 = vld [vmem:[#allocation9 + $0x8a4] ss:$16 sps:$4 sm:$0xff]  }
 0x7a2   :  { %v15116_v3 = vld [vmem:[#allocation9 + $0x5c8] ss:$16 sps:$4 sm:$0xff]  }
 0x7a4   :  { %10014 = vmatpush1.bf16.msra.mxu1 %v15032_v12  ;;  %10632 = vmatpush1.bf16.msra.mxu0 %v15035_v37  ;;  %v15112_v12 = vld [vmem:[#allocation9 + $0x764] ss:$16 sps:$4 sm:$0xff]   ;;  %v15115_v37 = vld [vmem:[#allocation9 + $0x5ac] ss:$16 sps:$4 sm:$0xff]  }
 0x7a5   :  { %10015 = vmatprep.subr.bf16.mxu1 %v15040_v18  ;;  %10633 = vmatprep.subr.bf16.mxu0 %v15043_v50  ;;  %v15110_v18 = vld [vmem:[#allocation9 + $0x760] ss:$16 sps:$4 sm:$0xff]   ;;  %v15113_v50 = vld [vmem:[#allocation9 + $0x5a8] ss:$16 sps:$4 sm:$0xff]  }
 0x7a8   :  { %10016 = vmatpush1.bf16.msra.mxu1 %v15038_v38  ;;  %10634 = vmatpush1.bf16.msra.mxu0 %v15041_v2  ;;  %v10078_v38 = vrot.slane %v17478_v8, 4  ;;  %v15118_v2 = vld [vmem:[#allocation9 + $0x5cc] ss:$16 sps:$4 sm:$0xff]  }
 0x7a9   :  { %10017 = vmatprep.subr.bf16.mxu1 %v15046_v27  ;;  %10635 = vmatprep.subr.bf16.mxu0 %v15049_v34  ;;  %v15121_v27 = vld [vmem:[#allocation9 + $0x78c] ss:$16 sps:$4 sm:$0xff]   ;;  %v15119_v34 = vld [vmem:[#allocation9 + $0x788] ss:$16 sps:$4 sm:$0xff]  }
 0x7ac   :  { %10018 = vmatpush1.bf16.msra.mxu1 %v15044_v35  ;;  %10636 = vmatpush1.bf16.msra.mxu0 %v15047_v41  ;;  %v17542_v35 = vmax.bf16 %v10078_v38, %v17478_v8  ;;  %v15124_v41 = vld [vmem:[#allocation9 + $0x5ec] ss:$16 sps:$4 sm:$0xff]   ;;  %v15128_v8 = vld [vmem:[#allocation9 + $0x608] ss:$16 sps:$4 sm:$0xff]   ;;  %v15179_v38 = vld [vmem:[#allocation9 + $0x8c0] ss:$16 sps:$4 sm:$0xff]  }
 0x7ad   :  { %10019 = vmatprep.subr.bf16.mxu1 %v15052_v56  ;;  %10637 = vmatprep.subr.bf16.mxu0 %v15055_v29  ;;  %v15127_v56 = vld [vmem:[#allocation9 + $0x7ac] ss:$16 sps:$4 sm:$0xff]   ;;  %v15125_v29 = vld [vmem:[#allocation9 + $0x7a8] ss:$16 sps:$4 sm:$0xff]  }
 0x7b0   :  { %10020 = vmatpush1.bf16.msra.mxu1 %v15050_v11  ;;  %10638 = vmatpush1.bf16.msra.mxu0 %v15053_v4  ;;  %v15130_v11 = vld [vmem:[#allocation9 + $0x60c] ss:$16 sps:$4 sm:$0xff]  }
 0x7b1   :  { %10021 = vmatprep.subr.bf16.mxu1 %v15058_v31  ;;  %10639 = vmatprep.subr.bf16.mxu0 %v15061_v17  ;;  %v15133_v4 = vld [vmem:[#allocation9 + $0x7cc] ss:$16 sps:$4 sm:$0xff]   ;;  %v15131_v31 = vld [vmem:[#allocation9 + $0x7c8] ss:$16 sps:$4 sm:$0xff]  }
 0x7b2   :  { %v15136_v17 = vld [vmem:[#allocation9 + $0x62c] ss:$16 sps:$4 sm:$0xff]  }
 0x7b4   :  { %10022 = vmatpush1.bf16.msra.mxu1 %v15056_v16  ;;  %10640 = vmatpush1.bf16.msra.mxu0 %v15059_v44  ;;  %v15139_v16 = vld [vmem:[#allocation9 + $0x7ec] ss:$16 sps:$4 sm:$0xff]   ;;  %v15134_v44 = vld [vmem:[#allocation9 + $0x628] ss:$16 sps:$4 sm:$0xff]  }
 0x7b5   :  { %10023 = vmatprep.subr.bf16.mxu1 %v15064_v47  ;;  %10641 = vmatprep.subr.bf16.mxu0 %v15067_v28  ;;  %v15137_v47 = vld [vmem:[#allocation9 + $0x7e8] ss:$16 sps:$4 sm:$0xff]   ;;  %v15142_v28 = vld [vmem:[#allocation9 + $0x64c] ss:$16 sps:$4 sm:$0xff]  }
 0x7b8   :  { %10024 = vmatpush1.bf16.msra.mxu1 %v15062_v21  ;;  %10642 = vmatpush1.bf16.msra.mxu0 %v15065_v14  ;;  %v15145_v21 = vld [vmem:[#allocation9 + $0x80c] ss:$16 sps:$4 sm:$0xff]   ;;  %v15140_v14 = vld [vmem:[#allocation9 + $0x648] ss:$16 sps:$4 sm:$0xff]  }
 0x7b9   :  { %10643 = vmatprep.subr.bf16.mxu0 %v15070_v26  ;;  %10668 = vmatprep.subr.bf16.mxu1 %v15073_v10  ;;  %v15143_v26 = vld [vmem:[#allocation9 + $0x808] ss:$16 sps:$4 sm:$0xff]   ;;  %v15148_v10 = vld [vmem:[#allocation9 + $0x66c] ss:$16 sps:$4 sm:$0xff]  }
 0x7bb   :  { %10026 = vmatmul.mubr.bf16.vlgmr.msra.gmra.mrb[76].mxu1 %v17516_v7  ;;  %v15086_v7 = vld [vmem:[#allocation9 + $0x6e0] ss:$16 sps:$4 sm:$0xff]  }
 0x7bc   :  { %10644 = vmatpush1.bf16.msra.mxu0 %v15068_v33  ;;  %10669 = vmatpush1.bf16.msra.mxu1 %v15071_v54  ;;  %v15149_v33 = vld [vmem:[#allocation9 + $0x82c] ss:$16 sps:$4 sm:$0x7f]   ;;  %v15151_v54 = vld [vmem:[#allocation9 + $0x828] ss:$16 sps:$4 sm:$0x7f]  }
 0x7bd   :  { %10645 = vmatprep.subr.bf16.mxu0 %v15076_v15  ;;  %10670 = vmatprep.subr.bf16.mxu1 %v15079_v23  ;;  %v15146_v15 = vld [vmem:[#allocation9 + $0x668] ss:$16 sps:$4 sm:$0xff]   ;;  %v10622_v23 = vsel %vm9283_vm5, %v15151_v54, 0  ;;  %v15217_v54 = vld [vmem:[#allocation9 + $0xa84] ss:$16 sps:$4 sm:$0xff]  }
 0x7be   :  { %10700 = vmatprep.mubr.bf16.mxu1 %v17677_v60 }
 0x7c0   :  { %10646 = vmatpush1.bf16.msra.mxu0 %v15074_v0  ;;  %10671 = vmatpush1.bf16.msra.mxu1 %v15077_v9  ;;  %v15154_v0 = vld [vmem:[#allocation9 + $0x68c] ss:$16 sps:$4 sm:$0xff]   ;;  %v15157_v9 = vld [vmem:[#allocation9 + $0x844] ss:$16 sps:$4 sm:$0xff]  }
 0x7c1   :  { %10647 = vmatprep.subr.bf16.mxu0 %v15082_v48  ;;  %10672 = vmatprep.subr.bf16.mxu1 %v15085_v36  ;;  %v10799_v48 = vrot.slane %v17499_v45, 4  ;;  %v15152_v36 = vld [vmem:[#allocation9 + $0x688] ss:$16 sps:$4 sm:$0xff]  }
 0x7c4   :  { %10648 = vmatpush1.bf16.msra.mxu0 %v15080_v1  ;;  %10673 = vmatpush1.bf16.msra.mxu1 %v15083_v6  ;;  %v15155_v1 = vld [vmem:[#allocation9 + $0x840] ss:$16 sps:$4 sm:$0xff]   ;;  %v15160_v6 = vld [vmem:[#allocation9 + $0x6ac] ss:$16 sps:$4 sm:$0xff]  }
 0x7c5   :  { %10649 = vmatprep.subr.bf16.mxu0 %v15088_v39  ;;  %10674 = vmatprep.subr.bf16.mxu1 %v15091_v58  ;;  %v15163_v39 = vld [vmem:[#allocation9 + $0x864] ss:$16 sps:$4 sm:$0xff]   ;;  %v17552_v58 = vmax.bf16 %v10799_v48, %v17499_v45  ;;  %v15172_v45 = vld [vmem:[#allocation9 + $0x6ec] ss:$16 sps:$4 sm:$0xff]   ;;  %v15215_v48 = vld [vmem:[#allocation9 + $0xa80] ss:$16 sps:$4 sm:$0xff]  }
 0x7c8   :  { %10650 = vmatpush1.bf16.msra.mxu0 %v15086_v7  ;;  %10675 = vmatpush1.bf16.msra.mxu1 %v15089_v32  ;;  %v15158_v7 = vld [vmem:[#allocation9 + $0x6a8] ss:$16 sps:$4 sm:$0xff]   ;;  %v15161_v32 = vld [vmem:[#allocation9 + $0x860] ss:$16 sps:$4 sm:$0xff]  }
 0x7c9   :  { %10651 = vmatprep.subr.bf16.mxu0 %v15094_v46  ;;  %10676 = vmatprep.subr.bf16.mxu1 %v15097_v19  ;;  %v15166_v46 = vld [vmem:[#allocation9 + $0x6cc] ss:$16 sps:$4 sm:$0xff]   ;;  %v15169_v19 = vld [vmem:[#allocation9 + $0x884] ss:$16 sps:$4 sm:$0xff]  }
 0x7cc   :  { %10652 = vmatpush1.bf16.msra.mxu0 %v15092_v22  ;;  %10677 = vmatpush1.bf16.msra.mxu1 %v15095_v51 }
 0x7cd   :  { %10653 = vmatprep.subr.bf16.mxu0 %v15100_v24  ;;  %12988 = vmatprep.subr.msk.bf16.mxu1 %vm9283_vm5, %v15101_v63  ;;  %v15164_v63 = vld [vmem:[#allocation9 + $0x6c8] ss:$16 sps:$4 sm:$0xff]  }
 0x7d0   :  { %10654 = vmatpush1.bf16.msra.mxu0 %v15098_v61  ;;  %10679 = vmatpush1.bf16.msra.mxu1 %v10616_v62  ;;  %v15170_v62 = vld [vmem:[#allocation9 + $0x6e8] ss:$16 sps:$4 sm:$0xff]  }
 0x7d1   :  { %10655 = vmatprep.subr.bf16.mxu0 %v15106_v52  ;;  %10709 = vmatprep.subr.bf16.mxu1 %v15109_v40  ;;  %v15173_v52 = vld [vmem:[#allocation9 + $0x8a0] ss:$16 sps:$4 sm:$0xff]   ;;  %v15178_v40 = vld [vmem:[#allocation9 + $0x70c] ss:$16 sps:$4 sm:$0xff]  }
 0x7d3   :  { %12989 = vmatmul.mubr.msk.bf16.vlgmr.msra.gmra.mrb[80].mxu1 %vm9279_vm7, %v17535_v49 }
 0x7d4   :  { %10656 = vmatpush1.bf16.msra.mxu0 %v15104_v42  ;;  %10710 = vmatpush1.bf16.msra.mxu1 %v15107_v57  ;;  %v15181_v42 = vld [vmem:[#allocation9 + $0x8c4] ss:$16 sps:$4 sm:$0xff]  }
 0x7d5   :  { %10741 = vmatprep.mubr.bf16.mxu1 %v17526_v43  ;;  %10657 = vmatprep.subr.bf16.mxu0 %v15112_v12  ;;  %v15122_v43 = vld [vmem:[#allocation9 + $0x5e8] ss:$16 sps:$4 sm:$0xff]  }
 0x7d6   :  { %10711 = vmatprep.subr.bf16.mxu1 %v15115_v37 }
 0x7d8   :  { %10658 = vmatpush1.bf16.msra.mxu0 %v15110_v18  ;;  %10712 = vmatpush1.bf16.msra.mxu1 %v15113_v50  ;;  %v15176_v50 = vld [vmem:[#allocation9 + $0x708] ss:$16 sps:$4 sm:$0xff]  }
 0x7d9   :  { %10713 = vmatprep.subr.bf16.mxu1 %v15118_v2  ;;  %10750 = vmatprep.subr.bf16.mxu0 %v15121_v27  ;;  %v15184_v27 = vld [vmem:[#allocation9 + $0x72c] ss:$16 sps:$4 sm:$0xff]  }
 0x7db   :  { %10660 = vmatmul.mubr.bf16.vlgmr.msra.gmra.mrb[80].mxu0 %v17542_v35 }
 0x7dc   :  { %10714 = vmatpush1.bf16.msra.mxu1 %v15116_v3  ;;  %10751 = vmatpush1.bf16.msra.mxu0 %v15119_v34  ;;  %v15187_v3 = vld [vmem:[#allocation9 + $0x8e4] ss:$16 sps:$4 sm:$0xff]   ;;  %v15182_v34 = vld [vmem:[#allocation9 + $0x728] ss:$16 sps:$4 sm:$0xff]  }
 0x7dd   :  { %10715 = vmatprep.subr.bf16.mxu1 %v15124_v41  ;;  %10752 = vmatprep.subr.bf16.mxu0 %v15127_v56  ;;  %v15185_v41 = vld [vmem:[#allocation9 + $0x8e0] ss:$16 sps:$4 sm:$0xff]   ;;  %v15190_v56 = vld [vmem:[#allocation9 + $0x74c] ss:$16 sps:$4 sm:$0xff]  }
 0x7de   :  { %10782 = vmatprep.mubr.bf16.mxu0 %v17677_v60 }
 0x7e0   :  { %10716 = vmatpush1.bf16.msra.mxu1 %v15122_v43  ;;  %10753 = vmatpush1.bf16.msra.mxu0 %v15125_v29  ;;  %v15193_v43 = vld [vmem:[#allocation9 + $0x904] ss:$16 sps:$4 sm:$0xff]   ;;  %v15188_v29 = vld [vmem:[#allocation9 + $0x748] ss:$16 sps:$4 sm:$0xff]  }
 0x7e1   :  { %10717 = vmatprep.subr.bf16.mxu1 %v15130_v11  ;;  %10754 = vmatprep.subr.bf16.mxu0 %v15133_v4  ;;  %v15191_v11 = vld [vmem:[#allocation9 + $0x900] ss:$16 sps:$4 sm:$0xff]   ;;  %v15196_v4 = vld [vmem:[#allocation9 + $0x76c] ss:$16 sps:$4 sm:$0xff]  }
 0x7e4   :  { %10718 = vmatpush1.bf16.msra.mxu1 %v15128_v8  ;;  %10755 = vmatpush1.bf16.msra.mxu0 %v15131_v31  ;;  %v15199_v8 = vld [vmem:[#allocation9 + $0x924] ss:$16 sps:$4 sm:$0xff]   ;;  %v15194_v31 = vld [vmem:[#allocation9 + $0x768] ss:$16 sps:$4 sm:$0xff]  }
 0x7e5   :  { %10719 = vmatprep.subr.bf16.mxu1 %v15136_v17  ;;  %10756 = vmatprep.subr.bf16.mxu0 %v15139_v16  ;;  %v15197_v17 = vld [vmem:[#allocation9 + $0x920] ss:$16 sps:$4 sm:$0xff]   ;;  %v15202_v16 = vld [vmem:[#allocation9 + $0x944] ss:$16 sps:$4 sm:$0xff]  }
 0x7e8   :  { %10720 = vmatpush1.bf16.msra.mxu1 %v15134_v44  ;;  %10757 = vmatpush1.bf16.msra.mxu0 %v15137_v47  ;;  %v15205_v44 = vld [vmem:[#allocation9 + $0xa44] ss:$16 sps:$4 sm:$0xff]   ;;  %v15200_v47 = vld [vmem:[#allocation9 + $0x940] ss:$16 sps:$4 sm:$0xff]  }
 0x7e9   :  { %10721 = vmatprep.subr.bf16.mxu1 %v15142_v28  ;;  %10758 = vmatprep.subr.bf16.mxu0 %v15145_v21  ;;  %v15203_v28 = vld [vmem:[#allocation9 + $0xa40] ss:$16 sps:$4 sm:$0xff]   ;;  %v15208_v21 = vld [vmem:[#allocation9 + $0x964] ss:$16 sps:$4 sm:$0xff]  }
 0x7ec   :  { %10722 = vmatpush1.bf16.msra.mxu1 %v15140_v14  ;;  %10759 = vmatpush1.bf16.msra.mxu0 %v15143_v26  ;;  %v15211_v14 = vld [vmem:[#allocation9 + $0xa64] ss:$16 sps:$4 sm:$0xff]   ;;  %v15206_v26 = vld [vmem:[#allocation9 + $0x960] ss:$16 sps:$4 sm:$0xff]  }
 0x7ed   :  { %10723 = vmatprep.subr.bf16.mxu1 %v15148_v10  ;;  %12990 = vmatprep.subr.msk.bf16.mxu0 %vm9283_vm5, %v15149_v33  ;;  %v15209_v10 = vld [vmem:[#allocation9 + $0xa60] ss:$16 sps:$4 sm:$0xff]   ;;  %v15214_v33 = vld [vmem:[#allocation9 + $0x984] ss:$16 sps:$4 sm:$0xff]  }
 0x7f0   :  { %10724 = vmatpush1.bf16.msra.mxu1 %v15146_v15  ;;  %10761 = vmatpush1.bf16.msra.mxu0 %v10622_v23 }
 0x7f1   :  { %10725 = vmatprep.subr.bf16.mxu1 %v15154_v0  ;;  %11347 = vmatprep.subr.bf16.mxu0 %v15157_v9  ;;  %v15212_v9 = vld [vmem:[#allocation9 + $0x980] ss:$16 sps:$4 sm:$0xff]  }
 0x7f3   :  { %12991 = vmatmul.mubr.msk.bf16.vlgmr.msra.gmra.mrb[84].mxu0 %vm9279_vm7, %v17535_v49 }
 0x7f4   :  { %10726 = vmatpush1.bf16.msra.mxu1 %v15152_v36  ;;  %11348 = vmatpush1.bf16.msra.mxu0 %v15155_v1  ;;  %v15220_v36 = vld [vmem:[#allocation9 + $0x9a4] ss:$16 sps:$4 sm:$0xff]  }
 0x7f5   :  { %11379 = vmatprep.mubr.bf16.mxu0 %v17552_v58  ;;  %10727 = vmatprep.subr.bf16.mxu1 %v15160_v6  ;;  %v15223_v1 = vld [vmem:[#allocation9 + $0xaa4] ss:$16 sps:$4 sm:$0xff]   ;;  %v15218_v6 = vld [vmem:[#allocation9 + $0x9a0] ss:$16 sps:$4 sm:$0xff]  }
 0x7f6   :  { %v9371_v22 = vpop.f32.mrb[64].mxu1  ;;  %11349 = vmatprep.subr.bf16.mxu0 %v15163_v39  ;;  %v15221_v39 = vld [vmem:[#allocation9 + $0xaa0] ss:$16 sps:$4 sm:$0xff]  }
 0x7f7   :  { %v9373_v51 = vpop.f32.mrb[65].mxu1 }
 0x7f8   :  { %10728 = vmatpush1.bf16.msra.mxu1 %v15158_v7  ;;  %11350 = vmatpush1.bf16.msra.mxu0 %v15161_v32  ;;  %v9375_v24 = vpop.f32.mrb[66].mxu1  ;;  %v15226_v7 = vld [vmem:[#allocation9 + $0x9c4] ss:$16 sps:$4 sm:$0xff]  }
 0x7f9   :  { %v9376_v61 = vpop.f32.mrb[67].mxu1  ;;  %10729 = vmatprep.subr.bf16.mxu1 %v15166_v46  ;;  %11351 = vmatprep.subr.bf16.mxu0 %v15169_v19  ;;  %v15229_v32 = vld [vmem:[#allocation9 + $0xac4] ss:$16 sps:$4 sm:$0xff]   ;;  %v15224_v46 = vld [vmem:[#allocation9 + $0x9c0] ss:$16 sps:$4 sm:$0xff]  }
 0x7fa   :  { %v15227_v19 = vld [vmem:[#allocation9 + $0xac0] ss:$16 sps:$4 sm:$0xff]  }
 0x7fb   :  { %v15235_v24 = vld [vmem:[#allocation9 + $0xae0] ss:$16 sps:$4 sm:$0x7f]  }
 0x7fc   :  { %10730 = vmatpush1.bf16.msra.mxu1 %v15164_v63  ;;  %11352 = vmatpush1.bf16.msra.mxu0 %v15167_v20  ;;  %v15230_v63 = vld [vmem:[#allocation9 + $0x9e0] ss:$16 sps:$4 sm:$0xff]   ;;  %v10800_v20 = vrot.slane %v17490_v53, 4  ;;  %v11336_v61 = vsel %vm9283_vm5, %v15235_v24, 0  ;;  %v15298_v24 = vld [vmem:[#allocation9 + $0x9cc] ss:$16 sps:$4 sm:$0xff]  }
 0x7fd   :  { %10731 = vmatprep.subr.bf16.mxu1 %v15172_v45  ;;  %11353 = vmatprep.subr.bf16.mxu0 %v15175_v59  ;;  %v15238_v45 = vld [vmem:[#allocation9 + $0xa04] ss:$16 sps:$4 sm:$0xff]   ;;  %v15241_v59 = vld [vmem:[#allocation9 + $0x84c] ss:$16 sps:$4 sm:$0xff]  }
 0x7fe   :  { %v9330_v57 = vpop.f32.mrb[64].mxu0 }
 0x7ff   :  { %v17555_v49 = vadd.f32 %v9371_v22, %v9330_v57  ;;  %v9332_v12 = vpop.f32.mrb[65].mxu0  ;;  %v15232_v22 = vld [vmem:[#allocation9 + $0x9e4] ss:$16 sps:$4 sm:$0xff]   ;;  %v15247_v57 = vld [vmem:[#allocation9 + $0x86c] ss:$16 sps:$4 sm:$0xff]  }
 0x800   :  { %v17557_v37 = vadd.f32 %v9373_v51, %v9332_v12  ;;  %10732 = vmatpush1.bf16.msra.mxu1 %v15170_v62  ;;  %11354 = vmatpush1.bf16.msra.mxu0 %v15173_v52  ;;  %v9334_v18 = vpop.f32.mrb[66].mxu0  ;;  %v15233_v51 = vld [vmem:[#allocation9 + $0xae4] ss:$16 sps:$4 sm:$0x7f]   ;;  %v15236_v62 = vld [vmem:[#allocation9 + $0xa00] ss:$16 sps:$4 sm:$0xff]  }
 0x801   :  { %v9335_v2 = vpop.f32.mrb[67].mxu0  ;;  %10733 = vmatprep.subr.bf16.mxu1 %v15178_v40  ;;  %11355 = vmatprep.subr.bf16.mxu0 %v15181_v42  ;;  %v15239_v52 = vld [vmem:[#allocation9 + $0x848] ss:$16 sps:$4 sm:$0xff]   ;;  %v17569_v40 = vmax.bf16 %v10800_v20, %v17490_v53  ;;  %v15244_v42 = vld [vmem:[#allocation9 + $0xa24] ss:$16 sps:$4 sm:$0xff]  }
 0x802   :  { %v15242_v12 = vld [vmem:[#allocation9 + $0xa20] ss:$16 sps:$4 sm:$0xff]   ;;  %v15245_v18 = vld [vmem:[#allocation9 + $0x868] ss:$16 sps:$4 sm:$0xff]   ;;  %v15253_v2 = vld [vmem:[#allocation9 + $0xa4c] ss:$16 sps:$4 sm:$0xff]  }
 0x803   :  { %v15248_v53 = vld [vmem:[#allocation9 + $0x888] ss:$16 sps:$4 sm:$0xff]  }
 0x804   :  { %10734 = vmatpush1.bf16.msra.mxu1 %v15176_v50  ;;  %11356 = vmatpush1.bf16.msra.mxu0 %v15179_v38  ;;  %v10798_v50 = vrot.slane %v17501_v5, 4  ;;  %v15250_v38 = vld [vmem:[#allocation9 + $0x88c] ss:$16 sps:$4 sm:$0xff]  }
 0x805   :  { %10735 = vmatprep.subr.bf16.mxu1 %v15184_v27  ;;  %11357 = vmatprep.subr.bf16.mxu0 %v15187_v3  ;;  %v15251_v27 = vld [vmem:[#allocation9 + $0xa48] ss:$16 sps:$4 sm:$0xff]  }
 0x806   :  { %v17576_v3 = vmax.bf16 %v10798_v50, %v17501_v5  ;;  %v15302_v50 = vld [vmem:[#allocation9 + $0xa08] ss:$16 sps:$4 sm:$0xff]  }
 0x808   :  { %10736 = vmatpush1.bf16.msra.mxu1 %v15182_v34  ;;  %11358 = vmatpush1.bf16.msra.mxu0 %v15185_v41  ;;  %v15256_v34 = vld [vmem:[#allocation9 + $0x8ac] ss:$16 sps:$4 sm:$0xff]  }
 0x809   :  { %10737 = vmatprep.subr.bf16.mxu1 %v15190_v56  ;;  %11359 = vmatprep.subr.bf16.mxu0 %v15193_v43  ;;  %v15259_v41 = vld [vmem:[#allocation9 + $0xa6c] ss:$16 sps:$4 sm:$0xff]   ;;  %v15257_v56 = vld [vmem:[#allocation9 + $0xa68] ss:$16 sps:$4 sm:$0xff]  }
 0x80a   :  { %v15262_v43 = vld [vmem:[#allocation9 + $0x8cc] ss:$16 sps:$4 sm:$0xff]  }
 0x80c   :  { %10738 = vmatpush1.bf16.msra.mxu1 %v15188_v29  ;;  %11360 = vmatpush1.bf16.msra.mxu0 %v15191_v11  ;;  %v15265_v29 = vld [vmem:[#allocation9 + $0xa8c] ss:$16 sps:$4 sm:$0xff]  }
 0x80d   :  { %10739 = vmatprep.subr.bf16.mxu1 %v15196_v4  ;;  %11361 = vmatprep.subr.bf16.mxu0 %v15199_v8 }
 0x810   :  { %10740 = vmatpush1.bf16.msra.mxu1 %v15194_v31  ;;  %11362 = vmatpush1.bf16.msra.mxu0 %v15197_v17  ;;  %v15260_v17 = vld [vmem:[#allocation9 + $0x8c8] ss:$16 sps:$4 sm:$0xff]  }
 0x811   :  { %11363 = vmatprep.subr.bf16.mxu0 %v15202_v16  ;;  %11388 = vmatprep.subr.bf16.mxu1 %v15205_v44  ;;  %v15263_v16 = vld [vmem:[#allocation9 + $0xa88] ss:$16 sps:$4 sm:$0xff]  }
 0x813   :  { %10742 = vmatmul.mubr.bf16.vlgmr.msra.gmra.mrb[84].mxu1 %v17542_v35 }
 0x814   :  { %11364 = vmatpush1.bf16.msra.mxu0 %v15200_v47  ;;  %11389 = vmatpush1.bf16.msra.mxu1 %v15203_v28  ;;  %v15268_v47 = vld [vmem:[#allocation9 + $0x8ec] ss:$16 sps:$4 sm:$0xff]  }
 0x815   :  { %11365 = vmatprep.subr.bf16.mxu0 %v15208_v21  ;;  %11390 = vmatprep.subr.bf16.mxu1 %v15211_v14  ;;  %v15271_v28 = vld [vmem:[#allocation9 + $0xaac] ss:$16 sps:$4 sm:$0xff]   ;;  %v15269_v21 = vld [vmem:[#allocation9 + $0xaa8] ss:$16 sps:$4 sm:$0xff]  }
 0x816   :  { %v17560_v15 = vpop.f32.mrb[68].mxu0  ;;  %11420 = vmatprep.mubr.bf16.mxu1 %v17677_v60  ;;  %v15274_v14 = vld [vmem:[#allocation9 + $0x90c] ss:$16 sps:$4 sm:$0xff]  }
 0x817   :  { %v17563_v23 = vpop.f32.mrb[69].mxu0 }
 0x818   :  { %v9457_v0 = vpop.f32.mrb[70].mxu0  ;;  %11366 = vmatpush1.bf16.msra.mxu0 %v15206_v26  ;;  %11391 = vmatpush1.bf16.msra.mxu1 %v15209_v10  ;;  %v15277_v26 = vld [vmem:[#allocation9 + $0xacc] ss:$16 sps:$4 sm:$0xff]   ;;  %v15272_v10 = vld [vmem:[#allocation9 + $0x908] ss:$16 sps:$4 sm:$0xff]  }
 0x819   :  { %v9458_v35 = vpop.f32.mrb[71].mxu0  ;;  %11367 = vmatprep.subr.bf16.mxu0 %v15214_v33  ;;  %11392 = vmatprep.subr.bf16.mxu1 %v15217_v54  ;;  %v15275_v33 = vld [vmem:[#allocation9 + $0xac8] ss:$16 sps:$4 sm:$0xff]   ;;  %v15280_v54 = vld [vmem:[#allocation9 + $0x92c] ss:$16 sps:$4 sm:$0xff]  }
 0x81a   :  { %v15278_v0 = vld [vmem:[#allocation9 + $0x928] ss:$16 sps:$4 sm:$0xff]  }
 0x81b   :  { %v15284_v35 = vld [vmem:[#allocation9 + $0x948] ss:$16 sps:$4 sm:$0xff]  }
 0x81c   :  { %11368 = vmatpush1.bf16.msra.mxu0 %v15212_v9  ;;  %11393 = vmatpush1.bf16.msra.mxu1 %v15215_v48  ;;  %v15286_v48 = vld [vmem:[#allocation9 + $0x94c] ss:$16 sps:$4 sm:$0xff]  }
 0x81d   :  { %11369 = vmatprep.subr.bf16.mxu0 %v15220_v36  ;;  %11394 = vmatprep.subr.bf16.mxu1 %v15223_v1  ;;  %v15289_v36 = vld [vmem:[#allocation9 + $0x96c] ss:$16 sps:$4 sm:$0xff]   ;;  %v15287_v1 = vld [vmem:[#allocation9 + $0x968] ss:$16 sps:$4 sm:$0xff]  }
 0x820   :  { %11370 = vmatpush1.bf16.msra.mxu0 %v15218_v6  ;;  %11395 = vmatpush1.bf16.msra.mxu1 %v15221_v39  ;;  %v15292_v6 = vld [vmem:[#allocation9 + $0x98c] ss:$16 sps:$4 sm:$0xff]  }
 0x821   :  { %11371 = vmatprep.subr.bf16.mxu0 %v15226_v7  ;;  %11396 = vmatprep.subr.bf16.mxu1 %v15229_v32 }
 0x824   :  { %11372 = vmatpush1.bf16.msra.mxu0 %v15224_v46  ;;  %11397 = vmatpush1.bf16.msra.mxu1 %v15227_v19  ;;  %v15290_v46 = vld [vmem:[#allocation9 + $0x988] ss:$16 sps:$4 sm:$0xff]  }
 0x825   :  { %11373 = vmatprep.subr.bf16.mxu0 %v15232_v22  ;;  %13080 = vmatprep.subr.msk.bf16.mxu1 %vm9283_vm5, %v15233_v51  ;;  %v15295_v22 = vld [vmem:[#allocation9 + $0x9ac] ss:$16 sps:$4 sm:$0xff]   ;;  %v15293_v51 = vld [vmem:[#allocation9 + $0x9a8] ss:$16 sps:$4 sm:$0xff]  }
 0x828   :  { %11374 = vmatpush1.bf16.msra.mxu0 %v15230_v63  ;;  %11399 = vmatpush1.bf16.msra.mxu1 %v11336_v61 }
 0x829   :  { %11375 = vmatprep.subr.bf16.mxu0 %v15238_v45  ;;  %11429 = vmatprep.subr.bf16.mxu1 %v15241_v59 }
 0x82b   :  { %13081 = vmatmul.mubr.msk.bf16.vlgmr.msra.gmra.mrb[88].mxu1 %vm9279_vm7, %v17569_v40 }
 0x82c   :  { %11376 = vmatpush1.bf16.msra.mxu0 %v15236_v62  ;;  %11430 = vmatpush1.bf16.msra.mxu1 %v15239_v52  ;;  %v15296_v62 = vld [vmem:[#allocation9 + $0x9c8] ss:$16 sps:$4 sm:$0xff]  }
 0x82d   :  { %11461 = vmatprep.mubr.bf16.mxu1 %v17552_v58  ;;  %11377 = vmatprep.subr.bf16.mxu0 %v15244_v42  ;;  %v15254_v58 = vld [vmem:[#allocation9 + $0x8a8] ss:$16 sps:$4 sm:$0xff]   ;;  %v15301_v42 = vld [vmem:[#allocation9 + $0x9ec] ss:$16 sps:$4 sm:$0xff]  }
 0x82e   :  { %11431 = vmatprep.subr.bf16.mxu1 %v15247_v57 }
 0x830   :  { %11378 = vmatpush1.bf16.msra.mxu0 %v15242_v12  ;;  %11432 = vmatpush1.bf16.msra.mxu1 %v15245_v18  ;;  %v15299_v12 = vld [vmem:[#allocation9 + $0x9e8] ss:$16 sps:$4 sm:$0xff]   ;;  %v15304_v18 = vld [vmem:[#allocation9 + $0xa0c] ss:$16 sps:$4 sm:$0xff]  }
 0x831   :  { %11433 = vmatprep.subr.bf16.mxu1 %v15250_v38  ;;  %11470 = vmatprep.subr.bf16.mxu0 %v15253_v2  ;;  %v15308_v38 = vld [vmem:[#allocation12 + $0x40] sm:$0xff]  }
 0x832   :  { %v15309_v2 = vld [vmem:[#allocation12] sm:$0xff]  }
 0x833   :  { %11380 = vmatmul.mubr.bf16.vlgmr.msra.gmra.mrb[88].mxu0 %v17576_v3 }
 0x834   :  { %11434 = vmatpush1.bf16.msra.mxu1 %v15248_v53  ;;  %11471 = vmatpush1.bf16.msra.mxu0 %v15251_v27  ;;  %v15310_v53 = vld [vmem:[#allocation12 + $0x48] sm:$0xff]  }
 0x835   :  { %11435 = vmatprep.subr.bf16.mxu1 %v15256_v34  ;;  %11472 = vmatprep.subr.bf16.mxu0 %v15259_v41  ;;  %v15311_v27 = vld [vmem:[#allocation12 + $0x8] sm:$0xff]   ;;  %v15312_v41 = vld [vmem:[#allocation12 + $0x50] sm:$0xff]  }
 0x836   :  { %v9412_v11 = vpop.f32.mrb[68].mxu1  ;;  %11502 = vmatprep.mubr.bf16.mxu0 %v17677_v60  ;;  %v15266_v60 = vld [vmem:[#allocation9 + $0x8e8] ss:$16 sps:$4 sm:$0xff]  }
 0x837   :  { %v17581_v5 = vadd.f32 %v17560_v15, %v9412_v11  ;;  %v9414_v4 = vpop.f32.mrb[69].mxu1  ;;  %v15281_v15 = vld [vmem:[#allocation9 + $0xaec] ss:$16 sps:$4 sm:$0x7f]  }
 0x838   :  { %v17584_v8 = vadd.f32 %v17563_v23, %v9414_v4  ;;  %v9416_v31 = vpop.f32.mrb[70].mxu1  ;;  %11436 = vmatpush1.bf16.msra.mxu1 %v15254_v58  ;;  %11473 = vmatpush1.bf16.msra.mxu0 %v15257_v56  ;;  %v15283_v23 = vld [vmem:[#allocation9 + $0xae8] ss:$16 sps:$4 sm:$0x7f]   ;;  %v15314_v11 = vld [vmem:[#allocation12 + $0x58] sm:$0xff]  }
 0x839   :  { %v9417_v44 = vpop.f32.mrb[71].mxu1  ;;  %11437 = vmatprep.subr.bf16.mxu1 %v15262_v43  ;;  %11474 = vmatprep.subr.bf16.mxu0 %v15265_v29  ;;  %v11342_v9 = vsel %vm9283_vm5, %v15283_v23, 0  ;;  %v15313_v29 = vld [vmem:[#allocation12 + $0x10] sm:$0xff]   ;;  %v15315_v4 = vld [vmem:[#allocation12 + $0x18] sm:$0xff]   ;;  %v15316_v31 = vld [vmem:[#allocation12 + $0x60] sm:$0xff]  }
 0x83a   :  { %v15320_v44 = vld [vmem:[#allocation12 + $0x70] sm:$0xff]  }
 0x83c   :  { %11438 = vmatpush1.bf16.msra.mxu1 %v15260_v17  ;;  %11475 = vmatpush1.bf16.msra.mxu0 %v15263_v16  ;;  %v15317_v17 = vld [vmem:[#allocation12 + $0x20] sm:$0xff]   ;;  %v15319_v16 = vld [vmem:[#allocation12 + $0x28] sm:$0xff]  }
 0x83d   :  { %11439 = vmatprep.subr.bf16.mxu1 %v15268_v47  ;;  %11476 = vmatprep.subr.bf16.mxu0 %v15271_v28  ;;  %v15321_v47 = vld [vmem:[#allocation12 + $0x30] sm:$0xff]  }
 0x840   :  { %11440 = vmatpush1.bf16.msra.mxu1 %v15266_v60  ;;  %11477 = vmatpush1.bf16.msra.mxu0 %v15269_v21  ;;  %v15322_v60 = vld [vmem:[#allocation12 + $0x78] sm:$0xff]  }
 0x841   :  { %11441 = vmatprep.subr.bf16.mxu1 %v15274_v14  ;;  %11478 = vmatprep.subr.bf16.mxu0 %v15277_v26  ;;  %v15323_v26 = vld [vmem:[#allocation12 + $0x38] sm:$0xff]  }
 0x844   :  { %11442 = vmatpush1.bf16.msra.mxu1 %v15272_v10  ;;  %11479 = vmatpush1.bf16.msra.mxu0 %v15275_v33 }
 0x845   :  { %11443 = vmatprep.subr.bf16.mxu1 %v15280_v54  ;;  %13082 = vmatprep.subr.msk.bf16.mxu0 %vm9283_vm5, %v15281_v15 }
 0x848   :  { %11444 = vmatpush1.bf16.msra.mxu1 %v15278_v0  ;;  %11481 = vmatpush1.bf16.msra.mxu0 %v11342_v9  ;;  %v15324_v0 = vld [vmem:[#allocation12 + $0xc0] sm:$0xff]  }
 0x849   :  { %11445 = vmatprep.subr.bf16.mxu1 %v15286_v48  ;;  %13118 = vmatprep.subr.bf16.mxu0 %v15308_v38  ;;  %v15325_v9 = vld [vmem:[#allocation12 + $0x80] sm:$0xff]   ;;  %v15326_v48 = vld [vmem:[#allocation12 + $0xc8] sm:$0xff]  }
 0x84b   :  { %13083 = vmatmul.mubr.msk.bf16.vlgmr.msra.gmra.mrb[92].mxu0 %vm9279_vm7, %v17569_v40 }
 0x84c   :  { %11446 = vmatpush1.bf16.msra.mxu1 %v15284_v35  ;;  %13119 = vmatpush3.bf16.msra.mxu0 %v15309_v2  ;;  %v15327_v35 = vld [vmem:[#allocation12 + $0x88] sm:$0xff]  }
 0x84d   :  { %11447 = vmatprep.subr.bf16.mxu1 %v15289_v36  ;;  %13120 = vmatprep.subr.bf16.mxu0 %v15310_v53  ;;  %v15328_v36 = vld [vmem:[#allocation12 + $0xd0] sm:$0xff]  }
 0x84e   :  { %v9986_v39 = vpop.f32.mrb[72].mxu1 }
 0x84f   :  { %v9988_v7 = vpop.f32.mrb[73].mxu1 }
 0x850   :  { %v9990_v32 = vpop.f32.mrb[74].mxu1  ;;  %11448 = vmatpush1.bf16.msra.mxu1 %v15287_v1  ;;  %13121 = vmatpush3.bf16.msra.mxu0 %v15311_v27 }
 0x851   :  { %v9991_v19 = vpop.f32.mrb[75].mxu1  ;;  %11449 = vmatprep.subr.bf16.mxu1 %v15292_v6  ;;  %13122 = vmatprep.subr.bf16.mxu0 %v15312_v41  ;;  %v15331_v32 = vld [vmem:[#allocation12 + $0x98] sm:$0xff]  }
 0x854   :  { %11450 = vmatpush1.bf16.msra.mxu1 %v15290_v46  ;;  %13123 = vmatpush3.bf16.msra.mxu0 %v15313_v29  ;;  %v15332_v46 = vld [vmem:[#allocation12 + $0xe0] sm:$0xff]  }
 0x855   :  { %11451 = vmatprep.subr.bf16.mxu1 %v15295_v22  ;;  %13124 = vmatprep.subr.bf16.mxu0 %v15314_v11 }
 0x856   :  { %v9945_v63 = vpop.f32.mrb[72].mxu0 }
 0x857   :  { %v9946_v20 = vadd.f32 %v9945_v63, %v17555_v49  ;;  %v9947_v61 = vpop.f32.mrb[73].mxu0  ;;  %v15307_v49 = vld [vmem:[#allocation9 + $0xa2c] ss:$16 sps:$4 sm:$0xff]  }
 0x858   :  { %v9948_v45 = vadd.f32 %v9947_v61, %v17557_v37  ;;  %v9949_v59 = vpop.f32.mrb[74].mxu0  ;;  %11452 = vmatpush1.bf16.msra.mxu1 %v15293_v51  ;;  %v15305_v37 = vld [vmem:[#allocation9 + $0xa28] ss:$16 sps:$4 sm:$0xff]   ;;  %13125 = vmatpush3.bf16.msra.mxu0 %v15315_v4 }
 0x859   :  { %v17592_v52 = vadd.f32 %v9986_v39, %v9946_v20  ;;  %v9950_v40 = vpop.f32.mrb[75].mxu0  ;;  %11453 = vmatprep.subr.bf16.mxu1 %v15298_v24  ;;  %13126 = vmatprep.subr.bf16.mxu0 %v15316_v31  ;;  %v15329_v39 = vld [vmem:[#allocation12 + $0x90] sm:$0xff]   ;;  %v15333_v20 = vld [vmem:[#allocation12 + $0xa0] sm:$0xff]   ;;  %v11515_v31 = vld [vmem:[#allocation10] sm:$0xf] }
 0x85a   :  { %v17594_v57 = vadd.f32 %v9988_v7, %v9948_v45  ;;  %v15330_v7 = vld [vmem:[#allocation12 + $0xd8] sm:$0xff]   ;;  %v15335_v40 = vld [vmem:[#allocation12 + $0xa8] sm:$0xff]  }
 0x85c   :  { %11454 = vmatpush1.bf16.msra.mxu1 %v15296_v62  ;;  %13127 = vmatpush3.bf16.msra.mxu0 %v15317_v17  ;;  %v15334_v62 = vld [vmem:[#allocation12 + $0xe8] sm:$0xff]  }
 0x85d   :  { %11455 = vmatprep.subr.bf16.mxu1 %v15301_v42  ;;  %v15336_v42 = vld [vmem:[#allocation12 + $0xf0] sm:$0xff]  }
 0x860   :  { %11456 = vmatpush1.bf16.msra.mxu1 %v15299_v12  ;;  %v15337_v12 = vld [vmem:[#allocation12 + $0xb0] sm:$0xff]  }
 0x861   :  { %11457 = vmatprep.subr.bf16.mxu1 %v15304_v18 }
 0x864   :  { %11458 = vmatpush1.bf16.msra.mxu1 %v15302_v50  ;;  %v15338_v50 = vld [vmem:[#allocation12 + $0xf8] ss:$0 sps:$4 sm:$0x33]  }
 0x865   :  { %11459 = vmatprep.subr.bf16.mxu1 %v15307_v49 }
 0x868   :  { %11460 = vmatpush1.bf16.msra.mxu1 %v15305_v37  ;;  %v15339_v37 = vld [vmem:[#allocation12 + $0xb8] sm:$0xff]  }
 0x869   :  { %13140 = vmatprep.subr.bf16.mxu1 %v15324_v0 }
 0x86b   :  { %11462 = vmatmul.mubr.bf16.vlgmr.msra.gmra.mrb[92].mxu1 %v17576_v3  ;;  %v15318_v3 = vld [vmem:[#allocation12 + $0x68] sm:$0xff]  }
 0x86c   :  { %13128 = vmatprep.subr.bf16.mxu0 %v15318_v3  ;;  %13141 = vmatpush3.bf16.msra.mxu1 %v15325_v9 }
 0x86d   :  { %13129 = vmatpush3.bf16.msra.mxu0 %v15319_v16  ;;  %13142 = vmatprep.subr.bf16.mxu1 %v15326_v48  ;;  %v11520_v16 = vrot.slane %v11515_v31, %v17680_v25 }
 0x86e   :  { %v10068_v34 = vpop.f32.mrb[76].mxu0  ;;  %13130 = vmatprep.subr.bf16.mxu0 %v15320_v44 }
 0x86f   :  { %v10070_v58 = vpop.f32.mrb[77].mxu0 }
 0x870   :  { %v10072_v56 = vpop.f32.mrb[78].mxu0  ;;  %13143 = vmatpush3.bf16.msra.mxu1 %v15327_v35 }
 0x871   :  { %v10073_v43 = vpop.f32.mrb[79].mxu0  ;;  %13131 = vmatpush3.bf16.msra.mxu0 %v15321_v47  ;;  %13144 = vmatprep.subr.bf16.mxu1 %v15328_v36 }
 0x872   :  { %13132 = vmatprep.subr.bf16.mxu0 %v15322_v60 }
 0x874   :  { %13145 = vmatpush3.bf16.msra.mxu1 %v15329_v39  ;;  %v17681_v39 = vsub.s32 3, %v16677_v13  ;;  %v13084_v13 = vld [vmem:[#allocation13] ss:$0 sm:$0xff] }
 0x875   :  { %13133 = vmatpush3.bf16.msra.mxu0 %v15323_v26  ;;  %13146 = vmatprep.subr.bf16.mxu1 %v15330_v7 }
 0x878   :  { %13147 = vmatpush3.bf16.msra.mxu1 %v15331_v32 }
 0x879   :  { %13148 = vmatprep.subr.bf16.mxu1 %v15332_v46 }
 0x87c   :  { %13149 = vmatpush3.bf16.msra.mxu1 %v15333_v20 }
 0x87d   :  { %13150 = vmatprep.subr.bf16.mxu1 %v15334_v62 }
 0x880   :  { %13151 = vmatpush3.bf16.msra.mxu1 %v15335_v40 }
 0x881   :  { %13152 = vmatprep.subr.bf16.mxu1 %v15336_v42 }
 0x884   :  { %13153 = vmatpush3.bf16.msra.mxu1 %v15337_v12 }
 0x885   :  { %13834 = vmatprep.subr.msk.bf16.mxu1 %vm11812_vm8, %v15338_v50 }
 0x888   :  { %13155 = vmatpush3.bf16.msra.mxu1 %v15339_v37 }
 0x88e   :  { %v10027_v28 = vpop.f32.mrb[76].mxu1 }
 0x88f   :  { %v10028_v21 = vadd.f32 %v10027_v28, %v17581_v5  ;;  %v10029_v14 = vpop.f32.mrb[77].mxu1  ;;  %v11524_v28 = vrot.slane %v11515_v31, %v17679_v55  ;;  %v11528_v55 = vrot.slane %v11515_v31, %v17678_v30 }
 0x890   :  { %v10030_v10 = vadd.f32 %v10029_v14, %v17584_v8  ;;  %v10031_v33 = vpop.f32.mrb[78].mxu1 }
 0x891   :  { %v10069_v54 = vadd.f32 %v10068_v34, %v10028_v21  ;;  %v10032_v15 = vpop.f32.mrb[79].mxu1 }
 0x892   :  { %v10071_v23 = vadd.f32 %v10070_v58, %v10030_v10 }
 0x8a6   :  { %v10702_v1 = vpop.f32.mrb[80].mxu1 }
 0x8a7   :  { %v10704_v5 = vpop.f32.mrb[81].mxu1 }
 0x8a8   :  { %v10706_v6 = vpop.f32.mrb[82].mxu1 }
 0x8a9   :  { %v10707_v8 = vpop.f32.mrb[83].mxu1 }
 0x8aa   :  { %v11532_v8 = vrot.slane %v11515_v31, %v17681_v39 }
 0x8ae   :  { %v10661_v19 = vpop.f32.mrb[80].mxu0 }
 0x8af   :  { %v10703_v22 = vadd.f32 %v10702_v1, %v10661_v19  ;;  %v10663_v51 = vpop.f32.mrb[81].mxu0 }
 0x8b0   :  { %v10705_v24 = vadd.f32 %v10704_v5, %v10663_v51  ;;  %v10665_v63 = vpop.f32.mrb[82].mxu0 }
 0x8b1   :  { %v10791_v61 = vadd.f32 %v10703_v22, %v17592_v52  ;;  %v10666_v45 = vpop.f32.mrb[83].mxu0 }
 0x8b2   :  { %v10792_v59 = vadd.f32 %v10705_v24, %v17594_v57 }
 0x8c6   :  { %v10784_v18 = vpop.f32.mrb[84].mxu0 }
 0x8c7   :  { %v10786_v49 = vpop.f32.mrb[85].mxu0 }
 0x8c8   :  { %v10788_v38 = vpop.f32.mrb[86].mxu0 }
 0x8c9   :  { %v10789_v52 = vpop.f32.mrb[87].mxu0 }
 0x8e6   :  { %v10743_v2 = vpop.f32.mrb[84].mxu1 }
 0x8e7   :  { %v10785_v57 = vadd.f32 %v10784_v18, %v10743_v2  ;;  %v10745_v53 = vpop.f32.mrb[85].mxu1 }
 0x8e8   :  { %v10787_v27 = vadd.f32 %v10786_v49, %v10745_v53  ;;  %v10747_v34 = vpop.f32.mrb[86].mxu1 }
 0x8e9   :  { %v10793_v41 = vadd.f32 %v10785_v57, %v10069_v54  ;;  %v10748_v58 = vpop.f32.mrb[87].mxu1 }
 0x8ea   :  { %v10794_v56 = vadd.f32 %v10787_v27, %v10071_v23 }
 0x8fe   :  { %v11422_v43 = vpop.f32.mrb[88].mxu1 }
 0x8ff   :  { %v11424_v29 = vpop.f32.mrb[89].mxu1 }
 0x900   :  { %v11426_v11 = vpop.f32.mrb[90].mxu1 }
 0x901   :  { %v11427_v4 = vpop.f32.mrb[91].mxu1 }
 0x906   :  { %v11381_v17 = vpop.f32.mrb[88].mxu0 }
 0x907   :  { %v11423_v3 = vadd.f32 %v11422_v43, %v11381_v17  ;;  %v11383_v44 = vpop.f32.mrb[89].mxu0 }
 0x908   :  { %v11425_v47 = vadd.f32 %v11424_v29, %v11383_v44  ;;  %v11385_v60 = vpop.f32.mrb[90].mxu0 }
 0x909   :  { %v11511_v21 = vadd.f32 %v11423_v3, %v10791_v61  ;;  %v11386_v14 = vpop.f32.mrb[91].mxu0 }
 0x90a   :  { %v11512_v26 = vadd.f32 %v11425_v47, %v10792_v59 }
 0x90b   :  { %v11537_v10 = vadd.f32 %v11520_v16, %v11511_v21 }
 0x90c   :  { %v11538_v33 = vadd.f32 %v11524_v28, %v11512_v26 }
 0x90d   :  { %v11541_v54 = vmax.f32 %v11537_v10, 0.0 }
 0x90e   :  { %v11542_v15 = vmax.f32 %v11538_v33, 0.0 }
 0x90f   :  { %v11545_v0 = vpack.c.bf16 %v11541_v54, %v11541_v54 }
 0x910   :  { %v11546_v23 = vpack.c.bf16 %v11542_v15, %v11542_v15 }
 0x912   :  { %11848 = vmatprep.mubr.bf16.mxu0 %v11546_v23 }
 0x913   :  { %11849 = vmatmul.mubr.bf16.vlgmr.msra.gmra.mrb[96].mxu0 %v11545_v0 }
 0x91e   :  { %v11504_v9 = vpop.f32.mrb[92].mxu0 }
 0x91f   :  { %v11506_v48 = vpop.f32.mrb[93].mxu0 }
 0x920   :  { %v11508_v35 = vpop.f32.mrb[94].mxu0 }
 0x921   :  { %v11509_v25 = vpop.f32.mrb[95].mxu0 }
 0x93e   :  { %v11463_v36 = vpop.f32.mrb[92].mxu1 }
 0x93f   :  { %v11505_v1 = vadd.f32 %v11504_v9, %v11463_v36  ;;  %v11465_v5 = vpop.f32.mrb[93].mxu1 }
 0x940   :  { %v11507_v6 = vadd.f32 %v11506_v48, %v11465_v5  ;;  %v11467_v7 = vpop.f32.mrb[94].mxu1 }
 0x941   :  { %v11513_v32 = vadd.f32 %v11505_v1, %v10793_v41  ;;  %v11468_v46 = vpop.f32.mrb[95].mxu1 }
 0x942   :  { %v11514_v19 = vadd.f32 %v11507_v6, %v10794_v56 }
 0x943   :  { %v11539_v22 = vadd.f32 %v11528_v55, %v11513_v32 }
 0x944   :  { %v11540_v51 = vadd.f32 %v11532_v8, %v11514_v19 }
 0x945   :  { %v11543_v24 = vmax.f32 %v11539_v22, 0.0 }
 0x946   :  { %v11544_v63 = vmax.f32 %v11540_v51, 0.0 }
 0x947   :  { %v11547_v61 = vpack.c.bf16 %v11543_v24, %v11543_v24 }
 0x948   :  { %v11548_v20 = vpack.c.bf16 %v11544_v63, %v11544_v63 }
 0x94a   :  { %13117 = vmatprep.mubr.msk.bf16.mxu1 %vm11808_vm9, %v11548_v20 }
 0x94b   :  { %11889 = vmatmul.mubr.bf16.vlgmr.msra.gmra.mrb[96].mxu1 %v11547_v61 }
 0x9e6   :  { %v13134_v45 = vpop.f32.mrb[96].mxu0 }
 0x9e7   :  { %v13135_v30 = vpop.f32.mrb[97].mxu0 }
 0x9e8   :  { %v13136_v59 = vadd.f32 %v13135_v30, %v13134_v45  ;;  %v13137_v62 = vpop.f32.mrb[98].mxu0 }
 0x9e9   :  { %v13138_v40 = vpop.f32.mrb[99].mxu0 }
 0x9ea   :  { %v11851_v18 = vadd.f32 %v13136_v59, %v13084_v13 }
 0xa1e   :  { %v13156_v42 = vpop.f32.mrb[96].mxu1 }
 0xa1f   :  { %v13157_v12 = vpop.f32.mrb[97].mxu1 }
 0xa20   :  { %v13158_v50 = vadd.f32 %v13157_v12, %v13156_v42  ;;  %v13159_v49 = vpop.f32.mrb[98].mxu1 }
 0xa21   :  { %v13160_v37 = vpop.f32.mrb[99].mxu1 }
 0xa22   :  { %v11891_v38 = vadd.f32 %v13158_v50, %v11851_v18 }
 0xa24   :  { %11896 = vst [vmem:[%s17619_s10] sm:$0xff] %v11891_v38 }
 0xa25   :  { %11901 = vsyncpa [#allocation3], 1 }
 0xa26   :  { %11902 = vsyncpa [#allocation5], 1 }
 0xa27   :  { %11903 = vsyncpa [#allocation8], 1 }
 0xa28   :  { %11904 = vsyncpa [#allocation11], 1 }
 0xa29   :  { %11905 = vsyncpa [#allocation14], 1 }

</bundles_post_ra>
